<compile_context>
chip_gen: v5e
topology: v5e:2x2
jax: 0.10.0
libtpu: 0.0.40
codegen_flags: <defaults>
</compile_context>

<pallas_src>
import jax
import jax.numpy as jnp
from jax.experimental import pallas as pl
from jax.experimental.pallas import tpu as pltpu

LATENT = 50                       # per-modality VAE latent dim
N_MODALITIES = 5
MERGED_PAD = 256                  # 5 * 50 = 250 rounded up to a lane-friendly K
LANE = 128


def _round_up(x, m):
    return ((x + m - 1) // m) * m


def deepdep_kernel(*refs):
    # refs layout:
    #   [0]        keep mask (scalar prefetch, SMEM, int32 (5,))
    #   [1..35]    5 x (x, w1, b1, w2, b2, wmu_packed, bmu_packed)
    #   [36..41]   wm1_packed (256,Dp), bm1 (1,Dp), wm2 (Dp,Dp), bm2 (1,Dp),
    #              wout_row (1,Dp), bout (1,1)
    #   [-2]       output block (TB, 1)
    #   [-1]       merged-mu scratch, VMEM (TB, 256) f32
    keep_ref = refs[0]
    out_ref = refs[-2]
    merged_ref = refs[-1]

    # Zero the packed-mu accumulator every grid step: dropped modalities'
    # slots (and the 250..255 pad lanes) must stay exactly 0.
    merged_ref[...] = jnp.zeros_like(merged_ref)

    idx = 1
    for m in range(N_MODALITIES):
        x_ref, w1_ref, b1_ref, w2_ref, b2_ref, wmu_ref, bmu_ref = refs[idx:idx + 7]
        idx += 7

        # Skip all three matmuls of a dropped modality.
        @pl.when(keep_ref[m] != 0)
        def _encode_modality(x_ref=x_ref, w1_ref=w1_ref, b1_ref=b1_ref,
                             w2_ref=w2_ref, b2_ref=b2_ref,
                             wmu_ref=wmu_ref, bmu_ref=bmu_ref):
            # bf16 MXU operands, f32 accumulation; bias add / ReLU stay f32.
            h = jnp.dot(x_ref[...], w1_ref[...],
                        preferred_element_type=jnp.float32)
            h = jnp.maximum(h + b1_ref[...], 0.0)
            h = jnp.dot(h.astype(jnp.bfloat16), w2_ref[...],
                        preferred_element_type=jnp.float32)
            h = jnp.maximum(h + b2_ref[...], 0.0)
            # wmu/bmu are packed to 256 columns with this modality's 50 real
            # columns at its slot -> full-width, aligned accumulate.
            merged_ref[...] += (
                jnp.dot(h.astype(jnp.bfloat16), wmu_ref[...],
                        preferred_element_type=jnp.float32) + bmu_ref[...])

    wm1_ref, bm1_ref, wm2_ref, bm2_ref, wout_ref, bout_ref = refs[idx:idx + 6]

    # Fused fc_merged1: a single (TB,256)@(256,Dp) MXU pass.
    h = jnp.dot(merged_ref[...].astype(jnp.bfloat16), wm1_ref[...],
                preferred_element_type=jnp.float32)
    h = jnp.maximum(h + bm1_ref[...], 0.0)
    h = jnp.dot(h.astype(jnp.bfloat16), wm2_ref[...],
                preferred_element_type=jnp.float32)
    h = jnp.maximum(h + bm2_ref[...], 0.0)
    # fc_out (N=1): f32 VPU multiply + XLU lane reduce instead of an MXU pass.
    out_ref[...] = (
        jnp.sum(h * wout_ref[...], axis=-1, keepdims=True) + bout_ref[...])


def _pack_params(params):
    """Pre-pack weights (bf16, lane-padded) at trace time, outside the kernel."""
    dense = params["wm2"].shape[0]
    dense_pad = _round_up(dense, LANE)
    bf = jnp.bfloat16

    enc_packed = []
    for m in range(N_MODALITIES):
        w1, b1, w2, b2, wmu, bmu = params["enc"][m]
        din, hid = w1.shape
        hid_pad = _round_up(hid, LANE)
        lo = m * LATENT
        w1_p = jnp.zeros((din, hid_pad), bf).at[:, :hid].set(w1.astype(bf))
        b1_p = jnp.zeros((1, hid_pad), jnp.float32).at[:, :hid].set(b1)
        w2_p = jnp.zeros((hid_pad, hid_pad), bf).at[:hid, :hid].set(w2.astype(bf))
        b2_p = jnp.zeros((1, hid_pad), jnp.float32).at[:, :hid].set(b2)
        wmu_p = (jnp.zeros((hid_pad, MERGED_PAD), bf)
                 .at[:hid, lo:lo + LATENT].set(wmu.astype(bf)))
        bmu_p = (jnp.zeros((1, MERGED_PAD), jnp.float32)
                 .at[:, lo:lo + LATENT].set(bmu))
        enc_packed.append((w1_p, b1_p, w2_p, b2_p, wmu_p, bmu_p))

    wm1_p = (jnp.zeros((MERGED_PAD, dense_pad), bf)
             .at[:N_MODALITIES * LATENT, :dense].set(params["wm1"].astype(bf)))
    bm1_p = jnp.zeros((1, dense_pad), jnp.float32).at[:, :dense].set(params["bm1"])
    wm2_p = (jnp.zeros((dense_pad, dense_pad), bf)
             .at[:dense, :dense].set(params["wm2"].astype(bf)))
    bm2_p = jnp.zeros((1, dense_pad), jnp.float32).at[:, :dense].set(params["bm2"])
    # fc_out weight stays f32: it feeds the VPU multiply / lane reduce, not the MXU.
    wout_row = (jnp.zeros((1, dense_pad), jnp.float32)
                .at[:, :dense].set(jnp.transpose(params["wout"])))
    merged_packed = (wm1_p, bm1_p, wm2_p, bm2_p, wout_row,
                     params["bout"].astype(jnp.float32))
    return enc_packed, merged_packed


def vae_deepdep_forward(params, mut, exp, cna, meth, fprint,
                        drop_mask=None, block_b=256, min_tiles=1):
    inputs = [mut, exp, cna, meth, fprint]
    B = mut.shape[0]

    if drop_mask is None:
        keep = jnp.ones((N_MODALITIES,), jnp.int32)
    else:
        keep = (1 - jnp.asarray(drop_mask, jnp.int32)).astype(jnp.int32)

    # Batch tile (multiple of 8 sublanes); pad B up and slice the result back.
    assert block_b % 8 == 0
    tb = min(block_b, _round_up(B, 8))
    if min_tiles > 1:  # e.g. v7x: keep both TensorCores busy on the parallel axis.
        tb = min(tb, max(8, _round_up(pl.cdiv(B, min_tiles), 8)))
    n_tiles = pl.cdiv(B, tb)
    bp = n_tiles * tb

    # bf16 activations at the call boundary: halves activation HBM->VMEM DMA.
    inputs = [x.astype(jnp.bfloat16) for x in inputs]
    if bp != B:
        inputs = [jnp.pad(x, ((0, bp - B), (0, 0))) for x in inputs]

    enc_packed, merged_packed = _pack_params(params)

    def build_and_call(weight_mode):
        def wspec(w):
            if weight_mode is None:
                return pl.BlockSpec(w.shape, lambda i, keep_ref: (0, 0))
            return pl.BlockSpec(w.shape, lambda i, keep_ref: (0, 0),
                                pipeline_mode=weight_mode)

        args = [keep]
        in_specs = []
        for m in range(N_MODALITIES):
            x = inputs[m]
            args.append(x)
            in_specs.append(pl.BlockSpec((tb, x.shape[1]),
                                         lambda i, keep_ref: (i, 0)))
            for w in enc_packed[m]:
                args.append(w)
                in_specs.append(wspec(w))
        for w in merged_packed:
            args.append(w)
            in_specs.append(wspec(w))

        # Scoped-VMEM budget from the actual footprint (+25% headroom).
        n_wbuf = 1 if weight_mode is not None else 2
        weight_bytes = sum(int(w.size) * w.dtype.itemsize
                           for t in enc_packed for w in t)
        weight_bytes += sum(int(w.size) * w.dtype.itemsize for w in merged_packed)
        act_bytes = sum(2 * tb * x.shape[1] * x.dtype.itemsize for x in inputs)
        out_bytes = 2 * tb * 4
        scratch_bytes = tb * MERGED_PAD * 4
        vmem_limit = int(1.25 * (n_wbuf * weight_bytes + act_bytes
                                 + out_bytes + scratch_bytes))
        vmem_limit = min(max(vmem_limit, 16 << 20), 128 << 20)

        return pl.pallas_call(
            deepdep_kernel,
            out_shape=jax.ShapeDtypeStruct((bp, 1), jnp.float32),
            grid_spec=pltpu.PrefetchScalarGridSpec(
                num_scalar_prefetch=1,
                grid=(n_tiles,),
                in_specs=in_specs,
                out_specs=pl.BlockSpec((tb, 1), lambda i, keep_ref: (i, 0)),
                scratch_shapes=[pltpu.VMEM((tb, MERGED_PAD), jnp.float32)],
            ),
            compiler_params=pltpu.CompilerParams(
                dimension_semantics=("parallel",),
                vmem_limit_bytes=vmem_limit),
        )(*args)

    try:
        out = jax.block_until_ready(build_and_call(pl.Buffered(1)))
    except Exception:
        # Fallback: some jax builds reject single-buffered top-level BlockSpecs.
        out = build_and_call(None)
    return out[:B]


def init_params(key, in_dims, hid, dense):
    params = {"enc": []}
    keys = jax.random.split(key, N_MODALITIES + 1)
    for m, din in enumerate(in_dims):
        k = jax.random.split(keys[m], 6)
        params["enc"].append((
            jax.random.normal(k[0], (din, hid), jnp.float32) * 0.1,
            jax.random.normal(k[1], (1, hid), jnp.float32) * 0.01,
            jax.random.normal(k[2], (hid, hid), jnp.float32) * 0.1,
            jax.random.normal(k[3], (1, hid), jnp.float32) * 0.01,
            jax.random.normal(k[4], (hid, LATENT), jnp.float32) * 0.1,
            jax.random.normal(k[5], (1, LATENT), jnp.float32) * 0.01,
        ))
    k = jax.random.split(keys[-1], 6)
    params["wm1"] = jax.random.normal(k[0], (N_MODALITIES * LATENT, dense), jnp.float32) * 0.1
    params["bm1"] = jax.random.normal(k[1], (1, dense), jnp.float32) * 0.01
    params["wm2"] = jax.random.normal(k[2], (dense, dense), jnp.float32) * 0.1
    params["bm2"] = jax.random.normal(k[3], (1, dense), jnp.float32) * 0.01
    params["wout"] = jax.random.normal(k[4], (dense, 1), jnp.float32) * 0.1
    params["bout"] = jax.random.normal(k[5], (1, 1), jnp.float32) * 0.01
    return params


def ref_forward(params, mut, exp, cna, meth, fprint, drop_mask=None):
    """Pure-JAX reference mirroring the PyTorch forward (mu path only),
    emulating the kernel's bf16-operand / f32-accumulate MXU numerics."""
    inputs = [mut, exp, cna, meth, fprint]
    keep = (jnp.ones((N_MODALITIES,), jnp.float32) if drop_mask is None
            else 1.0 - jnp.asarray(drop_mask, jnp.float32))

    def mm(a, w):
        return jnp.dot(a.astype(jnp.bfloat16), w.astype(jnp.bfloat16),
                       preferred_element_type=jnp.float32)

    mus = []
    for m in range(N_MODALITIES):
        w1, b1, w2, b2, wmu, bmu = params["enc"][m]
        h = jax.nn.relu(mm(inputs[m], w1) + b1)
        h = jax.nn.relu(mm(h, w2) + b2)
        mus.append((mm(h, wmu) + bmu) * keep[m])
    merged = jnp.concatenate(mus, axis=1)                       # (B, 250)
    h = jax.nn.relu(mm(merged, params["wm1"]) + params["bm1"])
    h = jax.nn.relu(mm(h, params["wm2"]) + params["bm2"])
    return h @ params["wout"] + params["bout"]                  # fc_out stays f32


if __name__ == "__main__":
    key = jax.random.PRNGKey(0)
    kp, kx = jax.random.split(key)

    B = 12                           # deliberately NOT a multiple of the batch tile
    in_dims = (40, 48, 56, 32, 64)   # mut, exp, cna, meth, fprint feature dims (small)
    hid = 32                         # VAE encoder hidden width
    dense = 64                       # dense_layer_dim

    params = init_params(kp, in_dims, hid, dense)
    xkeys = jax.random.split(kx, N_MODALITIES)
    mut, exp, cna, meth, fprint = [
        jax.random.normal(xkeys[i], (B, in_dims[i]), jnp.float32)
        for i in range(N_MODALITIES)
    ]

    # Case 1: drop the expression modality; small tile to exercise the batch grid.
    drop_mask = [0, 1, 0, 0, 0]
    out = vae_deepdep_forward(params, mut, exp, cna, meth, fprint, drop_mask,
                              block_b=8)
    out = jax.block_until_ready(out)
    ref = ref_forward(params, mut, exp, cna, meth, fprint, drop_mask)
    assert out.shape == (B, 1), out.shape
    assert jnp.allclose(out, ref, rtol=5e-3, atol=1e-3), (out, ref)

    # Case 2: no drop mask; default (large) batch tile.
    out2 = vae_deepdep_forward(params, mut, exp, cna, meth, fprint, None)
    out2 = jax.block_until_ready(out2)
    ref2 = ref_forward(params, mut, exp, cna, meth, fprint, None)
    assert jnp.allclose(out2, ref2, rtol=5e-3, atol=1e-3), (out2, ref2)

    print("KERNEL_OK")
</pallas_src>

<mosaic_0001>
module attributes {stable_mosaic.version = 11 : i64} {
  func.func @deepdep_kernel(%arg0: i32, %arg1: memref<5xi32, #tpu.memory_space<smem>>, %arg2: memref<8x40xbf16, #tpu.memory_space<vmem>>, %arg3: memref<40x128xbf16, #tpu.memory_space<vmem>>, %arg4: memref<1x128xf32, #tpu.memory_space<vmem>>, %arg5: memref<128x128xbf16, #tpu.memory_space<vmem>>, %arg6: memref<1x128xf32, #tpu.memory_space<vmem>>, %arg7: memref<128x256xbf16, #tpu.memory_space<vmem>>, %arg8: memref<1x256xf32, #tpu.memory_space<vmem>>, %arg9: memref<8x48xbf16, #tpu.memory_space<vmem>>, %arg10: memref<48x128xbf16, #tpu.memory_space<vmem>>, %arg11: memref<1x128xf32, #tpu.memory_space<vmem>>, %arg12: memref<128x128xbf16, #tpu.memory_space<vmem>>, %arg13: memref<1x128xf32, #tpu.memory_space<vmem>>, %arg14: memref<128x256xbf16, #tpu.memory_space<vmem>>, %arg15: memref<1x256xf32, #tpu.memory_space<vmem>>, %arg16: memref<8x56xbf16, #tpu.memory_space<vmem>>, %arg17: memref<56x128xbf16, #tpu.memory_space<vmem>>, %arg18: memref<1x128xf32, #tpu.memory_space<vmem>>, %arg19: memref<128x128xbf16, #tpu.memory_space<vmem>>, %arg20: memref<1x128xf32, #tpu.memory_space<vmem>>, %arg21: memref<128x256xbf16, #tpu.memory_space<vmem>>, %arg22: memref<1x256xf32, #tpu.memory_space<vmem>>, %arg23: memref<8x32xbf16, #tpu.memory_space<vmem>>, %arg24: memref<32x128xbf16, #tpu.memory_space<vmem>>, %arg25: memref<1x128xf32, #tpu.memory_space<vmem>>, %arg26: memref<128x128xbf16, #tpu.memory_space<vmem>>, %arg27: memref<1x128xf32, #tpu.memory_space<vmem>>, %arg28: memref<128x256xbf16, #tpu.memory_space<vmem>>, %arg29: memref<1x256xf32, #tpu.memory_space<vmem>>, %arg30: memref<8x64xbf16, #tpu.memory_space<vmem>>, %arg31: memref<64x128xbf16, #tpu.memory_space<vmem>>, %arg32: memref<1x128xf32, #tpu.memory_space<vmem>>, %arg33: memref<128x128xbf16, #tpu.memory_space<vmem>>, %arg34: memref<1x128xf32, #tpu.memory_space<vmem>>, %arg35: memref<128x256xbf16, #tpu.memory_space<vmem>>, %arg36: memref<1x256xf32, #tpu.memory_space<vmem>>, %arg37: memref<256x128xbf16, #tpu.memory_space<vmem>>, %arg38: memref<1x128xf32, #tpu.memory_space<vmem>>, %arg39: memref<128x128xbf16, #tpu.memory_space<vmem>>, %arg40: memref<1x128xf32, #tpu.memory_space<vmem>>, %arg41: memref<1x128xf32, #tpu.memory_space<vmem>>, %arg42: memref<1x1xf32, #tpu.memory_space<vmem>>, %arg43: memref<8x1xf32, #tpu.memory_space<vmem>>, %arg44: memref<8x256xf32, #tpu.memory_space<vmem>>) attributes {dimension_semantics = [#tpu.dimension_semantics<parallel>], iteration_bounds = array<i64: 2>, scalar_prefetch = 1 : i64, scratch_operands = 1 : i64, tpu.core_type = #tpu.core_type<tc>, window_params = [{transform_indices = @transform_0, window_bounds = array<i64: 8, 40>}, {pipeline_mode = #tpu.pipeline_mode<synchronous>, transform_indices = @transform_1, window_bounds = array<i64: 40, 128>}, {pipeline_mode = #tpu.pipeline_mode<synchronous>, transform_indices = @transform_2, window_bounds = array<i64: 1, 128>}, {pipeline_mode = #tpu.pipeline_mode<synchronous>, transform_indices = @transform_3, window_bounds = array<i64: 128, 128>}, {pipeline_mode = #tpu.pipeline_mode<synchronous>, transform_indices = @transform_4, window_bounds = array<i64: 1, 128>}, {pipeline_mode = #tpu.pipeline_mode<synchronous>, transform_indices = @transform_5, window_bounds = array<i64: 128, 256>}, {pipeline_mode = #tpu.pipeline_mode<synchronous>, transform_indices = @transform_6, window_bounds = array<i64: 1, 256>}, {transform_indices = @transform_7, window_bounds = array<i64: 8, 48>}, {pipeline_mode = #tpu.pipeline_mode<synchronous>, transform_indices = @transform_8, window_bounds = array<i64: 48, 128>}, {pipeline_mode = #tpu.pipeline_mode<synchronous>, transform_indices = @transform_9, window_bounds = array<i64: 1, 128>}, {pipeline_mode = #tpu.pipeline_mode<synchronous>, transform_indices = @transform_10, window_bounds = array<i64: 128, 128>}, {pipeline_mode = #tpu.pipeline_mode<synchronous>, transform_indices = @transform_11, window_bounds = array<i64: 1, 128>}, {pipeline_mode = #tpu.pipeline_mode<synchronous>, transform_indices = @transform_12, window_bounds = array<i64: 128, 256>}, {pipeline_mode = #tpu.pipeline_mode<synchronous>, transform_indices = @transform_13, window_bounds = array<i64: 1, 256>}, {transform_indices = @transform_14, window_bounds = array<i64: 8, 56>}, {pipeline_mode = #tpu.pipeline_mode<synchronous>, transform_indices = @transform_15, window_bounds = array<i64: 56, 128>}, {pipeline_mode = #tpu.pipeline_mode<synchronous>, transform_indices = @transform_16, window_bounds = array<i64: 1, 128>}, {pipeline_mode = #tpu.pipeline_mode<synchronous>, transform_indices = @transform_17, window_bounds = array<i64: 128, 128>}, {pipeline_mode = #tpu.pipeline_mode<synchronous>, transform_indices = @transform_18, window_bounds = array<i64: 1, 128>}, {pipeline_mode = #tpu.pipeline_mode<synchronous>, transform_indices = @transform_19, window_bounds = array<i64: 128, 256>}, {pipeline_mode = #tpu.pipeline_mode<synchronous>, transform_indices = @transform_20, window_bounds = array<i64: 1, 256>}, {transform_indices = @transform_21, window_bounds = array<i64: 8, 32>}, {pipeline_mode = #tpu.pipeline_mode<synchronous>, transform_indices = @transform_22, window_bounds = array<i64: 32, 128>}, {pipeline_mode = #tpu.pipeline_mode<synchronous>, transform_indices = @transform_23, window_bounds = array<i64: 1, 128>}, {pipeline_mode = #tpu.pipeline_mode<synchronous>, transform_indices = @transform_24, window_bounds = array<i64: 128, 128>}, {pipeline_mode = #tpu.pipeline_mode<synchronous>, transform_indices = @transform_25, window_bounds = array<i64: 1, 128>}, {pipeline_mode = #tpu.pipeline_mode<synchronous>, transform_indices = @transform_26, window_bounds = array<i64: 128, 256>}, {pipeline_mode = #tpu.pipeline_mode<synchronous>, transform_indices = @transform_27, window_bounds = array<i64: 1, 256>}, {transform_indices = @transform_28, window_bounds = array<i64: 8, 64>}, {pipeline_mode = #tpu.pipeline_mode<synchronous>, transform_indices = @transform_29, window_bounds = array<i64: 64, 128>}, {pipeline_mode = #tpu.pipeline_mode<synchronous>, transform_indices = @transform_30, window_bounds = array<i64: 1, 128>}, {pipeline_mode = #tpu.pipeline_mode<synchronous>, transform_indices = @transform_31, window_bounds = array<i64: 128, 128>}, {pipeline_mode = #tpu.pipeline_mode<synchronous>, transform_indices = @transform_32, window_bounds = array<i64: 1, 128>}, {pipeline_mode = #tpu.pipeline_mode<synchronous>, transform_indices = @transform_33, window_bounds = array<i64: 128, 256>}, {pipeline_mode = #tpu.pipeline_mode<synchronous>, transform_indices = @transform_34, window_bounds = array<i64: 1, 256>}, {pipeline_mode = #tpu.pipeline_mode<synchronous>, transform_indices = @transform_35, window_bounds = array<i64: 256, 128>}, {pipeline_mode = #tpu.pipeline_mode<synchronous>, transform_indices = @transform_36, window_bounds = array<i64: 1, 128>}, {pipeline_mode = #tpu.pipeline_mode<synchronous>, transform_indices = @transform_37, window_bounds = array<i64: 128, 128>}, {pipeline_mode = #tpu.pipeline_mode<synchronous>, transform_indices = @transform_38, window_bounds = array<i64: 1, 128>}, {pipeline_mode = #tpu.pipeline_mode<synchronous>, transform_indices = @transform_39, window_bounds = array<i64: 1, 128>}, {pipeline_mode = #tpu.pipeline_mode<synchronous>, transform_indices = @transform_40, window_bounds = array<i64: 1, 1>}, {transform_indices = @transform_41, window_bounds = array<i64: 8, 1>}]} {
    %cst = arith.constant 0.000000e+00 : f32
    %0 = vector.broadcast %cst : f32 to vector<8x256xf32>
    %c0 = arith.constant 0 : index
    %c0_0 = arith.constant 0 : index
    %1 = vector.load %arg44[%c0, %c0_0] : memref<8x256xf32, #tpu.memory_space<vmem>>, vector<8x256xf32>
    tpu.vector_store %arg44[%c0, %c0_0], %0 {strides = array<i32>} : memref<8x256xf32, #tpu.memory_space<vmem>>, vector<8x256xf32>,
    %c0_1 = arith.constant 0 : index
    %2 = memref.load %arg1[%c0_1] : memref<5xi32, #tpu.memory_space<smem>>
    %c0_i32 = arith.constant 0 : i32
    %3 = arith.cmpi ne, %2, %c0_i32 : i32
    %4 = arith.extui %3 : i1 to i32
    %c0_i32_2 = arith.constant 0 : i32
    %5 = arith.cmpi ne, %4, %c0_i32_2 : i32
    scf.if %5 {
      %c0_32 = arith.constant 0 : index
      %c0_33 = arith.constant 0 : index
      %48 = vector.load %arg2[%c0_32, %c0_33] : memref<8x40xbf16, #tpu.memory_space<vmem>>, vector<8x40xbf16>
      %c0_34 = arith.constant 0 : index
      %c0_35 = arith.constant 0 : index
      %49 = vector.load %arg3[%c0_34, %c0_35] : memref<40x128xbf16, #tpu.memory_space<vmem>>, vector<40x128xbf16>
      %cst_36 = arith.constant dense<0.000000e+00> : vector<8x128xf32>
      %50 = tpu.matmul %48, %49, %cst_36 {dimension_numbers = #tpu.dot_dimension_numbers<[1], [0], [0], [1], [0, 0, 1, 1], [], []>} : vector<8x40xbf16>, vector<40x128xbf16>, vector<8x128xf32> -> vector<8x128xf32>
      %c0_37 = arith.constant 0 : index
      %c0_38 = arith.constant 0 : index
      %51 = vector.load %arg4[%c0_37, %c0_38] : memref<1x128xf32, #tpu.memory_space<vmem>>, vector<1x128xf32>
      %52 = vector.broadcast %51 : vector<1x128xf32> to vector<8x128xf32>
      %53 = arith.addf %50, %52 : vector<8x128xf32>
      %cst_39 = arith.constant 0.000000e+00 : f32
      %54 = vector.broadcast %cst_39 : f32 to vector<8x128xf32>
      %55 = arith.maximumf %53, %54 : vector<8x128xf32>
      %56 = arith.truncf %55 : vector<8x128xf32> to vector<8x128xbf16>
      %c0_40 = arith.constant 0 : index
      %c0_41 = arith.constant 0 : index
      %57 = vector.load %arg5[%c0_40, %c0_41] : memref<128x128xbf16, #tpu.memory_space<vmem>>, vector<128x128xbf16>
      %cst_42 = arith.constant dense<0.000000e+00> : vector<8x128xf32>
      %58 = tpu.matmul %56, %57, %cst_42 {dimension_numbers = #tpu.dot_dimension_numbers<[1], [0], [0], [1], [0, 0, 1, 1], [], []>} : vector<8x128xbf16>, vector<128x128xbf16>, vector<8x128xf32> -> vector<8x128xf32>
      %c0_43 = arith.constant 0 : index
      %c0_44 = arith.constant 0 : index
      %59 = vector.load %arg6[%c0_43, %c0_44] : memref<1x128xf32, #tpu.memory_space<vmem>>, vector<1x128xf32>
      %60 = vector.broadcast %59 : vector<1x128xf32> to vector<8x128xf32>
      %61 = arith.addf %58, %60 : vector<8x128xf32>
      %cst_45 = arith.constant 0.000000e+00 : f32
      %62 = vector.broadcast %cst_45 : f32 to vector<8x128xf32>
      %63 = arith.maximumf %61, %62 : vector<8x128xf32>
      %c0_46 = arith.constant 0 : index
      %c0_47 = arith.constant 0 : index
      %64 = vector.load %arg44[%c0_46, %c0_47] : memref<8x256xf32, #tpu.memory_space<vmem>>, vector<8x256xf32>
      %65 = arith.truncf %63 : vector<8x128xf32> to vector<8x128xbf16>
      %c0_48 = arith.constant 0 : index
      %c0_49 = arith.constant 0 : index
      %66 = vector.load %arg7[%c0_48, %c0_49] : memref<128x256xbf16, #tpu.memory_space<vmem>>, vector<128x256xbf16>
      %cst_50 = arith.constant dense<0.000000e+00> : vector<8x256xf32>
      %67 = tpu.matmul %65, %66, %cst_50 {dimension_numbers = #tpu.dot_dimension_numbers<[1], [0], [0], [1], [0, 0, 1, 1], [], []>} : vector<8x128xbf16>, vector<128x256xbf16>, vector<8x256xf32> -> vector<8x256xf32>
      %c0_51 = arith.constant 0 : index
      %c0_52 = arith.constant 0 : index
      %68 = vector.load %arg8[%c0_51, %c0_52] : memref<1x256xf32, #tpu.memory_space<vmem>>, vector<1x256xf32>
      %69 = vector.broadcast %68 : vector<1x256xf32> to vector<8x256xf32>
      %70 = arith.addf %67, %69 : vector<8x256xf32>
      %71 = arith.addf %64, %70 : vector<8x256xf32>
      %c0_53 = arith.constant 0 : index
      %c0_54 = arith.constant 0 : index
      %72 = vector.load %arg44[%c0_53, %c0_54] : memref<8x256xf32, #tpu.memory_space<vmem>>, vector<8x256xf32>
      tpu.vector_store %arg44[%c0_53, %c0_54], %71 {strides = array<i32>} : memref<8x256xf32, #tpu.memory_space<vmem>>, vector<8x256xf32>,
    } else {
    }
    %c1 = arith.constant 1 : index
    %6 = memref.load %arg1[%c1] : memref<5xi32, #tpu.memory_space<smem>>
    %c0_i32_3 = arith.constant 0 : i32
    %7 = arith.cmpi ne, %6, %c0_i32_3 : i32
    %8 = arith.extui %7 : i1 to i32
    %c0_i32_4 = arith.constant 0 : i32
    %9 = arith.cmpi ne, %8, %c0_i32_4 : i32
    scf.if %9 {
      %c0_32 = arith.constant 0 : index
      %c0_33 = arith.constant 0 : index
      %48 = vector.load %arg9[%c0_32, %c0_33] : memref<8x48xbf16, #tpu.memory_space<vmem>>, vector<8x48xbf16>
      %c0_34 = arith.constant 0 : index
      %c0_35 = arith.constant 0 : index
      %49 = vector.load %arg10[%c0_34, %c0_35] : memref<48x128xbf16, #tpu.memory_space<vmem>>, vector<48x128xbf16>
      %cst_36 = arith.constant dense<0.000000e+00> : vector<8x128xf32>
      %50 = tpu.matmul %48, %49, %cst_36 {dimension_numbers = #tpu.dot_dimension_numbers<[1], [0], [0], [1], [0, 0, 1, 1], [], []>} : vector<8x48xbf16>, vector<48x128xbf16>, vector<8x128xf32> -> vector<8x128xf32>
      %c0_37 = arith.constant 0 : index
      %c0_38 = arith.constant 0 : index
      %51 = vector.load %arg11[%c0_37, %c0_38] : memref<1x128xf32, #tpu.memory_space<vmem>>, vector<1x128xf32>
      %52 = vector.broadcast %51 : vector<1x128xf32> to vector<8x128xf32>
      %53 = arith.addf %50, %52 : vector<8x128xf32>
      %cst_39 = arith.constant 0.000000e+00 : f32
      %54 = vector.broadcast %cst_39 : f32 to vector<8x128xf32>
      %55 = arith.maximumf %53, %54 : vector<8x128xf32>
      %56 = arith.truncf %55 : vector<8x128xf32> to vector<8x128xbf16>
      %c0_40 = arith.constant 0 : index
      %c0_41 = arith.constant 0 : index
      %57 = vector.load %arg12[%c0_40, %c0_41] : memref<128x128xbf16, #tpu.memory_space<vmem>>, vector<128x128xbf16>
      %cst_42 = arith.constant dense<0.000000e+00> : vector<8x128xf32>
      %58 = tpu.matmul %56, %57, %cst_42 {dimension_numbers = #tpu.dot_dimension_numbers<[1], [0], [0], [1], [0, 0, 1, 1], [], []>} : vector<8x128xbf16>, vector<128x128xbf16>, vector<8x128xf32> -> vector<8x128xf32>
      %c0_43 = arith.constant 0 : index
      %c0_44 = arith.constant 0 : index
      %59 = vector.load %arg13[%c0_43, %c0_44] : memref<1x128xf32, #tpu.memory_space<vmem>>, vector<1x128xf32>
      %60 = vector.broadcast %59 : vector<1x128xf32> to vector<8x128xf32>
      %61 = arith.addf %58, %60 : vector<8x128xf32>
      %cst_45 = arith.constant 0.000000e+00 : f32
      %62 = vector.broadcast %cst_45 : f32 to vector<8x128xf32>
      %63 = arith.maximumf %61, %62 : vector<8x128xf32>
      %c0_46 = arith.constant 0 : index
      %c0_47 = arith.constant 0 : index
      %64 = vector.load %arg44[%c0_46, %c0_47] : memref<8x256xf32, #tpu.memory_space<vmem>>, vector<8x256xf32>
      %65 = arith.truncf %63 : vector<8x128xf32> to vector<8x128xbf16>
      %c0_48 = arith.constant 0 : index
      %c0_49 = arith.constant 0 : index
      %66 = vector.load %arg14[%c0_48, %c0_49] : memref<128x256xbf16, #tpu.memory_space<vmem>>, vector<128x256xbf16>
      %cst_50 = arith.constant dense<0.000000e+00> : vector<8x256xf32>
      %67 = tpu.matmul %65, %66, %cst_50 {dimension_numbers = #tpu.dot_dimension_numbers<[1], [0], [0], [1], [0, 0, 1, 1], [], []>} : vector<8x128xbf16>, vector<128x256xbf16>, vector<8x256xf32> -> vector<8x256xf32>
      %c0_51 = arith.constant 0 : index
      %c0_52 = arith.constant 0 : index
      %68 = vector.load %arg15[%c0_51, %c0_52] : memref<1x256xf32, #tpu.memory_space<vmem>>, vector<1x256xf32>
      %69 = vector.broadcast %68 : vector<1x256xf32> to vector<8x256xf32>
      %70 = arith.addf %67, %69 : vector<8x256xf32>
      %71 = arith.addf %64, %70 : vector<8x256xf32>
      %c0_53 = arith.constant 0 : index
      %c0_54 = arith.constant 0 : index
      %72 = vector.load %arg44[%c0_53, %c0_54] : memref<8x256xf32, #tpu.memory_space<vmem>>, vector<8x256xf32>
      tpu.vector_store %arg44[%c0_53, %c0_54], %71 {strides = array<i32>} : memref<8x256xf32, #tpu.memory_space<vmem>>, vector<8x256xf32>,
    } else {
    }
    %c2 = arith.constant 2 : index
    %10 = memref.load %arg1[%c2] : memref<5xi32, #tpu.memory_space<smem>>
    %c0_i32_5 = arith.constant 0 : i32
    %11 = arith.cmpi ne, %10, %c0_i32_5 : i32
    %12 = arith.extui %11 : i1 to i32
    %c0_i32_6 = arith.constant 0 : i32
    %13 = arith.cmpi ne, %12, %c0_i32_6 : i32
    scf.if %13 {
      %c0_32 = arith.constant 0 : index
      %c0_33 = arith.constant 0 : index
      %48 = vector.load %arg16[%c0_32, %c0_33] : memref<8x56xbf16, #tpu.memory_space<vmem>>, vector<8x56xbf16>
      %c0_34 = arith.constant 0 : index
      %c0_35 = arith.constant 0 : index
      %49 = vector.load %arg17[%c0_34, %c0_35] : memref<56x128xbf16, #tpu.memory_space<vmem>>, vector<56x128xbf16>
      %cst_36 = arith.constant dense<0.000000e+00> : vector<8x128xf32>
      %50 = tpu.matmul %48, %49, %cst_36 {dimension_numbers = #tpu.dot_dimension_numbers<[1], [0], [0], [1], [0, 0, 1, 1], [], []>} : vector<8x56xbf16>, vector<56x128xbf16>, vector<8x128xf32> -> vector<8x128xf32>
      %c0_37 = arith.constant 0 : index
      %c0_38 = arith.constant 0 : index
      %51 = vector.load %arg18[%c0_37, %c0_38] : memref<1x128xf32, #tpu.memory_space<vmem>>, vector<1x128xf32>
      %52 = vector.broadcast %51 : vector<1x128xf32> to vector<8x128xf32>
      %53 = arith.addf %50, %52 : vector<8x128xf32>
      %cst_39 = arith.constant 0.000000e+00 : f32
      %54 = vector.broadcast %cst_39 : f32 to vector<8x128xf32>
      %55 = arith.maximumf %53, %54 : vector<8x128xf32>
      %56 = arith.truncf %55 : vector<8x128xf32> to vector<8x128xbf16>
      %c0_40 = arith.constant 0 : index
      %c0_41 = arith.constant 0 : index
      %57 = vector.load %arg19[%c0_40, %c0_41] : memref<128x128xbf16, #tpu.memory_space<vmem>>, vector<128x128xbf16>
      %cst_42 = arith.constant dense<0.000000e+00> : vector<8x128xf32>
      %58 = tpu.matmul %56, %57, %cst_42 {dimension_numbers = #tpu.dot_dimension_numbers<[1], [0], [0], [1], [0, 0, 1, 1], [], []>} : vector<8x128xbf16>, vector<128x128xbf16>, vector<8x128xf32> -> vector<8x128xf32>
      %c0_43 = arith.constant 0 : index
      %c0_44 = arith.constant 0 : index
      %59 = vector.load %arg20[%c0_43, %c0_44] : memref<1x128xf32, #tpu.memory_space<vmem>>, vector<1x128xf32>
      %60 = vector.broadcast %59 : vector<1x128xf32> to vector<8x128xf32>
      %61 = arith.addf %58, %60 : vector<8x128xf32>
      %cst_45 = arith.constant 0.000000e+00 : f32
      %62 = vector.broadcast %cst_45 : f32 to vector<8x128xf32>
      %63 = arith.maximumf %61, %62 : vector<8x128xf32>
      %c0_46 = arith.constant 0 : index
      %c0_47 = arith.constant 0 : index
      %64 = vector.load %arg44[%c0_46, %c0_47] : memref<8x256xf32, #tpu.memory_space<vmem>>, vector<8x256xf32>
      %65 = arith.truncf %63 : vector<8x128xf32> to vector<8x128xbf16>
      %c0_48 = arith.constant 0 : index
      %c0_49 = arith.constant 0 : index
      %66 = vector.load %arg21[%c0_48, %c0_49] : memref<128x256xbf16, #tpu.memory_space<vmem>>, vector<128x256xbf16>
      %cst_50 = arith.constant dense<0.000000e+00> : vector<8x256xf32>
      %67 = tpu.matmul %65, %66, %cst_50 {dimension_numbers = #tpu.dot_dimension_numbers<[1], [0], [0], [1], [0, 0, 1, 1], [], []>} : vector<8x128xbf16>, vector<128x256xbf16>, vector<8x256xf32> -> vector<8x256xf32>
      %c0_51 = arith.constant 0 : index
      %c0_52 = arith.constant 0 : index
      %68 = vector.load %arg22[%c0_51, %c0_52] : memref<1x256xf32, #tpu.memory_space<vmem>>, vector<1x256xf32>
      %69 = vector.broadcast %68 : vector<1x256xf32> to vector<8x256xf32>
      %70 = arith.addf %67, %69 : vector<8x256xf32>
      %71 = arith.addf %64, %70 : vector<8x256xf32>
      %c0_53 = arith.constant 0 : index
      %c0_54 = arith.constant 0 : index
      %72 = vector.load %arg44[%c0_53, %c0_54] : memref<8x256xf32, #tpu.memory_space<vmem>>, vector<8x256xf32>
      tpu.vector_store %arg44[%c0_53, %c0_54], %71 {strides = array<i32>} : memref<8x256xf32, #tpu.memory_space<vmem>>, vector<8x256xf32>,
    } else {
    }
    %c3 = arith.constant 3 : index
    %14 = memref.load %arg1[%c3] : memref<5xi32, #tpu.memory_space<smem>>
    %c0_i32_7 = arith.constant 0 : i32
    %15 = arith.cmpi ne, %14, %c0_i32_7 : i32
    %16 = arith.extui %15 : i1 to i32
    %c0_i32_8 = arith.constant 0 : i32
    %17 = arith.cmpi ne, %16, %c0_i32_8 : i32
    scf.if %17 {
      %c0_32 = arith.constant 0 : index
      %c0_33 = arith.constant 0 : index
      %48 = vector.load %arg23[%c0_32, %c0_33] : memref<8x32xbf16, #tpu.memory_space<vmem>>, vector<8x32xbf16>
      %c0_34 = arith.constant 0 : index
      %c0_35 = arith.constant 0 : index
      %49 = vector.load %arg24[%c0_34, %c0_35] : memref<32x128xbf16, #tpu.memory_space<vmem>>, vector<32x128xbf16>
      %cst_36 = arith.constant dense<0.000000e+00> : vector<8x128xf32>
      %50 = tpu.matmul %48, %49, %cst_36 {dimension_numbers = #tpu.dot_dimension_numbers<[1], [0], [0], [1], [0, 0, 1, 1], [], []>} : vector<8x32xbf16>, vector<32x128xbf16>, vector<8x128xf32> -> vector<8x128xf32>
      %c0_37 = arith.constant 0 : index
      %c0_38 = arith.constant 0 : index
      %51 = vector.load %arg25[%c0_37, %c0_38] : memref<1x128xf32, #tpu.memory_space<vmem>>, vector<1x128xf32>
      %52 = vector.broadcast %51 : vector<1x128xf32> to vector<8x128xf32>
      %53 = arith.addf %50, %52 : vector<8x128xf32>
      %cst_39 = arith.constant 0.000000e+00 : f32
      %54 = vector.broadcast %cst_39 : f32 to vector<8x128xf32>
      %55 = arith.maximumf %53, %54 : vector<8x128xf32>
      %56 = arith.truncf %55 : vector<8x128xf32> to vector<8x128xbf16>
      %c0_40 = arith.constant 0 : index
      %c0_41 = arith.constant 0 : index
      %57 = vector.load %arg26[%c0_40, %c0_41] : memref<128x128xbf16, #tpu.memory_space<vmem>>, vector<128x128xbf16>
      %cst_42 = arith.constant dense<0.000000e+00> : vector<8x128xf32>
      %58 = tpu.matmul %56, %57, %cst_42 {dimension_numbers = #tpu.dot_dimension_numbers<[1], [0], [0], [1], [0, 0, 1, 1], [], []>} : vector<8x128xbf16>, vector<128x128xbf16>, vector<8x128xf32> -> vector<8x128xf32>
      %c0_43 = arith.constant 0 : index
      %c0_44 = arith.constant 0 : index
      %59 = vector.load %arg27[%c0_43, %c0_44] : memref<1x128xf32, #tpu.memory_space<vmem>>, vector<1x128xf32>
      %60 = vector.broadcast %59 : vector<1x128xf32> to vector<8x128xf32>
      %61 = arith.addf %58, %60 : vector<8x128xf32>
      %cst_45 = arith.constant 0.000000e+00 : f32
      %62 = vector.broadcast %cst_45 : f32 to vector<8x128xf32>
      %63 = arith.maximumf %61, %62 : vector<8x128xf32>
      %c0_46 = arith.constant 0 : index
      %c0_47 = arith.constant 0 : index
      %64 = vector.load %arg44[%c0_46, %c0_47] : memref<8x256xf32, #tpu.memory_space<vmem>>, vector<8x256xf32>
      %65 = arith.truncf %63 : vector<8x128xf32> to vector<8x128xbf16>
      %c0_48 = arith.constant 0 : index
      %c0_49 = arith.constant 0 : index
      %66 = vector.load %arg28[%c0_48, %c0_49] : memref<128x256xbf16, #tpu.memory_space<vmem>>, vector<128x256xbf16>
      %cst_50 = arith.constant dense<0.000000e+00> : vector<8x256xf32>
      %67 = tpu.matmul %65, %66, %cst_50 {dimension_numbers = #tpu.dot_dimension_numbers<[1], [0], [0], [1], [0, 0, 1, 1], [], []>} : vector<8x128xbf16>, vector<128x256xbf16>, vector<8x256xf32> -> vector<8x256xf32>
      %c0_51 = arith.constant 0 : index
      %c0_52 = arith.constant 0 : index
      %68 = vector.load %arg29[%c0_51, %c0_52] : memref<1x256xf32, #tpu.memory_space<vmem>>, vector<1x256xf32>
      %69 = vector.broadcast %68 : vector<1x256xf32> to vector<8x256xf32>
      %70 = arith.addf %67, %69 : vector<8x256xf32>
      %71 = arith.addf %64, %70 : vector<8x256xf32>
      %c0_53 = arith.constant 0 : index
      %c0_54 = arith.constant 0 : index
      %72 = vector.load %arg44[%c0_53, %c0_54] : memref<8x256xf32, #tpu.memory_space<vmem>>, vector<8x256xf32>
      tpu.vector_store %arg44[%c0_53, %c0_54], %71 {strides = array<i32>} : memref<8x256xf32, #tpu.memory_space<vmem>>, vector<8x256xf32>,
    } else {
    }
    %c4 = arith.constant 4 : index
    %18 = memref.load %arg1[%c4] : memref<5xi32, #tpu.memory_space<smem>>
    %c0_i32_9 = arith.constant 0 : i32
    %19 = arith.cmpi ne, %18, %c0_i32_9 : i32
    %20 = arith.extui %19 : i1 to i32
    %c0_i32_10 = arith.constant 0 : i32
    %21 = arith.cmpi ne, %20, %c0_i32_10 : i32
    scf.if %21 {
      %c0_32 = arith.constant 0 : index
      %c0_33 = arith.constant 0 : index
      %48 = vector.load %arg30[%c0_32, %c0_33] : memref<8x64xbf16, #tpu.memory_space<vmem>>, vector<8x64xbf16>
      %c0_34 = arith.constant 0 : index
      %c0_35 = arith.constant 0 : index
      %49 = vector.load %arg31[%c0_34, %c0_35] : memref<64x128xbf16, #tpu.memory_space<vmem>>, vector<64x128xbf16>
      %cst_36 = arith.constant dense<0.000000e+00> : vector<8x128xf32>
      %50 = tpu.matmul %48, %49, %cst_36 {dimension_numbers = #tpu.dot_dimension_numbers<[1], [0], [0], [1], [0, 0, 1, 1], [], []>} : vector<8x64xbf16>, vector<64x128xbf16>, vector<8x128xf32> -> vector<8x128xf32>
      %c0_37 = arith.constant 0 : index
      %c0_38 = arith.constant 0 : index
      %51 = vector.load %arg32[%c0_37, %c0_38] : memref<1x128xf32, #tpu.memory_space<vmem>>, vector<1x128xf32>
      %52 = vector.broadcast %51 : vector<1x128xf32> to vector<8x128xf32>
      %53 = arith.addf %50, %52 : vector<8x128xf32>
      %cst_39 = arith.constant 0.000000e+00 : f32
      %54 = vector.broadcast %cst_39 : f32 to vector<8x128xf32>
      %55 = arith.maximumf %53, %54 : vector<8x128xf32>
      %56 = arith.truncf %55 : vector<8x128xf32> to vector<8x128xbf16>
      %c0_40 = arith.constant 0 : index
      %c0_41 = arith.constant 0 : index
      %57 = vector.load %arg33[%c0_40, %c0_41] : memref<128x128xbf16, #tpu.memory_space<vmem>>, vector<128x128xbf16>
      %cst_42 = arith.constant dense<0.000000e+00> : vector<8x128xf32>
      %58 = tpu.matmul %56, %57, %cst_42 {dimension_numbers = #tpu.dot_dimension_numbers<[1], [0], [0], [1], [0, 0, 1, 1], [], []>} : vector<8x128xbf16>, vector<128x128xbf16>, vector<8x128xf32> -> vector<8x128xf32>
      %c0_43 = arith.constant 0 : index
      %c0_44 = arith.constant 0 : index
      %59 = vector.load %arg34[%c0_43, %c0_44] : memref<1x128xf32, #tpu.memory_space<vmem>>, vector<1x128xf32>
      %60 = vector.broadcast %59 : vector<1x128xf32> to vector<8x128xf32>
      %61 = arith.addf %58, %60 : vector<8x128xf32>
      %cst_45 = arith.constant 0.000000e+00 : f32
      %62 = vector.broadcast %cst_45 : f32 to vector<8x128xf32>
      %63 = arith.maximumf %61, %62 : vector<8x128xf32>
      %c0_46 = arith.constant 0 : index
      %c0_47 = arith.constant 0 : index
      %64 = vector.load %arg44[%c0_46, %c0_47] : memref<8x256xf32, #tpu.memory_space<vmem>>, vector<8x256xf32>
      %65 = arith.truncf %63 : vector<8x128xf32> to vector<8x128xbf16>
      %c0_48 = arith.constant 0 : index
      %c0_49 = arith.constant 0 : index
      %66 = vector.load %arg35[%c0_48, %c0_49] : memref<128x256xbf16, #tpu.memory_space<vmem>>, vector<128x256xbf16>
      %cst_50 = arith.constant dense<0.000000e+00> : vector<8x256xf32>
      %67 = tpu.matmul %65, %66, %cst_50 {dimension_numbers = #tpu.dot_dimension_numbers<[1], [0], [0], [1], [0, 0, 1, 1], [], []>} : vector<8x128xbf16>, vector<128x256xbf16>, vector<8x256xf32> -> vector<8x256xf32>
      %c0_51 = arith.constant 0 : index
      %c0_52 = arith.constant 0 : index
      %68 = vector.load %arg36[%c0_51, %c0_52] : memref<1x256xf32, #tpu.memory_space<vmem>>, vector<1x256xf32>
      %69 = vector.broadcast %68 : vector<1x256xf32> to vector<8x256xf32>
      %70 = arith.addf %67, %69 : vector<8x256xf32>
      %71 = arith.addf %64, %70 : vector<8x256xf32>
      %c0_53 = arith.constant 0 : index
      %c0_54 = arith.constant 0 : index
      %72 = vector.load %arg44[%c0_53, %c0_54] : memref<8x256xf32, #tpu.memory_space<vmem>>, vector<8x256xf32>
      tpu.vector_store %arg44[%c0_53, %c0_54], %71 {strides = array<i32>} : memref<8x256xf32, #tpu.memory_space<vmem>>, vector<8x256xf32>,
    } else {
    }
    %c0_11 = arith.constant 0 : index
    %c0_12 = arith.constant 0 : index
    %22 = vector.load %arg44[%c0_11, %c0_12] : memref<8x256xf32, #tpu.memory_space<vmem>>, vector<8x256xf32>
    %23 = arith.truncf %22 : vector<8x256xf32> to vector<8x256xbf16>
    %c0_13 = arith.constant 0 : index
    %c0_14 = arith.constant 0 : index
    %24 = vector.load %arg37[%c0_13, %c0_14] : memref<256x128xbf16, #tpu.memory_space<vmem>>, vector<256x128xbf16>
    %cst_15 = arith.constant dense<0.000000e+00> : vector<8x128xf32>
    %25 = tpu.matmul %23, %24, %cst_15 {dimension_numbers = #tpu.dot_dimension_numbers<[1], [0], [0], [1], [0, 0, 1, 1], [], []>} : vector<8x256xbf16>, vector<256x128xbf16>, vector<8x128xf32> -> vector<8x128xf32>
    %c0_16 = arith.constant 0 : index
    %c0_17 = arith.constant 0 : index
    %26 = vector.load %arg38[%c0_16, %c0_17] : memref<1x128xf32, #tpu.memory_space<vmem>>, vector<1x128xf32>
    %27 = vector.broadcast %26 : vector<1x128xf32> to vector<8x128xf32>
    %28 = arith.addf %25, %27 : vector<8x128xf32>
    %cst_18 = arith.constant 0.000000e+00 : f32
    %29 = vector.broadcast %cst_18 : f32 to vector<8x128xf32>
    %30 = arith.maximumf %28, %29 : vector<8x128xf32>
    %31 = arith.truncf %30 : vector<8x128xf32> to vector<8x128xbf16>
    %c0_19 = arith.constant 0 : index
    %c0_20 = arith.constant 0 : index
    %32 = vector.load %arg39[%c0_19, %c0_20] : memref<128x128xbf16, #tpu.memory_space<vmem>>, vector<128x128xbf16>
    %cst_21 = arith.constant dense<0.000000e+00> : vector<8x128xf32>
    %33 = tpu.matmul %31, %32, %cst_21 {dimension_numbers = #tpu.dot_dimension_numbers<[1], [0], [0], [1], [0, 0, 1, 1], [], []>} : vector<8x128xbf16>, vector<128x128xbf16>, vector<8x128xf32> -> vector<8x128xf32>
    %c0_22 = arith.constant 0 : index
    %c0_23 = arith.constant 0 : index
    %34 = vector.load %arg40[%c0_22, %c0_23] : memref<1x128xf32, #tpu.memory_space<vmem>>, vector<1x128xf32>
    %35 = vector.broadcast %34 : vector<1x128xf32> to vector<8x128xf32>
    %36 = arith.addf %33, %35 : vector<8x128xf32>
    %cst_24 = arith.constant 0.000000e+00 : f32
    %37 = vector.broadcast %cst_24 : f32 to vector<8x128xf32>
    %38 = arith.maximumf %36, %37 : vector<8x128xf32>
    %c0_25 = arith.constant 0 : index
    %c0_26 = arith.constant 0 : index
    %39 = vector.load %arg41[%c0_25, %c0_26] : memref<1x128xf32, #tpu.memory_space<vmem>>, vector<1x128xf32>
    %40 = vector.broadcast %39 : vector<1x128xf32> to vector<8x128xf32>
    %41 = arith.mulf %38, %40 : vector<8x128xf32>
    %cst_27 = arith.constant dense<0.000000e+00> : vector<8xf32>
    %42 = vector.multi_reduction <add>, %41, %cst_27 [1] : vector<8x128xf32> to vector<8xf32>
    %43 = vector.shape_cast %42 : vector<8xf32> to vector<8x1xf32>
    %c0_28 = arith.constant 0 : index
    %c0_29 = arith.constant 0 : index
    %44 = vector.load %arg42[%c0_28, %c0_29] : memref<1x1xf32, #tpu.memory_space<vmem>>, vector<1x1xf32>
    %45 = vector.broadcast %44 : vector<1x1xf32> to vector<8x1xf32>
    %46 = arith.addf %43, %45 : vector<8x1xf32>
    %c0_30 = arith.constant 0 : index
    %c0_31 = arith.constant 0 : index
    %47 = vector.load %arg43[%c0_30, %c0_31] : memref<8x1xf32, #tpu.memory_space<vmem>>, vector<8x1xf32>
    tpu.vector_store %arg43[%c0_30, %c0_31], %46 {strides = array<i32>} : memref<8x1xf32, #tpu.memory_space<vmem>>, vector<8x1xf32>,
    return
  }
  func.func @transform_0(%arg0: i32, %arg1: memref<5xi32, #tpu.memory_space<smem>>) -> (i32, i32) {
    %c0_i32 = arith.constant 0 : i32
    %c0_i32_0 = arith.constant 0 : i32
    return %arg0, %c0_i32 : i32, i32
  }
  func.func @transform_1(%arg0: i32, %arg1: memref<5xi32, #tpu.memory_space<smem>>) -> (i32, i32) {
    %c0_i32 = arith.constant 0 : i32
    %c0_i32_0 = arith.constant 0 : i32
    %c0_i32_1 = arith.constant 0 : i32
    return %c0_i32, %c0_i32_0 : i32, i32
  }
  func.func @transform_2(%arg0: i32, %arg1: memref<5xi32, #tpu.memory_space<smem>>) -> (i32, i32) {
    %c0_i32 = arith.constant 0 : i32
    %c0_i32_0 = arith.constant 0 : i32
    %c0_i32_1 = arith.constant 0 : i32
    return %c0_i32, %c0_i32_0 : i32, i32
  }
  func.func @transform_3(%arg0: i32, %arg1: memref<5xi32, #tpu.memory_space<smem>>) -> (i32, i32) {
    %c0_i32 = arith.constant 0 : i32
    %c0_i32_0 = arith.constant 0 : i32
    %c0_i32_1 = arith.constant 0 : i32
    return %c0_i32, %c0_i32_0 : i32, i32
  }
  func.func @transform_4(%arg0: i32, %arg1: memref<5xi32, #tpu.memory_space<smem>>) -> (i32, i32) {
    %c0_i32 = arith.constant 0 : i32
    %c0_i32_0 = arith.constant 0 : i32
    %c0_i32_1 = arith.constant 0 : i32
    return %c0_i32, %c0_i32_0 : i32, i32
  }
  func.func @transform_5(%arg0: i32, %arg1: memref<5xi32, #tpu.memory_space<smem>>) -> (i32, i32) {
    %c0_i32 = arith.constant 0 : i32
    %c0_i32_0 = arith.constant 0 : i32
    %c0_i32_1 = arith.constant 0 : i32
    return %c0_i32, %c0_i32_0 : i32, i32
  }
  func.func @transform_6(%arg0: i32, %arg1: memref<5xi32, #tpu.memory_space<smem>>) -> (i32, i32) {
    %c0_i32 = arith.constant 0 : i32
    %c0_i32_0 = arith.constant 0 : i32
    %c0_i32_1 = arith.constant 0 : i32
    return %c0_i32, %c0_i32_0 : i32, i32
  }
  func.func @transform_7(%arg0: i32, %arg1: memref<5xi32, #tpu.memory_space<smem>>) -> (i32, i32) {
    %c0_i32 = arith.constant 0 : i32
    %c0_i32_0 = arith.constant 0 : i32
    return %arg0, %c0_i32 : i32, i32
  }
  func.func @transform_8(%arg0: i32, %arg1: memref<5xi32, #tpu.memory_space<smem>>) -> (i32, i32) {
    %c0_i32 = arith.constant 0 : i32
    %c0_i32_0 = arith.constant 0 : i32
    %c0_i32_1 = arith.constant 0 : i32
    return %c0_i32, %c0_i32_0 : i32, i32
  }
  func.func @transform_9(%arg0: i32, %arg1: memref<5xi32, #tpu.memory_space<smem>>) -> (i32, i32) {
    %c0_i32 = arith.constant 0 : i32
    %c0_i32_0 = arith.constant 0 : i32
    %c0_i32_1 = arith.constant 0 : i32
    return %c0_i32, %c0_i32_0 : i32, i32
  }
  func.func @transform_10(%arg0: i32, %arg1: memref<5xi32, #tpu.memory_space<smem>>) -> (i32, i32) {
    %c0_i32 = arith.constant 0 : i32
    %c0_i32_0 = arith.constant 0 : i32
    %c0_i32_1 = arith.constant 0 : i32
    return %c0_i32, %c0_i32_0 : i32, i32
  }
  func.func @transform_11(%arg0: i32, %arg1: memref<5xi32, #tpu.memory_space<smem>>) -> (i32, i32) {
    %c0_i32 = arith.constant 0 : i32
    %c0_i32_0 = arith.constant 0 : i32
    %c0_i32_1 = arith.constant 0 : i32
    return %c0_i32, %c0_i32_0 : i32, i32
  }
  func.func @transform_12(%arg0: i32, %arg1: memref<5xi32, #tpu.memory_space<smem>>) -> (i32, i32) {
    %c0_i32 = arith.constant 0 : i32
    %c0_i32_0 = arith.constant 0 : i32
    %c0_i32_1 = arith.constant 0 : i32
    return %c0_i32, %c0_i32_0 : i32, i32
  }
  func.func @transform_13(%arg0: i32, %arg1: memref<5xi32, #tpu.memory_space<smem>>) -> (i32, i32) {
    %c0_i32 = arith.constant 0 : i32
    %c0_i32_0 = arith.constant 0 : i32
    %c0_i32_1 = arith.constant 0 : i32
    return %c0_i32, %c0_i32_0 : i32, i32
  }
  func.func @transform_14(%arg0: i32, %arg1: memref<5xi32, #tpu.memory_space<smem>>) -> (i32, i32) {
    %c0_i32 = arith.constant 0 : i32
    %c0_i32_0 = arith.constant 0 : i32
    return %arg0, %c0_i32 : i32, i32
  }
  func.func @transform_15(%arg0: i32, %arg1: memref<5xi32, #tpu.memory_space<smem>>) -> (i32, i32) {
    %c0_i32 = arith.constant 0 : i32
    %c0_i32_0 = arith.constant 0 : i32
    %c0_i32_1 = arith.constant 0 : i32
    return %c0_i32, %c0_i32_0 : i32, i32
  }
  func.func @transform_16(%arg0: i32, %arg1: memref<5xi32, #tpu.memory_space<smem>>) -> (i32, i32) {
    %c0_i32 = arith.constant 0 : i32
    %c0_i32_0 = arith.constant 0 : i32
    %c0_i32_1 = arith.constant 0 : i32
    return %c0_i32, %c0_i32_0 : i32, i32
  }
  func.func @transform_17(%arg0: i32, %arg1: memref<5xi32, #tpu.memory_space<smem>>) -> (i32, i32) {
    %c0_i32 = arith.constant 0 : i32
    %c0_i32_0 = arith.constant 0 : i32
    %c0_i32_1 = arith.constant 0 : i32
    return %c0_i32, %c0_i32_0 : i32, i32
  }
  func.func @transform_18(%arg0: i32, %arg1: memref<5xi32, #tpu.memory_space<smem>>) -> (i32, i32) {
    %c0_i32 = arith.constant 0 : i32
    %c0_i32_0 = arith.constant 0 : i32
    %c0_i32_1 = arith.constant 0 : i32
    return %c0_i32, %c0_i32_0 : i32, i32
  }
  func.func @transform_19(%arg0: i32, %arg1: memref<5xi32, #tpu.memory_space<smem>>) -> (i32, i32) {
    %c0_i32 = arith.constant 0 : i32
    %c0_i32_0 = arith.constant 0 : i32
    %c0_i32_1 = arith.constant 0 : i32
    return %c0_i32, %c0_i32_0 : i32, i32
  }
  func.func @transform_20(%arg0: i32, %arg1: memref<5xi32, #tpu.memory_space<smem>>) -> (i32, i32) {
    %c0_i32 = arith.constant 0 : i32
    %c0_i32_0 = arith.constant 0 : i32
    %c0_i32_1 = arith.constant 0 : i32
    return %c0_i32, %c0_i32_0 : i32, i32
  }
  func.func @transform_21(%arg0: i32, %arg1: memref<5xi32, #tpu.memory_space<smem>>) -> (i32, i32) {
    %c0_i32 = arith.constant 0 : i32
    %c0_i32_0 = arith.constant 0 : i32
    return %arg0, %c0_i32 : i32, i32
  }
  func.func @transform_22(%arg0: i32, %arg1: memref<5xi32, #tpu.memory_space<smem>>) -> (i32, i32) {
    %c0_i32 = arith.constant 0 : i32
    %c0_i32_0 = arith.constant 0 : i32
    %c0_i32_1 = arith.constant 0 : i32
    return %c0_i32, %c0_i32_0 : i32, i32
  }
  func.func @transform_23(%arg0: i32, %arg1: memref<5xi32, #tpu.memory_space<smem>>) -> (i32, i32) {
    %c0_i32 = arith.constant 0 : i32
    %c0_i32_0 = arith.constant 0 : i32
    %c0_i32_1 = arith.constant 0 : i32
    return %c0_i32, %c0_i32_0 : i32, i32
  }
  func.func @transform_24(%arg0: i32, %arg1: memref<5xi32, #tpu.memory_space<smem>>) -> (i32, i32) {
    %c0_i32 = arith.constant 0 : i32
    %c0_i32_0 = arith.constant 0 : i32
    %c0_i32_1 = arith.constant 0 : i32
    return %c0_i32, %c0_i32_0 : i32, i32
  }
  func.func @transform_25(%arg0: i32, %arg1: memref<5xi32, #tpu.memory_space<smem>>) -> (i32, i32) {
    %c0_i32 = arith.constant 0 : i32
    %c0_i32_0 = arith.constant 0 : i32
    %c0_i32_1 = arith.constant 0 : i32
    return %c0_i32, %c0_i32_0 : i32, i32
  }
  func.func @transform_26(%arg0: i32, %arg1: memref<5xi32, #tpu.memory_space<smem>>) -> (i32, i32) {
    %c0_i32 = arith.constant 0 : i32
    %c0_i32_0 = arith.constant 0 : i32
    %c0_i32_1 = arith.constant 0 : i32
    return %c0_i32, %c0_i32_0 : i32, i32
  }
  func.func @transform_27(%arg0: i32, %arg1: memref<5xi32, #tpu.memory_space<smem>>) -> (i32, i32) {
    %c0_i32 = arith.constant 0 : i32
    %c0_i32_0 = arith.constant 0 : i32
    %c0_i32_1 = arith.constant 0 : i32
    return %c0_i32, %c0_i32_0 : i32, i32
  }
  func.func @transform_28(%arg0: i32, %arg1: memref<5xi32, #tpu.memory_space<smem>>) -> (i32, i32) {
    %c0_i32 = arith.constant 0 : i32
    %c0_i32_0 = arith.constant 0 : i32
    return %arg0, %c0_i32 : i32, i32
  }
  func.func @transform_29(%arg0: i32, %arg1: memref<5xi32, #tpu.memory_space<smem>>) -> (i32, i32) {
    %c0_i32 = arith.constant 0 : i32
    %c0_i32_0 = arith.constant 0 : i32
    %c0_i32_1 = arith.constant 0 : i32
    return %c0_i32, %c0_i32_0 : i32, i32
  }
  func.func @transform_30(%arg0: i32, %arg1: memref<5xi32, #tpu.memory_space<smem>>) -> (i32, i32) {
    %c0_i32 = arith.constant 0 : i32
    %c0_i32_0 = arith.constant 0 : i32
    %c0_i32_1 = arith.constant 0 : i32
    return %c0_i32, %c0_i32_0 : i32, i32
  }
  func.func @transform_31(%arg0: i32, %arg1: memref<5xi32, #tpu.memory_space<smem>>) -> (i32, i32) {
    %c0_i32 = arith.constant 0 : i32
    %c0_i32_0 = arith.constant 0 : i32
    %c0_i32_1 = arith.constant 0 : i32
    return %c0_i32, %c0_i32_0 : i32, i32
  }
  func.func @transform_32(%arg0: i32, %arg1: memref<5xi32, #tpu.memory_space<smem>>) -> (i32, i32) {
    %c0_i32 = arith.constant 0 : i32
    %c0_i32_0 = arith.constant 0 : i32
    %c0_i32_1 = arith.constant 0 : i32
    return %c0_i32, %c0_i32_0 : i32, i32
  }
  func.func @transform_33(%arg0: i32, %arg1: memref<5xi32, #tpu.memory_space<smem>>) -> (i32, i32) {
    %c0_i32 = arith.constant 0 : i32
    %c0_i32_0 = arith.constant 0 : i32
    %c0_i32_1 = arith.constant 0 : i32
    return %c0_i32, %c0_i32_0 : i32, i32
  }
  func.func @transform_34(%arg0: i32, %arg1: memref<5xi32, #tpu.memory_space<smem>>) -> (i32, i32) {
    %c0_i32 = arith.constant 0 : i32
    %c0_i32_0 = arith.constant 0 : i32
    %c0_i32_1 = arith.constant 0 : i32
    return %c0_i32, %c0_i32_0 : i32, i32
  }
  func.func @transform_35(%arg0: i32, %arg1: memref<5xi32, #tpu.memory_space<smem>>) -> (i32, i32) {
    %c0_i32 = arith.constant 0 : i32
    %c0_i32_0 = arith.constant 0 : i32
    %c0_i32_1 = arith.constant 0 : i32
    return %c0_i32, %c0_i32_0 : i32, i32
  }
  func.func @transform_36(%arg0: i32, %arg1: memref<5xi32, #tpu.memory_space<smem>>) -> (i32, i32) {
    %c0_i32 = arith.constant 0 : i32
    %c0_i32_0 = arith.constant 0 : i32
    %c0_i32_1 = arith.constant 0 : i32
    return %c0_i32, %c0_i32_0 : i32, i32
  }
  func.func @transform_37(%arg0: i32, %arg1: memref<5xi32, #tpu.memory_space<smem>>) -> (i32, i32) {
    %c0_i32 = arith.constant 0 : i32
    %c0_i32_0 = arith.constant 0 : i32
    %c0_i32_1 = arith.constant 0 : i32
    return %c0_i32, %c0_i32_0 : i32, i32
  }
  func.func @transform_38(%arg0: i32, %arg1: memref<5xi32, #tpu.memory_space<smem>>) -> (i32, i32) {
    %c0_i32 = arith.constant 0 : i32
    %c0_i32_0 = arith.constant 0 : i32
    %c0_i32_1 = arith.constant 0 : i32
    return %c0_i32, %c0_i32_0 : i32, i32
  }
  func.func @transform_39(%arg0: i32, %arg1: memref<5xi32, #tpu.memory_space<smem>>) -> (i32, i32) {
    %c0_i32 = arith.constant 0 : i32
    %c0_i32_0 = arith.constant 0 : i32
    %c0_i32_1 = arith.constant 0 : i32
    return %c0_i32, %c0_i32_0 : i32, i32
  }
  func.func @transform_40(%arg0: i32, %arg1: memref<5xi32, #tpu.memory_space<smem>>) -> (i32, i32) {
    %c0_i32 = arith.constant 0 : i32
    %c0_i32_0 = arith.constant 0 : i32
    %c0_i32_1 = arith.constant 0 : i32
    return %c0_i32, %c0_i32_0 : i32, i32
  }
  func.func @transform_41(%arg0: i32, %arg1: memref<5xi32, #tpu.memory_space<smem>>) -> (i32, i32) {
    %c0_i32 = arith.constant 0 : i32
    %c0_i32_0 = arith.constant 0 : i32
    return %arg0, %c0_i32 : i32, i32
  }
}

module attributes {stable_mosaic.version = 11 : i64} {
  func.func @deepdep_kernel(%arg0: i32, %arg1: memref<5xi32, #tpu.memory_space<smem>>, %arg2: memref<8x40xbf16, #tpu.memory_space<vmem>>, %arg3: memref<40x128xbf16, #tpu.memory_space<vmem>>, %arg4: memref<1x128xf32, #tpu.memory_space<vmem>>, %arg5: memref<128x128xbf16, #tpu.memory_space<vmem>>, %arg6: memref<1x128xf32, #tpu.memory_space<vmem>>, %arg7: memref<128x256xbf16, #tpu.memory_space<vmem>>, %arg8: memref<1x256xf32, #tpu.memory_space<vmem>>, %arg9: memref<8x48xbf16, #tpu.memory_space<vmem>>, %arg10: memref<48x128xbf16, #tpu.memory_space<vmem>>, %arg11: memref<1x128xf32, #tpu.memory_space<vmem>>, %arg12: memref<128x128xbf16, #tpu.memory_space<vmem>>, %arg13: memref<1x128xf32, #tpu.memory_space<vmem>>, %arg14: memref<128x256xbf16, #tpu.memory_space<vmem>>, %arg15: memref<1x256xf32, #tpu.memory_space<vmem>>, %arg16: memref<8x56xbf16, #tpu.memory_space<vmem>>, %arg17: memref<56x128xbf16, #tpu.memory_space<vmem>>, %arg18: memref<1x128xf32, #tpu.memory_space<vmem>>, %arg19: memref<128x128xbf16, #tpu.memory_space<vmem>>, %arg20: memref<1x128xf32, #tpu.memory_space<vmem>>, %arg21: memref<128x256xbf16, #tpu.memory_space<vmem>>, %arg22: memref<1x256xf32, #tpu.memory_space<vmem>>, %arg23: memref<8x32xbf16, #tpu.memory_space<vmem>>, %arg24: memref<32x128xbf16, #tpu.memory_space<vmem>>, %arg25: memref<1x128xf32, #tpu.memory_space<vmem>>, %arg26: memref<128x128xbf16, #tpu.memory_space<vmem>>, %arg27: memref<1x128xf32, #tpu.memory_space<vmem>>, %arg28: memref<128x256xbf16, #tpu.memory_space<vmem>>, %arg29: memref<1x256xf32, #tpu.memory_space<vmem>>, %arg30: memref<8x64xbf16, #tpu.memory_space<vmem>>, %arg31: memref<64x128xbf16, #tpu.memory_space<vmem>>, %arg32: memref<1x128xf32, #tpu.memory_space<vmem>>, %arg33: memref<128x128xbf16, #tpu.memory_space<vmem>>, %arg34: memref<1x128xf32, #tpu.memory_space<vmem>>, %arg35: memref<128x256xbf16, #tpu.memory_space<vmem>>, %arg36: memref<1x256xf32, #tpu.memory_space<vmem>>, %arg37: memref<256x128xbf16, #tpu.memory_space<vmem>>, %arg38: memref<1x128xf32, #tpu.memory_space<vmem>>, %arg39: memref<128x128xbf16, #tpu.memory_space<vmem>>, %arg40: memref<1x128xf32, #tpu.memory_space<vmem>>, %arg41: memref<1x128xf32, #tpu.memory_space<vmem>>, %arg42: memref<1x1xf32, #tpu.memory_space<vmem>>, %arg43: memref<8x1xf32, #tpu.memory_space<vmem>>, %arg44: memref<8x256xf32, #tpu.memory_space<vmem>>) attributes {dimension_semantics = [#tpu.dimension_semantics<parallel>], iteration_bounds = array<i64: 2>, scalar_prefetch = 1 : i64, scratch_operands = 1 : i64, tpu.core_type = #tpu.core_type<tc>, window_params = [{transform_indices = @transform_0, window_bounds = array<i64: 8, 40>}, {pipeline_mode = #tpu.pipeline_mode<synchronous>, transform_indices = @transform_1, window_bounds = array<i64: 40, 128>}, {pipeline_mode = #tpu.pipeline_mode<synchronous>, transform_indices = @transform_2, window_bounds = array<i64: 1, 128>}, {pipeline_mode = #tpu.pipeline_mode<synchronous>, transform_indices = @transform_3, window_bounds = array<i64: 128, 128>}, {pipeline_mode = #tpu.pipeline_mode<synchronous>, transform_indices = @transform_4, window_bounds = array<i64: 1, 128>}, {pipeline_mode = #tpu.pipeline_mode<synchronous>, transform_indices = @transform_5, window_bounds = array<i64: 128, 256>}, {pipeline_mode = #tpu.pipeline_mode<synchronous>, transform_indices = @transform_6, window_bounds = array<i64: 1, 256>}, {transform_indices = @transform_7, window_bounds = array<i64: 8, 48>}, {pipeline_mode = #tpu.pipeline_mode<synchronous>, transform_indices = @transform_8, window_bounds = array<i64: 48, 128>}, {pipeline_mode = #tpu.pipeline_mode<synchronous>, transform_indices = @transform_9, window_bounds = array<i64: 1, 128>}, {pipeline_mode = #tpu.pipeline_mode<synchronous>, transform_indices = @transform_10, window_bounds = array<i64: 128, 128>}, {pipeline_mode = #tpu.pipeline_mode<synchronous>, transform_indices = @transform_11, window_bounds = array<i64: 1, 128>}, {pipeline_mode = #tpu.pipeline_mode<synchronous>, transform_indices = @transform_12, window_bounds = array<i64: 128, 256>}, {pipeline_mode = #tpu.pipeline_mode<synchronous>, transform_indices = @transform_13, window_bounds = array<i64: 1, 256>}, {transform_indices = @transform_14, window_bounds = array<i64: 8, 56>}, {pipeline_mode = #tpu.pipeline_mode<synchronous>, transform_indices = @transform_15, window_bounds = array<i64: 56, 128>}, {pipeline_mode = #tpu.pipeline_mode<synchronous>, transform_indices = @transform_16, window_bounds = array<i64: 1, 128>}, {pipeline_mode = #tpu.pipeline_mode<synchronous>, transform_indices = @transform_17, window_bounds = array<i64: 128, 128>}, {pipeline_mode = #tpu.pipeline_mode<synchronous>, transform_indices = @transform_18, window_bounds = array<i64: 1, 128>}, {pipeline_mode = #tpu.pipeline_mode<synchronous>, transform_indices = @transform_19, window_bounds = array<i64: 128, 256>}, {pipeline_mode = #tpu.pipeline_mode<synchronous>, transform_indices = @transform_20, window_bounds = array<i64: 1, 256>}, {transform_indices = @transform_21, window_bounds = array<i64: 8, 32>}, {pipeline_mode = #tpu.pipeline_mode<synchronous>, transform_indices = @transform_22, window_bounds = array<i64: 32, 128>}, {pipeline_mode = #tpu.pipeline_mode<synchronous>, transform_indices = @transform_23, window_bounds = array<i64: 1, 128>}, {pipeline_mode = #tpu.pipeline_mode<synchronous>, transform_indices = @transform_24, window_bounds = array<i64: 128, 128>}, {pipeline_mode = #tpu.pipeline_mode<synchronous>, transform_indices = @transform_25, window_bounds = array<i64: 1, 128>}, {pipeline_mode = #tpu.pipeline_mode<synchronous>, transform_indices = @transform_26, window_bounds = array<i64: 128, 256>}, {pipeline_mode = #tpu.pipeline_mode<synchronous>, transform_indices = @transform_27, window_bounds = array<i64: 1, 256>}, {transform_indices = @transform_28, window_bounds = array<i64: 8, 64>}, {pipeline_mode = #tpu.pipeline_mode<synchronous>, transform_indices = @transform_29, window_bounds = array<i64: 64, 128>}, {pipeline_mode = #tpu.pipeline_mode<synchronous>, transform_indices = @transform_30, window_bounds = array<i64: 1, 128>}, {pipeline_mode = #tpu.pipeline_mode<synchronous>, transform_indices = @transform_31, window_bounds = array<i64: 128, 128>}, {pipeline_mode = #tpu.pipeline_mode<synchronous>, transform_indices = @transform_32, window_bounds = array<i64: 1, 128>}, {pipeline_mode = #tpu.pipeline_mode<synchronous>, transform_indices = @transform_33, window_bounds = array<i64: 128, 256>}, {pipeline_mode = #tpu.pipeline_mode<synchronous>, transform_indices = @transform_34, window_bounds = array<i64: 1, 256>}, {pipeline_mode = #tpu.pipeline_mode<synchronous>, transform_indices = @transform_35, window_bounds = array<i64: 256, 128>}, {pipeline_mode = #tpu.pipeline_mode<synchronous>, transform_indices = @transform_36, window_bounds = array<i64: 1, 128>}, {pipeline_mode = #tpu.pipeline_mode<synchronous>, transform_indices = @transform_37, window_bounds = array<i64: 128, 128>}, {pipeline_mode = #tpu.pipeline_mode<synchronous>, transform_indices = @transform_38, window_bounds = array<i64: 1, 128>}, {pipeline_mode = #tpu.pipeline_mode<synchronous>, transform_indices = @transform_39, window_bounds = array<i64: 1, 128>}, {pipeline_mode = #tpu.pipeline_mode<synchronous>, transform_indices = @transform_40, window_bounds = array<i64: 1, 1>}, {transform_indices = @transform_41, window_bounds = array<i64: 8, 1>}]} {
    %cst = arith.constant 0.000000e+00 : f32
    %0 = vector.broadcast %cst : f32 to vector<8x256xf32>
    %c0 = arith.constant 0 : index
    %c0_0 = arith.constant 0 : index
    %1 = vector.load %arg44[%c0, %c0_0] : memref<8x256xf32, #tpu.memory_space<vmem>>, vector<8x256xf32>
    tpu.vector_store %arg44[%c0, %c0_0], %0 {strides = array<i32>} : memref<8x256xf32, #tpu.memory_space<vmem>>, vector<8x256xf32>,
    %c0_1 = arith.constant 0 : index
    %2 = memref.load %arg1[%c0_1] : memref<5xi32, #tpu.memory_space<smem>>
    %c0_i32 = arith.constant 0 : i32
    %3 = arith.cmpi ne, %2, %c0_i32 : i32
    %4 = arith.extui %3 : i1 to i32
    %c0_i32_2 = arith.constant 0 : i32
    %5 = arith.cmpi ne, %4, %c0_i32_2 : i32
    scf.if %5 {
      %c0_32 = arith.constant 0 : index
      %c0_33 = arith.constant 0 : index
      %48 = vector.load %arg2[%c0_32, %c0_33] : memref<8x40xbf16, #tpu.memory_space<vmem>>, vector<8x40xbf16>
      %c0_34 = arith.constant 0 : index
      %c0_35 = arith.constant 0 : index
      %49 = vector.load %arg3[%c0_34, %c0_35] : memref<40x128xbf16, #tpu.memory_space<vmem>>, vector<40x128xbf16>
      %cst_36 = arith.constant dense<0.000000e+00> : vector<8x128xf32>
      %50 = tpu.matmul %48, %49, %cst_36 {dimension_numbers = #tpu.dot_dimension_numbers<[1], [0], [0], [1], [0, 0, 1, 1], [], []>} : vector<8x40xbf16>, vector<40x128xbf16>, vector<8x128xf32> -> vector<8x128xf32>
      %c0_37 = arith.constant 0 : index
      %c0_38 = arith.constant 0 : index
      %51 = vector.load %arg4[%c0_37, %c0_38] : memref<1x128xf32, #tpu.memory_space<vmem>>, vector<1x128xf32>
      %52 = vector.broadcast %51 : vector<1x128xf32> to vector<8x128xf32>
      %53 = arith.addf %50, %52 : vector<8x128xf32>
      %cst_39 = arith.constant 0.000000e+00 : f32
      %54 = vector.broadcast %cst_39 : f32 to vector<8x128xf32>
      %55 = arith.maximumf %53, %54 : vector<8x128xf32>
      %56 = arith.truncf %55 : vector<8x128xf32> to vector<8x128xbf16>
      %c0_40 = arith.constant 0 : index
      %c0_41 = arith.constant 0 : index
      %57 = vector.load %arg5[%c0_40, %c0_41] : memref<128x128xbf16, #tpu.memory_space<vmem>>, vector<128x128xbf16>
      %cst_42 = arith.constant dense<0.000000e+00> : vector<8x128xf32>
      %58 = tpu.matmul %56, %57, %cst_42 {dimension_numbers = #tpu.dot_dimension_numbers<[1], [0], [0], [1], [0, 0, 1, 1], [], []>} : vector<8x128xbf16>, vector<128x128xbf16>, vector<8x128xf32> -> vector<8x128xf32>
      %c0_43 = arith.constant 0 : index
      %c0_44 = arith.constant 0 : index
      %59 = vector.load %arg6[%c0_43, %c0_44] : memref<1x128xf32, #tpu.memory_space<vmem>>, vector<1x128xf32>
      %60 = vector.broadcast %59 : vector<1x128xf32> to vector<8x128xf32>
      %61 = arith.addf %58, %60 : vector<8x128xf32>
      %cst_45 = arith.constant 0.000000e+00 : f32
      %62 = vector.broadcast %cst_45 : f32 to vector<8x128xf32>
      %63 = arith.maximumf %61, %62 : vector<8x128xf32>
      %c0_46 = arith.constant 0 : index
      %c0_47 = arith.constant 0 : index
      %64 = vector.load %arg44[%c0_46, %c0_47] : memref<8x256xf32, #tpu.memory_space<vmem>>, vector<8x256xf32>
      %65 = arith.truncf %63 : vector<8x128xf32> to vector<8x128xbf16>
      %c0_48 = arith.constant 0 : index
      %c0_49 = arith.constant 0 : index
      %66 = vector.load %arg7[%c0_48, %c0_49] : memref<128x256xbf16, #tpu.memory_space<vmem>>, vector<128x256xbf16>
      %cst_50 = arith.constant dense<0.000000e+00> : vector<8x256xf32>
      %67 = tpu.matmul %65, %66, %cst_50 {dimension_numbers = #tpu.dot_dimension_numbers<[1], [0], [0], [1], [0, 0, 1, 1], [], []>} : vector<8x128xbf16>, vector<128x256xbf16>, vector<8x256xf32> -> vector<8x256xf32>
      %c0_51 = arith.constant 0 : index
      %c0_52 = arith.constant 0 : index
      %68 = vector.load %arg8[%c0_51, %c0_52] : memref<1x256xf32, #tpu.memory_space<vmem>>, vector<1x256xf32>
      %69 = vector.broadcast %68 : vector<1x256xf32> to vector<8x256xf32>
      %70 = arith.addf %67, %69 : vector<8x256xf32>
      %71 = arith.addf %64, %70 : vector<8x256xf32>
      %c0_53 = arith.constant 0 : index
      %c0_54 = arith.constant 0 : index
      %72 = vector.load %arg44[%c0_53, %c0_54] : memref<8x256xf32, #tpu.memory_space<vmem>>, vector<8x256xf32>
      tpu.vector_store %arg44[%c0_53, %c0_54], %71 {strides = array<i32>} : memref<8x256xf32, #tpu.memory_space<vmem>>, vector<8x256xf32>,
    } else {
    }
    %c1 = arith.constant 1 : index
    %6 = memref.load %arg1[%c1] : memref<5xi32, #tpu.memory_space<smem>>
    %c0_i32_3 = arith.constant 0 : i32
    %7 = arith.cmpi ne, %6, %c0_i32_3 : i32
    %8 = arith.extui %7 : i1 to i32
    %c0_i32_4 = arith.constant 0 : i32
    %9 = arith.cmpi ne, %8, %c0_i32_4 : i32
    scf.if %9 {
      %c0_32 = arith.constant 0 : index
      %c0_33 = arith.constant 0 : index
      %48 = vector.load %arg9[%c0_32, %c0_33] : memref<8x48xbf16, #tpu.memory_space<vmem>>, vector<8x48xbf16>
      %c0_34 = arith.constant 0 : index
      %c0_35 = arith.constant 0 : index
      %49 = vector.load %arg10[%c0_34, %c0_35] : memref<48x128xbf16, #tpu.memory_space<vmem>>, vector<48x128xbf16>
      %cst_36 = arith.constant dense<0.000000e+00> : vector<8x128xf32>
      %50 = tpu.matmul %48, %49, %cst_36 {dimension_numbers = #tpu.dot_dimension_numbers<[1], [0], [0], [1], [0, 0, 1, 1], [], []>} : vector<8x48xbf16>, vector<48x128xbf16>, vector<8x128xf32> -> vector<8x128xf32>
      %c0_37 = arith.constant 0 : index
      %c0_38 = arith.constant 0 : index
      %51 = vector.load %arg11[%c0_37, %c0_38] : memref<1x128xf32, #tpu.memory_space<vmem>>, vector<1x128xf32>
      %52 = vector.broadcast %51 : vector<1x128xf32> to vector<8x128xf32>
      %53 = arith.addf %50, %52 : vector<8x128xf32>
      %cst_39 = arith.constant 0.000000e+00 : f32
      %54 = vector.broadcast %cst_39 : f32 to vector<8x128xf32>
      %55 = arith.maximumf %53, %54 : vector<8x128xf32>
      %56 = arith.truncf %55 : vector<8x128xf32> to vector<8x128xbf16>
      %c0_40 = arith.constant 0 : index
      %c0_41 = arith.constant 0 : index
      %57 = vector.load %arg12[%c0_40, %c0_41] : memref<128x128xbf16, #tpu.memory_space<vmem>>, vector<128x128xbf16>
      %cst_42 = arith.constant dense<0.000000e+00> : vector<8x128xf32>
      %58 = tpu.matmul %56, %57, %cst_42 {dimension_numbers = #tpu.dot_dimension_numbers<[1], [0], [0], [1], [0, 0, 1, 1], [], []>} : vector<8x128xbf16>, vector<128x128xbf16>, vector<8x128xf32> -> vector<8x128xf32>
      %c0_43 = arith.constant 0 : index
      %c0_44 = arith.constant 0 : index
      %59 = vector.load %arg13[%c0_43, %c0_44] : memref<1x128xf32, #tpu.memory_space<vmem>>, vector<1x128xf32>
      %60 = vector.broadcast %59 : vector<1x128xf32> to vector<8x128xf32>
      %61 = arith.addf %58, %60 : vector<8x128xf32>
      %cst_45 = arith.constant 0.000000e+00 : f32
      %62 = vector.broadcast %cst_45 : f32 to vector<8x128xf32>
      %63 = arith.maximumf %61, %62 : vector<8x128xf32>
      %c0_46 = arith.constant 0 : index
      %c0_47 = arith.constant 0 : index
      %64 = vector.load %arg44[%c0_46, %c0_47] : memref<8x256xf32, #tpu.memory_space<vmem>>, vector<8x256xf32>
      %65 = arith.truncf %63 : vector<8x128xf32> to vector<8x128xbf16>
      %c0_48 = arith.constant 0 : index
      %c0_49 = arith.constant 0 : index
      %66 = vector.load %arg14[%c0_48, %c0_49] : memref<128x256xbf16, #tpu.memory_space<vmem>>, vector<128x256xbf16>
      %cst_50 = arith.constant dense<0.000000e+00> : vector<8x256xf32>
      %67 = tpu.matmul %65, %66, %cst_50 {dimension_numbers = #tpu.dot_dimension_numbers<[1], [0], [0], [1], [0, 0, 1, 1], [], []>} : vector<8x128xbf16>, vector<128x256xbf16>, vector<8x256xf32> -> vector<8x256xf32>
      %c0_51 = arith.constant 0 : index
      %c0_52 = arith.constant 0 : index
      %68 = vector.load %arg15[%c0_51, %c0_52] : memref<1x256xf32, #tpu.memory_space<vmem>>, vector<1x256xf32>
      %69 = vector.broadcast %68 : vector<1x256xf32> to vector<8x256xf32>
      %70 = arith.addf %67, %69 : vector<8x256xf32>
      %71 = arith.addf %64, %70 : vector<8x256xf32>
      %c0_53 = arith.constant 0 : index
      %c0_54 = arith.constant 0 : index
      %72 = vector.load %arg44[%c0_53, %c0_54] : memref<8x256xf32, #tpu.memory_space<vmem>>, vector<8x256xf32>
      tpu.vector_store %arg44[%c0_53, %c0_54], %71 {strides = array<i32>} : memref<8x256xf32, #tpu.memory_space<vmem>>, vector<8x256xf32>,
    } else {
    }
    %c2 = arith.constant 2 : index
    %10 = memref.load %arg1[%c2] : memref<5xi32, #tpu.memory_space<smem>>
    %c0_i32_5 = arith.constant 0 : i32
    %11 = arith.cmpi ne, %10, %c0_i32_5 : i32
    %12 = arith.extui %11 : i1 to i32
    %c0_i32_6 = arith.constant 0 : i32
    %13 = arith.cmpi ne, %12, %c0_i32_6 : i32
    scf.if %13 {
      %c0_32 = arith.constant 0 : index
      %c0_33 = arith.constant 0 : index
      %48 = vector.load %arg16[%c0_32, %c0_33] : memref<8x56xbf16, #tpu.memory_space<vmem>>, vector<8x56xbf16>
      %c0_34 = arith.constant 0 : index
      %c0_35 = arith.constant 0 : index
      %49 = vector.load %arg17[%c0_34, %c0_35] : memref<56x128xbf16, #tpu.memory_space<vmem>>, vector<56x128xbf16>
      %cst_36 = arith.constant dense<0.000000e+00> : vector<8x128xf32>
      %50 = tpu.matmul %48, %49, %cst_36 {dimension_numbers = #tpu.dot_dimension_numbers<[1], [0], [0], [1], [0, 0, 1, 1], [], []>} : vector<8x56xbf16>, vector<56x128xbf16>, vector<8x128xf32> -> vector<8x128xf32>
      %c0_37 = arith.constant 0 : index
      %c0_38 = arith.constant 0 : index
      %51 = vector.load %arg18[%c0_37, %c0_38] : memref<1x128xf32, #tpu.memory_space<vmem>>, vector<1x128xf32>
      %52 = vector.broadcast %51 : vector<1x128xf32> to vector<8x128xf32>
      %53 = arith.addf %50, %52 : vector<8x128xf32>
      %cst_39 = arith.constant 0.000000e+00 : f32
      %54 = vector.broadcast %cst_39 : f32 to vector<8x128xf32>
      %55 = arith.maximumf %53, %54 : vector<8x128xf32>
      %56 = arith.truncf %55 : vector<8x128xf32> to vector<8x128xbf16>
      %c0_40 = arith.constant 0 : index
      %c0_41 = arith.constant 0 : index
      %57 = vector.load %arg19[%c0_40, %c0_41] : memref<128x128xbf16, #tpu.memory_space<vmem>>, vector<128x128xbf16>
      %cst_42 = arith.constant dense<0.000000e+00> : vector<8x128xf32>
      %58 = tpu.matmul %56, %57, %cst_42 {dimension_numbers = #tpu.dot_dimension_numbers<[1], [0], [0], [1], [0, 0, 1, 1], [], []>} : vector<8x128xbf16>, vector<128x128xbf16>, vector<8x128xf32> -> vector<8x128xf32>
      %c0_43 = arith.constant 0 : index
      %c0_44 = arith.constant 0 : index
      %59 = vector.load %arg20[%c0_43, %c0_44] : memref<1x128xf32, #tpu.memory_space<vmem>>, vector<1x128xf32>
      %60 = vector.broadcast %59 : vector<1x128xf32> to vector<8x128xf32>
      %61 = arith.addf %58, %60 : vector<8x128xf32>
      %cst_45 = arith.constant 0.000000e+00 : f32
      %62 = vector.broadcast %cst_45 : f32 to vector<8x128xf32>
      %63 = arith.maximumf %61, %62 : vector<8x128xf32>
      %c0_46 = arith.constant 0 : index
      %c0_47 = arith.constant 0 : index
      %64 = vector.load %arg44[%c0_46, %c0_47] : memref<8x256xf32, #tpu.memory_space<vmem>>, vector<8x256xf32>
      %65 = arith.truncf %63 : vector<8x128xf32> to vector<8x128xbf16>
      %c0_48 = arith.constant 0 : index
      %c0_49 = arith.constant 0 : index
      %66 = vector.load %arg21[%c0_48, %c0_49] : memref<128x256xbf16, #tpu.memory_space<vmem>>, vector<128x256xbf16>
      %cst_50 = arith.constant dense<0.000000e+00> : vector<8x256xf32>
      %67 = tpu.matmul %65, %66, %cst_50 {dimension_numbers = #tpu.dot_dimension_numbers<[1], [0], [0], [1], [0, 0, 1, 1], [], []>} : vector<8x128xbf16>, vector<128x256xbf16>, vector<8x256xf32> -> vector<8x256xf32>
      %c0_51 = arith.constant 0 : index
      %c0_52 = arith.constant 0 : index
      %68 = vector.load %arg22[%c0_51, %c0_52] : memref<1x256xf32, #tpu.memory_space<vmem>>, vector<1x256xf32>
      %69 = vector.broadcast %68 : vector<1x256xf32> to vector<8x256xf32>
      %70 = arith.addf %67, %69 : vector<8x256xf32>
      %71 = arith.addf %64, %70 : vector<8x256xf32>
      %c0_53 = arith.constant 0 : index
      %c0_54 = arith.constant 0 : index
      %72 = vector.load %arg44[%c0_53, %c0_54] : memref<8x256xf32, #tpu.memory_space<vmem>>, vector<8x256xf32>
      tpu.vector_store %arg44[%c0_53, %c0_54], %71 {strides = array<i32>} : memref<8x256xf32, #tpu.memory_space<vmem>>, vector<8x256xf32>,
    } else {
    }
    %c3 = arith.constant 3 : index
    %14 = memref.load %arg1[%c3] : memref<5xi32, #tpu.memory_space<smem>>
    %c0_i32_7 = arith.constant 0 : i32
    %15 = arith.cmpi ne, %14, %c0_i32_7 : i32
    %16 = arith.extui %15 : i1 to i32
    %c0_i32_8 = arith.constant 0 : i32
    %17 = arith.cmpi ne, %16, %c0_i32_8 : i32
    scf.if %17 {
      %c0_32 = arith.constant 0 : index
      %c0_33 = arith.constant 0 : index
      %48 = vector.load %arg23[%c0_32, %c0_33] : memref<8x32xbf16, #tpu.memory_space<vmem>>, vector<8x32xbf16>
      %c0_34 = arith.constant 0 : index
      %c0_35 = arith.constant 0 : index
      %49 = vector.load %arg24[%c0_34, %c0_35] : memref<32x128xbf16, #tpu.memory_space<vmem>>, vector<32x128xbf16>
      %cst_36 = arith.constant dense<0.000000e+00> : vector<8x128xf32>
      %50 = tpu.matmul %48, %49, %cst_36 {dimension_numbers = #tpu.dot_dimension_numbers<[1], [0], [0], [1], [0, 0, 1, 1], [], []>} : vector<8x32xbf16>, vector<32x128xbf16>, vector<8x128xf32> -> vector<8x128xf32>
      %c0_37 = arith.constant 0 : index
      %c0_38 = arith.constant 0 : index
      %51 = vector.load %arg25[%c0_37, %c0_38] : memref<1x128xf32, #tpu.memory_space<vmem>>, vector<1x128xf32>
      %52 = vector.broadcast %51 : vector<1x128xf32> to vector<8x128xf32>
      %53 = arith.addf %50, %52 : vector<8x128xf32>
      %cst_39 = arith.constant 0.000000e+00 : f32
      %54 = vector.broadcast %cst_39 : f32 to vector<8x128xf32>
      %55 = arith.maximumf %53, %54 : vector<8x128xf32>
      %56 = arith.truncf %55 : vector<8x128xf32> to vector<8x128xbf16>
      %c0_40 = arith.constant 0 : index
      %c0_41 = arith.constant 0 : index
      %57 = vector.load %arg26[%c0_40, %c0_41] : memref<128x128xbf16, #tpu.memory_space<vmem>>, vector<128x128xbf16>
      %cst_42 = arith.constant dense<0.000000e+00> : vector<8x128xf32>
      %58 = tpu.matmul %56, %57, %cst_42 {dimension_numbers = #tpu.dot_dimension_numbers<[1], [0], [0], [1], [0, 0, 1, 1], [], []>} : vector<8x128xbf16>, vector<128x128xbf16>, vector<8x128xf32> -> vector<8x128xf32>
      %c0_43 = arith.constant 0 : index
      %c0_44 = arith.constant 0 : index
      %59 = vector.load %arg27[%c0_43, %c0_44] : memref<1x128xf32, #tpu.memory_space<vmem>>, vector<1x128xf32>
      %60 = vector.broadcast %59 : vector<1x128xf32> to vector<8x128xf32>
      %61 = arith.addf %58, %60 : vector<8x128xf32>
      %cst_45 = arith.constant 0.000000e+00 : f32
      %62 = vector.broadcast %cst_45 : f32 to vector<8x128xf32>
      %63 = arith.maximumf %61, %62 : vector<8x128xf32>
      %c0_46 = arith.constant 0 : index
      %c0_47 = arith.constant 0 : index
      %64 = vector.load %arg44[%c0_46, %c0_47] : memref<8x256xf32, #tpu.memory_space<vmem>>, vector<8x256xf32>
      %65 = arith.truncf %63 : vector<8x128xf32> to vector<8x128xbf16>
      %c0_48 = arith.constant 0 : index
      %c0_49 = arith.constant 0 : index
      %66 = vector.load %arg28[%c0_48, %c0_49] : memref<128x256xbf16, #tpu.memory_space<vmem>>, vector<128x256xbf16>
      %cst_50 = arith.constant dense<0.000000e+00> : vector<8x256xf32>
      %67 = tpu.matmul %65, %66, %cst_50 {dimension_numbers = #tpu.dot_dimension_numbers<[1], [0], [0], [1], [0, 0, 1, 1], [], []>} : vector<8x128xbf16>, vector<128x256xbf16>, vector<8x256xf32> -> vector<8x256xf32>
      %c0_51 = arith.constant 0 : index
      %c0_52 = arith.constant 0 : index
      %68 = vector.load %arg29[%c0_51, %c0_52] : memref<1x256xf32, #tpu.memory_space<vmem>>, vector<1x256xf32>
      %69 = vector.broadcast %68 : vector<1x256xf32> to vector<8x256xf32>
      %70 = arith.addf %67, %69 : vector<8x256xf32>
      %71 = arith.addf %64, %70 : vector<8x256xf32>
      %c0_53 = arith.constant 0 : index
      %c0_54 = arith.constant 0 : index
      %72 = vector.load %arg44[%c0_53, %c0_54] : memref<8x256xf32, #tpu.memory_space<vmem>>, vector<8x256xf32>
      tpu.vector_store %arg44[%c0_53, %c0_54], %71 {strides = array<i32>} : memref<8x256xf32, #tpu.memory_space<vmem>>, vector<8x256xf32>,
    } else {
    }
    %c4 = arith.constant 4 : index
    %18 = memref.load %arg1[%c4] : memref<5xi32, #tpu.memory_space<smem>>
    %c0_i32_9 = arith.constant 0 : i32
    %19 = arith.cmpi ne, %18, %c0_i32_9 : i32
    %20 = arith.extui %19 : i1 to i32
    %c0_i32_10 = arith.constant 0 : i32
    %21 = arith.cmpi ne, %20, %c0_i32_10 : i32
    scf.if %21 {
      %c0_32 = arith.constant 0 : index
      %c0_33 = arith.constant 0 : index
      %48 = vector.load %arg30[%c0_32, %c0_33] : memref<8x64xbf16, #tpu.memory_space<vmem>>, vector<8x64xbf16>
      %c0_34 = arith.constant 0 : index
      %c0_35 = arith.constant 0 : index
      %49 = vector.load %arg31[%c0_34, %c0_35] : memref<64x128xbf16, #tpu.memory_space<vmem>>, vector<64x128xbf16>
      %cst_36 = arith.constant dense<0.000000e+00> : vector<8x128xf32>
      %50 = tpu.matmul %48, %49, %cst_36 {dimension_numbers = #tpu.dot_dimension_numbers<[1], [0], [0], [1], [0, 0, 1, 1], [], []>} : vector<8x64xbf16>, vector<64x128xbf16>, vector<8x128xf32> -> vector<8x128xf32>
      %c0_37 = arith.constant 0 : index
      %c0_38 = arith.constant 0 : index
      %51 = vector.load %arg32[%c0_37, %c0_38] : memref<1x128xf32, #tpu.memory_space<vmem>>, vector<1x128xf32>
      %52 = vector.broadcast %51 : vector<1x128xf32> to vector<8x128xf32>
      %53 = arith.addf %50, %52 : vector<8x128xf32>
      %cst_39 = arith.constant 0.000000e+00 : f32
      %54 = vector.broadcast %cst_39 : f32 to vector<8x128xf32>
      %55 = arith.maximumf %53, %54 : vector<8x128xf32>
      %56 = arith.truncf %55 : vector<8x128xf32> to vector<8x128xbf16>
      %c0_40 = arith.constant 0 : index
      %c0_41 = arith.constant 0 : index
      %57 = vector.load %arg33[%c0_40, %c0_41] : memref<128x128xbf16, #tpu.memory_space<vmem>>, vector<128x128xbf16>
      %cst_42 = arith.constant dense<0.000000e+00> : vector<8x128xf32>
      %58 = tpu.matmul %56, %57, %cst_42 {dimension_numbers = #tpu.dot_dimension_numbers<[1], [0], [0], [1], [0, 0, 1, 1], [], []>} : vector<8x128xbf16>, vector<128x128xbf16>, vector<8x128xf32> -> vector<8x128xf32>
      %c0_43 = arith.constant 0 : index
      %c0_44 = arith.constant 0 : index
      %59 = vector.load %arg34[%c0_43, %c0_44] : memref<1x128xf32, #tpu.memory_space<vmem>>, vector<1x128xf32>
      %60 = vector.broadcast %59 : vector<1x128xf32> to vector<8x128xf32>
      %61 = arith.addf %58, %60 : vector<8x128xf32>
      %cst_45 = arith.constant 0.000000e+00 : f32
      %62 = vector.broadcast %cst_45 : f32 to vector<8x128xf32>
      %63 = arith.maximumf %61, %62 : vector<8x128xf32>
      %c0_46 = arith.constant 0 : index
      %c0_47 = arith.constant 0 : index
      %64 = vector.load %arg44[%c0_46, %c0_47] : memref<8x256xf32, #tpu.memory_space<vmem>>, vector<8x256xf32>
      %65 = arith.truncf %63 : vector<8x128xf32> to vector<8x128xbf16>
      %c0_48 = arith.constant 0 : index
      %c0_49 = arith.constant 0 : index
      %66 = vector.load %arg35[%c0_48, %c0_49] : memref<128x256xbf16, #tpu.memory_space<vmem>>, vector<128x256xbf16>
      %cst_50 = arith.constant dense<0.000000e+00> : vector<8x256xf32>
      %67 = tpu.matmul %65, %66, %cst_50 {dimension_numbers = #tpu.dot_dimension_numbers<[1], [0], [0], [1], [0, 0, 1, 1], [], []>} : vector<8x128xbf16>, vector<128x256xbf16>, vector<8x256xf32> -> vector<8x256xf32>
      %c0_51 = arith.constant 0 : index
      %c0_52 = arith.constant 0 : index
      %68 = vector.load %arg36[%c0_51, %c0_52] : memref<1x256xf32, #tpu.memory_space<vmem>>, vector<1x256xf32>
      %69 = vector.broadcast %68 : vector<1x256xf32> to vector<8x256xf32>
      %70 = arith.addf %67, %69 : vector<8x256xf32>
      %71 = arith.addf %64, %70 : vector<8x256xf32>
      %c0_53 = arith.constant 0 : index
      %c0_54 = arith.constant 0 : index
      %72 = vector.load %arg44[%c0_53, %c0_54] : memref<8x256xf32, #tpu.memory_space<vmem>>, vector<8x256xf32>
      tpu.vector_store %arg44[%c0_53, %c0_54], %71 {strides = array<i32>} : memref<8x256xf32, #tpu.memory_space<vmem>>, vector<8x256xf32>,
    } else {
    }
    %c0_11 = arith.constant 0 : index
    %c0_12 = arith.constant 0 : index
    %22 = vector.load %arg44[%c0_11, %c0_12] : memref<8x256xf32, #tpu.memory_space<vmem>>, vector<8x256xf32>
    %23 = arith.truncf %22 : vector<8x256xf32> to vector<8x256xbf16>
    %c0_13 = arith.constant 0 : index
    %c0_14 = arith.constant 0 : index
    %24 = vector.load %arg37[%c0_13, %c0_14] : memref<256x128xbf16, #tpu.memory_space<vmem>>, vector<256x128xbf16>
    %cst_15 = arith.constant dense<0.000000e+00> : vector<8x128xf32>
    %25 = tpu.matmul %23, %24, %cst_15 {dimension_numbers = #tpu.dot_dimension_numbers<[1], [0], [0], [1], [0, 0, 1, 1], [], []>} : vector<8x256xbf16>, vector<256x128xbf16>, vector<8x128xf32> -> vector<8x128xf32>
    %c0_16 = arith.constant 0 : index
    %c0_17 = arith.constant 0 : index
    %26 = vector.load %arg38[%c0_16, %c0_17] : memref<1x128xf32, #tpu.memory_space<vmem>>, vector<1x128xf32>
    %27 = vector.broadcast %26 : vector<1x128xf32> to vector<8x128xf32>
    %28 = arith.addf %25, %27 : vector<8x128xf32>
    %cst_18 = arith.constant 0.000000e+00 : f32
    %29 = vector.broadcast %cst_18 : f32 to vector<8x128xf32>
    %30 = arith.maximumf %28, %29 : vector<8x128xf32>
    %31 = arith.truncf %30 : vector<8x128xf32> to vector<8x128xbf16>
    %c0_19 = arith.constant 0 : index
    %c0_20 = arith.constant 0 : index
    %32 = vector.load %arg39[%c0_19, %c0_20] : memref<128x128xbf16, #tpu.memory_space<vmem>>, vector<128x128xbf16>
    %cst_21 = arith.constant dense<0.000000e+00> : vector<8x128xf32>
    %33 = tpu.matmul %31, %32, %cst_21 {dimension_numbers = #tpu.dot_dimension_numbers<[1], [0], [0], [1], [0, 0, 1, 1], [], []>} : vector<8x128xbf16>, vector<128x128xbf16>, vector<8x128xf32> -> vector<8x128xf32>
    %c0_22 = arith.constant 0 : index
    %c0_23 = arith.constant 0 : index
    %34 = vector.load %arg40[%c0_22, %c0_23] : memref<1x128xf32, #tpu.memory_space<vmem>>, vector<1x128xf32>
    %35 = vector.broadcast %34 : vector<1x128xf32> to vector<8x128xf32>
    %36 = arith.addf %33, %35 : vector<8x128xf32>
    %cst_24 = arith.constant 0.000000e+00 : f32
    %37 = vector.broadcast %cst_24 : f32 to vector<8x128xf32>
    %38 = arith.maximumf %36, %37 : vector<8x128xf32>
    %c0_25 = arith.constant 0 : index
    %c0_26 = arith.constant 0 : index
    %39 = vector.load %arg41[%c0_25, %c0_26] : memref<1x128xf32, #tpu.memory_space<vmem>>, vector<1x128xf32>
    %40 = vector.broadcast %39 : vector<1x128xf32> to vector<8x128xf32>
    %41 = arith.mulf %38, %40 : vector<8x128xf32>
    %cst_27 = arith.constant dense<0.000000e+00> : vector<8xf32>
    %42 = vector.multi_reduction <add>, %41, %cst_27 [1] : vector<8x128xf32> to vector<8xf32>
    %43 = vector.shape_cast %42 : vector<8xf32> to vector<8x1xf32>
    %c0_28 = arith.constant 0 : index
    %c0_29 = arith.constant 0 : index
    %44 = vector.load %arg42[%c0_28, %c0_29] : memref<1x1xf32, #tpu.memory_space<vmem>>, vector<1x1xf32>
    %45 = vector.broadcast %44 : vector<1x1xf32> to vector<8x1xf32>
    %46 = arith.addf %43, %45 : vector<8x1xf32>
    %c0_30 = arith.constant 0 : index
    %c0_31 = arith.constant 0 : index
    %47 = vector.load %arg43[%c0_30, %c0_31] : memref<8x1xf32, #tpu.memory_space<vmem>>, vector<8x1xf32>
    tpu.vector_store %arg43[%c0_30, %c0_31], %46 {strides = array<i32>} : memref<8x1xf32, #tpu.memory_space<vmem>>, vector<8x1xf32>,
    return
  }
  func.func @transform_0(%arg0: i32, %arg1: memref<5xi32, #tpu.memory_space<smem>>) -> (i32, i32) {
    %c0_i32 = arith.constant 0 : i32
    %c0_i32_0 = arith.constant 0 : i32
    return %arg0, %c0_i32 : i32, i32
  }
  func.func @transform_1(%arg0: i32, %arg1: memref<5xi32, #tpu.memory_space<smem>>) -> (i32, i32) {
    %c0_i32 = arith.constant 0 : i32
    %c0_i32_0 = arith.constant 0 : i32
    %c0_i32_1 = arith.constant 0 : i32
    return %c0_i32, %c0_i32_0 : i32, i32
  }
  func.func @transform_2(%arg0: i32, %arg1: memref<5xi32, #tpu.memory_space<smem>>) -> (i32, i32) {
    %c0_i32 = arith.constant 0 : i32
    %c0_i32_0 = arith.constant 0 : i32
    %c0_i32_1 = arith.constant 0 : i32
    return %c0_i32, %c0_i32_0 : i32, i32
  }
  func.func @transform_3(%arg0: i32, %arg1: memref<5xi32, #tpu.memory_space<smem>>) -> (i32, i32) {
    %c0_i32 = arith.constant 0 : i32
    %c0_i32_0 = arith.constant 0 : i32
    %c0_i32_1 = arith.constant 0 : i32
    return %c0_i32, %c0_i32_0 : i32, i32
  }
  func.func @transform_4(%arg0: i32, %arg1: memref<5xi32, #tpu.memory_space<smem>>) -> (i32, i32) {
    %c0_i32 = arith.constant 0 : i32
    %c0_i32_0 = arith.constant 0 : i32
    %c0_i32_1 = arith.constant 0 : i32
    return %c0_i32, %c0_i32_0 : i32, i32
  }
  func.func @transform_5(%arg0: i32, %arg1: memref<5xi32, #tpu.memory_space<smem>>) -> (i32, i32) {
    %c0_i32 = arith.constant 0 : i32
    %c0_i32_0 = arith.constant 0 : i32
    %c0_i32_1 = arith.constant 0 : i32
    return %c0_i32, %c0_i32_0 : i32, i32
  }
  func.func @transform_6(%arg0: i32, %arg1: memref<5xi32, #tpu.memory_space<smem>>) -> (i32, i32) {
    %c0_i32 = arith.constant 0 : i32
    %c0_i32_0 = arith.constant 0 : i32
    %c0_i32_1 = arith.constant 0 : i32
    return %c0_i32, %c0_i32_0 : i32, i32
  }
  func.func @transform_7(%arg0: i32, %arg1: memref<5xi32, #tpu.memory_space<smem>>) -> (i32, i32) {
    %c0_i32 = arith.constant 0 : i32
    %c0_i32_0 = arith.constant 0 : i32
    return %arg0, %c0_i32 : i32, i32
  }
  func.func @transform_8(%arg0: i32, %arg1: memref<5xi32, #tpu.memory_space<smem>>) -> (i32, i32) {
    %c0_i32 = arith.constant 0 : i32
    %c0_i32_0 = arith.constant 0 : i32
    %c0_i32_1 = arith.constant 0 : i32
    return %c0_i32, %c0_i32_0 : i32, i32
  }
  func.func @transform_9(%arg0: i32, %arg1: memref<5xi32, #tpu.memory_space<smem>>) -> (i32, i32) {
    %c0_i32 = arith.constant 0 : i32
    %c0_i32_0 = arith.constant 0 : i32
    %c0_i32_1 = arith.constant 0 : i32
    return %c0_i32, %c0_i32_0 : i32, i32
  }
  func.func @transform_10(%arg0: i32, %arg1: memref<5xi32, #tpu.memory_space<smem>>) -> (i32, i32) {
    %c0_i32 = arith.constant 0 : i32
    %c0_i32_0 = arith.constant 0 : i32
    %c0_i32_1 = arith.constant 0 : i32
    return %c0_i32, %c0_i32_0 : i32, i32
  }
  func.func @transform_11(%arg0: i32, %arg1: memref<5xi32, #tpu.memory_space<smem>>) -> (i32, i32) {
    %c0_i32 = arith.constant 0 : i32
    %c0_i32_0 = arith.constant 0 : i32
    %c0_i32_1 = arith.constant 0 : i32
    return %c0_i32, %c0_i32_0 : i32, i32
  }
  func.func @transform_12(%arg0: i32, %arg1: memref<5xi32, #tpu.memory_space<smem>>) -> (i32, i32) {
    %c0_i32 = arith.constant 0 : i32
    %c0_i32_0 = arith.constant 0 : i32
    %c0_i32_1 = arith.constant 0 : i32
    return %c0_i32, %c0_i32_0 : i32, i32
  }
  func.func @transform_13(%arg0: i32, %arg1: memref<5xi32, #tpu.memory_space<smem>>) -> (i32, i32) {
    %c0_i32 = arith.constant 0 : i32
    %c0_i32_0 = arith.constant 0 : i32
    %c0_i32_1 = arith.constant 0 : i32
    return %c0_i32, %c0_i32_0 : i32, i32
  }
  func.func @transform_14(%arg0: i32, %arg1: memref<5xi32, #tpu.memory_space<smem>>) -> (i32, i32) {
    %c0_i32 = arith.constant 0 : i32
    %c0_i32_0 = arith.constant 0 : i32
    return %arg0, %c0_i32 : i32, i32
  }
  func.func @transform_15(%arg0: i32, %arg1: memref<5xi32, #tpu.memory_space<smem>>) -> (i32, i32) {
    %c0_i32 = arith.constant 0 : i32
    %c0_i32_0 = arith.constant 0 : i32
    %c0_i32_1 = arith.constant 0 : i32
    return %c0_i32, %c0_i32_0 : i32, i32
  }
  func.func @transform_16(%arg0: i32, %arg1: memref<5xi32, #tpu.memory_space<smem>>) -> (i32, i32) {
    %c0_i32 = arith.constant 0 : i32
    %c0_i32_0 = arith.constant 0 : i32
    %c0_i32_1 = arith.constant 0 : i32
    return %c0_i32, %c0_i32_0 : i32, i32
  }
  func.func @transform_17(%arg0: i32, %arg1: memref<5xi32, #tpu.memory_space<smem>>) -> (i32, i32) {
    %c0_i32 = arith.constant 0 : i32
    %c0_i32_0 = arith.constant 0 : i32
    %c0_i32_1 = arith.constant 0 : i32
    return %c0_i32, %c0_i32_0 : i32, i32
  }
  func.func @transform_18(%arg0: i32, %arg1: memref<5xi32, #tpu.memory_space<smem>>) -> (i32, i32) {
    %c0_i32 = arith.constant 0 : i32
    %c0_i32_0 = arith.constant 0 : i32
    %c0_i32_1 = arith.constant 0 : i32
    return %c0_i32, %c0_i32_0 : i32, i32
  }
  func.func @transform_19(%arg0: i32, %arg1: memref<5xi32, #tpu.memory_space<smem>>) -> (i32, i32) {
    %c0_i32 = arith.constant 0 : i32
    %c0_i32_0 = arith.constant 0 : i32
    %c0_i32_1 = arith.constant 0 : i32
    return %c0_i32, %c0_i32_0 : i32, i32
  }
  func.func @transform_20(%arg0: i32, %arg1: memref<5xi32, #tpu.memory_space<smem>>) -> (i32, i32) {
    %c0_i32 = arith.constant 0 : i32
    %c0_i32_0 = arith.constant 0 : i32
    %c0_i32_1 = arith.constant 0 : i32
    return %c0_i32, %c0_i32_0 : i32, i32
  }
  func.func @transform_21(%arg0: i32, %arg1: memref<5xi32, #tpu.memory_space<smem>>) -> (i32, i32) {
    %c0_i32 = arith.constant 0 : i32
    %c0_i32_0 = arith.constant 0 : i32
    return %arg0, %c0_i32 : i32, i32
  }
  func.func @transform_22(%arg0: i32, %arg1: memref<5xi32, #tpu.memory_space<smem>>) -> (i32, i32) {
    %c0_i32 = arith.constant 0 : i32
    %c0_i32_0 = arith.constant 0 : i32
    %c0_i32_1 = arith.constant 0 : i32
    return %c0_i32, %c0_i32_0 : i32, i32
  }
  func.func @transform_23(%arg0: i32, %arg1: memref<5xi32, #tpu.memory_space<smem>>) -> (i32, i32) {
    %c0_i32 = arith.constant 0 : i32
    %c0_i32_0 = arith.constant 0 : i32
    %c0_i32_1 = arith.constant 0 : i32
    return %c0_i32, %c0_i32_0 : i32, i32
  }
  func.func @transform_24(%arg0: i32, %arg1: memref<5xi32, #tpu.memory_space<smem>>) -> (i32, i32) {
    %c0_i32 = arith.constant 0 : i32
    %c0_i32_0 = arith.constant 0 : i32
    %c0_i32_1 = arith.constant 0 : i32
    return %c0_i32, %c0_i32_0 : i32, i32
  }
  func.func @transform_25(%arg0: i32, %arg1: memref<5xi32, #tpu.memory_space<smem>>) -> (i32, i32) {
    %c0_i32 = arith.constant 0 : i32
    %c0_i32_0 = arith.constant 0 : i32
    %c0_i32_1 = arith.constant 0 : i32
    return %c0_i32, %c0_i32_0 : i32, i32
  }
  func.func @transform_26(%arg0: i32, %arg1: memref<5xi32, #tpu.memory_space<smem>>) -> (i32, i32) {
    %c0_i32 = arith.constant 0 : i32
    %c0_i32_0 = arith.constant 0 : i32
    %c0_i32_1 = arith.constant 0 : i32
    return %c0_i32, %c0_i32_0 : i32, i32
  }
  func.func @transform_27(%arg0: i32, %arg1: memref<5xi32, #tpu.memory_space<smem>>) -> (i32, i32) {
    %c0_i32 = arith.constant 0 : i32
    %c0_i32_0 = arith.constant 0 : i32
    %c0_i32_1 = arith.constant 0 : i32
    return %c0_i32, %c0_i32_0 : i32, i32
  }
  func.func @transform_28(%arg0: i32, %arg1: memref<5xi32, #tpu.memory_space<smem>>) -> (i32, i32) {
    %c0_i32 = arith.constant 0 : i32
    %c0_i32_0 = arith.constant 0 : i32
    return %arg0, %c0_i32 : i32, i32
  }
  func.func @transform_29(%arg0: i32, %arg1: memref<5xi32, #tpu.memory_space<smem>>) -> (i32, i32) {
    %c0_i32 = arith.constant 0 : i32
    %c0_i32_0 = arith.constant 0 : i32
    %c0_i32_1 = arith.constant 0 : i32
    return %c0_i32, %c0_i32_0 : i32, i32
  }
  func.func @transform_30(%arg0: i32, %arg1: memref<5xi32, #tpu.memory_space<smem>>) -> (i32, i32) {
    %c0_i32 = arith.constant 0 : i32
    %c0_i32_0 = arith.constant 0 : i32
    %c0_i32_1 = arith.constant 0 : i32
    return %c0_i32, %c0_i32_0 : i32, i32
  }
  func.func @transform_31(%arg0: i32, %arg1: memref<5xi32, #tpu.memory_space<smem>>) -> (i32, i32) {
    %c0_i32 = arith.constant 0 : i32
    %c0_i32_0 = arith.constant 0 : i32
    %c0_i32_1 = arith.constant 0 : i32
    return %c0_i32, %c0_i32_0 : i32, i32
  }
  func.func @transform_32(%arg0: i32, %arg1: memref<5xi32, #tpu.memory_space<smem>>) -> (i32, i32) {
    %c0_i32 = arith.constant 0 : i32
    %c0_i32_0 = arith.constant 0 : i32
    %c0_i32_1 = arith.constant 0 : i32
    return %c0_i32, %c0_i32_0 : i32, i32
  }
  func.func @transform_33(%arg0: i32, %arg1: memref<5xi32, #tpu.memory_space<smem>>) -> (i32, i32) {
    %c0_i32 = arith.constant 0 : i32
    %c0_i32_0 = arith.constant 0 : i32
    %c0_i32_1 = arith.constant 0 : i32
    return %c0_i32, %c0_i32_0 : i32, i32
  }
  func.func @transform_34(%arg0: i32, %arg1: memref<5xi32, #tpu.memory_space<smem>>) -> (i32, i32) {
    %c0_i32 = arith.constant 0 : i32
    %c0_i32_0 = arith.constant 0 : i32
    %c0_i32_1 = arith.constant 0 : i32
    return %c0_i32, %c0_i32_0 : i32, i32
  }
  func.func @transform_35(%arg0: i32, %arg1: memref<5xi32, #tpu.memory_space<smem>>) -> (i32, i32) {
    %c0_i32 = arith.constant 0 : i32
    %c0_i32_0 = arith.constant 0 : i32
    %c0_i32_1 = arith.constant 0 : i32
    return %c0_i32, %c0_i32_0 : i32, i32
  }
  func.func @transform_36(%arg0: i32, %arg1: memref<5xi32, #tpu.memory_space<smem>>) -> (i32, i32) {
    %c0_i32 = arith.constant 0 : i32
    %c0_i32_0 = arith.constant 0 : i32
    %c0_i32_1 = arith.constant 0 : i32
    return %c0_i32, %c0_i32_0 : i32, i32
  }
  func.func @transform_37(%arg0: i32, %arg1: memref<5xi32, #tpu.memory_space<smem>>) -> (i32, i32) {
    %c0_i32 = arith.constant 0 : i32
    %c0_i32_0 = arith.constant 0 : i32
    %c0_i32_1 = arith.constant 0 : i32
    return %c0_i32, %c0_i32_0 : i32, i32
  }
  func.func @transform_38(%arg0: i32, %arg1: memref<5xi32, #tpu.memory_space<smem>>) -> (i32, i32) {
    %c0_i32 = arith.constant 0 : i32
    %c0_i32_0 = arith.constant 0 : i32
    %c0_i32_1 = arith.constant 0 : i32
    return %c0_i32, %c0_i32_0 : i32, i32
  }
  func.func @transform_39(%arg0: i32, %arg1: memref<5xi32, #tpu.memory_space<smem>>) -> (i32, i32) {
    %c0_i32 = arith.constant 0 : i32
    %c0_i32_0 = arith.constant 0 : i32
    %c0_i32_1 = arith.constant 0 : i32
    return %c0_i32, %c0_i32_0 : i32, i32
  }
  func.func @transform_40(%arg0: i32, %arg1: memref<5xi32, #tpu.memory_space<smem>>) -> (i32, i32) {
    %c0_i32 = arith.constant 0 : i32
    %c0_i32_0 = arith.constant 0 : i32
    %c0_i32_1 = arith.constant 0 : i32
    return %c0_i32, %c0_i32_0 : i32, i32
  }
  func.func @transform_41(%arg0: i32, %arg1: memref<5xi32, #tpu.memory_space<smem>>) -> (i32, i32) {
    %c0_i32 = arith.constant 0 : i32
    %c0_i32_0 = arith.constant 0 : i32
    return %arg0, %c0_i32 : i32, i32
  }
}

</mosaic_0001>

<bundles_post_ra>
// kernel: tpu_custom_call.1
= control target key start
LH: loop header
LB: loop body
LE: loop exit
PB: predicated region body
PF: predicated region fallthrough
CT: control target
= control target key end

     0   :  { %s6065_s6 = smov 1   ;;  %s6066_s10 = smov 2   ;;  %s6951_s0 = inlined_call_operand.smem [shape: u32[43], index: -1, kind: input, shape index: {}] }
   0x1   :  { %s6148_s5 = sld [smem:[%s6951_s0]]   ;;  %s6067_s14 = smov 3  }
   0x2   :  { %s6153_s9 = sld [smem:[%s6951_s0 + %s6065_s6]]   ;;  %s6068_s18 = smov 4  }
   0x3   :  { %s6158_s13 = sld [smem:[%s6951_s0 + %s6066_s10]]   ;;  %s6069_s22 = smov 5  }
   0x4   :  { %s6163_s17 = sld [smem:[%s6951_s0 + %s6067_s14]]   ;;  %s6070_s26 = smov 6  }
   0x5   :  { %s6168_s21 = sld [smem:[%s6951_s0 + %s6068_s18]]   ;;  %s6071_s30 = smov 7  }
   0x6   :  { %s6173_s25 = sld [smem:[%s6951_s0 + %s6069_s22]]   ;;  %s6072_s4 = smov 8  }
   0x7   :  { %s6178_s29 = sld [smem:[%s6951_s0 + %s6070_s26]]   ;;  %s6073_s10 = smov 9  }
   0x8   :  { %7000 = sst [smem:[#allocation72_spill]] %s6153_s9  ;;  %s6074_s15 = smov 10  }
   0x9   :  { %7001 = sst [smem:[#allocation73_spill]] %s6158_s13  ;;  %s6075_s20 = smov 11  }
   0xa   :  { %7002 = sst [smem:[#allocation74_spill]] %s6163_s17  ;;  %s6076_s26 = smov 12  }
   0xb   :  { %s6183_s3 = sld [smem:[%s6951_s0 + %s6071_s30]]   ;;  %s6077_s1 = smov 13  }
   0xc   :  { %s6188_s8 = sld [smem:[%s6951_s0 + %s6072_s4]]   ;;  %s6078_s7 = smov 14  }
   0xd   :  { %s6193_s14 = sld [smem:[%s6951_s0 + %s6073_s10]]   ;;  %s6080_s22 = smov 16  }
   0xe   :  { %s6198_s19 = sld [smem:[%s6951_s0 + %s6074_s15]]   ;;  %s6079_s15 = smov 15  }
   0xf   :  { %s6203_s24 = sld [smem:[%s6951_s0 + %s6075_s20]]   ;;  %s6081_s28 = smov 17  }
  0x10   :  { %s6208_s30 = sld [smem:[%s6951_s0 + %s6076_s26]]   ;;  %s6104_s26 = smov 40  }
  0x11   :  { %7003 = sst [smem:[#allocation75_spill]] %s6183_s3  ;;  %s6105_s2 = smov 42  }
  0x12   :  { %7004 = sst [smem:[#allocation76_spill]] %s6188_s8 }
  0x13   :  { %7005 = sst [smem:[#allocation77_spill]] %s6193_s14 }
  0x14   :  { %s6213_s6 = sld [smem:[%s6951_s0 + %s6077_s1]]  }
  0x15   :  { %s6218_s12 = sld [smem:[%s6951_s0 + %s6078_s7]]   ;;  %s6082_s7 = smov 18  }
  0x16   :  { %7006 = sst [smem:[#allocation78_spill]] %s6208_s30 }
  0x17   :  { %s6223_s20 = sld [smem:[%s6951_s0 + %s6079_s15]]   ;;  %s6083_s15 = smov 19  }
  0x18   :  { %s6228_s27 = sld [smem:[%s6951_s0 + %s6080_s22]]   ;;  %s6084_s22 = smov 20  }
  0x19   :  { %s6233_s4 = sld [smem:[%s6951_s0 + %s6081_s28]]   ;;  %s6085_s28 = smov 21  }
  0x1a   :  { %7007 = sst [smem:[#allocation79_spill]] %s6213_s6 }
  0x1b   :  { %7008 = sst [smem:[#allocation80_spill]] %s6218_s12 }
  0x1c   :  { %s6238_s8 = sld [smem:[%s6951_s0 + %s6082_s7]]   ;;  %s6086_s7 = smov 22  }
  0x1d   :  { %7009 = sst [smem:[#allocation81_spill]] %s6223_s20 }
  0x1e   :  { %7010 = sst [smem:[#allocation82_spill]] %s6228_s27 }
  0x1f   :  { %7011 = sst [smem:[#allocation83_spill]] %s6233_s4 }
  0x20   :  { %s6243_s20 = sld [smem:[%s6951_s0 + %s6083_s15]]   ;;  %s6087_s15 = smov 23  }
  0x21   :  { %s6248_s9 = sld [smem:[%s6951_s0 + %s6084_s22]]   ;;  %s6088_s22 = smov 24  }
  0x22   :  { %7012 = sst [smem:[#allocation84_spill]] %s6238_s8 }
  0x23   :  { %s6253_s27 = sld [smem:[%s6951_s0 + %s6085_s28]]   ;;  %s6089_s28 = smov 25  }
  0x24   :  { %s6258_s12 = sld [smem:[%s6951_s0 + %s6086_s7]]   ;;  %s6090_s7 = smov 26  }
  0x25   :  { %s6263_s30 = sld [smem:[%s6951_s0 + %s6087_s15]]   ;;  %s6091_s15 = smov 27  }
  0x27   :  { %7013 = sst [smem:[#allocation85_spill]] %s6248_s9 }
  0x28   :  { %s6268_s9 = sld [smem:[%s6951_s0 + %s6088_s22]]   ;;  %s6092_s22 = smov 28  }
  0x29   :  { %7014 = sst [smem:[#allocation86_spill]] %s6253_s27 }
  0x2a   :  { %7015 = sst [smem:[#allocation87_spill]] %s6258_s12 }
  0x2b   :  { %7016 = sst [smem:[#allocation88_spill]] %s6263_s30 }
  0x2c   :  { %s6273_s27 = sld [smem:[%s6951_s0 + %s6089_s28]]   ;;  %s6093_s28 = smov 29  }
  0x2d   :  { %s6278_s12 = sld [smem:[%s6951_s0 + %s6090_s7]]   ;;  %s6094_s7 = smov 30  }
  0x2e   :  { %7017 = sst [smem:[#allocation89_spill]] %s6268_s9 }
  0x2f   :  { %s6283_s30 = sld [smem:[%s6951_s0 + %s6091_s15]]   ;;  %s6095_s15 = smov 31  }
  0x30   :  { %s6288_s9 = sld [smem:[%s6951_s0 + %s6092_s22]]   ;;  %s6096_s22 = smov 32  }
  0x31   :  { %s6308_s1 = sld [smem:[%s6951_s0 + %s6096_s22]]   ;;  %s6100_s22 = smov 36  }
  0x32   :  { %7018 = sst [smem:[#allocation90_spill]] %s6273_s27 }
  0x33   :  { %7019 = sst [smem:[#allocation91_spill]] %s6278_s12 }
  0x34   :  { %s6293_s27 = sld [smem:[%s6951_s0 + %s6093_s28]]   ;;  %s6097_s28 = smov 33  }
  0x35   :  { %7020 = sst [smem:[#allocation92_spill]] %s6283_s30 }
  0x36   :  { %7021 = sst [smem:[#allocation93_spill]] %s6288_s9  ;;  %s6101_s9 = smov 37  }
  0x37   :  { %s6298_s12 = sld [smem:[%s6951_s0 + %s6094_s7]]   ;;  %s6098_s7 = smov 34  }
  0x38   :  { %s6303_s30 = sld [smem:[%s6951_s0 + %s6095_s15]]   ;;  %s6099_s15 = smov 35  }
  0x39   :  { %7025 = sst [smem:[#allocation97_spill]] %s6308_s1 }
  0x3a   :  { %7022 = sst [smem:[#allocation94_spill]] %s6293_s27 }
  0x3b   :  { %s6313_s10 = sld [smem:[%s6951_s0 + %s6097_s28]]  }
  0x3c   :  { %s6318_s16 = sld [smem:[%s6951_s0 + %s6098_s7]]   ;;  %s6102_s7 = smov 38  }
  0x3d   :  { %7023 = sst [smem:[#allocation95_spill]] %s6298_s12 }
  0x3e   :  { %7024 = sst [smem:[#allocation96_spill]] %s6303_s30 }
  0x3f   :  { %s6323_s23 = sld [smem:[%s6951_s0 + %s6099_s15]]   ;;  %s6103_s15 = smov 39  }
  0x40   :  { %s6328_s12 = sld [smem:[%s6951_s0 + %s6100_s22]]   ;;  %s91_s22 = sshll.u32 %s6148_s5, 4  ;;  %s92_s22 = int_to_ptr.hbm [resolvable:$true] %s91_s22 }
  0x41   :  { %7026 = sst [smem:[#allocation98_spill]] %s6313_s10 }
  0x42   :  { %7027 = sst [smem:[#allocation99_spill]] %s6318_s16 }
  0x43   :  { %s6333_s27 = sld [smem:[%s6951_s0 + %s6101_s9]]  }
  0x44   :  { %s6338_s30 = sld [smem:[%s6951_s0 + %s6102_s7]]   ;;  %s5055_s7 = sshra.s32 %s92_s22, 4  ;;  %s5056_s7 = int_to_ptr.hbm [resolvable:$true] %s5055_s7 }
  0x45   :  { %7028 = sst [smem:[#allocation100_spill]] %s6323_s23  ;;  %s5057_s11 = scalar_lea.hbm %s5056_s7, 1 }
  0x46   :  { %7029 = sst [smem:[#allocation101_spill]] %s6328_s12  ;;  %p5058_p0 = scmp.ne.s32.totalorder %s5056_s7, %s5057_s11 }
  0x47   :  { %s6343_s1 = sld [smem:[%s6951_s0 + %s6103_s15]]   ;;  %s5059_s23 = scalar_lea.hbm %s6148_s5, 1 }
  0x48   :  { %s6349_s9 = sld [smem:[%s6951_s0 + %s6104_s26]]   ;;  %p5060_p1 = scmp.lt.s32.totalorder %s5056_s7, %s6148_s5 }
  0x49   :  { %7030 = sst [smem:[#allocation102_spill]] %s6333_s27  ;;  %p5061_p2 = scmp.lt.s32.totalorder %s5059_s23, %s5057_s11 }
  0x4a   :  { %s6354_s10 = sld [smem:[%s6951_s0 + %s6105_s2]]  }
  0x4b   :  { %p5062_p3 = por %p5061_p2, %p5060_p1 }
  0x4d   :  { %7031 = sst [smem:[#allocation103_spill]] %s6343_s1  ;;  %p5063_p4 = pnand %p5062_p3, %p5058_p0 }
  0x4e   :  { %7032 = sst [smem:[#allocation104_spill]] %s6349_s9 }
  0x50   :  { %7033 = sst [smem:[#allocation105_spill]] %s6354_s10 }
  0x51   :  { %5066 = shalt.err (!%p5063_p4)  }
  0x52   :  { %s6106_s16 = smov [#allocation4]   ;;  %s6107_s15 = smov 41  }
  0x53   :  { %94 = dma.hbm_to_smem %s92_s22, 16, %s6106_s16, [#allocation3] }
  0x54   :  { %s3869_s28 = sld [smem:[%s6951_s0 + %s6107_s15]]  }
  0x5a   :  { %v95_v0 = vstv %s3869_s28 }
  0x5b   :  { %96 = vst [vmem:[#allocation5] sm:$0x1] %v95_v0 }
  0x5c   :  { %5959 = dma.done.wait [#allocation3], 16 }
  0x5d   :  { %5960 = vsyncadd [#allocation3], 4294967280 }
  0x5e   :  { %99 = sfence }
  0x5f   :  { %100 = vsyncpa [#allocation7], 0 }
  0x60   :  { %102 = vsyncpa [#allocation7 + $0x1], 0 }
  0x61   :  { %103 = vsyncpa [#allocation9], 0 }
  0x62   :  { %104 = vsyncpa [#allocation12], 0 }
  0x63   :  { %105 = vsyncpa [#allocation15], 0 }
  0x64   :  { %106 = vsyncpa [#allocation18], 0 }
  0x65   :  { %107 = vsyncpa [#allocation21], 0 }
  0x66   :  { %108 = vsyncpa [#allocation24], 0 }
  0x67   :  { %109 = vsyncpa [#allocation27], 0 }
  0x68   :  { %111 = vsyncpa [#allocation27 + $0x1], 0 }
  0x69   :  { %112 = vsyncpa [#allocation30], 0 }
  0x6a   :  { %113 = vsyncpa [#allocation33], 0 }
  0x6b   :  { %114 = vsyncpa [#allocation36], 0 }
  0x6c   :  { %115 = vsyncpa [#allocation47], 0  ;;  %s6361_s0 = smov 0   ;;  %s6363_s5 = smov 0  }
  0x6d   :  { %s6365_s12 = smov 0   ;;  %s6367_s27 = smov 0  }
  0x6e LB: > { %s7034_s17 = sld [smem:[#allocation74_spill]]  ;;  %s6380_s22 = sadd.s32 4294967295, %s6063_s27   ;;  %s6059_s12 = sphi %s6365_s12, %s7084_s12   ;;  %s6055_s5 = sphi %s6363_s5, %s7083_s5   ;;  %s6051_s0 = sphi %s6361_s0, %s7082_s0   ;;  %s6063_s27 = sphi %s6367_s27, %s7080_s27  }
  0x6f   : > { %s7035_s8 = sld [smem:[#allocation84_spill]]  ;;  %s6383_s2 = sadd.s32 1, %s6063_s27  }
  0x70   : > { %s7036_s6 = sld [smem:[#allocation79_spill]]  ;;  %s125_s7 = ssub.s32 %s6063_s27, %s6383_s2 }
  0x71   : > { %s7037_s4 = sld [smem:[#allocation83_spill]]  ;;  %s128_s11 = sadd.s32 1, %s6059_s12 }
  0x72   : > { %s7038_s3 = sld [smem:[#allocation75_spill]]  ;;  %p126_p5 = scmp.eq.s32.totalorder %s125_s7, 0 }
  0x73   : > { %s7039_s14 = sld [smem:[#allocation77_spill]]  ;;  %p135_p6 = scmp.ne.s32.totalorder %s6059_s12, %s6055_s5 }
  0x74   : > { %s7040_s13 = sld [smem:[#allocation73_spill]]  ;;  %p136_p7 = scmp.eq.s32.totalorder %s6063_s27, 0 }
  0x75   : > { %7041 = sst [smem:[#allocation106_spill]] %s6383_s2  ;;  %p141_p8 = scmp.ne.s32.totalorder %s6055_s5, %s6051_s0 }
  0x76   : > { %s6393_s23 = scalar_select %p126_p5, %s6059_s12, %s128_s11  }
  0x77   : > { %p6395_p9 = por %p136_p7, %p135_p6  ;;  %p142_p10 = scmp.eq.s32.totalorder %s6380_s22, 0 }
  0x78   : > { %7042 = sst [smem:[#allocation107_spill]] %s6393_s23  ;;  %p3873_p11 = scmp.ge.s32.totalorder %s6063_s27, 1 }
  0x79   : > { %p1038_p12 = scmp.lt.s32.totalorder %s6063_s27, 3  ;;  %p6404_p13 = por %p142_p10, %p141_p8 }
  0x7b   : > { %p6408_p0 = pnand %p3873_p11, %p1038_p12 }
  0x7c   : > { %s1049_s26 = sshll.u32 (!%p6408_p0), %s7040_s13, 4  ;;  %s6108_s28 = smov (!%p6408_p0), [#allocation8]   ;;  %s1050_s26 = int_to_ptr.hbm [resolvable:$true] %s1049_s26 }
  0x7d   : > { %1042 = sbr.rel (%p6408_p0) target bundleno = 480 (0x1e0), region = 12  ;;  %s1051_s0 = sshll.u32 (!%p6408_p0), %s6108_s28, 4  ;;  %s1052_s0 = int_to_ptr.vmem [resolvable:$true] %s1051_s0 }
  0x7e   : > { %s5067_s7 = sshra.s32 (!%p6408_p0), %s1050_s26, 4  ;;  %s5073_s23 = scalar_lea.hbm (!%p6408_p0), %s7040_s13, 20  ;;  %s5068_s7 = int_to_ptr.hbm [resolvable:$true] %s5067_s7 }
  0x7f   : > { %s5069_s11 = scalar_lea.hbm (!%p6408_p0), %s5068_s7, 20  ;;  %p5074_p4 = scmp.lt.s32.totalorder (!%p6408_p0), %s5068_s7, %s7040_s13 }
  0x80   : > { %p5070_p1 = scmp.ne.s32.totalorder (!%p6408_p0), %s5068_s7, %s5069_s11  ;;  %p5075_p5 = scmp.lt.s32.totalorder (!%p6408_p0), %s5073_s23, %s5069_s11 }
  0x82   : > { %p5071_p2 = pnand %p5070_p1, %p142_p10  ;;  %p5076_p6 = por %p5075_p5, %p5074_p4 }
  0x84   : > { %p5072_p3 = pneg %p5071_p2 }
  0x86   : > { %p5077_p7 = pnand %p5076_p6, %p5072_p3 }
  0x88   : > { %5080 = shalt.err (!%p5077_p7)
}
  0x89   : > { %s6973_s2 = smov 64   ;;  %s6975_s28 = smov 4  }
  0x8a   : > { %4751 = dma.hbm_to_vmem [thread:$0]  (%p142_p10), %s1050_s26, 320, %s1052_s0, [#allocation9], %s6973_s2, %s6973_s2, %s6975_s28  }
  0x8b   : > { %s1075_s9 = sshll.u32 %s6168_s21, 4  ;;  %s6111_s7 = smov [#allocation11]   ;;  %s1076_s9 = int_to_ptr.hbm [resolvable:$true] %s1075_s9 }
  0x8c   : > { %s1077_s23 = sshll.u32 %s6111_s7, 4  ;;  %s1101_s11 = sshll.u32 %s6178_s29, 4  ;;  %s1078_s23 = int_to_ptr.vmem [resolvable:$true] %s1077_s23  ;;  %s1102_s11 = int_to_ptr.hbm [resolvable:$true] %s1101_s11 }
  0x8d   : > { %s5095_s13 = sshra.s32 %s1076_s9, 4  ;;  %s5101_s10 = scalar_lea.hbm %s6168_s21, 64  ;;  %s5096_s13 = int_to_ptr.hbm [resolvable:$true] %s5095_s13 }
  0x8e   : > { %s5097_s1 = scalar_lea.hbm %s5096_s13, 64  ;;  %p5102_p1 = scmp.lt.s32.totalorder %s5096_s13, %s6168_s21 }
  0x8f   : > { %p5098_p8 = scmp.ne.s32.totalorder %s5096_s13, %s5097_s1  ;;  %p5103_p2 = scmp.lt.s32.totalorder %s5101_s10, %s5097_s1 }
  0x91   : > { %p5099_p11 = pnand %p5098_p8, %p142_p10  ;;  %p5104_p3 = por %p5103_p2, %p5102_p1 }
  0x93   : > { %p5100_p12 = pneg %p5099_p11 }
  0x95   : > { %p5105_p4 = pnand %p5104_p3, %p5100_p12 }
  0x97   : > { %5108 = shalt.err (!%p5105_p4)
}
  0x98   : > { %4755 = dma.hbm_to_vmem [thread:$0]  (%p142_p10), %s1076_s9, 1024, %s1078_s23, [#allocation12], %s6973_s2, %s6973_s2, %s6975_s28  }
  0x99   : > { %s6112_s26 = smov [#allocation14]   ;;  %s5123_s7 = sshra.s32 %s1102_s11, 4  ;;  %s5124_s7 = int_to_ptr.hbm [resolvable:$true] %s5123_s7 }
  0x9a   : > { %s1103_s0 = sshll.u32 %s6112_s26, 4  ;;  %s5125_s13 = scalar_lea.hbm %s5124_s7, 128  ;;  %s1104_s0 = int_to_ptr.vmem [resolvable:$true] %s1103_s0 }
  0x9b   : > { %p5126_p5 = scmp.ne.s32.totalorder %s5124_s7, %s5125_s13  ;;  %s5129_s1 = scalar_lea.hbm %s6178_s29, 128 }
  0x9c   : > { %p5130_p8 = scmp.lt.s32.totalorder %s5124_s7, %s6178_s29  ;;  %p5131_p11 = scmp.lt.s32.totalorder %s5129_s1, %s5125_s13 }
  0x9d   : > { %p5127_p6 = pnand %p5126_p5, %p142_p10 }
  0x9e   : > { %p5132_p12 = por %p5131_p11, %p5130_p8 }
  0x9f   : > { %p5128_p7 = pneg %p5127_p6 }
  0xa1   : > { %p5133_p1 = pnand %p5132_p12, %p5128_p7 }
  0xa3   : > { %5136 = shalt.err (!%p5133_p1)
}
  0xa4   : > { %s6977_s10 = smov 128   ;;  %s6979_s9 = smov 8  }
  0xa5   : > { %4759 = dma.hbm_to_vmem [thread:$0]  (%p142_p10), %s1102_s11, 2048, %s1104_s0, [#allocation15], %s6977_s10, %s6977_s10, %s6979_s9  }
  0xa6   : > { %s1127_s23 = sshll.u32 %s7039_s14, 4  ;;  %s6115_s26 = smov [#allocation17]   ;;  %s1128_s23 = int_to_ptr.hbm [resolvable:$true] %s1127_s23 }
  0xa7   : > { %s1129_s7 = sshll.u32 %s6115_s26, 4  ;;  %s1220_s13 = sshll.u32 %s7037_s4, 4  ;;  %s1130_s7 = int_to_ptr.vmem [resolvable:$true] %s1129_s7  ;;  %s1221_s13 = int_to_ptr.hbm [resolvable:$true] %s1220_s13 }
  0xa8   : > { %s5151_s1 = sshra.s32 %s1128_s23, 4  ;;  %s5157_s28 = scalar_lea.hbm %s7039_s14, 24  ;;  %s5152_s1 = int_to_ptr.hbm [resolvable:$true] %s5151_s1 }
  0xa9   : > { %s5153_s2 = scalar_lea.hbm %s5152_s1, 24  ;;  %p5158_p5 = scmp.lt.s32.totalorder %s5152_s1, %s7039_s14 }
  0xaa   : > { %p5154_p2 = scmp.ne.s32.totalorder %s5152_s1, %s5153_s2  ;;  %p5159_p6 = scmp.lt.s32.totalorder %s5157_s28, %s5153_s2 }
  0xac   : > { %p5155_p3 = pnand %p5154_p2, %p142_p10  ;;  %p5160_p7 = por %p5159_p6, %p5158_p5 }
  0xae   : > { %p5156_p4 = pneg %p5155_p3 }
  0xb0   : > { %p5161_p8 = pnand %p5160_p7, %p5156_p4 }
  0xb2   : > { %5164 = shalt.err (!%p5161_p8)
}
  0xb3   : > { %s7046_s11 = smov 4   ;;  %s7047_s0 = smov 64  }
  0xb4   : > { %4763 = dma.hbm_to_vmem [thread:$0]  (%p142_p10), %s1128_s23, 384, %s1130_s7, [#allocation18], %s7047_s0, %s7047_s0, %s7046_s11  }
  0xb5   : > { %s6116_s26 = smov [#allocation29]   ;;  %s1246_s9 = sshll.u32 %s6243_s20, 4  ;;  %s6456_s9 = int_to_ptr.hbm [resolvable:$true] %s1246_s9 }
  0xb6   : > { %s1222_s10 = sshll.u32 %s6116_s26, 4  ;;  %s5179_s2 = sshra.s32 %s1221_s13, 4  ;;  %s1223_s10 = int_to_ptr.vmem [resolvable:$true] %s1222_s10  ;;  %s5180_s2 = int_to_ptr.hbm [resolvable:$true] %s5179_s2 }
  0xb7   : > { %s5181_s28 = scalar_lea.hbm %s5180_s2, 1  ;;  %s5185_s1 = scalar_lea.hbm %s7037_s4, 1 }
  0xb8   : > { %p5182_p11 = scmp.ne.s32.totalorder %s5180_s2, %s5181_s28  ;;  %p5186_p2 = scmp.lt.s32.totalorder %s5180_s2, %s7037_s4 }
  0xb9   : > { %p5187_p3 = scmp.lt.s32.totalorder %s5185_s1, %s5181_s28 }
  0xba   : > { %p5183_p12 = pnand %p5182_p11, %p142_p10 }
  0xbb   : > { %p5188_p4 = por %p5187_p3, %p5186_p2 }
  0xbc   : > { %p5184_p1 = pneg %p5183_p12 }
  0xbe   : > { %p5189_p5 = pnand %p5188_p4, %p5184_p1 }
  0xc0   : > { %5192 = shalt.err (!%p5189_p5)
}
  0xc1   : > { %4777 = dma.hbm_to_vmem [thread:$0]  (%p142_p10), %s1221_s13, 16, %s1223_s10, [#allocation30]  }
  0xc2   : > { %s1064_s23 = sshll.u32 %s7034_s17, 4  ;;  %s6117_s7 = smov [#allocation32]   ;;  %s6465_s23 = int_to_ptr.hbm [resolvable:$true] %s1064_s23 }
  0xc3   : > { %s1248_s26 = sshll.u32 %s6117_s7, 4  ;;  %s5207_s14 = sshra.s32 %s6456_s9, 4  ;;  %s1249_s26 = int_to_ptr.vmem [resolvable:$true] %s1248_s26  ;;  %s5208_s14 = int_to_ptr.hbm [resolvable:$true] %s5207_s14 }
  0xc4   : > { %s5209_s2 = scalar_lea.hbm %s5208_s14, 1  ;;  %s5213_s28 = scalar_lea.hbm %s6243_s20, 1 }
  0xc5   : > { %p5210_p6 = scmp.ne.s32.totalorder %s5208_s14, %s5209_s2  ;;  %p5214_p11 = scmp.lt.s32.totalorder %s5208_s14, %s6243_s20 }
  0xc6   : > { %p5215_p12 = scmp.lt.s32.totalorder %s5213_s28, %s5209_s2 }
  0xc7   : > { %p5211_p7 = pnand %p5210_p6, %p142_p10 }
  0xc8   : > { %p5216_p1 = por %p5215_p12, %p5214_p11 }
  0xc9   : > { %p5212_p8 = pneg %p5211_p7 }
  0xcb   : > { %p5217_p2 = pnand %p5216_p1, %p5212_p8 }
  0xcd   : > { %5220 = shalt.err (!%p5217_p2)
}
  0xce   : > { %4781 = dma.hbm_to_vmem [thread:$0]  (%p142_p10), %s6456_s9, 16, %s1249_s26, [#allocation33]  }
  0xcf   : > { %s6118_s10 = smov [#allocation10]   ;;  %s1090_s1 = sshll.u32 %s6173_s25, 4  ;;  %s6476_s1 = int_to_ptr.hbm [resolvable:$true] %s1090_s1 }
  0xd0   : > { %s1066_s13 = sshll.u32 %s6118_s10, 4  ;;  %s5235_s14 = sshra.s32 %s6465_s23, 4  ;;  %s1067_s13 = int_to_ptr.vmem [resolvable:$true] %s1066_s13  ;;  %s5236_s14 = int_to_ptr.hbm [resolvable:$true] %s5235_s14 }
  0xd1   : > { %s5237_s7 = scalar_lea.hbm %s5236_s14, 1  ;;  %s5241_s2 = scalar_lea.hbm %s7034_s17, 1 }
  0xd2   : > { %p5238_p3 = scmp.ne.s32.totalorder %s5236_s14, %s5237_s7  ;;  %p5242_p6 = scmp.lt.s32.totalorder %s5236_s14, %s7034_s17 }
  0xd3   : > { %p5243_p7 = scmp.lt.s32.totalorder %s5241_s2, %s5237_s7 }
  0xd4   : > { %p5239_p4 = pnand %p5238_p3, %p142_p10 }
  0xd5   : > { %p5244_p8 = por %p5243_p7, %p5242_p6 }
  0xd6   : > { %p5240_p5 = pneg %p5239_p4 }
  0xd8   : > { %p5245_p11 = pnand %p5244_p8, %p5240_p5 }
  0xda   : > { %5248 = shalt.err (!%p5245_p11)
}
  0xdb   : > { %4753 = dma.hbm_to_vmem [thread:$0]  (%p142_p10), %s6465_s23, 16, %s1067_s13, [#allocation9]  }
  0xdc   : > { %s1116_s9 = sshll.u32 %s7038_s3, 4  ;;  %s6119_s26 = smov [#allocation13]   ;;  %s6487_s9 = int_to_ptr.hbm [resolvable:$true] %s1116_s9 }
  0xdd   : > { %s1092_s28 = sshll.u32 %s6119_s26, 4  ;;  %s5263_s10 = sshra.s32 %s6476_s1, 4  ;;  %s1093_s28 = int_to_ptr.vmem [resolvable:$true] %s1092_s28  ;;  %s5264_s10 = int_to_ptr.hbm [resolvable:$true] %s5263_s10 }
  0xde   : > { %s5265_s14 = scalar_lea.hbm %s5264_s10, 1  ;;  %s5269_s7 = scalar_lea.hbm %s6173_s25, 1 }
  0xdf   : > { %p5266_p12 = scmp.ne.s32.totalorder %s5264_s10, %s5265_s14  ;;  %p5270_p3 = scmp.lt.s32.totalorder %s5264_s10, %s6173_s25 }
  0xe0   : > { %p5271_p4 = scmp.lt.s32.totalorder %s5269_s7, %s5265_s14 }
  0xe1   : > { %p5267_p1 = pnand %p5266_p12, %p142_p10 }
  0xe2   : > { %p5272_p5 = por %p5271_p4, %p5270_p3 }
  0xe3   : > { %p5268_p2 = pneg %p5267_p1 }
  0xe5   : > { %p5273_p6 = pnand %p5272_p5, %p5268_p2 }
  0xe7   : > { %5276 = shalt.err (!%p5273_p6)
}
  0xe8   : > { %4757 = dma.hbm_to_vmem [thread:$0]  (%p142_p10), %s6476_s1, 16, %s1093_s28, [#allocation12]  }
  0xe9   : > { %s6120_s23 = smov [#allocation16]   ;;  %s1142_s2 = sshll.u32 %s6198_s19, 4  ;;  %s6498_s2 = int_to_ptr.hbm [resolvable:$true] %s1142_s2 }
  0xea   : > { %s1118_s13 = sshll.u32 %s6120_s23, 4  ;;  %s5291_s26 = sshra.s32 %s6487_s9, 4  ;;  %s1119_s13 = int_to_ptr.vmem [resolvable:$true] %s1118_s13  ;;  %s5292_s26 = int_to_ptr.hbm [resolvable:$true] %s5291_s26 }
  0xeb   : > { %s5293_s10 = scalar_lea.hbm %s5292_s26, 2  ;;  %s5297_s14 = scalar_lea.hbm %s7038_s3, 2 }
  0xec   : > { %p5294_p7 = scmp.ne.s32.totalorder %s5292_s26, %s5293_s10  ;;  %p5298_p12 = scmp.lt.s32.totalorder %s5292_s26, %s7038_s3 }
  0xed   : > { %p5299_p1 = scmp.lt.s32.totalorder %s5297_s14, %s5293_s10 }
  0xee   : > { %p5295_p8 = pnand %p5294_p7, %p142_p10 }
  0xef   : > { %p5300_p2 = por %p5299_p1, %p5298_p12 }
  0xf0   : > { %p5296_p11 = pneg %p5295_p8 }
  0xf2   : > { %p5301_p3 = pnand %p5300_p2, %p5296_p11 }
  0xf4   : > { %5304 = shalt.err (!%p5301_p3)
}
  0xf5   : > { %4761 = dma.hbm_to_vmem [thread:$0]  (%p142_p10), %s6487_s9, 32, %s1119_s13, [#allocation15]  }
  0xf6   : > { %s1153_s1 = sshll.u32 %s6203_s24, 4  ;;  %s6121_s28 = smov [#allocation19]   ;;  %s6509_s1 = int_to_ptr.hbm [resolvable:$true] %s1153_s1 }
  0xf7   : > { %s1144_s7 = sshll.u32 %s6121_s28, 4  ;;  %s5319_s23 = sshra.s32 %s6498_s2, 4  ;;  %s1145_s7 = int_to_ptr.vmem [resolvable:$true] %s1144_s7  ;;  %s5320_s23 = int_to_ptr.hbm [resolvable:$true] %s5319_s23 }
  0xf8   : > { %s5321_s26 = scalar_lea.hbm %s5320_s23, 1  ;;  %s5325_s10 = scalar_lea.hbm %s6198_s19, 1 }
  0xf9   : > { %p5322_p4 = scmp.ne.s32.totalorder %s5320_s23, %s5321_s26  ;;  %p5326_p7 = scmp.lt.s32.totalorder %s5320_s23, %s6198_s19 }
  0xfa   : > { %p5327_p8 = scmp.lt.s32.totalorder %s5325_s10, %s5321_s26 }
  0xfb   : > { %p5323_p5 = pnand %p5322_p4, %p142_p10 }
  0xfc   : > { %p5328_p11 = por %p5327_p8, %p5326_p7 }
  0xfd   : > { %p5324_p6 = pneg %p5323_p5 }
  0xff   : > { %p5329_p12 = pnand %p5328_p11, %p5324_p6 }
 0x101   : > { %5332 = shalt.err (!%p5329_p12)
}
 0x102   : > { %4765 = dma.hbm_to_vmem [thread:$0]  (%p142_p10), %s6498_s2, 16, %s1145_s7, [#allocation18]  }
 0x103   : > { %s6122_s9 = smov [#allocation20]   ;;  %s1179_s14 = sshll.u32 %s7036_s6, 4  ;;  %s6520_s14 = int_to_ptr.hbm [resolvable:$true] %s1179_s14 }
 0x104   : > { %s1155_s13 = sshll.u32 %s6122_s9, 4  ;;  %s5347_s28 = sshra.s32 %s6509_s1, 4  ;;  %s1156_s13 = int_to_ptr.vmem [resolvable:$true] %s1155_s13  ;;  %s5348_s28 = int_to_ptr.hbm [resolvable:$true] %s5347_s28 }
 0x105   : > { %s5349_s23 = scalar_lea.hbm %s5348_s28, 64  ;;  %s5353_s26 = scalar_lea.hbm %s6203_s24, 64 }
 0x106   : > { %p5350_p1 = scmp.ne.s32.totalorder %s5348_s28, %s5349_s23  ;;  %p5354_p4 = scmp.lt.s32.totalorder %s5348_s28, %s6203_s24 }
 0x107   : > { %p5355_p5 = scmp.lt.s32.totalorder %s5353_s26, %s5349_s23 }
 0x108   : > { %p5351_p2 = pnand %p5350_p1, %p142_p10 }
 0x109   : > { %p5356_p6 = por %p5355_p5, %p5354_p4 }
 0x10a   : > { %p5352_p3 = pneg %p5351_p2 }
 0x10c   : > { %p5357_p7 = pnand %p5356_p6, %p5352_p3 }
 0x10e   : > { %5360 = shalt.err (!%p5357_p7)
}
 0x10f   : > { %4767 = dma.hbm_to_vmem [thread:$0]  (%p142_p10), %s6509_s1, 1024, %s1156_s13, [#allocation21], %s7047_s0, %s7047_s0, %s7046_s11  }
 0x110   : > { %s1231_s2 = sshll.u32 %s7035_s8, 4  ;;  %s6123_s7 = smov [#allocation23]   ;;  %s6534_s2 = int_to_ptr.hbm [resolvable:$true] %s1231_s2 }
 0x111   : > { %s1181_s10 = sshll.u32 %s6123_s7, 4  ;;  %s5375_s9 = sshra.s32 %s6520_s14, 4  ;;  %s1182_s10 = int_to_ptr.vmem [resolvable:$true] %s1181_s10  ;;  %s5376_s9 = int_to_ptr.hbm [resolvable:$true] %s5375_s9 }
 0x112   : > { %s5377_s28 = scalar_lea.hbm %s5376_s9, 128  ;;  %s5381_s23 = scalar_lea.hbm %s7036_s6, 128 }
 0x113   : > { %p5378_p8 = scmp.ne.s32.totalorder %s5376_s9, %s5377_s28  ;;  %p5382_p1 = scmp.lt.s32.totalorder %s5376_s9, %s7036_s6 }
 0x114   : > { %p5383_p2 = scmp.lt.s32.totalorder %s5381_s23, %s5377_s28 }
 0x115   : > { %p5379_p11 = pnand %p5378_p8, %p142_p10 }
 0x116   : > { %p5384_p3 = por %p5383_p2, %p5382_p1 }
 0x117   : > { %p5380_p12 = pneg %p5379_p11 }
 0x119   : > { %p5385_p4 = pnand %p5384_p3, %p5380_p12 }
 0x11b   : > { %5388 = shalt.err (!%p5385_p4)
}
 0x11c   : > { %s7048_s1 = smov 8   ;;  %s7049_s13 = smov 128  }
 0x11d   : > { %s7050_s26 = sld [smem:[#allocation85_spill]]  ;;  %s6124_s7 = smov [#allocation31]  }
 0x11e   : > { %4771 = dma.hbm_to_vmem [thread:$0]  (%p142_p10), %s6520_s14, 2048, %s1182_s10, [#allocation24], %s7049_s13, %s7049_s13, %s7048_s1  }
 0x11f   : > { %s1233_s3 = sshll.u32 %s6124_s7, 4  ;;  %s5403_s9 = sshra.s32 %s6534_s2, 4  ;;  %s1234_s3 = int_to_ptr.vmem [resolvable:$true] %s1233_s3  ;;  %s5404_s9 = int_to_ptr.hbm [resolvable:$true] %s5403_s9 }
 0x120   : > { %s5405_s28 = scalar_lea.hbm %s5404_s9, 64  ;;  %s5409_s23 = scalar_lea.hbm %s7035_s8, 64 }
 0x121   : > { %p5406_p5 = scmp.ne.s32.totalorder %s5404_s9, %s5405_s28  ;;  %p5410_p8 = scmp.lt.s32.totalorder %s5404_s9, %s7035_s8 }
 0x122   : > { %p5411_p11 = scmp.lt.s32.totalorder %s5409_s23, %s5405_s28 }
 0x123   : > { %s1257_s4 = sshll.u32 %s7050_s26, 4  ;;  %p5407_p6 = pnand %p5406_p5, %p142_p10  ;;  %s6548_s4 = int_to_ptr.hbm [resolvable:$true] %s1257_s4 }
 0x124   : > { %p5412_p12 = por %p5411_p11, %p5410_p8 }
 0x125   : > { %p5408_p7 = pneg %p5407_p6 }
 0x127   : > { %p5413_p1 = pnand %p5412_p12, %p5408_p7 }
 0x129   : > { %5416 = shalt.err (!%p5413_p1)
}
 0x12a   : > { %s7051_s14 = sld [smem:[#allocation86_spill]]  ;;  %s6125_s7 = smov [#allocation34]  }
 0x12b   : > { %4779 = dma.hbm_to_vmem [thread:$0]  (%p142_p10), %s6534_s2, 1024, %s1234_s3, [#allocation30], %s7047_s0, %s7047_s0, %s7046_s11  }
 0x12c   : > { %s1259_s6 = sshll.u32 %s6125_s7, 4  ;;  %s5431_s9 = sshra.s32 %s6548_s4, 4  ;;  %s1260_s6 = int_to_ptr.vmem [resolvable:$true] %s1259_s6  ;;  %s5432_s9 = int_to_ptr.hbm [resolvable:$true] %s5431_s9 }
 0x12d   : > { %s5433_s28 = scalar_lea.hbm %s5432_s9, 128  ;;  %s5437_s23 = scalar_lea.hbm %s7050_s26, 128 }
 0x12e   : > { %p5434_p2 = scmp.ne.s32.totalorder %s5432_s9, %s5433_s28  ;;  %p5438_p5 = scmp.lt.s32.totalorder %s5432_s9, %s7050_s26 }
 0x12f   : > { %p5439_p6 = scmp.lt.s32.totalorder %s5437_s23, %s5433_s28 }
 0x130   : > { %s1272_s10 = sshll.u32 %s7051_s14, 4  ;;  %p5435_p3 = pnand %p5434_p2, %p142_p10  ;;  %s6562_s10 = int_to_ptr.hbm [resolvable:$true] %s1272_s10 }
 0x131   : > { %p5440_p7 = por %p5439_p6, %p5438_p5 }
 0x132   : > { %p5436_p4 = pneg %p5435_p3 }
 0x134   : > { %p5441_p8 = pnand %p5440_p7, %p5436_p4 }
 0x136   : > { %5444 = shalt.err (!%p5441_p8)
}
 0x137   : > { %s7052_s3 = sld [smem:[#allocation101_spill]]  ;;  %s6126_s2 = smov [#allocation35]  }
 0x138   : > { %4783 = dma.hbm_to_vmem [thread:$0]  (%p142_p10), %s6548_s4, 2048, %s1260_s6, [#allocation33], %s7049_s13, %s7049_s13, %s7048_s1  }
 0x139   : > { %s1274_s7 = sshll.u32 %s6126_s2, 4  ;;  %s5459_s9 = sshra.s32 %s6562_s10, 4  ;;  %s1275_s7 = int_to_ptr.vmem [resolvable:$true] %s1274_s7  ;;  %s5460_s9 = int_to_ptr.hbm [resolvable:$true] %s5459_s9 }
 0x13a   : > { %s5461_s28 = scalar_lea.hbm %s5460_s9, 2  ;;  %s5465_s23 = scalar_lea.hbm %s7051_s14, 2 }
 0x13b   : > { %p5462_p11 = scmp.ne.s32.totalorder %s5460_s9, %s5461_s28  ;;  %p5466_p2 = scmp.lt.s32.totalorder %s5460_s9, %s7051_s14 }
 0x13c   : > { %p5467_p3 = scmp.lt.s32.totalorder %s5465_s23, %s5461_s28 }
 0x13d   : > { %s1392_s8 = sshll.u32 %s7052_s3, 4  ;;  %p5463_p12 = pnand %p5462_p11, %p142_p10  ;;  %s6576_s8 = int_to_ptr.hbm [resolvable:$true] %s1392_s8 }
 0x13e   : > { %p5468_p4 = por %p5467_p3, %p5466_p2 }
 0x13f   : > { %p5464_p1 = pneg %p5463_p12 }
 0x141   : > { %p5469_p5 = pnand %p5468_p4, %p5464_p1 }
 0x143   : > { %5472 = shalt.err (!%p5469_p5)
}
 0x144   : > { %s7053_s6 = sld [smem:[#allocation78_spill]]  ;;  %s6127_s2 = smov [#allocation46]  }
 0x145   : > { %4785 = dma.hbm_to_vmem [thread:$0]  (%p142_p10), %s6562_s10, 32, %s1275_s7, [#allocation36]  }
 0x146   : > { %s1394_s17 = sshll.u32 %s6127_s2, 4  ;;  %s5487_s9 = sshra.s32 %s6576_s8, 4  ;;  %s1395_s17 = int_to_ptr.vmem [resolvable:$true] %s1394_s17  ;;  %s5488_s9 = int_to_ptr.hbm [resolvable:$true] %s5487_s9 }
 0x147   : > { %s5489_s28 = scalar_lea.hbm %s5488_s9, 128  ;;  %s5493_s23 = scalar_lea.hbm %s7052_s3, 128 }
 0x148   : > { %p5490_p6 = scmp.ne.s32.totalorder %s5488_s9, %s5489_s28  ;;  %p5494_p11 = scmp.lt.s32.totalorder %s5488_s9, %s7052_s3 }
 0x149   : > { %p5495_p12 = scmp.lt.s32.totalorder %s5493_s23, %s5489_s28 }
 0x14a   : > { %s1168_s4 = sshll.u32 %s7053_s6, 4  ;;  %p5491_p7 = pnand %p5490_p6, %p142_p10  ;;  %s6587_s4 = int_to_ptr.hbm [resolvable:$true] %s1168_s4 }
 0x14b   : > { %p5496_p1 = por %p5495_p12, %p5494_p11 }
 0x14c   : > { %p5492_p8 = pneg %p5491_p7 }
 0x14e   : > { %p5497_p2 = pnand %p5496_p1, %p5492_p8 }
 0x150   : > { %5500 = shalt.err (!%p5497_p2)
}
 0x151   : > { %s7054_s10 = sld [smem:[#allocation80_spill]]  ;;  %s6128_s7 = smov [#allocation22]  }
 0x152   : > { %4801 = dma.hbm_to_vmem [thread:$0]  (%p142_p10), %s6576_s8, 2048, %s1395_s17, [#allocation47], %s7047_s0, %s7047_s0, %s7046_s11  }
 0x153   : > { %s1170_s2 = sshll.u32 %s6128_s7, 4  ;;  %s5515_s9 = sshra.s32 %s6587_s4, 4  ;;  %s1171_s2 = int_to_ptr.vmem [resolvable:$true] %s1170_s2  ;;  %s5516_s9 = int_to_ptr.hbm [resolvable:$true] %s5515_s9 }
 0x154   : > { %s5517_s28 = scalar_lea.hbm %s5516_s9, 1  ;;  %s5521_s23 = scalar_lea.hbm %s7053_s6, 1 }
 0x155   : > { %p5518_p3 = scmp.ne.s32.totalorder %s5516_s9, %s5517_s28  ;;  %p5522_p6 = scmp.lt.s32.totalorder %s5516_s9, %s7053_s6 }
 0x156   : > { %p5523_p7 = scmp.lt.s32.totalorder %s5521_s23, %s5517_s28 }
 0x157   : > { %s1194_s14 = sshll.u32 %s7054_s10, 4  ;;  %p5519_p4 = pnand %p5518_p3, %p142_p10  ;;  %s6601_s14 = int_to_ptr.hbm [resolvable:$true] %s1194_s14 }
 0x158   : > { %p5524_p8 = por %p5523_p7, %p5522_p6 }
 0x159   : > { %p5520_p5 = pneg %p5519_p4 }
 0x15b   : > { %p5525_p11 = pnand %p5524_p8, %p5520_p5 }
 0x15d   : > { %5528 = shalt.err (!%p5525_p11)
}
 0x15e   : > { %s7055_s17 = sld [smem:[#allocation82_spill]]  ;;  %s6129_s7 = smov [#allocation25]  }
 0x15f   : > { %4769 = dma.hbm_to_vmem [thread:$0]  (%p142_p10), %s6587_s4, 16, %s1171_s2, [#allocation21]  }
 0x160   : > { %s1196_s3 = sshll.u32 %s6129_s7, 4  ;;  %s5543_s9 = sshra.s32 %s6601_s14, 4  ;;  %s1197_s3 = int_to_ptr.vmem [resolvable:$true] %s1196_s3  ;;  %s5544_s9 = int_to_ptr.hbm [resolvable:$true] %s5543_s9 }
 0x161   : > { %s5545_s28 = scalar_lea.hbm %s5544_s9, 2  ;;  %s5549_s23 = scalar_lea.hbm %s7054_s10, 2 }
 0x162   : > { %p5546_p12 = scmp.ne.s32.totalorder %s5544_s9, %s5545_s28  ;;  %p5550_p3 = scmp.lt.s32.totalorder %s5544_s9, %s7054_s10 }
 0x163   : > { %p5551_p4 = scmp.lt.s32.totalorder %s5549_s23, %s5545_s28 }
 0x164   : > { %s1205_s8 = sshll.u32 %s7055_s17, 4  ;;  %p5547_p1 = pnand %p5546_p12, %p142_p10  ;;  %s6612_s8 = int_to_ptr.hbm [resolvable:$true] %s1205_s8 }
 0x165   : > { %p5552_p5 = por %p5551_p4, %p5550_p3 }
 0x166   : > { %p5548_p2 = pneg %p5547_p1 }
 0x168   : > { %p5553_p6 = pnand %p5552_p5, %p5548_p2 }
 0x16a   : > { %5556 = shalt.err (!%p5553_p6)
}
 0x16b   : > { %s7056_s4 = sld [smem:[#allocation89_spill]]  ;;  %s6130_s2 = smov [#allocation28]  }
 0x16c   : > { %4773 = dma.hbm_to_vmem [thread:$0]  (%p142_p10), %s6601_s14, 32, %s1197_s3, [#allocation24]  }
 0x16d   : > { %s1207_s7 = sshll.u32 %s6130_s2, 4  ;;  %s5571_s9 = sshra.s32 %s6612_s8, 4  ;;  %s1208_s7 = int_to_ptr.vmem [resolvable:$true] %s1207_s7  ;;  %s5572_s9 = int_to_ptr.hbm [resolvable:$true] %s5571_s9 }
 0x16e   : > { %s5573_s28 = scalar_lea.hbm %s5572_s9, 28  ;;  %s5577_s23 = scalar_lea.hbm %s7055_s17, 28 }
 0x16f   : > { %p5574_p7 = scmp.ne.s32.totalorder %s5572_s9, %s5573_s28  ;;  %p5578_p12 = scmp.lt.s32.totalorder %s5572_s9, %s7055_s17 }
 0x170   : > { %p5579_p1 = scmp.lt.s32.totalorder %s5577_s23, %s5573_s28 }
 0x171   : > { %s1287_s6 = sshll.u32 %s7056_s4, 4  ;;  %p5575_p8 = pnand %p5574_p7, %p142_p10  ;;  %s6623_s6 = int_to_ptr.hbm [resolvable:$true] %s1287_s6 }
 0x172   : > { %p5580_p2 = por %p5579_p1, %p5578_p12 }
 0x173   : > { %p5576_p11 = pneg %p5575_p8 }
 0x175   : > { %p5581_p3 = pnand %p5580_p2, %p5576_p11 }
 0x177   : > { %5584 = shalt.err (!%p5581_p3)
}
 0x178   : > { %s7057_s14 = sld [smem:[#allocation90_spill]]  ;;  %s6131_s2 = smov [#allocation38]  }
 0x179   : > { %4775 = dma.hbm_to_vmem [thread:$0]  (%p142_p10), %s6612_s8, 448, %s1208_s7, [#allocation27], %s7047_s0, %s7047_s0, %s7046_s11  }
 0x17a   : > { %s1289_s10 = sshll.u32 %s6131_s2, 4  ;;  %s5599_s9 = sshra.s32 %s6623_s6, 4  ;;  %s1290_s10 = int_to_ptr.vmem [resolvable:$true] %s1289_s10  ;;  %s5600_s9 = int_to_ptr.hbm [resolvable:$true] %s5599_s9 }
 0x17b   : > { %s5601_s28 = scalar_lea.hbm %s5600_s9, 1  ;;  %s5605_s23 = scalar_lea.hbm %s7056_s4, 1 }
 0x17c   : > { %p5602_p4 = scmp.ne.s32.totalorder %s5600_s9, %s5601_s28  ;;  %p5606_p7 = scmp.lt.s32.totalorder %s5600_s9, %s7056_s4 }
 0x17d   : > { %p5607_p8 = scmp.lt.s32.totalorder %s5605_s23, %s5601_s28 }
 0x17e   : > { %s1298_s3 = sshll.u32 %s7057_s14, 4  ;;  %p5603_p5 = pnand %p5602_p4, %p142_p10  ;;  %s6637_s3 = int_to_ptr.hbm [resolvable:$true] %s1298_s3 }
 0x17f   : > { %p5608_p11 = por %p5607_p8, %p5606_p7 }
 0x180   : > { %p5604_p6 = pneg %p5603_p5 }
 0x182   : > { %p5609_p12 = pnand %p5608_p11, %p5604_p6 }
 0x184   : > { %5612 = shalt.err (!%p5609_p12)
}
 0x185   : > { %s7058_s8 = sld [smem:[#allocation91_spill]]  ;;  %s6132_s7 = smov [#allocation39]  }
 0x186   : > { %4787 = dma.hbm_to_vmem [thread:$0]  (%p142_p10), %s6623_s6, 16, %s1290_s10, [#allocation9]  }
 0x187   : > { %s1300_s2 = sshll.u32 %s6132_s7, 4  ;;  %s5627_s9 = sshra.s32 %s6637_s3, 4  ;;  %s1301_s2 = int_to_ptr.vmem [resolvable:$true] %s1300_s2  ;;  %s5628_s9 = int_to_ptr.hbm [resolvable:$true] %s5627_s9 }
 0x188   : > { %s5629_s28 = scalar_lea.hbm %s5628_s9, 64  ;;  %s5633_s23 = scalar_lea.hbm %s7057_s14, 64 }
 0x189   : > { %p5630_p1 = scmp.ne.s32.totalorder %s5628_s9, %s5629_s28  ;;  %p5634_p4 = scmp.lt.s32.totalorder %s5628_s9, %s7057_s14 }
 0x18a   : > { %p5635_p5 = scmp.lt.s32.totalorder %s5633_s23, %s5629_s28 }
 0x18b   : > { %s1313_s17 = sshll.u32 %s7058_s8, 4  ;;  %p5631_p2 = pnand %p5630_p1, %p142_p10  ;;  %s6648_s17 = int_to_ptr.hbm [resolvable:$true] %s1313_s17 }
 0x18c   : > { %p5636_p6 = por %p5635_p5, %p5634_p4 }
 0x18d   : > { %p5632_p3 = pneg %p5631_p2 }
 0x18f   : > { %p5637_p7 = pnand %p5636_p6, %p5632_p3 }
 0x191   : > { %5640 = shalt.err (!%p5637_p7)
}
 0x192   : > { %s7059_s6 = sld [smem:[#allocation92_spill]]  ;;  %s6133_s7 = smov [#allocation40]  }
 0x193   : > { %4789 = dma.hbm_to_vmem [thread:$0]  (%p142_p10), %s6637_s3, 1024, %s1301_s2, [#allocation12], %s7047_s0, %s7047_s0, %s7046_s11  }
 0x194   : > { %s1315_s4 = sshll.u32 %s6133_s7, 4  ;;  %s5655_s9 = sshra.s32 %s6648_s17, 4  ;;  %s1316_s4 = int_to_ptr.vmem [resolvable:$true] %s1315_s4  ;;  %s5656_s9 = int_to_ptr.hbm [resolvable:$true] %s5655_s9 }
 0x195   : > { %s5657_s28 = scalar_lea.hbm %s5656_s9, 1  ;;  %s5661_s23 = scalar_lea.hbm %s7058_s8, 1 }
 0x196   : > { %p5658_p8 = scmp.ne.s32.totalorder %s5656_s9, %s5657_s28  ;;  %p5662_p1 = scmp.lt.s32.totalorder %s5656_s9, %s7058_s8 }
 0x197   : > { %p5663_p2 = scmp.lt.s32.totalorder %s5661_s23, %s5657_s28 }
 0x198   : > { %s1324_s10 = sshll.u32 %s7059_s6, 4  ;;  %p5659_p11 = pnand %p5658_p8, %p142_p10  ;;  %s6662_s10 = int_to_ptr.hbm [resolvable:$true] %s1324_s10 }
 0x199   : > { %p5664_p3 = por %p5663_p2, %p5662_p1 }
 0x19a   : > { %p5660_p12 = pneg %p5659_p11 }
 0x19c   : > { %p5665_p4 = pnand %p5664_p3, %p5660_p12 }
 0x19e   : > { %5668 = shalt.err (!%p5665_p4)
}
 0x19f   : > { %s7060_s3 = sld [smem:[#allocation95_spill]]  ;;  %s6134_s2 = smov [#allocation41]  }
 0x1a0   : > { %4791 = dma.hbm_to_vmem [thread:$0]  (%p142_p10), %s6648_s17, 16, %s1316_s4, [#allocation15]  }
 0x1a1   : > { %s1326_s7 = sshll.u32 %s6134_s2, 4  ;;  %s5683_s9 = sshra.s32 %s6662_s10, 4  ;;  %s1327_s7 = int_to_ptr.vmem [resolvable:$true] %s1326_s7  ;;  %s5684_s9 = int_to_ptr.hbm [resolvable:$true] %s5683_s9 }
 0x1a2   : > { %s5685_s28 = scalar_lea.hbm %s5684_s9, 128  ;;  %s5689_s23 = scalar_lea.hbm %s7059_s6, 128 }
 0x1a3   : > { %p5686_p5 = scmp.ne.s32.totalorder %s5684_s9, %s5685_s28  ;;  %p5690_p8 = scmp.lt.s32.totalorder %s5684_s9, %s7059_s6 }
 0x1a4   : > { %p5691_p11 = scmp.lt.s32.totalorder %s5689_s23, %s5685_s28 }
 0x1a5   : > { %s1341_s14 = sshll.u32 %s7060_s3, 4  ;;  %p5687_p6 = pnand %p5686_p5, %p142_p10  ;;  %s6673_s14 = int_to_ptr.hbm [resolvable:$true] %s1341_s14 }
 0x1a6   : > { %p5692_p12 = por %p5691_p11, %p5690_p8 }
 0x1a7   : > { %p5688_p7 = pneg %p5687_p6 }
 0x1a9   : > { %p5693_p1 = pnand %p5692_p12, %p5688_p7 }
 0x1ab   : > { %5696 = shalt.err (!%p5693_p1)
}
 0x1ac   : > { %s7061_s17 = sld [smem:[#allocation97_spill]]  ;;  %s6135_s2 = smov [#allocation43]  }
 0x1ad   : > { %4793 = dma.hbm_to_vmem [thread:$0]  (%p142_p10), %s6662_s10, 2048, %s1327_s7, [#allocation18], %s7049_s13, %s7049_s13, %s7048_s1  }
 0x1ae   : > { %s1343_s8 = sshll.u32 %s6135_s2, 4  ;;  %s5711_s9 = sshra.s32 %s6673_s14, 4  ;;  %s1344_s8 = int_to_ptr.vmem [resolvable:$true] %s1343_s8  ;;  %s5712_s9 = int_to_ptr.hbm [resolvable:$true] %s5711_s9 }
 0x1af   : > { %s5713_s28 = scalar_lea.hbm %s5712_s9, 32  ;;  %s5717_s23 = scalar_lea.hbm %s7060_s3, 32 }
 0x1b0   : > { %p5714_p2 = scmp.ne.s32.totalorder %s5712_s9, %s5713_s28  ;;  %p5718_p5 = scmp.lt.s32.totalorder %s5712_s9, %s7060_s3 }
 0x1b1   : > { %p5719_p6 = scmp.lt.s32.totalorder %s5717_s23, %s5713_s28 }
 0x1b2   : > { %s1358_s4 = sshll.u32 %s7061_s17, 4  ;;  %p5715_p3 = pnand %p5714_p2, %p142_p10  ;;  %s6687_s4 = int_to_ptr.hbm [resolvable:$true] %s1358_s4 }
 0x1b3   : > { %p5720_p7 = por %p5719_p6, %p5718_p5 }
 0x1b4   : > { %p5716_p4 = pneg %p5715_p3 }
 0x1b6   : > { %p5721_p8 = pnand %p5720_p7, %p5716_p4 }
 0x1b8   : > { %5724 = shalt.err (!%p5721_p8)
}
 0x1b9   : > { %s7062_s10 = sld [smem:[#allocation99_spill]]  ;;  %s6136_s7 = smov [#allocation44]  }
 0x1ba   : > { %4795 = dma.hbm_to_vmem [thread:$0]  (%p142_p10), %s6673_s14, 512, %s1344_s8, [#allocation30], %s7047_s0, %s7047_s0, %s7046_s11  }
 0x1bb   : > { %s1360_s2 = sshll.u32 %s6136_s7, 4  ;;  %s5739_s9 = sshra.s32 %s6687_s4, 4  ;;  %s1361_s2 = int_to_ptr.vmem [resolvable:$true] %s1360_s2  ;;  %s5740_s9 = int_to_ptr.hbm [resolvable:$true] %s5739_s9 }
 0x1bc   : > { %s5741_s28 = scalar_lea.hbm %s5740_s9, 64  ;;  %s5745_s23 = scalar_lea.hbm %s7061_s17, 64 }
 0x1bd   : > { %p5742_p11 = scmp.ne.s32.totalorder %s5740_s9, %s5741_s28  ;;  %p5746_p2 = scmp.lt.s32.totalorder %s5740_s9, %s7061_s17 }
 0x1be   : > { %p5747_p3 = scmp.lt.s32.totalorder %s5745_s23, %s5741_s28 }
 0x1bf   : > { %s1375_s6 = sshll.u32 %s7062_s10, 4  ;;  %p5743_p12 = pnand %p5742_p11, %p142_p10  ;;  %s6701_s6 = int_to_ptr.hbm [resolvable:$true] %s1375_s6 }
 0x1c0   : > { %p5748_p4 = por %p5747_p3, %p5746_p2 }
 0x1c1   : > { %p5744_p1 = pneg %p5743_p12 }
 0x1c3   : > { %p5749_p5 = pnand %p5748_p4, %p5744_p1 }
 0x1c5   : > { %5752 = shalt.err (!%p5749_p5)
}
 0x1c6   : > { %4797 = dma.hbm_to_vmem [thread:$0]  (%p142_p10), %s6687_s4, 1024, %s1361_s2, [#allocation33], %s7047_s0, %s7047_s0, %s7046_s11  }
 0x1c7   : > { %s1409_s14 = sshll.u32 %s6338_s30, 4  ;;  %s6137_s8 = smov [#allocation45]   ;;  %s6715_s14 = int_to_ptr.hbm [resolvable:$true] %s1409_s14 }
 0x1c8   : > { %s1377_s7 = sshll.u32 %s6137_s8, 4  ;;  %s5767_s9 = sshra.s32 %s6701_s6, 4  ;;  %s1378_s7 = int_to_ptr.vmem [resolvable:$true] %s1377_s7  ;;  %s5768_s9 = int_to_ptr.hbm [resolvable:$true] %s5767_s9 }
 0x1c9   : > { %s5769_s28 = scalar_lea.hbm %s5768_s9, 128  ;;  %s5773_s23 = scalar_lea.hbm %s7062_s10, 128 }
 0x1ca   : > { %p5770_p6 = scmp.ne.s32.totalorder %s5768_s9, %s5769_s28  ;;  %p5774_p11 = scmp.lt.s32.totalorder %s5768_s9, %s7062_s10 }
 0x1cb   : > { %p5775_p12 = scmp.lt.s32.totalorder %s5773_s23, %s5769_s28 }
 0x1cc   : > { %p5771_p7 = pnand %p5770_p6, %p142_p10 }
 0x1cd   : > { %p5776_p1 = por %p5775_p12, %p5774_p11 }
 0x1ce   : > { %p5772_p8 = pneg %p5771_p7 }
 0x1d0   : > { %p5777_p2 = pnand %p5776_p1, %p5772_p8 }
 0x1d2   : > { %5780 = shalt.err (!%p5777_p2)
}
 0x1d3   : > { %4799 = dma.hbm_to_vmem [thread:$0]  (%p142_p10), %s6701_s6, 2048, %s1378_s7, [#allocation36], %s7049_s13, %s7049_s13, %s7048_s1  }
 0x1d4   : > { %s6138_s4 = smov [#allocation48]   ;;  %s5795_s8 = sshra.s32 %s6715_s14, 4  ;;  %s5796_s8 = int_to_ptr.hbm [resolvable:$true] %s5795_s8 }
 0x1d5   : > { %s1411_s2 = sshll.u32 %s6138_s4, 4  ;;  %s5797_s9 = scalar_lea.hbm %s5796_s8, 64  ;;  %s1412_s2 = int_to_ptr.vmem [resolvable:$true] %s1411_s2 }
 0x1d6   : > { %p5798_p3 = scmp.ne.s32.totalorder %s5796_s8, %s5797_s9  ;;  %s5801_s28 = scalar_lea.hbm %s6338_s30, 64 }
 0x1d7   : > { %p5802_p6 = scmp.lt.s32.totalorder %s5796_s8, %s6338_s30  ;;  %p5803_p7 = scmp.lt.s32.totalorder %s5801_s28, %s5797_s9 }
 0x1d8   : > { %p5799_p4 = pnand %p5798_p3, %p142_p10 }
 0x1d9   : > { %p5804_p8 = por %p5803_p7, %p5802_p6 }
 0x1da   : > { %p5800_p5 = pneg %p5799_p4 }
 0x1dc   : > { %p5805_p11 = pnand %p5804_p8, %p5800_p5 }
 0x1de   : > { %5808 = shalt.err (!%p5805_p11)
}
 0x1df   : > { %4803 = dma.hbm_to_vmem [thread:$0]  (%p142_p10), %s6715_s14, 1024, %s1412_s2, [#allocation47], %s7047_s0, %s7047_s0, %s7046_s11  }
 0x1e0 PF: > { %s7063_s1 = sld [smem:[#allocation72_spill]]  ;;  %p4906_p12 = scmp.lt.s32.totalorder %s6063_s27, 2 }
 0x1e1   : > { %s7064_s13 = sld [smem:[#allocation81_spill]]  ;;  %s6997_s6 = sand.u32 1, %s6063_s27  }
 0x1e2   : > { %s1436_s7 = sand.u32 1, %s6059_s12   ;;  %s6745_s4 = sshll.u32 %s6063_s27, 2 }
 0x1e3   : > { %s6742_s23 = sshll.u32 %s1436_s7, 2  ;;  %p6752_p1 = pnand %p4906_p12, %p6395_p9 }
 0x1e4   : > { %s1438_s0 = scalar_lea.vmem [#allocation6], %s6742_s23  ;;  %s6760_s28 = scalar_lea.sflag [#allocation7], %s6997_s6 }
 0x1e5   : > { %s1446_s14 = sshll.u32 %s1438_s0, 4  ;;  %p5827_p3 = pneg %p6752_p1  ;;  %s1447_s14 = int_to_ptr.vmem [resolvable:$true] %s1446_s14 }
 0x1e6   : > { %s1442_s11 = scalar_lea.hbm %s7063_s1, %s6745_s4  ;;  %s5830_s16 = scalar_lea.hbm %s7063_s1, 8 }
 0x1e7   : > { %s1444_s2 = sshll.u32 %s1442_s11, 4  ;;  %s1468_s9 = scalar_lea.hbm %s7064_s13, %s6745_s4  ;;  %s1445_s2 = int_to_ptr.hbm [resolvable:$true] %s1444_s2 }
 0x1e8   : > { %s5823_s7 = sshra.s32 %s1445_s2, 4  ;;  %s5824_s7 = int_to_ptr.hbm [resolvable:$true] %s5823_s7 }
 0x1e9   : > { %s5825_s3 = scalar_lea.hbm %s5824_s7, 4  ;;  %p5831_p9 = scmp.lt.s32.totalorder %s5824_s7, %s7063_s1 }
 0x1ea   : > { %p5826_p2 = scmp.ne.s32.totalorder %s5824_s7, %s5825_s3  ;;  %p5832_p6 = scmp.lt.s32.totalorder %s5830_s16, %s5825_s3 }
 0x1ec   : > { %p5828_p4 = pnand %p5827_p3, %p5826_p2  ;;  %p5833_p7 = por %p5832_p6, %p5831_p9 }
 0x1ee   : > { %p5829_p5 = pneg %p5828_p4 }
 0x1f0   : > { %p5834_p8 = pnand %p5833_p7, %p5829_p5 }
 0x1f2   : > { %5837 = shalt.err (!%p5834_p8)
}
 0x1f3   : > { %4869 = dma.hbm_to_vmem [thread:$0]  (!%p6752_p1), %s1445_s2, 64, %s1447_s14, %s6760_s28  }
 0x1f4   : > { %s1470_s11 = sshll.u32 %s1468_s9, 4  ;;  %s1464_s0 = scalar_lea.vmem [#allocation26], %s6742_s23  ;;  %s1471_s11 = int_to_ptr.hbm [resolvable:$true] %s1470_s11 }
 0x1f5   : > { %s1472_s6 = sshll.u32 %s1464_s0, 4  ;;  %s7066_s10 = sand.u32 1, %s6063_s27   ;;  %s1473_s6 = int_to_ptr.vmem [resolvable:$true] %s1472_s6 }
 0x1f6   : > { %s6775_s7 = scalar_lea.sflag [#allocation27], %s7066_s10  ;;  %s5853_s3 = sshra.s32 %s1471_s11, 4  ;;  %s5854_s3 = int_to_ptr.hbm [resolvable:$true] %s5853_s3 }
 0x1f7   : > { %s5855_s16 = scalar_lea.hbm %s5854_s3, 4  ;;  %s5860_s1 = scalar_lea.hbm %s7064_s13, 8 }
 0x1f8   : > { %p5856_p11 = scmp.ne.s32.totalorder %s5854_s3, %s5855_s16  ;;  %p5861_p4 = scmp.lt.s32.totalorder %s5854_s3, %s7064_s13 }
 0x1f9   : > { %p5862_p5 = scmp.lt.s32.totalorder %s5860_s1, %s5855_s16 }
 0x1fa   : > { %p5858_p12 = pnand %p5856_p11, %p5827_p3 }
 0x1fb   : > { %p5863_p9 = por %p5862_p5, %p5861_p4 }
 0x1fc   : > { %p5859_p2 = pneg %p5858_p12 }
 0x1fe   : > { %p5864_p6 = pnand %p5863_p9, %p5859_p2 }
 0x200   : > { %5867 = shalt.err (!%p5864_p6)
}
 0x201   : > { %s7067_s27 = sld [smem:[#allocation87_spill]]  ;;  %s1483_s9 = scalar_lea.vmem [#allocation37], %s6742_s23 }
 0x202   : > { %4872 = dma.hbm_to_vmem [thread:$0]  (!%p6752_p1), %s1471_s11, 64, %s1473_s6, %s6775_s7  }
 0x203   : > { %s1491_s0 = sshll.u32 %s1483_s9, 4  ;;  %s1492_s0 = int_to_ptr.vmem [resolvable:$true] %s1491_s0 }
 0x207   : > { %s7068_s10 = smov %s7067_s27  ;;  %s1487_s14 = scalar_lea.hbm %s7067_s27, %s6745_s4 }
 0x208   : > { %s1489_s2 = sshll.u32 %s1487_s14, 4  ;;  %s5890_s16 = scalar_lea.hbm %s7068_s10, 8  ;;  %s1490_s2 = int_to_ptr.hbm [resolvable:$true] %s1489_s2 }
 0x209   : > { %s5883_s1 = sshra.s32 %s1490_s2, 4  ;;  %s5884_s1 = int_to_ptr.hbm [resolvable:$true] %s5883_s1 }
 0x20a   : > { %s5885_s3 = scalar_lea.hbm %s5884_s1, 4  ;;  %p5891_p12 = scmp.lt.s32.totalorder %s5884_s1, %s7068_s10 }
 0x20b   : > { %p5886_p7 = scmp.ne.s32.totalorder %s5884_s1, %s5885_s3  ;;  %p5892_p2 = scmp.lt.s32.totalorder %s5890_s16, %s5885_s3 }
 0x20d   : > { %p5888_p8 = pnand %p5886_p7, %p5827_p3  ;;  %p5893_p4 = por %p5892_p2, %p5891_p12 }
 0x20f   : > { %p5889_p11 = pneg %p5888_p8 }
 0x211   : > { %p5894_p5 = pnand %p5893_p4, %p5889_p11 }
 0x213   : > { %5897 = shalt.err (!%p5894_p5)
}
 0x214   : > { %s7069_s6 = sld [smem:[#allocation94_spill]]  ;;  %s1502_s14 = scalar_lea.vmem [#allocation42], %s6742_s23 }
 0x215   : > { %4875 = dma.hbm_to_vmem [thread:$0]  (!%p6752_p1), %s1490_s2, 64, %s1492_s0, %s6760_s28  }
 0x216   : > { %s1510_s9 = sshll.u32 %s1502_s14, 4  ;;  %s1511_s9 = int_to_ptr.vmem [resolvable:$true] %s1510_s9 }
 0x21a   : > { %s1506_s11 = scalar_lea.hbm %s7069_s6, %s6745_s4  ;;  %s5920_s16 = scalar_lea.hbm %s7069_s6, 8 }
 0x21b   : > { %s1508_s27 = sshll.u32 %s1506_s11, 4  ;;  %s1509_s27 = int_to_ptr.hbm [resolvable:$true] %s1508_s27 }
 0x21c   : > { %s5913_s1 = sshra.s32 %s1509_s27, 4  ;;  %s5914_s1 = int_to_ptr.hbm [resolvable:$true] %s5913_s1 }
 0x21d   : > { %s5915_s3 = scalar_lea.hbm %s5914_s1, 4  ;;  %p5921_p8 = scmp.lt.s32.totalorder %s5914_s1, %s7069_s6 }
 0x21e   : > { %p5916_p9 = scmp.ne.s32.totalorder %s5914_s1, %s5915_s3  ;;  %p5922_p11 = scmp.lt.s32.totalorder %s5920_s16, %s5915_s3 }
 0x220   : > { %p5918_p6 = pnand %p5916_p9, %p5827_p3  ;;  %p5923_p12 = por %p5922_p11, %p5921_p8 }
 0x222   : > { %p5919_p7 = pneg %p5918_p6 }
 0x224   : > { %p5924_p2 = pnand %p5923_p12, %p5919_p7 }
 0x226   : > { %5927 = shalt.err (!%p5924_p2)
}
 0x227   : > { %4878 = dma.hbm_to_vmem [thread:$0]  (!%p6752_p1), %s1509_s27, 64, %s1511_s9, %s6775_s7  }
 0x228   : > { %1519 = sbr.rel (%p6408_p0) target bundleno = 3184 (0xc70), region = 184  ;;  %s1521_s23 = sand.u32 (!%p6408_p0), 1, %s6380_s22  }
 0x229   : > { %s1523_s4 = sand.u32 (!%p6408_p0), 1, %s6055_s5   ;;  %s6813_s2 = scalar_lea.sflag (!%p6408_p0), [#allocation7], %s1521_s23 }
 0x22a   : > { %s6811_s28 = sshll.u32 (!%p6408_p0), %s1523_s4, 2 }
 0x22b   : > { %s1525_s0 = scalar_lea.vmem (!%p6408_p0), [#allocation6], %s6811_s28 }
 0x22d   : > { %5962 = dma.done.wait (%p6404_p13), %s6813_s2, 64  }
 0x22e   : > { %5964 = vsyncadd (%p6404_p13), %s6813_s2, 4294967232 }
 0x22f   : > { %5966 = dma.done.wait (%p142_p10), [#allocation9], 336  }
 0x230   : > { %5968 = vsyncadd (%p142_p10), [#allocation9], 4294966960 }
 0x231   : > { %5970 = dma.done.wait (%p142_p10), [#allocation12], 1040  }
 0x232   : > { %5972 = vsyncadd (%p142_p10), [#allocation12], 4294966256 }
 0x233   : > { %5974 = dma.done.wait (%p142_p10), [#allocation15], 2080  }
 0x234   : > { %5976 = vsyncadd (%p142_p10), [#allocation15], 4294965216 }
 0x235   : > { %5978 = dma.done.wait (%p142_p10), [#allocation18], 400  }
 0x236   : > { %5980 = vsyncadd (%p142_p10), [#allocation18], 4294966896 }
 0x237   : > { %5982 = dma.done.wait (%p142_p10), [#allocation21], 1040  }
 0x238   : > { %5984 = vsyncadd (%p142_p10), [#allocation21], 4294966256 }
 0x239   : > { %5986 = dma.done.wait (%p142_p10), [#allocation24], 2080  }
 0x23a   : > { %5988 = vsyncadd (%p142_p10), [#allocation24], 4294965216  ;;  %s1592_s18 = scalar_lea.sflag [#allocation27], %s1521_s23  ;;  %s1595_s8 = scalar_lea.vmem [#allocation26], %s6811_s28 }
 0x23b   : > { %5990 = dma.done.wait (%p6404_p13), %s1592_s18, 64  }
 0x23c   : > { %5992 = vsyncadd (%p6404_p13), %s1592_s18, 4294967232 }
 0x23d   : > { %5994 = dma.done.wait (%p142_p10), [#allocation27], 448  }
 0x23e   : > { %5996 = vsyncadd (%p142_p10), [#allocation27], 4294966848 }
 0x23f   : > { %5998 = dma.done.wait (%p142_p10), [#allocation30], 1040  }
 0x240   : > { %6000 = vsyncadd (%p142_p10), [#allocation30], 4294966256 }
 0x241   : > { %6002 = dma.done.wait (%p142_p10), [#allocation33], 2064  }
 0x242   : > { %6004 = vsyncadd (%p142_p10), [#allocation33], 4294965232 }
 0x243   : > { %6006 = dma.done.wait (%p142_p10), [#allocation36], 32  }
 0x244   : > { %6008 = vsyncadd (%p142_p10), [#allocation36], 4294967264  ;;  %s1635_s7 = scalar_lea.vmem [#allocation37], %s6811_s28 }
 0x245   : > { %6010 = dma.done.wait (%p6404_p13), %s6813_s2, 64  }
 0x246   : > { %6012 = vsyncadd (%p6404_p13), %s6813_s2, 4294967232 }
 0x247   : > { %6014 = dma.done.wait (%p142_p10), [#allocation9], 16  }
 0x248   : > { %6016 = vsyncadd (%p142_p10), [#allocation9], 4294967280 }
 0x249   : > { %6018 = dma.done.wait (%p142_p10), [#allocation12], 1024  }
 0x24a   : > { %6020 = vsyncadd (%p142_p10), [#allocation12], 4294966272 }
 0x24b   : > { %6022 = dma.done.wait (%p142_p10), [#allocation15], 16  }
 0x24c   : > { %6024 = vsyncadd (%p142_p10), [#allocation15], 4294967280 }
 0x24d   : > { %6026 = dma.done.wait (%p142_p10), [#allocation18], 2048  }
 0x24e   : > { %6028 = vsyncadd (%p142_p10), [#allocation18], 4294965248  ;;  %s1665_s11 = scalar_lea.vmem [#allocation42], %s6811_s28 }
 0x24f   : > { %6030 = dma.done.wait (%p6404_p13), %s1592_s18, 64  }
 0x250   : > { %6032 = vsyncadd (%p6404_p13), %s1592_s18, 4294967232 }
 0x251   : > { %6034 = dma.done.wait (%p142_p10), [#allocation30], 512  }
 0x252   : > { %6036 = vsyncadd (%p142_p10), [#allocation30], 4294966784 }
 0x253   : > { %6038 = dma.done.wait (%p142_p10), [#allocation33], 1024  }
 0x254   : > { %6040 = vsyncadd (%p142_p10), [#allocation33], 4294966272 }
 0x255   : > { %6042 = dma.done.wait (%p142_p10), [#allocation36], 2048  }
 0x256   : > { %6044 = vsyncadd (%p142_p10), [#allocation36], 4294965248 }
 0x257   : > { %6046 = dma.done.wait (%p142_p10), [#allocation47], 3072  }
 0x258   : > { %6048 = vsyncadd (%p142_p10), [#allocation47], 4294964224  ;;  %s7070_s15 = sld [smem:[#allocation76_spill]]  ;;  %p1808_p13 = scmp.lt.s32.totalorder %s6380_s22, 1  ;;  %v6139_v1 = vmov 0.0  }
 0x259   : > { %s7071_s27 = sld [smem:[#allocation105_spill]]  ;;  %1817 = vst [vmem:[#allocation2] sm:$0xff] %v6139_v1 }
 0x25a   : > { %s1819_s14 = sld [smem:[#allocation4]]  ;;  %s7086_s22 = smov (!%p1808_p13, %s6380_s22), 1  ;;  %1818 = vst [vmem:[#allocation2 + $0x8] sm:$0xff] %v6139_v1 }
 0x25b   : > { %s3942_s9 = sshll.u32 %s7086_s22, 2  ;;  %s3943_s1 = sshll.u32 %s7086_s22, 3 }
 0x25e   : > { %s6914_s3 = scalar_lea.vmem %s7070_s15, %s3942_s9 }
 0x25f   : > { %s6917_s16 = scalar_lea.vmem %s7071_s27, %s3943_s1 }
 0x260   : > { %p3944_p0 = scmp.eq.s32.totalorder %s1819_s14, 0 }
 0x262   : > { %1823 = sbr.rel (%p3944_p0) target bundleno = 1036 (0x40c), region = 312 }
 0x267   : > { %v1829_v2 = vld [vmem:[#allocation8 + $0x10] sm:$0xf]  ;;  %vm1853_vm0 = vcmask 1043456   ;;  %v4600_v6 = vld [vmem:[#allocation11 + $0x30] sm:$0xff]  ;;  %v4599_v9 = vld [vmem:[#allocation11 + $0x28] sm:$0xff]  ;;  %vm1849_vm1 = vcmask 326656  }
 0x268   : > { %v1843_v3 = vunpack.c.l.b16 %v1829_v2  ;;  %v4601_v4 = vld [vmem:[#allocation11 + $0x38] sm:$0xff]  ;;  %v4592_v10 = vld [vmem:[#allocation8] sm:$0xff]  ;;  %v4598_v11 = vld [vmem:[#allocation11 + $0x20] sm:$0xff] }
 0x269   : > { %1940 = vmatpush.bf16.msra.mxu1 %v4601_v4  ;;  %v4593_v8 = vld [vmem:[#allocation8 + $0x8] sm:$0xff]  ;;  %v1824_v12 = vld [vmem:[%s1525_s0] sm:$0xf]  ;;  %v4617_v18 = vld [vmem:[#allocation14 + $0x74] sm:$0xf0] }
 0x26a   : > { %v1846_v5 = vpack.c.b16 %v1843_v3, %v1843_v3  ;;  %v4597_v13 = vld [vmem:[#allocation11 + $0x18] sm:$0xff]  ;;  %v4596_v14 = vld [vmem:[#allocation11 + $0x10] sm:$0xff]  ;;  %v4595_v15 = vld [vmem:[#allocation11 + $0x8] sm:$0xff] }
 0x26b   : > { %v4594_v16 = vld [vmem:[#allocation11] sm:$0xff]  ;;  %v4044_v17 = vld [vmem:[#allocation14 + $0x70] sm:$0xf]  ;;  %v4616_v19 = vld [vmem:[#allocation14 + $0x74] sm:$0xf] }
 0x26c   : > { %v1855_v7 = vsel %vm1853_vm0, %v1846_v5, 0  ;;  %v4045_v20 = vor.u32 %v4617_v18, %v4044_v17  ;;  %v4046_v21 = vld [vmem:[#allocation14 + $0x78] sm:$0xf0]  ;;  %v4036_v22 = vld [vmem:[#allocation14 + $0x60] sm:$0xf] }
 0x26d   : > { %1862 = vmatpush.bf16.msra.mxu0 %v1855_v7  ;;  %1941 = vmatpush.bf16.msra.mxu1 %v4600_v6  ;;  %v4615_v23 = vld [vmem:[#allocation14 + $0x64] sm:$0xf0]  ;;  %v4049_v24 = vor.u32 %v4616_v19, %v4046_v21  ;;  %v4614_v25 = vld [vmem:[#allocation14 + $0x64] sm:$0xf]  ;;  %v4038_v26 = vld [vmem:[#allocation14 + $0x68] sm:$0xf0] }
 0x26e   : > { %2059 = vmatpush.bf16.msra.mxu2 %v4045_v20  ;;  %v4037_v27 = vor.u32 %v4615_v23, %v4036_v22  ;;  %v4041_v28 = vor.u32 %v4614_v25, %v4038_v26  ;;  %v4028_v29 = vld [vmem:[#allocation14 + $0x50] sm:$0xf]  ;;  %v4613_v30 = vld [vmem:[#allocation14 + $0x54] sm:$0xf0]  ;;  %v4612_v31 = vld [vmem:[#allocation14 + $0x54] sm:$0xf] }
 0x26f   : > { %2072 = vmatpush.bf16.msra.mxu3 %v4049_v24  ;;  %v4030_v32 = vld [vmem:[#allocation14 + $0x58] sm:$0xf0]  ;;  %v4029_v33 = vor.u32 %v4613_v30, %v4028_v29  ;;  %v4020_v35 = vld [vmem:[#allocation14 + $0x40] sm:$0xf]  ;;  %v4611_v36 = vld [vmem:[#allocation14 + $0x44] sm:$0xf0] }
 0x270   : > { %v4033_v34 = vor.u32 %v4612_v31, %v4030_v32  ;;  %v4610_v37 = vld [vmem:[#allocation14 + $0x44] sm:$0xf]  ;;  %v4022_v38 = vld [vmem:[#allocation14 + $0x48] sm:$0xf0]  ;;  %v4021_v39 = vor.u32 %v4611_v36, %v4020_v35  ;;  %v4012_v41 = vld [vmem:[#allocation14 + $0x30] sm:$0xf] }
 0x271   : > { %1863 = vmatpush.bf16.msra.mxu0 %v4593_v8  ;;  %1942 = vmatpush.bf16.msra.mxu1 %v4599_v9  ;;  %v4025_v40 = vor.u32 %v4610_v37, %v4022_v38  ;;  %v4609_v42 = vld [vmem:[#allocation14 + $0x34] sm:$0xf0]  ;;  %v4608_v43 = vld [vmem:[#allocation14 + $0x34] sm:$0xf]  ;;  %v4014_v44 = vld [vmem:[#allocation14 + $0x38] sm:$0xf0] }
 0x272   : > { %2060 = vmatpush.bf16.msra.mxu2 %v4037_v27  ;;  %v4013_v45 = vor.u32 %v4609_v42, %v4012_v41  ;;  %v4017_v46 = vor.u32 %v4608_v43, %v4014_v44  ;;  %v4004_v47 = vld [vmem:[#allocation14 + $0x20] sm:$0xf]  ;;  %v4607_v48 = vld [vmem:[#allocation14 + $0x24] sm:$0xf0]  ;;  %v4606_v49 = vld [vmem:[#allocation14 + $0x24] sm:$0xf] }
 0x273   : > { %2073 = vmatpush.bf16.msra.mxu3 %v4041_v28  ;;  %v4006_v50 = vld [vmem:[#allocation14 + $0x28] sm:$0xf0]  ;;  %v4005_v51 = vor.u32 %v4607_v48, %v4004_v47  ;;  %v5041_v53 = vld [vmem:[#allocation10] ss:$0 sm:$0xff]  ;;  %v3996_v59 = vld [vmem:[#allocation14 + $0x10] sm:$0xf] }
 0x274   : > { %v4009_v52 = vor.u32 %v4606_v49, %v4006_v50  ;;  %v4605_v60 = vld [vmem:[#allocation14 + $0x14] sm:$0xf0]  ;;  %v4604_v61 = vld [vmem:[#allocation14 + $0x14] sm:$0xf]  ;;  %v3998_v63 = vld [vmem:[#allocation14 + $0x18] sm:$0xf0] }
 0x275   : > { %1864 = vmatpush.bf16.msra.mxu0 %v4592_v10  ;;  %1943 = vmatpush.bf16.msra.mxu1 %v4598_v11  ;;  %v3997_v62 = vor.u32 %v4605_v60, %v3996_v59  ;;  %v4001_v0 = vor.u32 %v4604_v61, %v3998_v63  ;;  %v3988_v1 = vld [vmem:[#allocation14] sm:$0xf]  ;;  %v4603_v2 = vld [vmem:[#allocation14 + $0x4] sm:$0xf0]  ;;  %v4602_v3 = vld [vmem:[#allocation14 + $0x4] sm:$0xf] }
 0x276   : > { %2061 = vmatpush.bf16.msra.mxu2 %v4029_v33  ;;  %v3989_v4 = vor.u32 %v4603_v2, %v3988_v1  ;;  %v3990_v5 = vld [vmem:[#allocation14 + $0x8] sm:$0xf0]  ;;  %v5042_v7 = vld [vmem:[#allocation13] ss:$0 sm:$0xff] }
 0x277   : > { %2074 = vmatpush.bf16.msra.mxu3 %v4033_v34  ;;  %v3993_v6 = vor.u32 %v4602_v3, %v3990_v5  ;;  %v1955_v18 = vld [vmem:[#allocation2 + $0x8] sm:$0xff] }
 0x278   : > { %3953 = vmatmul.msk.bf16.vlgmr.msra.gmra.mxu0 %vm1849_vm1, %v1824_v12 }
 0x279   : > { %1944 = vmatpush.bf16.msra.mxu1 %v4597_v13  ;;  %v1973_v13 = vld [vmem:[#allocation16] sm:$0x3] }
 0x27a   : > { %2062 = vmatpush.bf16.msra.mxu2 %v4021_v39 }
 0x27b   : > { %2075 = vmatpush.bf16.msra.mxu3 %v4025_v40 }
 0x27d   : > { %1945 = vmatpush.bf16.msra.mxu1 %v4596_v14  ;;  %v1975_v14 = vperm.slane %v1973_v13, 0 }
 0x27e   : > { %2063 = vmatpush.bf16.msra.mxu2 %v4013_v45 }
 0x27f   : > { %2076 = vmatpush.bf16.msra.mxu3 %v4017_v46 }
 0x281   : > { %1946 = vmatpush.bf16.msra.mxu1 %v4595_v15  ;;  %v1976_v15 = vperm.slane %v1973_v13, 1 }
 0x282   : > { %2064 = vmatpush.bf16.msra.mxu2 %v4005_v51 }
 0x283   : > { %2077 = vmatpush.bf16.msra.mxu3 %v4009_v52 }
 0x285   : > { %1947 = vmatpush.bf16.msra.mxu1 %v4594_v16  ;;  %v1954_v16 = vld [vmem:[#allocation2] sm:$0xff] }
 0x286   : > { %2065 = vmatpush.bf16.msra.mxu2 %v3997_v62 }
 0x287   : > { %2078 = vmatpush.bf16.msra.mxu3 %v4001_v0 }
 0x28a   : > { %2066 = vmatpush.bf16.msra.mxu2 %v3989_v4 }
 0x28b   : > { %2079 = vmatpush.bf16.msra.mxu3 %v3993_v6 }
 0x2f5   : > { %v1866_v54 = vpop.f32.mrf.mxu0 }
 0x2f6   : > { %v1867_v55 = vadd.f32 %v5041_v53, %v1866_v54 }
 0x2f8   : > { %v1870_v56 = vmax.f32 %v1867_v55, 0.0 }
 0x2fa   : > { %v1871_v57 = vpack.c.bf16 %v1870_v56, %v1870_v56 }
 0x2fc   : > { %1948 = vmatmul.bf16.vlgmr.msra.gmra.mxu1 %v1871_v57 }
 0x2fd   : > { %v1868_v58 = vpop.f32.mrf.mxu0 }
 0x379   : > { %v1949_v8 = vpop.f32.mrf.mxu1 }
 0x37a   : > { %v1950_v9 = vadd.f32 %v5042_v7, %v1949_v8 }
 0x37c   : > { %v1953_v10 = vmax.f32 %v1950_v9, 0.0 }
 0x37e   : > { %v1956_v11 = vpack.c.bf16 %v1953_v10, %v1953_v10 }
 0x380   : > { %2067 = vmatmul.bf16.vlgmr.msra.gmra.mxu2 %v1956_v11  ;;  %2080 = vmatmul.bf16.vlgmr.msra.gmra.mxu3 %v1956_v11 }
 0x381   : > { %v1951_v12 = vpop.f32.mrf.mxu1 }
 0x403   : > { %v2068_v17 = vpop.f32.mrf.mxu2  ;;  %v2081_v19 = vpop.f32.mrf.mxu3 }
 0x404   : > { %v2069_v20 = vadd.f32 %v2068_v17, %v1975_v14  ;;  %v2082_v21 = vadd.f32 %v2081_v19, %v1976_v15 }
 0x406   : > { %v2085_v22 = vadd.f32 %v2069_v20, %v1954_v16  ;;  %v2086_v23 = vadd.f32 %v2082_v21, %v1955_v18 }
 0x408   : > { %2087 = vst [vmem:[#allocation2] sm:$0xff] %v2085_v22 }
 0x409   : > { %2088 = vst [vmem:[#allocation2 + $0x8] sm:$0xff] %v2086_v23 }
 0x40b   : > { %v2070_v24 = vpop.f32.mrf.mxu2  ;;  %v2083_v25 = vpop.f32.mrf.mxu3 }
 0x40c PF: > { %s4050_s22 = sld [smem:[#allocation4 + $0x1]] }
 0x412   : > { %p4051_p10 = scmp.eq.s32.totalorder %s4050_s22, 0 }
 0x414   : > { %2093 = sbr.rel (%p4051_p10) target bundleno = 1465 (0x5b9), region = 316 }
 0x419   : > { %v4620_v26 = vld [vmem:[#allocation17 + $0x10] sm:$0xff]  ;;  %v4619_v28 = vld [vmem:[#allocation17 + $0x8] sm:$0xff]  ;;  %v4618_v30 = vld [vmem:[#allocation17] sm:$0xff]  ;;  %vm2123_vm2 = vcmask 392192  }
 0x41a   : > { %v4628_v27 = vld [vmem:[#allocation20 + $0x38] sm:$0xff]  ;;  %2132 = vmatpush.bf16.msra.mxu0 %v4620_v26  ;;  %v4627_v29 = vld [vmem:[#allocation20 + $0x30] sm:$0xff]  ;;  %v4626_v31 = vld [vmem:[#allocation20 + $0x28] sm:$0xff] }
 0x41b   : > { %2210 = vmatpush.bf16.msra.mxu1 %v4628_v27  ;;  %v2094_v32 = vld [vmem:[%s6914_s3] sm:$0xf]  ;;  %v4625_v33 = vld [vmem:[#allocation20 + $0x20] sm:$0xff]  ;;  %v4624_v34 = vld [vmem:[#allocation20 + $0x18] sm:$0xff] }
 0x41c   : > { %v4623_v35 = vld [vmem:[#allocation20 + $0x10] sm:$0xff]  ;;  %v4622_v36 = vld [vmem:[#allocation20 + $0x8] sm:$0xff]  ;;  %v4621_v37 = vld [vmem:[#allocation20] sm:$0xff] }
 0x41d   : > { %v4155_v38 = vld [vmem:[#allocation23 + $0x70] sm:$0xf]  ;;  %v4644_v39 = vld [vmem:[#allocation23 + $0x74] sm:$0xf0]  ;;  %v4643_v40 = vld [vmem:[#allocation23 + $0x74] sm:$0xf] }
 0x41e   : > { %2133 = vmatpush.bf16.msra.mxu0 %v4619_v28  ;;  %v4156_v41 = vor.u32 %v4644_v39, %v4155_v38  ;;  %v4157_v42 = vld [vmem:[#allocation23 + $0x78] sm:$0xf0]  ;;  %v4147_v43 = vld [vmem:[#allocation23 + $0x60] sm:$0xf]  ;;  %v4642_v44 = vld [vmem:[#allocation23 + $0x64] sm:$0xf0] }
 0x41f   : > { %2211 = vmatpush.bf16.msra.mxu1 %v4627_v29  ;;  %v4160_v45 = vor.u32 %v4643_v40, %v4157_v42  ;;  %v4641_v46 = vld [vmem:[#allocation23 + $0x64] sm:$0xf]  ;;  %v4149_v47 = vld [vmem:[#allocation23 + $0x68] sm:$0xf0]  ;;  %v4148_v48 = vor.u32 %v4642_v44, %v4147_v43  ;;  %v4139_v50 = vld [vmem:[#allocation23 + $0x50] sm:$0xf] }
 0x420   : > { %2329 = vmatpush.bf16.msra.mxu2 %v4156_v41  ;;  %v4152_v49 = vor.u32 %v4641_v46, %v4149_v47  ;;  %v4640_v51 = vld [vmem:[#allocation23 + $0x54] sm:$0xf0]  ;;  %v4639_v52 = vld [vmem:[#allocation23 + $0x54] sm:$0xf]  ;;  %v4141_v53 = vld [vmem:[#allocation23 + $0x58] sm:$0xf0] }
 0x421   : > { %2342 = vmatpush.bf16.msra.mxu3 %v4160_v45  ;;  %v4140_v54 = vor.u32 %v4640_v51, %v4139_v50  ;;  %v4144_v55 = vor.u32 %v4639_v52, %v4141_v53  ;;  %v4131_v56 = vld [vmem:[#allocation23 + $0x40] sm:$0xf]  ;;  %v4638_v57 = vld [vmem:[#allocation23 + $0x44] sm:$0xf0]  ;;  %v4637_v58 = vld [vmem:[#allocation23 + $0x44] sm:$0xf] }
 0x422   : > { %2134 = vmatpush.bf16.msra.mxu0 %v4618_v30  ;;  %v4133_v59 = vld [vmem:[#allocation23 + $0x48] sm:$0xf0]  ;;  %v4132_v60 = vor.u32 %v4638_v57, %v4131_v56  ;;  %v4123_v62 = vld [vmem:[#allocation23 + $0x30] sm:$0xf]  ;;  %v4636_v63 = vld [vmem:[#allocation23 + $0x34] sm:$0xf0] }
 0x423   : > { %2212 = vmatpush.bf16.msra.mxu1 %v4626_v31  ;;  %v4136_v61 = vor.u32 %v4637_v58, %v4133_v59  ;;  %v4635_v0 = vld [vmem:[#allocation23 + $0x34] sm:$0xf]  ;;  %v4125_v1 = vld [vmem:[#allocation23 + $0x38] sm:$0xf0]  ;;  %v4124_v2 = vor.u32 %v4636_v63, %v4123_v62  ;;  %v4115_v4 = vld [vmem:[#allocation23 + $0x20] sm:$0xf] }
 0x424   : > { %2330 = vmatpush.bf16.msra.mxu2 %v4148_v48  ;;  %v4128_v3 = vor.u32 %v4635_v0, %v4125_v1  ;;  %v4634_v5 = vld [vmem:[#allocation23 + $0x24] sm:$0xf0]  ;;  %v4633_v6 = vld [vmem:[#allocation23 + $0x24] sm:$0xf]  ;;  %v4117_v7 = vld [vmem:[#allocation23 + $0x28] sm:$0xf0] }
 0x425   : > { %4064 = vmatmul.msk.bf16.vlgmr.msra.gmra.mxu0 %vm2123_vm2, %v2094_v32  ;;  %2343 = vmatpush.bf16.msra.mxu3 %v4152_v49  ;;  %v4116_v8 = vor.u32 %v4634_v5, %v4115_v4  ;;  %v4120_v9 = vor.u32 %v4633_v6, %v4117_v7  ;;  %v5043_v10 = vld [vmem:[#allocation19] ss:$0 sm:$0xff]  ;;  %v4107_v16 = vld [vmem:[#allocation23 + $0x10] sm:$0xf]  ;;  %v4632_v17 = vld [vmem:[#allocation23 + $0x14] sm:$0xf0] }
 0x426   : > { %v4631_v18 = vld [vmem:[#allocation23 + $0x14] sm:$0xf]  ;;  %v4108_v19 = vor.u32 %v4632_v17, %v4107_v16  ;;  %v4109_v20 = vld [vmem:[#allocation23 + $0x18] sm:$0xf0]  ;;  %v4099_v22 = vld [vmem:[#allocation23] sm:$0xf] }
 0x427   : > { %2213 = vmatpush.bf16.msra.mxu1 %v4625_v33  ;;  %v4112_v21 = vor.u32 %v4631_v18, %v4109_v20  ;;  %v4630_v23 = vld [vmem:[#allocation23 + $0x4] sm:$0xf0]  ;;  %v4629_v24 = vld [vmem:[#allocation23 + $0x4] sm:$0xf]  ;;  %v4101_v26 = vld [vmem:[#allocation23 + $0x8] sm:$0xf0] }
 0x428   : > { %2331 = vmatpush.bf16.msra.mxu2 %v4140_v54  ;;  %v4100_v25 = vor.u32 %v4630_v23, %v4099_v22  ;;  %v4104_v27 = vor.u32 %v4629_v24, %v4101_v26  ;;  %v5044_v28 = vld [vmem:[#allocation22] ss:$0 sm:$0xff] }
 0x429   : > { %2344 = vmatpush.bf16.msra.mxu3 %v4144_v55  ;;  %v2225_v39 = vld [vmem:[#allocation2 + $0x8] sm:$0xff] }
 0x42b   : > { %2214 = vmatpush.bf16.msra.mxu1 %v4624_v34  ;;  %v2243_v34 = vld [vmem:[#allocation25] sm:$0x3] }
 0x42c   : > { %2332 = vmatpush.bf16.msra.mxu2 %v4132_v60 }
 0x42d   : > { %2345 = vmatpush.bf16.msra.mxu3 %v4136_v61 }
 0x42f   : > { %2215 = vmatpush.bf16.msra.mxu1 %v4623_v35  ;;  %v2245_v35 = vperm.slane %v2243_v34, 0 }
 0x430   : > { %2333 = vmatpush.bf16.msra.mxu2 %v4124_v2 }
 0x431   : > { %2346 = vmatpush.bf16.msra.mxu3 %v4128_v3 }
 0x433   : > { %2216 = vmatpush.bf16.msra.mxu1 %v4622_v36  ;;  %v2246_v36 = vperm.slane %v2243_v34, 1 }
 0x434   : > { %2334 = vmatpush.bf16.msra.mxu2 %v4116_v8 }
 0x435   : > { %2347 = vmatpush.bf16.msra.mxu3 %v4120_v9 }
 0x437   : > { %2217 = vmatpush.bf16.msra.mxu1 %v4621_v37  ;;  %v2224_v37 = vld [vmem:[#allocation2] sm:$0xff] }
 0x438   : > { %2335 = vmatpush.bf16.msra.mxu2 %v4108_v19 }
 0x439   : > { %2348 = vmatpush.bf16.msra.mxu3 %v4112_v21 }
 0x43c   : > { %2336 = vmatpush.bf16.msra.mxu2 %v4100_v25 }
 0x43d   : > { %2349 = vmatpush.bf16.msra.mxu3 %v4104_v27 }
 0x4a2   : > { %v2136_v11 = vpop.f32.mrf.mxu0 }
 0x4a3   : > { %v2137_v12 = vadd.f32 %v5043_v10, %v2136_v11 }
 0x4a5   : > { %v2140_v13 = vmax.f32 %v2137_v12, 0.0 }
 0x4a7   : > { %v2141_v14 = vpack.c.bf16 %v2140_v13, %v2140_v13 }
 0x4a9   : > { %2218 = vmatmul.bf16.vlgmr.msra.gmra.mxu1 %v2141_v14 }
 0x4aa   : > { %v2138_v15 = vpop.f32.mrf.mxu0 }
 0x526   : > { %v2219_v29 = vpop.f32.mrf.mxu1 }
 0x527   : > { %v2220_v30 = vadd.f32 %v5044_v28, %v2219_v29 }
 0x529   : > { %v2223_v31 = vmax.f32 %v2220_v30, 0.0 }
 0x52b   : > { %v2226_v32 = vpack.c.bf16 %v2223_v31, %v2223_v31 }
 0x52d   : > { %2337 = vmatmul.bf16.vlgmr.msra.gmra.mxu2 %v2226_v32  ;;  %2350 = vmatmul.bf16.vlgmr.msra.gmra.mxu3 %v2226_v32 }
 0x52e   : > { %v2221_v33 = vpop.f32.mrf.mxu1 }
 0x5b0   : > { %v2338_v38 = vpop.f32.mrf.mxu2  ;;  %v2351_v40 = vpop.f32.mrf.mxu3 }
 0x5b1   : > { %v2339_v41 = vadd.f32 %v2338_v38, %v2245_v35  ;;  %v2352_v42 = vadd.f32 %v2351_v40, %v2246_v36 }
 0x5b3   : > { %v2355_v43 = vadd.f32 %v2339_v41, %v2224_v37  ;;  %v2356_v44 = vadd.f32 %v2352_v42, %v2225_v39 }
 0x5b5   : > { %2357 = vst [vmem:[#allocation2] sm:$0xff] %v2355_v43 }
 0x5b6   : > { %2358 = vst [vmem:[#allocation2 + $0x8] sm:$0xff] %v2356_v44 }
 0x5b8   : > { %v2340_v45 = vpop.f32.mrf.mxu2  ;;  %v2353_v46 = vpop.f32.mrf.mxu3 }
 0x5b9 PF: > { %s4161_s23 = sld [smem:[#allocation4 + $0x2]] }
 0x5bf   : > { %p4162_p1 = scmp.eq.s32.totalorder %s4161_s23, 0 }
 0x5c1   : > { %2363 = sbr.rel (%p4162_p1) target bundleno = 1903 (0x76f), region = 320 }
 0x5c6   : > { %v2371_v47 = vld [vmem:[#allocation28 + $0x18] sm:$0xf]  ;;  %vm2401_vm3 = vcmask 1043456   ;;  %v4654_v51 = vld [vmem:[#allocation31 + $0x30] sm:$0xff]  ;;  %v4653_v54 = vld [vmem:[#allocation31 + $0x28] sm:$0xff]  ;;  %vm2397_vm4 = vcmask 457728  }
 0x5c7   : > { %v2389_v48 = vunpack.c.l.b16 %v2371_v47  ;;  %v4655_v49 = vld [vmem:[#allocation31 + $0x38] sm:$0xff]  ;;  %v4646_v55 = vld [vmem:[#allocation28 + $0x8] sm:$0xff]  ;;  %v4652_v56 = vld [vmem:[#allocation31 + $0x20] sm:$0xff] }
 0x5c8   : > { %2488 = vmatpush.bf16.msra.mxu1 %v4655_v49  ;;  %v4647_v53 = vld [vmem:[#allocation28 + $0x10] sm:$0xff]  ;;  %v4645_v57 = vld [vmem:[#allocation28] sm:$0xff]  ;;  %v2364_v59 = vld [vmem:[%s1595_s8] sm:$0xf] }
 0x5c9   : > { %v2393_v50 = vpack.c.b16 %v2389_v48, %v2389_v48  ;;  %v4651_v58 = vld [vmem:[#allocation31 + $0x18] sm:$0xff]  ;;  %v4650_v60 = vld [vmem:[#allocation31 + $0x10] sm:$0xff]  ;;  %v4649_v61 = vld [vmem:[#allocation31 + $0x8] sm:$0xff] }
 0x5ca   : > { %v4648_v62 = vld [vmem:[#allocation31] sm:$0xff]  ;;  %v4266_v63 = vld [vmem:[#allocation34 + $0x70] sm:$0xf]  ;;  %v4671_v0 = vld [vmem:[#allocation34 + $0x74] sm:$0xf0] }
 0x5cb   : > { %v2403_v52 = vsel %vm2401_vm3, %v2393_v50, 0  ;;  %v4670_v1 = vld [vmem:[#allocation34 + $0x74] sm:$0xf]  ;;  %v4267_v2 = vor.u32 %v4671_v0, %v4266_v63  ;;  %v4268_v3 = vld [vmem:[#allocation34 + $0x78] sm:$0xf0] }
 0x5cc   : > { %2409 = vmatpush.bf16.msra.mxu0 %v2403_v52  ;;  %2489 = vmatpush.bf16.msra.mxu1 %v4654_v51  ;;  %v4258_v4 = vld [vmem:[#allocation34 + $0x60] sm:$0xf]  ;;  %v4669_v5 = vld [vmem:[#allocation34 + $0x64] sm:$0xf0]  ;;  %v4271_v6 = vor.u32 %v4670_v1, %v4268_v3  ;;  %v4668_v7 = vld [vmem:[#allocation34 + $0x64] sm:$0xf] }
 0x5cd   : > { %v4260_v8 = vld [vmem:[#allocation34 + $0x68] sm:$0xf0]  ;;  %2607 = vmatpush.bf16.msra.mxu2 %v4267_v2  ;;  %v4259_v9 = vor.u32 %v4669_v5, %v4258_v4  ;;  %v4250_v11 = vld [vmem:[#allocation34 + $0x50] sm:$0xf]  ;;  %v4667_v12 = vld [vmem:[#allocation34 + $0x54] sm:$0xf0] }
 0x5ce   : > { %2620 = vmatpush.bf16.msra.mxu3 %v4271_v6  ;;  %v4263_v10 = vor.u32 %v4668_v7, %v4260_v8  ;;  %v4666_v13 = vld [vmem:[#allocation34 + $0x54] sm:$0xf]  ;;  %v4252_v14 = vld [vmem:[#allocation34 + $0x58] sm:$0xf0]  ;;  %v4251_v15 = vor.u32 %v4667_v12, %v4250_v11  ;;  %v4242_v17 = vld [vmem:[#allocation34 + $0x40] sm:$0xf] }
 0x5cf   : > { %v4255_v16 = vor.u32 %v4666_v13, %v4252_v14  ;;  %v4665_v18 = vld [vmem:[#allocation34 + $0x44] sm:$0xf0]  ;;  %v4664_v19 = vld [vmem:[#allocation34 + $0x44] sm:$0xf]  ;;  %v4244_v20 = vld [vmem:[#allocation34 + $0x48] sm:$0xf0] }
 0x5d0   : > { %2410 = vmatpush.bf16.msra.mxu0 %v4647_v53  ;;  %2490 = vmatpush.bf16.msra.mxu1 %v4653_v54  ;;  %v4243_v21 = vor.u32 %v4665_v18, %v4242_v17  ;;  %v4247_v22 = vor.u32 %v4664_v19, %v4244_v20  ;;  %v4234_v23 = vld [vmem:[#allocation34 + $0x30] sm:$0xf]  ;;  %v4663_v24 = vld [vmem:[#allocation34 + $0x34] sm:$0xf0]  ;;  %v4662_v25 = vld [vmem:[#allocation34 + $0x34] sm:$0xf] }
 0x5d1   : > { %2608 = vmatpush.bf16.msra.mxu2 %v4259_v9  ;;  %v4236_v26 = vld [vmem:[#allocation34 + $0x38] sm:$0xf0]  ;;  %v4235_v27 = vor.u32 %v4663_v24, %v4234_v23  ;;  %v4226_v29 = vld [vmem:[#allocation34 + $0x20] sm:$0xf]  ;;  %v4661_v30 = vld [vmem:[#allocation34 + $0x24] sm:$0xf0] }
 0x5d2   : > { %2621 = vmatpush.bf16.msra.mxu3 %v4263_v10  ;;  %v4239_v28 = vor.u32 %v4662_v25, %v4236_v26  ;;  %v4660_v31 = vld [vmem:[#allocation34 + $0x24] sm:$0xf]  ;;  %v4228_v32 = vld [vmem:[#allocation34 + $0x28] sm:$0xf0]  ;;  %v4227_v33 = vor.u32 %v4661_v30, %v4226_v29  ;;  %v5045_v35 = vld [vmem:[#allocation29] ss:$0 sm:$0xff] }
 0x5d3   : > { %v4231_v34 = vor.u32 %v4660_v31, %v4228_v32  ;;  %v4218_v41 = vld [vmem:[#allocation34 + $0x10] sm:$0xf]  ;;  %v4659_v42 = vld [vmem:[#allocation34 + $0x14] sm:$0xf0]  ;;  %v4658_v43 = vld [vmem:[#allocation34 + $0x14] sm:$0xf] }
 0x5d4   : > { %2411 = vmatpush.bf16.msra.mxu0 %v4646_v55  ;;  %2491 = vmatpush.bf16.msra.mxu1 %v4652_v56  ;;  %v4219_v44 = vor.u32 %v4659_v42, %v4218_v41  ;;  %v4220_v45 = vld [vmem:[#allocation34 + $0x18] sm:$0xf0]  ;;  %v4210_v47 = vld [vmem:[#allocation34] sm:$0xf]  ;;  %v4657_v48 = vld [vmem:[#allocation34 + $0x4] sm:$0xf0] }
 0x5d5   : > { %2609 = vmatpush.bf16.msra.mxu2 %v4251_v15  ;;  %v4223_v46 = vor.u32 %v4658_v43, %v4220_v45  ;;  %v4656_v49 = vld [vmem:[#allocation34 + $0x4] sm:$0xf]  ;;  %v4211_v50 = vor.u32 %v4657_v48, %v4210_v47  ;;  %v4212_v51 = vld [vmem:[#allocation34 + $0x8] sm:$0xf0]  ;;  %v5046_v53 = vld [vmem:[#allocation32] ss:$0 sm:$0xff] }
 0x5d6   : > { %2622 = vmatpush.bf16.msra.mxu3 %v4255_v16  ;;  %v4215_v52 = vor.u32 %v4656_v49, %v4212_v51  ;;  %v2503_v0 = vld [vmem:[#allocation2 + $0x8] sm:$0xff] }
 0x5d8   : > { %2412 = vmatpush.bf16.msra.mxu0 %v4645_v57  ;;  %2492 = vmatpush.bf16.msra.mxu1 %v4651_v58 }
 0x5d9   : > { %2610 = vmatpush.bf16.msra.mxu2 %v4243_v21 }
 0x5da   : > { %2623 = vmatpush.bf16.msra.mxu3 %v4247_v22 }
 0x5db   : > { %4175 = vmatmul.msk.bf16.vlgmr.msra.gmra.mxu0 %vm2397_vm4, %v2364_v59  ;;  %v2521_v59 = vld [vmem:[#allocation35] sm:$0x3] }
 0x5dc   : > { %2493 = vmatpush.bf16.msra.mxu1 %v4650_v60  ;;  %v2523_v60 = vperm.slane %v2521_v59, 0 }
 0x5dd   : > { %2611 = vmatpush.bf16.msra.mxu2 %v4235_v27 }
 0x5de   : > { %2624 = vmatpush.bf16.msra.mxu3 %v4239_v28 }
 0x5e0   : > { %2494 = vmatpush.bf16.msra.mxu1 %v4649_v61  ;;  %v2524_v61 = vperm.slane %v2521_v59, 1 }
 0x5e1   : > { %2612 = vmatpush.bf16.msra.mxu2 %v4227_v33 }
 0x5e2   : > { %2625 = vmatpush.bf16.msra.mxu3 %v4231_v34 }
 0x5e4   : > { %2495 = vmatpush.bf16.msra.mxu1 %v4648_v62  ;;  %v2502_v62 = vld [vmem:[#allocation2] sm:$0xff] }
 0x5e5   : > { %2613 = vmatpush.bf16.msra.mxu2 %v4219_v44 }
 0x5e6   : > { %2626 = vmatpush.bf16.msra.mxu3 %v4223_v46 }
 0x5e9   : > { %2614 = vmatpush.bf16.msra.mxu2 %v4211_v50 }
 0x5ea   : > { %2627 = vmatpush.bf16.msra.mxu3 %v4215_v52 }
 0x658   : > { %v2414_v36 = vpop.f32.mrf.mxu0 }
 0x659   : > { %v2415_v37 = vadd.f32 %v5045_v35, %v2414_v36 }
 0x65b   : > { %v2418_v38 = vmax.f32 %v2415_v37, 0.0 }
 0x65d   : > { %v2419_v39 = vpack.c.bf16 %v2418_v38, %v2418_v38 }
 0x65f   : > { %2496 = vmatmul.bf16.vlgmr.msra.gmra.mxu1 %v2419_v39 }
 0x660   : > { %v2416_v40 = vpop.f32.mrf.mxu0 }
 0x6dc   : > { %v2497_v54 = vpop.f32.mrf.mxu1 }
 0x6dd   : > { %v2498_v55 = vadd.f32 %v5046_v53, %v2497_v54 }
 0x6df   : > { %v2501_v56 = vmax.f32 %v2498_v55, 0.0 }
 0x6e1   : > { %v2504_v57 = vpack.c.bf16 %v2501_v56, %v2501_v56 }
 0x6e3   : > { %2615 = vmatmul.bf16.vlgmr.msra.gmra.mxu2 %v2504_v57  ;;  %2628 = vmatmul.bf16.vlgmr.msra.gmra.mxu3 %v2504_v57 }
 0x6e4   : > { %v2499_v58 = vpop.f32.mrf.mxu1 }
 0x766   : > { %v2616_v63 = vpop.f32.mrf.mxu2  ;;  %v2629_v1 = vpop.f32.mrf.mxu3 }
 0x767   : > { %v2617_v2 = vadd.f32 %v2616_v63, %v2523_v60  ;;  %v2630_v3 = vadd.f32 %v2629_v1, %v2524_v61 }
 0x769   : > { %v2633_v4 = vadd.f32 %v2617_v2, %v2502_v62  ;;  %v2634_v5 = vadd.f32 %v2630_v3, %v2503_v0 }
 0x76b   : > { %2635 = vst [vmem:[#allocation2] sm:$0xff] %v2633_v4 }
 0x76c   : > { %2636 = vst [vmem:[#allocation2 + $0x8] sm:$0xff] %v2634_v5 }
 0x76e   : > { %v2618_v6 = vpop.f32.mrf.mxu2  ;;  %v2631_v7 = vpop.f32.mrf.mxu3 }
 0x76f PF: > { %s4272_s4 = sld [smem:[#allocation4 + $0x3]] }
 0x775   : > { %p4273_p3 = scmp.eq.s32.totalorder %s4272_s4, 0 }
 0x776   : > { %s7072_s2 = sld [smem:[#allocation88_spill]] (!%p4273_p3) }
 0x777   : > { %2641 = sbr.rel (%p4273_p3) target bundleno = 2328 (0x918), region = 324  ;;  %s7073_s0 = sld [smem:[#allocation93_spill]] (!%p4273_p3) }
 0x77c   : > { %v4673_v8 = vld [vmem:[%s7072_s2 + $0x8] sm:$0xff]  ;;  %v4681_v9 = vld [vmem:[#allocation39 + $0x38] sm:$0xff]  ;;  %v4680_v11 = vld [vmem:[#allocation39 + $0x30] sm:$0xff]  ;;  %vm2663_vm5 = vcmask 261120  }
 0x77d   : > { %2673 = vmatpush.bf16.msra.mxu0 %v4673_v8  ;;  %v4672_v10 = vld [vmem:[%s7072_s2] sm:$0xff]  ;;  %2750 = vmatpush.bf16.msra.mxu1 %v4681_v9  ;;  %v4679_v13 = vld [vmem:[#allocation39 + $0x28] sm:$0xff]  ;;  %v4676_v16 = vld [vmem:[#allocation39 + $0x10] sm:$0xff] }
 0x77e   : > { %v2642_v12 = vld [vmem:[%s1635_s7] sm:$0xf]  ;;  %v4678_v14 = vld [vmem:[#allocation39 + $0x20] sm:$0xff]  ;;  %v4675_v17 = vld [vmem:[#allocation39 + $0x8] sm:$0xff] }
 0x77f   : > { %v4677_v15 = vld [vmem:[#allocation39 + $0x18] sm:$0xff]  ;;  %v4674_v18 = vld [vmem:[#allocation39] sm:$0xff]  ;;  %v4373_v19 = vld [vmem:[#allocation41 + $0x70] sm:$0xf] }
 0x780   : > { %v4697_v20 = vld [vmem:[#allocation41 + $0x74] sm:$0xf0]  ;;  %v4696_v21 = vld [vmem:[#allocation41 + $0x74] sm:$0xf]  ;;  %v4375_v23 = vld [vmem:[#allocation41 + $0x78] sm:$0xf0] }
 0x781   : > { %2674 = vmatpush.bf16.msra.mxu0 %v4672_v10  ;;  %2751 = vmatpush.bf16.msra.mxu1 %v4680_v11  ;;  %v4374_v22 = vor.u32 %v4697_v20, %v4373_v19  ;;  %v4365_v24 = vld [vmem:[#allocation41 + $0x60] sm:$0xf]  ;;  %v4695_v25 = vld [vmem:[#allocation41 + $0x64] sm:$0xf0]  ;;  %v4378_v26 = vor.u32 %v4696_v21, %v4375_v23  ;;  %v4694_v27 = vld [vmem:[#allocation41 + $0x64] sm:$0xf] }
 0x782   : > { %v4367_v28 = vld [vmem:[#allocation41 + $0x68] sm:$0xf0]  ;;  %v4366_v29 = vor.u32 %v4695_v25, %v4365_v24  ;;  %v4357_v31 = vld [vmem:[#allocation41 + $0x50] sm:$0xf]  ;;  %v4693_v32 = vld [vmem:[#allocation41 + $0x54] sm:$0xf0] }
 0x783   : > { %2869 = vmatpush.bf16.msra.mxu2 %v4374_v22  ;;  %2882 = vmatpush.bf16.msra.mxu3 %v4378_v26  ;;  %v4370_v30 = vor.u32 %v4694_v27, %v4367_v28  ;;  %v4692_v33 = vld [vmem:[#allocation41 + $0x54] sm:$0xf]  ;;  %v4359_v34 = vld [vmem:[#allocation41 + $0x58] sm:$0xf0]  ;;  %v4358_v35 = vor.u32 %v4693_v32, %v4357_v31  ;;  %v4349_v37 = vld [vmem:[#allocation41 + $0x40] sm:$0xf] }
 0x784   : > { %4282 = vmatmul.msk.bf16.vlgmr.msra.gmra.mxu0 %vm2663_vm5, %v2642_v12  ;;  %v4362_v36 = vor.u32 %v4692_v33, %v4359_v34  ;;  %v4691_v38 = vld [vmem:[#allocation41 + $0x44] sm:$0xf0]  ;;  %v4690_v39 = vld [vmem:[#allocation41 + $0x44] sm:$0xf]  ;;  %v4351_v40 = vld [vmem:[#allocation41 + $0x48] sm:$0xf0] }
 0x785   : > { %2752 = vmatpush.bf16.msra.mxu1 %v4679_v13  ;;  %v4350_v41 = vor.u32 %v4691_v38, %v4349_v37  ;;  %v4354_v42 = vor.u32 %v4690_v39, %v4351_v40  ;;  %v4341_v43 = vld [vmem:[#allocation41 + $0x30] sm:$0xf]  ;;  %v4689_v44 = vld [vmem:[#allocation41 + $0x34] sm:$0xf0]  ;;  %v4688_v45 = vld [vmem:[#allocation41 + $0x34] sm:$0xf] }
 0x786   : > { %v4343_v46 = vld [vmem:[#allocation41 + $0x38] sm:$0xf0]  ;;  %v4342_v47 = vor.u32 %v4689_v44, %v4341_v43  ;;  %v4333_v49 = vld [vmem:[#allocation41 + $0x20] sm:$0xf]  ;;  %v4687_v50 = vld [vmem:[#allocation41 + $0x24] sm:$0xf0] }
 0x787   : > { %2870 = vmatpush.bf16.msra.mxu2 %v4366_v29  ;;  %2883 = vmatpush.bf16.msra.mxu3 %v4370_v30  ;;  %v4346_v48 = vor.u32 %v4688_v45, %v4343_v46  ;;  %v4686_v51 = vld [vmem:[#allocation41 + $0x24] sm:$0xf]  ;;  %v4335_v52 = vld [vmem:[#allocation41 + $0x28] sm:$0xf0]  ;;  %v4334_v53 = vor.u32 %v4687_v50, %v4333_v49  ;;  %v5047_v55 = vld [vmem:[#allocation38] ss:$0 sm:$0xff] }
 0x788   : > { %v4338_v54 = vor.u32 %v4686_v51, %v4335_v52  ;;  %v4325_v61 = vld [vmem:[#allocation41 + $0x10] sm:$0xf]  ;;  %v4685_v62 = vld [vmem:[#allocation41 + $0x14] sm:$0xf0]  ;;  %v4684_v63 = vld [vmem:[#allocation41 + $0x14] sm:$0xf] }
 0x789   : > { %2753 = vmatpush.bf16.msra.mxu1 %v4678_v14  ;;  %v4326_v0 = vor.u32 %v4685_v62, %v4325_v61  ;;  %v4327_v1 = vld [vmem:[#allocation41 + $0x18] sm:$0xf0]  ;;  %v4317_v3 = vld [vmem:[#allocation41] sm:$0xf]  ;;  %v4683_v4 = vld [vmem:[#allocation41 + $0x4] sm:$0xf0] }
 0x78a   : > { %v4330_v2 = vor.u32 %v4684_v63, %v4327_v1  ;;  %v4682_v5 = vld [vmem:[#allocation41 + $0x4] sm:$0xf]  ;;  %v4318_v6 = vor.u32 %v4683_v4, %v4317_v3  ;;  %v4319_v7 = vld [vmem:[#allocation41 + $0x8] sm:$0xf0]  ;;  %v5048_v9 = vld [vmem:[#allocation40] ss:$0 sm:$0xff] }
 0x78b   : > { %2871 = vmatpush.bf16.msra.mxu2 %v4358_v35  ;;  %2884 = vmatpush.bf16.msra.mxu3 %v4362_v36  ;;  %v4322_v8 = vor.u32 %v4682_v5, %v4319_v7  ;;  %v2765_v20 = vld [vmem:[#allocation2 + $0x8] sm:$0xff] }
 0x78d   : > { %2754 = vmatpush.bf16.msra.mxu1 %v4677_v15  ;;  %v2783_v15 = vld [vmem:[%s7073_s0] sm:$0x3] }
 0x78f   : > { %2872 = vmatpush.bf16.msra.mxu2 %v4350_v41  ;;  %2885 = vmatpush.bf16.msra.mxu3 %v4354_v42 }
 0x791   : > { %2755 = vmatpush.bf16.msra.mxu1 %v4676_v16  ;;  %v2785_v16 = vperm.slane %v2783_v15, 0 }
 0x793   : > { %2873 = vmatpush.bf16.msra.mxu2 %v4342_v47  ;;  %2886 = vmatpush.bf16.msra.mxu3 %v4346_v48 }
 0x795   : > { %2756 = vmatpush.bf16.msra.mxu1 %v4675_v17  ;;  %v2786_v17 = vperm.slane %v2783_v15, 1 }
 0x797   : > { %2874 = vmatpush.bf16.msra.mxu2 %v4334_v53  ;;  %2887 = vmatpush.bf16.msra.mxu3 %v4338_v54 }
 0x799   : > { %2757 = vmatpush.bf16.msra.mxu1 %v4674_v18  ;;  %v2764_v18 = vld [vmem:[#allocation2] sm:$0xff] }
 0x79b   : > { %2875 = vmatpush.bf16.msra.mxu2 %v4326_v0  ;;  %2888 = vmatpush.bf16.msra.mxu3 %v4330_v2 }
 0x79f   : > { %2876 = vmatpush.bf16.msra.mxu2 %v4318_v6  ;;  %2889 = vmatpush.bf16.msra.mxu3 %v4322_v8 }
 0x801   : > { %v2676_v56 = vpop.f32.mrf.mxu0 }
 0x802   : > { %v2677_v57 = vadd.f32 %v5047_v55, %v2676_v56 }
 0x804   : > { %v2680_v58 = vmax.f32 %v2677_v57, 0.0 }
 0x806   : > { %v2681_v59 = vpack.c.bf16 %v2680_v58, %v2680_v58 }
 0x808   : > { %2758 = vmatmul.bf16.vlgmr.msra.gmra.mxu1 %v2681_v59 }
 0x809   : > { %v2678_v60 = vpop.f32.mrf.mxu0 }
 0x885   : > { %v2759_v10 = vpop.f32.mrf.mxu1 }
 0x886   : > { %v2760_v11 = vadd.f32 %v5048_v9, %v2759_v10 }
 0x888   : > { %v2763_v12 = vmax.f32 %v2760_v11, 0.0 }
 0x88a   : > { %v2766_v13 = vpack.c.bf16 %v2763_v12, %v2763_v12 }
 0x88c   : > { %2877 = vmatmul.bf16.vlgmr.msra.gmra.mxu2 %v2766_v13  ;;  %2890 = vmatmul.bf16.vlgmr.msra.gmra.mxu3 %v2766_v13 }
 0x88d   : > { %v2761_v14 = vpop.f32.mrf.mxu1 }
 0x90f   : > { %v2878_v19 = vpop.f32.mrf.mxu2  ;;  %v2891_v21 = vpop.f32.mrf.mxu3 }
 0x910   : > { %v2879_v22 = vadd.f32 %v2878_v19, %v2785_v16  ;;  %v2892_v23 = vadd.f32 %v2891_v21, %v2786_v17 }
 0x912   : > { %v2895_v24 = vadd.f32 %v2879_v22, %v2764_v18  ;;  %v2896_v25 = vadd.f32 %v2892_v23, %v2765_v20 }
 0x914   : > { %2897 = vst [vmem:[#allocation2] sm:$0xff] %v2895_v24 }
 0x915   : > { %2898 = vst [vmem:[#allocation2 + $0x8] sm:$0xff] %v2896_v25 }
 0x917   : > { %v2880_v26 = vpop.f32.mrf.mxu2  ;;  %v2893_v27 = vpop.f32.mrf.mxu3 }
 0x918 PF: > { %s4379_s18 = sld [smem:[#allocation4 + $0x4]] }
 0x91e   : > { %p4380_p4 = scmp.eq.s32.totalorder %s4379_s18, 0 }
 0x91f   : > { %s7074_s28 = sld [smem:[#allocation96_spill]] (!%p4380_p4) }
 0x920   : > { %2903 = sbr.rel (%p4380_p4) target bundleno = 2761 (0xac9), region = 328  ;;  %s7075_s8 = sld [smem:[#allocation98_spill]] (!%p4380_p4) }
 0x921   : > { %s7076_s7 = sld [smem:[#allocation100_spill]] (!%p4380_p4) }
 0x925   : > { %v4701_v28 = vld [vmem:[#allocation43 + $0x18] sm:$0xff]  ;;  %v4700_v30 = vld [vmem:[#allocation43 + $0x10] sm:$0xff]  ;;  %v4699_v32 = vld [vmem:[#allocation43 + $0x8] sm:$0xff]  ;;  %vm2941_vm6 = vcmask 523264  }
 0x926   : > { %v4709_v29 = vld [vmem:[#allocation44 + $0x38] sm:$0xff]  ;;  %2949 = vmatpush.bf16.msra.mxu0 %v4701_v28  ;;  %v4708_v31 = vld [vmem:[#allocation44 + $0x30] sm:$0xff]  ;;  %v4707_v33 = vld [vmem:[#allocation44 + $0x28] sm:$0xff] }
 0x927   : > { %3028 = vmatpush.bf16.msra.mxu1 %v4709_v29  ;;  %v4698_v34 = vld [vmem:[#allocation43] sm:$0xff]  ;;  %v2904_v36 = vld [vmem:[%s1665_s11] sm:$0xf]  ;;  %v4704_v38 = vld [vmem:[#allocation44 + $0x10] sm:$0xff] }
 0x928   : > { %v4706_v35 = vld [vmem:[#allocation44 + $0x20] sm:$0xff]  ;;  %v4705_v37 = vld [vmem:[#allocation44 + $0x18] sm:$0xff]  ;;  %v4703_v39 = vld [vmem:[#allocation44 + $0x8] sm:$0xff] }
 0x929   : > { %v4702_v40 = vld [vmem:[#allocation44] sm:$0xff]  ;;  %v4488_v41 = vld [vmem:[#allocation45 + $0x70] sm:$0xf]  ;;  %v4725_v42 = vld [vmem:[#allocation45 + $0x74] sm:$0xf0] }
 0x92a   : > { %2950 = vmatpush.bf16.msra.mxu0 %v4700_v30  ;;  %v4724_v43 = vld [vmem:[#allocation45 + $0x74] sm:$0xf]  ;;  %v4489_v44 = vor.u32 %v4725_v42, %v4488_v41  ;;  %v4490_v45 = vld [vmem:[#allocation45 + $0x78] sm:$0xf0]  ;;  %v4480_v46 = vld [vmem:[#allocation45 + $0x60] sm:$0xf] }
 0x92b   : > { %3029 = vmatpush.bf16.msra.mxu1 %v4708_v31  ;;  %v4723_v47 = vld [vmem:[#allocation45 + $0x64] sm:$0xf0]  ;;  %v4493_v48 = vor.u32 %v4724_v43, %v4490_v45  ;;  %v4722_v49 = vld [vmem:[#allocation45 + $0x64] sm:$0xf]  ;;  %v4482_v50 = vld [vmem:[#allocation45 + $0x68] sm:$0xf0] }
 0x92c   : > { %3147 = vmatpush.bf16.msra.mxu2 %v4489_v44  ;;  %v4481_v51 = vor.u32 %v4723_v47, %v4480_v46  ;;  %v4485_v52 = vor.u32 %v4722_v49, %v4482_v50  ;;  %v4472_v53 = vld [vmem:[#allocation45 + $0x50] sm:$0xf]  ;;  %v4721_v54 = vld [vmem:[#allocation45 + $0x54] sm:$0xf0]  ;;  %v4720_v55 = vld [vmem:[#allocation45 + $0x54] sm:$0xf] }
 0x92d   : > { %3160 = vmatpush.bf16.msra.mxu3 %v4493_v48  ;;  %v4474_v56 = vld [vmem:[#allocation45 + $0x58] sm:$0xf0]  ;;  %v4473_v57 = vor.u32 %v4721_v54, %v4472_v53  ;;  %v4464_v59 = vld [vmem:[#allocation45 + $0x40] sm:$0xf]  ;;  %v4719_v60 = vld [vmem:[#allocation45 + $0x44] sm:$0xf0] }
 0x92e   : > { %2951 = vmatpush.bf16.msra.mxu0 %v4699_v32  ;;  %v4477_v58 = vor.u32 %v4720_v55, %v4474_v56  ;;  %v4718_v61 = vld [vmem:[#allocation45 + $0x44] sm:$0xf]  ;;  %v4466_v62 = vld [vmem:[#allocation45 + $0x48] sm:$0xf0]  ;;  %v4465_v63 = vor.u32 %v4719_v60, %v4464_v59  ;;  %v4456_v1 = vld [vmem:[#allocation45 + $0x30] sm:$0xf] }
 0x92f   : > { %3030 = vmatpush.bf16.msra.mxu1 %v4707_v33  ;;  %v4469_v0 = vor.u32 %v4718_v61, %v4466_v62  ;;  %v4717_v2 = vld [vmem:[#allocation45 + $0x34] sm:$0xf0]  ;;  %v4716_v3 = vld [vmem:[#allocation45 + $0x34] sm:$0xf]  ;;  %v4458_v4 = vld [vmem:[#allocation45 + $0x38] sm:$0xf0] }
 0x930   : > { %3148 = vmatpush.bf16.msra.mxu2 %v4481_v51  ;;  %v4457_v5 = vor.u32 %v4717_v2, %v4456_v1  ;;  %v4461_v6 = vor.u32 %v4716_v3, %v4458_v4  ;;  %v4448_v7 = vld [vmem:[#allocation45 + $0x20] sm:$0xf]  ;;  %v4715_v8 = vld [vmem:[#allocation45 + $0x24] sm:$0xf0]  ;;  %v4714_v9 = vld [vmem:[#allocation45 + $0x24] sm:$0xf] }
 0x931   : > { %3161 = vmatpush.bf16.msra.mxu3 %v4485_v52  ;;  %v4450_v10 = vld [vmem:[#allocation45 + $0x28] sm:$0xf0]  ;;  %v4449_v11 = vor.u32 %v4715_v8, %v4448_v7  ;;  %v5049_v13 = vld [vmem:[%s7074_s28] ss:$0 sm:$0xff]  ;;  %v4713_v20 = vld [vmem:[#allocation45 + $0x14] sm:$0xf0] }
 0x932   : > { %2952 = vmatpush.bf16.msra.mxu0 %v4698_v34  ;;  %v4453_v12 = vor.u32 %v4714_v9, %v4450_v10  ;;  %v4440_v19 = vld [vmem:[#allocation45 + $0x10] sm:$0xf]  ;;  %v4712_v21 = vld [vmem:[#allocation45 + $0x14] sm:$0xf]  ;;  %v4442_v23 = vld [vmem:[#allocation45 + $0x18] sm:$0xf0] }
 0x933   : > { %3031 = vmatpush.bf16.msra.mxu1 %v4706_v35  ;;  %v4441_v22 = vor.u32 %v4713_v20, %v4440_v19  ;;  %v4445_v24 = vor.u32 %v4712_v21, %v4442_v23  ;;  %v4432_v25 = vld [vmem:[#allocation45] sm:$0xf]  ;;  %v4711_v26 = vld [vmem:[#allocation45 + $0x4] sm:$0xf0]  ;;  %v4710_v27 = vld [vmem:[#allocation45 + $0x4] sm:$0xf] }
 0x934   : > { %3149 = vmatpush.bf16.msra.mxu2 %v4473_v57  ;;  %v4433_v28 = vor.u32 %v4711_v26, %v4432_v25  ;;  %v4434_v29 = vld [vmem:[#allocation45 + $0x8] sm:$0xf0]  ;;  %v5050_v31 = vld [vmem:[%s7075_s8] ss:$0 sm:$0xff]  ;;  %v3043_v42 = vld [vmem:[#allocation2 + $0x8] sm:$0xff] }
 0x935   : > { %4397 = vmatmul.msk.bf16.vlgmr.msra.gmra.mxu0 %vm2941_vm6, %v2904_v36  ;;  %3162 = vmatpush.bf16.msra.mxu3 %v4477_v58  ;;  %v4437_v30 = vor.u32 %v4710_v27, %v4434_v29 }
 0x937   : > { %3032 = vmatpush.bf16.msra.mxu1 %v4705_v37  ;;  %v3061_v37 = vld [vmem:[%s7076_s7] sm:$0x3] }
 0x938   : > { %3150 = vmatpush.bf16.msra.mxu2 %v4465_v63 }
 0x939   : > { %3163 = vmatpush.bf16.msra.mxu3 %v4469_v0 }
 0x93b   : > { %3033 = vmatpush.bf16.msra.mxu1 %v4704_v38  ;;  %v3063_v38 = vperm.slane %v3061_v37, 0 }
 0x93c   : > { %3151 = vmatpush.bf16.msra.mxu2 %v4457_v5 }
 0x93d   : > { %3164 = vmatpush.bf16.msra.mxu3 %v4461_v6 }
 0x93f   : > { %3034 = vmatpush.bf16.msra.mxu1 %v4703_v39  ;;  %v3064_v39 = vperm.slane %v3061_v37, 1 }
 0x940   : > { %3152 = vmatpush.bf16.msra.mxu2 %v4449_v11 }
 0x941   : > { %3165 = vmatpush.bf16.msra.mxu3 %v4453_v12 }
 0x943   : > { %3035 = vmatpush.bf16.msra.mxu1 %v4702_v40  ;;  %v3042_v40 = vld [vmem:[#allocation2] sm:$0xff] }
 0x944   : > { %3153 = vmatpush.bf16.msra.mxu2 %v4441_v22 }
 0x945   : > { %3166 = vmatpush.bf16.msra.mxu3 %v4445_v24 }
 0x948   : > { %3154 = vmatpush.bf16.msra.mxu2 %v4433_v28 }
 0x949   : > { %3167 = vmatpush.bf16.msra.mxu3 %v4437_v30 }
 0x9b2   : > { %v2954_v14 = vpop.f32.mrf.mxu0 }
 0x9b3   : > { %v2955_v15 = vadd.f32 %v5049_v13, %v2954_v14 }
 0x9b5   : > { %v2958_v16 = vmax.f32 %v2955_v15, 0.0 }
 0x9b7   : > { %v2959_v17 = vpack.c.bf16 %v2958_v16, %v2958_v16 }
 0x9b9   : > { %3036 = vmatmul.bf16.vlgmr.msra.gmra.mxu1 %v2959_v17 }
 0x9ba   : > { %v2956_v18 = vpop.f32.mrf.mxu0 }
 0xa36   : > { %v3037_v32 = vpop.f32.mrf.mxu1 }
 0xa37   : > { %v3038_v33 = vadd.f32 %v5050_v31, %v3037_v32 }
 0xa39   : > { %v3041_v34 = vmax.f32 %v3038_v33, 0.0 }
 0xa3b   : > { %v3044_v35 = vpack.c.bf16 %v3041_v34, %v3041_v34 }
 0xa3d   : > { %3155 = vmatmul.bf16.vlgmr.msra.gmra.mxu2 %v3044_v35  ;;  %3168 = vmatmul.bf16.vlgmr.msra.gmra.mxu3 %v3044_v35 }
 0xa3e   : > { %v3039_v36 = vpop.f32.mrf.mxu1 }
 0xac0   : > { %v3156_v41 = vpop.f32.mrf.mxu2  ;;  %v3169_v43 = vpop.f32.mrf.mxu3 }
 0xac1   : > { %v3157_v44 = vadd.f32 %v3156_v41, %v3063_v38  ;;  %v3170_v45 = vadd.f32 %v3169_v43, %v3064_v39 }
 0xac3   : > { %v3173_v46 = vadd.f32 %v3157_v44, %v3042_v40  ;;  %v3174_v47 = vadd.f32 %v3170_v45, %v3043_v42 }
 0xac5   : > { %3175 = vst [vmem:[#allocation2] sm:$0xff] %v3173_v46 }
 0xac6   : > { %3176 = vst [vmem:[#allocation2 + $0x8] sm:$0xff] %v3174_v47 }
 0xac8   : > { %v3158_v48 = vpop.f32.mrf.mxu2  ;;  %v3171_v49 = vpop.f32.mrf.mxu3 }
 0xac9 PF: > { %v4733_v50 = vld [vmem:[#allocation46 + $0x38] sm:$0xff]  ;;  %v4732_v52 = vld [vmem:[#allocation46 + $0x30] sm:$0xff]  ;;  %v4731_v54 = vld [vmem:[#allocation46 + $0x28] sm:$0xff]  ;;  %s7077_s11 = sld [smem:[#allocation102_spill]]  ;;  %vm3435_vm7 = vcmask 7168  }
 0xaca   : > { %v4741_v51 = vld [vmem:[#allocation46 + $0x78] sm:$0xff]  ;;  %3313 = vmatpush.bf16.msra.mxu0 %v4733_v50  ;;  %v4740_v53 = vld [vmem:[#allocation46 + $0x70] sm:$0xff]  ;;  %v4739_v55 = vld [vmem:[#allocation46 + $0x68] sm:$0xff]  ;;  %s7078_s15 = sld [smem:[#allocation103_spill]] }
 0xacb   : > { %3326 = vmatpush.bf16.msra.mxu1 %v4741_v51  ;;  %v4749_v56 = vld [vmem:[#allocation48 + $0x38] sm:$0xff]  ;;  %v4748_v57 = vld [vmem:[#allocation48 + $0x30] sm:$0xff]  ;;  %v4730_v58 = vld [vmem:[#allocation46 + $0x20] sm:$0xff]  ;;  %s7079_s27 = sld [smem:[#allocation104_spill]] }
 0xacc   : > { %3409 = vmatpush.bf16.msra.mxu2 %v4749_v56  ;;  %v4738_v59 = vld [vmem:[#allocation46 + $0x60] sm:$0xff]  ;;  %v4747_v60 = vld [vmem:[#allocation48 + $0x28] sm:$0xff]  ;;  %v4729_v61 = vld [vmem:[#allocation46 + $0x18] sm:$0xff] }
 0xacd   : > { %v4737_v62 = vld [vmem:[#allocation46 + $0x58] sm:$0xff]  ;;  %v4746_v63 = vld [vmem:[#allocation48 + $0x20] sm:$0xff]  ;;  %v4728_v0 = vld [vmem:[#allocation46 + $0x10] sm:$0xff] }
 0xace   : > { %3314 = vmatpush.bf16.msra.mxu0 %v4732_v52  ;;  %v4736_v1 = vld [vmem:[#allocation46 + $0x50] sm:$0xff]  ;;  %v4745_v2 = vld [vmem:[#allocation48 + $0x18] sm:$0xff]  ;;  %v4727_v3 = vld [vmem:[#allocation46 + $0x8] sm:$0xff] }
 0xacf   : > { %3327 = vmatpush.bf16.msra.mxu1 %v4740_v53  ;;  %v4735_v4 = vld [vmem:[#allocation46 + $0x48] sm:$0xff]  ;;  %v4744_v5 = vld [vmem:[#allocation48 + $0x10] sm:$0xff]  ;;  %v4726_v6 = vld [vmem:[#allocation46] sm:$0xff] }
 0xad0   : > { %3410 = vmatpush.bf16.msra.mxu2 %v4748_v57  ;;  %v4734_v7 = vld [vmem:[#allocation46 + $0x40] sm:$0xff]  ;;  %v3177_v8 = vld [vmem:[#allocation2] sm:$0xff]  ;;  %v4743_v12 = vld [vmem:[#allocation48 + $0x8] sm:$0xff] }
 0xad1   : > { %v3178_v9 = vld [vmem:[#allocation2 + $0x8] sm:$0xff]  ;;  %v3179_v10 = vpack.c.bf16 %v3177_v8, %v3177_v8  ;;  %v5051_v14 = vld [vmem:[%s7077_s11] ss:$0 sm:$0xff]  ;;  %v5054_v30 = vld [vmem:[#allocation5] ss:$0 sm:$0xff] }
 0xad2   : > { %3315 = vmatpush.bf16.msra.mxu0 %v4731_v54  ;;  %v3180_v11 = vpack.c.bf16 %v3178_v9, %v3178_v9  ;;  %v4742_v13 = vld [vmem:[#allocation48] sm:$0xff]  ;;  %v5052_v23 = vld [vmem:[%s7078_s15] ss:$0 sm:$0xff] }
 0xad3   : > { %3328 = vmatpush.bf16.msra.mxu1 %v4739_v55  ;;  %v5053_v26 = vld [vmem:[%s7079_s27] ss:$0 sm:$0xff] }
 0xad4   : > { %3411 = vmatpush.bf16.msra.mxu2 %v4747_v60 }
 0xad6   : > { %3316 = vmatpush.bf16.msra.mxu0 %v4730_v58 }
 0xad7   : > { %3329 = vmatpush.bf16.msra.mxu1 %v4738_v59 }
 0xad8   : > { %3412 = vmatpush.bf16.msra.mxu2 %v4746_v63 }
 0xada   : > { %3317 = vmatpush.bf16.msra.mxu0 %v4729_v61 }
 0xadb   : > { %3330 = vmatpush.bf16.msra.mxu1 %v4737_v62 }
 0xadc   : > { %3413 = vmatpush.bf16.msra.mxu2 %v4745_v2 }
 0xade   : > { %3318 = vmatpush.bf16.msra.mxu0 %v4728_v0 }
 0xadf   : > { %3331 = vmatpush.bf16.msra.mxu1 %v4736_v1 }
 0xae0   : > { %3414 = vmatpush.bf16.msra.mxu2 %v4744_v5 }
 0xae2   : > { %3319 = vmatpush.bf16.msra.mxu0 %v4727_v3 }
 0xae3   : > { %3332 = vmatpush.bf16.msra.mxu1 %v4735_v4 }
 0xae4   : > { %3415 = vmatpush.bf16.msra.mxu2 %v4743_v12 }
 0xae6   : > { %3320 = vmatpush.bf16.msra.mxu0 %v4726_v6 }
 0xae7   : > { %3333 = vmatpush.bf16.msra.mxu1 %v4734_v7 }
 0xae8   : > { %3416 = vmatpush.bf16.msra.mxu2 %v4742_v13 }
 0xae9   : > { %3321 = vmatmul.bf16.vlgmr.msra.gmra.mxu0 %v3179_v10 }
 0xaea   : > { %3334 = vmatmul.bf16.vlgmr.msra.gmra.mxu1 %v3180_v11 }
 0xb66   : > { %v3322_v15 = vpop.f32.mrf.mxu0 }
 0xb67   : > { %v3335_v16 = vpop.f32.mrf.mxu1  ;;  %v3323_v17 = vadd.f32 %v5051_v14, %v3322_v15 }
 0xb69   : > { %v3336_v18 = vadd.f32 %v3335_v16, %v3323_v17 }
 0xb6b   : > { %v3339_v19 = vmax.f32 %v3336_v18, 0.0 }
 0xb6d   : > { %v3340_v20 = vpack.c.bf16 %v3339_v19, %v3339_v19 }
 0xb6e   : > { %v3324_v21 = vpop.f32.mrf.mxu0 }
 0xb6f   : > { %v3337_v22 = vpop.f32.mrf.mxu1  ;;  %3417 = vmatmul.bf16.vlgmr.msra.gmra.mxu2 %v3340_v20 }
 0xbf2   : > { %v3418_v24 = vpop.f32.mrf.mxu2 }
 0xbf3   : > { %v3419_v25 = vadd.f32 %v5052_v23, %v3418_v24 }
 0xbf5   : > { %v3422_v27 = vmax.f32 %v3419_v25, 0.0 }
 0xbf7   : > { %v3427_v28 = vmul.f32 %v5053_v26, %v3422_v27 }
 0xbf9   : > { %3428 = vadd.xlane.f32.xlu0 %v3427_v28 }
 0xbfa   : > { %v3420_v29 = vpop.f32.mrf.mxu2 }
 0xc6c   : > { %v3429_v31 = vpop.xlane.xlu0 %3428 }
 0xc6d   : > { %v3434_v32 = vadd.f32 %v5054_v30, %v3429_v31 }
 0xc6f   : > { %3436 = vst.msk [vmem:[%s6917_s16] sm:$0xff] %vm3435_vm7, %v3434_v32 }
 0xc70 PF: > { %s7080_s27 = sld [smem:[#allocation106_spill]]  ;;  %s7082_s0 = smov %s6055_s5 }
 0xc71   : > { %s7081_s14 = sld [smem:[#allocation107_spill]]  ;;  %s7083_s5 = smov %s6059_s12 }
 0xc76   : > { %p118_p5 = scmp.ge.s32.totalorder %s7080_s27, 4  }
 0xc77   : > { %s7084_s12 = smov %s7081_s14 }
 0xc78   :  { %120 = sbr.rel (!%p118_p5) target bundleno = 110 (0x6e), region = 432 }
 0xc7d   :  { %3456 = vsyncpa [#allocation7], 1 }
 0xc7e   :  { %3458 = vsyncpa [#allocation7 + $0x1], 1 }
 0xc7f   :  { %3459 = vsyncpa [#allocation9], 1 }
 0xc80   :  { %3460 = vsyncpa [#allocation12], 1 }
 0xc81   :  { %3461 = vsyncpa [#allocation15], 1 }
 0xc82   :  { %3462 = vsyncpa [#allocation18], 1 }
 0xc83   :  { %3463 = vsyncpa [#allocation21], 1 }
 0xc84   :  { %3464 = vsyncpa [#allocation24], 1 }
 0xc85   :  { %3465 = vsyncpa [#allocation27], 1 }
 0xc86   :  { %3467 = vsyncpa [#allocation27 + $0x1], 1 }
 0xc87   :  { %3468 = vsyncpa [#allocation30], 1 }
 0xc88   :  { %3469 = vsyncpa [#allocation33], 1 }
 0xc89   :  { %3470 = vsyncpa [#allocation36], 1 }
 0xc8a   :  { %3471 = vsyncpa [#allocation47], 1 }

// kernel: tpu_custom_call.1
= control target key start
LH: loop header
LB: loop body
LE: loop exit
PB: predicated region body
PF: predicated region fallthrough
CT: control target
= control target key end

     0   :  { %s6065_s6 = smov 1   ;;  %s6066_s10 = smov 2   ;;  %s6951_s0 = inlined_call_operand.smem [shape: u32[43], index: -1, kind: input, shape index: {}] }
   0x1   :  { %s6148_s5 = sld [smem:[%s6951_s0]]   ;;  %s6067_s14 = smov 3  }
   0x2   :  { %s6153_s9 = sld [smem:[%s6951_s0 + %s6065_s6]]   ;;  %s6068_s18 = smov 4  }
   0x3   :  { %s6158_s13 = sld [smem:[%s6951_s0 + %s6066_s10]]   ;;  %s6069_s22 = smov 5  }
   0x4   :  { %s6163_s17 = sld [smem:[%s6951_s0 + %s6067_s14]]   ;;  %s6070_s26 = smov 6  }
   0x5   :  { %s6168_s21 = sld [smem:[%s6951_s0 + %s6068_s18]]   ;;  %s6071_s30 = smov 7  }
   0x6   :  { %s6173_s25 = sld [smem:[%s6951_s0 + %s6069_s22]]   ;;  %s6072_s4 = smov 8  }
   0x7   :  { %s6178_s29 = sld [smem:[%s6951_s0 + %s6070_s26]]   ;;  %s6073_s10 = smov 9  }
   0x8   :  { %7000 = sst [smem:[#allocation72_spill]] %s6153_s9  ;;  %s6074_s15 = smov 10  }
   0x9   :  { %7001 = sst [smem:[#allocation73_spill]] %s6158_s13  ;;  %s6075_s20 = smov 11  }
   0xa   :  { %7002 = sst [smem:[#allocation74_spill]] %s6163_s17  ;;  %s6076_s26 = smov 12  }
   0xb   :  { %s6183_s3 = sld [smem:[%s6951_s0 + %s6071_s30]]   ;;  %s6077_s1 = smov 13  }
   0xc   :  { %s6188_s8 = sld [smem:[%s6951_s0 + %s6072_s4]]   ;;  %s6078_s7 = smov 14  }
   0xd   :  { %s6193_s14 = sld [smem:[%s6951_s0 + %s6073_s10]]   ;;  %s6080_s22 = smov 16  }
   0xe   :  { %s6198_s19 = sld [smem:[%s6951_s0 + %s6074_s15]]   ;;  %s6079_s15 = smov 15  }
   0xf   :  { %s6203_s24 = sld [smem:[%s6951_s0 + %s6075_s20]]   ;;  %s6081_s28 = smov 17  }
  0x10   :  { %s6208_s30 = sld [smem:[%s6951_s0 + %s6076_s26]]   ;;  %s6104_s26 = smov 40  }
  0x11   :  { %7003 = sst [smem:[#allocation75_spill]] %s6183_s3  ;;  %s6105_s2 = smov 42  }
  0x12   :  { %7004 = sst [smem:[#allocation76_spill]] %s6188_s8 }
  0x13   :  { %7005 = sst [smem:[#allocation77_spill]] %s6193_s14 }
  0x14   :  { %s6213_s6 = sld [smem:[%s6951_s0 + %s6077_s1]]  }
  0x15   :  { %s6218_s12 = sld [smem:[%s6951_s0 + %s6078_s7]]   ;;  %s6082_s7 = smov 18  }
  0x16   :  { %7006 = sst [smem:[#allocation78_spill]] %s6208_s30 }
  0x17   :  { %s6223_s20 = sld [smem:[%s6951_s0 + %s6079_s15]]   ;;  %s6083_s15 = smov 19  }
  0x18   :  { %s6228_s27 = sld [smem:[%s6951_s0 + %s6080_s22]]   ;;  %s6084_s22 = smov 20  }
  0x19   :  { %s6233_s4 = sld [smem:[%s6951_s0 + %s6081_s28]]   ;;  %s6085_s28 = smov 21  }
  0x1a   :  { %7007 = sst [smem:[#allocation79_spill]] %s6213_s6 }
  0x1b   :  { %7008 = sst [smem:[#allocation80_spill]] %s6218_s12 }
  0x1c   :  { %s6238_s8 = sld [smem:[%s6951_s0 + %s6082_s7]]   ;;  %s6086_s7 = smov 22  }
  0x1d   :  { %7009 = sst [smem:[#allocation81_spill]] %s6223_s20 }
  0x1e   :  { %7010 = sst [smem:[#allocation82_spill]] %s6228_s27 }
  0x1f   :  { %7011 = sst [smem:[#allocation83_spill]] %s6233_s4 }
  0x20   :  { %s6243_s20 = sld [smem:[%s6951_s0 + %s6083_s15]]   ;;  %s6087_s15 = smov 23  }
  0x21   :  { %s6248_s9 = sld [smem:[%s6951_s0 + %s6084_s22]]   ;;  %s6088_s22 = smov 24  }
  0x22   :  { %7012 = sst [smem:[#allocation84_spill]] %s6238_s8 }
  0x23   :  { %s6253_s27 = sld [smem:[%s6951_s0 + %s6085_s28]]   ;;  %s6089_s28 = smov 25  }
  0x24   :  { %s6258_s12 = sld [smem:[%s6951_s0 + %s6086_s7]]   ;;  %s6090_s7 = smov 26  }
  0x25   :  { %s6263_s30 = sld [smem:[%s6951_s0 + %s6087_s15]]   ;;  %s6091_s15 = smov 27  }
  0x27   :  { %7013 = sst [smem:[#allocation85_spill]] %s6248_s9 }
  0x28   :  { %s6268_s9 = sld [smem:[%s6951_s0 + %s6088_s22]]   ;;  %s6092_s22 = smov 28  }
  0x29   :  { %7014 = sst [smem:[#allocation86_spill]] %s6253_s27 }
  0x2a   :  { %7015 = sst [smem:[#allocation87_spill]] %s6258_s12 }
  0x2b   :  { %7016 = sst [smem:[#allocation88_spill]] %s6263_s30 }
  0x2c   :  { %s6273_s27 = sld [smem:[%s6951_s0 + %s6089_s28]]   ;;  %s6093_s28 = smov 29  }
  0x2d   :  { %s6278_s12 = sld [smem:[%s6951_s0 + %s6090_s7]]   ;;  %s6094_s7 = smov 30  }
  0x2e   :  { %7017 = sst [smem:[#allocation89_spill]] %s6268_s9 }
  0x2f   :  { %s6283_s30 = sld [smem:[%s6951_s0 + %s6091_s15]]   ;;  %s6095_s15 = smov 31  }
  0x30   :  { %s6288_s9 = sld [smem:[%s6951_s0 + %s6092_s22]]   ;;  %s6096_s22 = smov 32  }
  0x31   :  { %s6308_s1 = sld [smem:[%s6951_s0 + %s6096_s22]]   ;;  %s6100_s22 = smov 36  }
  0x32   :  { %7018 = sst [smem:[#allocation90_spill]] %s6273_s27 }
  0x33   :  { %7019 = sst [smem:[#allocation91_spill]] %s6278_s12 }
  0x34   :  { %s6293_s27 = sld [smem:[%s6951_s0 + %s6093_s28]]   ;;  %s6097_s28 = smov 33  }
  0x35   :  { %7020 = sst [smem:[#allocation92_spill]] %s6283_s30 }
  0x36   :  { %7021 = sst [smem:[#allocation93_spill]] %s6288_s9  ;;  %s6101_s9 = smov 37  }
  0x37   :  { %s6298_s12 = sld [smem:[%s6951_s0 + %s6094_s7]]   ;;  %s6098_s7 = smov 34  }
  0x38   :  { %s6303_s30 = sld [smem:[%s6951_s0 + %s6095_s15]]   ;;  %s6099_s15 = smov 35  }
  0x39   :  { %7025 = sst [smem:[#allocation97_spill]] %s6308_s1 }
  0x3a   :  { %7022 = sst [smem:[#allocation94_spill]] %s6293_s27 }
  0x3b   :  { %s6313_s10 = sld [smem:[%s6951_s0 + %s6097_s28]]  }
  0x3c   :  { %s6318_s16 = sld [smem:[%s6951_s0 + %s6098_s7]]   ;;  %s6102_s7 = smov 38  }
  0x3d   :  { %7023 = sst [smem:[#allocation95_spill]] %s6298_s12 }
  0x3e   :  { %7024 = sst [smem:[#allocation96_spill]] %s6303_s30 }
  0x3f   :  { %s6323_s23 = sld [smem:[%s6951_s0 + %s6099_s15]]   ;;  %s6103_s15 = smov 39  }
  0x40   :  { %s6328_s12 = sld [smem:[%s6951_s0 + %s6100_s22]]   ;;  %s91_s22 = sshll.u32 %s6148_s5, 4  ;;  %s92_s22 = int_to_ptr.hbm [resolvable:$true] %s91_s22 }
  0x41   :  { %7026 = sst [smem:[#allocation98_spill]] %s6313_s10 }
  0x42   :  { %7027 = sst [smem:[#allocation99_spill]] %s6318_s16 }
  0x43   :  { %s6333_s27 = sld [smem:[%s6951_s0 + %s6101_s9]]  }
  0x44   :  { %s6338_s30 = sld [smem:[%s6951_s0 + %s6102_s7]]   ;;  %s5055_s7 = sshra.s32 %s92_s22, 4  ;;  %s5056_s7 = int_to_ptr.hbm [resolvable:$true] %s5055_s7 }
  0x45   :  { %7028 = sst [smem:[#allocation100_spill]] %s6323_s23  ;;  %s5057_s11 = scalar_lea.hbm %s5056_s7, 1 }
  0x46   :  { %7029 = sst [smem:[#allocation101_spill]] %s6328_s12  ;;  %p5058_p0 = scmp.ne.s32.totalorder %s5056_s7, %s5057_s11 }
  0x47   :  { %s6343_s1 = sld [smem:[%s6951_s0 + %s6103_s15]]   ;;  %s5059_s23 = scalar_lea.hbm %s6148_s5, 1 }
  0x48   :  { %s6349_s9 = sld [smem:[%s6951_s0 + %s6104_s26]]   ;;  %p5060_p1 = scmp.lt.s32.totalorder %s5056_s7, %s6148_s5 }
  0x49   :  { %7030 = sst [smem:[#allocation102_spill]] %s6333_s27  ;;  %p5061_p2 = scmp.lt.s32.totalorder %s5059_s23, %s5057_s11 }
  0x4a   :  { %s6354_s10 = sld [smem:[%s6951_s0 + %s6105_s2]]  }
  0x4b   :  { %p5062_p3 = por %p5061_p2, %p5060_p1 }
  0x4d   :  { %7031 = sst [smem:[#allocation103_spill]] %s6343_s1  ;;  %p5063_p4 = pnand %p5062_p3, %p5058_p0 }
  0x4e   :  { %7032 = sst [smem:[#allocation104_spill]] %s6349_s9 }
  0x50   :  { %7033 = sst [smem:[#allocation105_spill]] %s6354_s10 }
  0x51   :  { %5066 = shalt.err (!%p5063_p4)  }
  0x52   :  { %s6106_s16 = smov [#allocation4]   ;;  %s6107_s15 = smov 41  }
  0x53   :  { %94 = dma.hbm_to_smem %s92_s22, 16, %s6106_s16, [#allocation3] }
  0x54   :  { %s3869_s28 = sld [smem:[%s6951_s0 + %s6107_s15]]  }
  0x5a   :  { %v95_v0 = vstv %s3869_s28 }
  0x5b   :  { %96 = vst [vmem:[#allocation5] sm:$0x1] %v95_v0 }
  0x5c   :  { %5959 = dma.done.wait [#allocation3], 16 }
  0x5d   :  { %5960 = vsyncadd [#allocation3], 4294967280 }
  0x5e   :  { %99 = sfence }
  0x5f   :  { %100 = vsyncpa [#allocation7], 0 }
  0x60   :  { %102 = vsyncpa [#allocation7 + $0x1], 0 }
  0x61   :  { %103 = vsyncpa [#allocation9], 0 }
  0x62   :  { %104 = vsyncpa [#allocation12], 0 }
  0x63   :  { %105 = vsyncpa [#allocation15], 0 }
  0x64   :  { %106 = vsyncpa [#allocation18], 0 }
  0x65   :  { %107 = vsyncpa [#allocation21], 0 }
  0x66   :  { %108 = vsyncpa [#allocation24], 0 }
  0x67   :  { %109 = vsyncpa [#allocation27], 0 }
  0x68   :  { %111 = vsyncpa [#allocation27 + $0x1], 0 }
  0x69   :  { %112 = vsyncpa [#allocation30], 0 }
  0x6a   :  { %113 = vsyncpa [#allocation33], 0 }
  0x6b   :  { %114 = vsyncpa [#allocation36], 0 }
  0x6c   :  { %115 = vsyncpa [#allocation47], 0  ;;  %s6361_s0 = smov 0   ;;  %s6363_s5 = smov 0  }
  0x6d   :  { %s6365_s12 = smov 0   ;;  %s6367_s27 = smov 0  }
  0x6e LB: > { %s7034_s17 = sld [smem:[#allocation74_spill]]  ;;  %s6380_s22 = sadd.s32 4294967295, %s6063_s27   ;;  %s6059_s12 = sphi %s6365_s12, %s7084_s12   ;;  %s6055_s5 = sphi %s6363_s5, %s7083_s5   ;;  %s6051_s0 = sphi %s6361_s0, %s7082_s0   ;;  %s6063_s27 = sphi %s6367_s27, %s7080_s27  }
  0x6f   : > { %s7035_s8 = sld [smem:[#allocation84_spill]]  ;;  %s6383_s2 = sadd.s32 1, %s6063_s27  }
  0x70   : > { %s7036_s6 = sld [smem:[#allocation79_spill]]  ;;  %s125_s7 = ssub.s32 %s6063_s27, %s6383_s2 }
  0x71   : > { %s7037_s4 = sld [smem:[#allocation83_spill]]  ;;  %s128_s11 = sadd.s32 1, %s6059_s12 }
  0x72   : > { %s7038_s3 = sld [smem:[#allocation75_spill]]  ;;  %p126_p5 = scmp.eq.s32.totalorder %s125_s7, 0 }
  0x73   : > { %s7039_s14 = sld [smem:[#allocation77_spill]]  ;;  %p135_p6 = scmp.ne.s32.totalorder %s6059_s12, %s6055_s5 }
  0x74   : > { %s7040_s13 = sld [smem:[#allocation73_spill]]  ;;  %p136_p7 = scmp.eq.s32.totalorder %s6063_s27, 0 }
  0x75   : > { %7041 = sst [smem:[#allocation106_spill]] %s6383_s2  ;;  %p141_p8 = scmp.ne.s32.totalorder %s6055_s5, %s6051_s0 }
  0x76   : > { %s6393_s23 = scalar_select %p126_p5, %s6059_s12, %s128_s11  }
  0x77   : > { %p6395_p9 = por %p136_p7, %p135_p6  ;;  %p142_p10 = scmp.eq.s32.totalorder %s6380_s22, 0 }
  0x78   : > { %7042 = sst [smem:[#allocation107_spill]] %s6393_s23  ;;  %p3873_p11 = scmp.ge.s32.totalorder %s6063_s27, 1 }
  0x79   : > { %p1038_p12 = scmp.lt.s32.totalorder %s6063_s27, 3  ;;  %p6404_p13 = por %p142_p10, %p141_p8 }
  0x7b   : > { %p6408_p0 = pnand %p3873_p11, %p1038_p12 }
  0x7c   : > { %s1049_s26 = sshll.u32 (!%p6408_p0), %s7040_s13, 4  ;;  %s6108_s28 = smov (!%p6408_p0), [#allocation8]   ;;  %s1050_s26 = int_to_ptr.hbm [resolvable:$true] %s1049_s26 }
  0x7d   : > { %1042 = sbr.rel (%p6408_p0) target bundleno = 480 (0x1e0), region = 12  ;;  %s1051_s0 = sshll.u32 (!%p6408_p0), %s6108_s28, 4  ;;  %s1052_s0 = int_to_ptr.vmem [resolvable:$true] %s1051_s0 }
  0x7e   : > { %s5067_s7 = sshra.s32 (!%p6408_p0), %s1050_s26, 4  ;;  %s5073_s23 = scalar_lea.hbm (!%p6408_p0), %s7040_s13, 20  ;;  %s5068_s7 = int_to_ptr.hbm [resolvable:$true] %s5067_s7 }
  0x7f   : > { %s5069_s11 = scalar_lea.hbm (!%p6408_p0), %s5068_s7, 20  ;;  %p5074_p4 = scmp.lt.s32.totalorder (!%p6408_p0), %s5068_s7, %s7040_s13 }
  0x80   : > { %p5070_p1 = scmp.ne.s32.totalorder (!%p6408_p0), %s5068_s7, %s5069_s11  ;;  %p5075_p5 = scmp.lt.s32.totalorder (!%p6408_p0), %s5073_s23, %s5069_s11 }
  0x82   : > { %p5071_p2 = pnand %p5070_p1, %p142_p10  ;;  %p5076_p6 = por %p5075_p5, %p5074_p4 }
  0x84   : > { %p5072_p3 = pneg %p5071_p2 }
  0x86   : > { %p5077_p7 = pnand %p5076_p6, %p5072_p3 }
  0x88   : > { %5080 = shalt.err (!%p5077_p7)
}
  0x89   : > { %s6973_s2 = smov 64   ;;  %s6975_s28 = smov 4  }
  0x8a   : > { %4751 = dma.hbm_to_vmem [thread:$0]  (%p142_p10), %s1050_s26, 320, %s1052_s0, [#allocation9], %s6973_s2, %s6973_s2, %s6975_s28  }
  0x8b   : > { %s1075_s9 = sshll.u32 %s6168_s21, 4  ;;  %s6111_s7 = smov [#allocation11]   ;;  %s1076_s9 = int_to_ptr.hbm [resolvable:$true] %s1075_s9 }
  0x8c   : > { %s1077_s23 = sshll.u32 %s6111_s7, 4  ;;  %s1101_s11 = sshll.u32 %s6178_s29, 4  ;;  %s1078_s23 = int_to_ptr.vmem [resolvable:$true] %s1077_s23  ;;  %s1102_s11 = int_to_ptr.hbm [resolvable:$true] %s1101_s11 }
  0x8d   : > { %s5095_s13 = sshra.s32 %s1076_s9, 4  ;;  %s5101_s10 = scalar_lea.hbm %s6168_s21, 64  ;;  %s5096_s13 = int_to_ptr.hbm [resolvable:$true] %s5095_s13 }
  0x8e   : > { %s5097_s1 = scalar_lea.hbm %s5096_s13, 64  ;;  %p5102_p1 = scmp.lt.s32.totalorder %s5096_s13, %s6168_s21 }
  0x8f   : > { %p5098_p8 = scmp.ne.s32.totalorder %s5096_s13, %s5097_s1  ;;  %p5103_p2 = scmp.lt.s32.totalorder %s5101_s10, %s5097_s1 }
  0x91   : > { %p5099_p11 = pnand %p5098_p8, %p142_p10  ;;  %p5104_p3 = por %p5103_p2, %p5102_p1 }
  0x93   : > { %p5100_p12 = pneg %p5099_p11 }
  0x95   : > { %p5105_p4 = pnand %p5104_p3, %p5100_p12 }
  0x97   : > { %5108 = shalt.err (!%p5105_p4)
}
  0x98   : > { %4755 = dma.hbm_to_vmem [thread:$0]  (%p142_p10), %s1076_s9, 1024, %s1078_s23, [#allocation12], %s6973_s2, %s6973_s2, %s6975_s28  }
  0x99   : > { %s6112_s26 = smov [#allocation14]   ;;  %s5123_s7 = sshra.s32 %s1102_s11, 4  ;;  %s5124_s7 = int_to_ptr.hbm [resolvable:$true] %s5123_s7 }
  0x9a   : > { %s1103_s0 = sshll.u32 %s6112_s26, 4  ;;  %s5125_s13 = scalar_lea.hbm %s5124_s7, 128  ;;  %s1104_s0 = int_to_ptr.vmem [resolvable:$true] %s1103_s0 }
  0x9b   : > { %p5126_p5 = scmp.ne.s32.totalorder %s5124_s7, %s5125_s13  ;;  %s5129_s1 = scalar_lea.hbm %s6178_s29, 128 }
  0x9c   : > { %p5130_p8 = scmp.lt.s32.totalorder %s5124_s7, %s6178_s29  ;;  %p5131_p11 = scmp.lt.s32.totalorder %s5129_s1, %s5125_s13 }
  0x9d   : > { %p5127_p6 = pnand %p5126_p5, %p142_p10 }
  0x9e   : > { %p5132_p12 = por %p5131_p11, %p5130_p8 }
  0x9f   : > { %p5128_p7 = pneg %p5127_p6 }
  0xa1   : > { %p5133_p1 = pnand %p5132_p12, %p5128_p7 }
  0xa3   : > { %5136 = shalt.err (!%p5133_p1)
}
  0xa4   : > { %s6977_s10 = smov 128   ;;  %s6979_s9 = smov 8  }
  0xa5   : > { %4759 = dma.hbm_to_vmem [thread:$0]  (%p142_p10), %s1102_s11, 2048, %s1104_s0, [#allocation15], %s6977_s10, %s6977_s10, %s6979_s9  }
  0xa6   : > { %s1127_s23 = sshll.u32 %s7039_s14, 4  ;;  %s6115_s26 = smov [#allocation17]   ;;  %s1128_s23 = int_to_ptr.hbm [resolvable:$true] %s1127_s23 }
  0xa7   : > { %s1129_s7 = sshll.u32 %s6115_s26, 4  ;;  %s1220_s13 = sshll.u32 %s7037_s4, 4  ;;  %s1130_s7 = int_to_ptr.vmem [resolvable:$true] %s1129_s7  ;;  %s1221_s13 = int_to_ptr.hbm [resolvable:$true] %s1220_s13 }
  0xa8   : > { %s5151_s1 = sshra.s32 %s1128_s23, 4  ;;  %s5157_s28 = scalar_lea.hbm %s7039_s14, 24  ;;  %s5152_s1 = int_to_ptr.hbm [resolvable:$true] %s5151_s1 }
  0xa9   : > { %s5153_s2 = scalar_lea.hbm %s5152_s1, 24  ;;  %p5158_p5 = scmp.lt.s32.totalorder %s5152_s1, %s7039_s14 }
  0xaa   : > { %p5154_p2 = scmp.ne.s32.totalorder %s5152_s1, %s5153_s2  ;;  %p5159_p6 = scmp.lt.s32.totalorder %s5157_s28, %s5153_s2 }
  0xac   : > { %p5155_p3 = pnand %p5154_p2, %p142_p10  ;;  %p5160_p7 = por %p5159_p6, %p5158_p5 }
  0xae   : > { %p5156_p4 = pneg %p5155_p3 }
  0xb0   : > { %p5161_p8 = pnand %p5160_p7, %p5156_p4 }
  0xb2   : > { %5164 = shalt.err (!%p5161_p8)
}
  0xb3   : > { %s7046_s11 = smov 4   ;;  %s7047_s0 = smov 64  }
  0xb4   : > { %4763 = dma.hbm_to_vmem [thread:$0]  (%p142_p10), %s1128_s23, 384, %s1130_s7, [#allocation18], %s7047_s0, %s7047_s0, %s7046_s11  }
  0xb5   : > { %s6116_s26 = smov [#allocation29]   ;;  %s1246_s9 = sshll.u32 %s6243_s20, 4  ;;  %s6456_s9 = int_to_ptr.hbm [resolvable:$true] %s1246_s9 }
  0xb6   : > { %s1222_s10 = sshll.u32 %s6116_s26, 4  ;;  %s5179_s2 = sshra.s32 %s1221_s13, 4  ;;  %s1223_s10 = int_to_ptr.vmem [resolvable:$true] %s1222_s10  ;;  %s5180_s2 = int_to_ptr.hbm [resolvable:$true] %s5179_s2 }
  0xb7   : > { %s5181_s28 = scalar_lea.hbm %s5180_s2, 1  ;;  %s5185_s1 = scalar_lea.hbm %s7037_s4, 1 }
  0xb8   : > { %p5182_p11 = scmp.ne.s32.totalorder %s5180_s2, %s5181_s28  ;;  %p5186_p2 = scmp.lt.s32.totalorder %s5180_s2, %s7037_s4 }
  0xb9   : > { %p5187_p3 = scmp.lt.s32.totalorder %s5185_s1, %s5181_s28 }
  0xba   : > { %p5183_p12 = pnand %p5182_p11, %p142_p10 }
  0xbb   : > { %p5188_p4 = por %p5187_p3, %p5186_p2 }
  0xbc   : > { %p5184_p1 = pneg %p5183_p12 }
  0xbe   : > { %p5189_p5 = pnand %p5188_p4, %p5184_p1 }
  0xc0   : > { %5192 = shalt.err (!%p5189_p5)
}
  0xc1   : > { %4777 = dma.hbm_to_vmem [thread:$0]  (%p142_p10), %s1221_s13, 16, %s1223_s10, [#allocation30]  }
  0xc2   : > { %s1064_s23 = sshll.u32 %s7034_s17, 4  ;;  %s6117_s7 = smov [#allocation32]   ;;  %s6465_s23 = int_to_ptr.hbm [resolvable:$true] %s1064_s23 }
  0xc3   : > { %s1248_s26 = sshll.u32 %s6117_s7, 4  ;;  %s5207_s14 = sshra.s32 %s6456_s9, 4  ;;  %s1249_s26 = int_to_ptr.vmem [resolvable:$true] %s1248_s26  ;;  %s5208_s14 = int_to_ptr.hbm [resolvable:$true] %s5207_s14 }
  0xc4   : > { %s5209_s2 = scalar_lea.hbm %s5208_s14, 1  ;;  %s5213_s28 = scalar_lea.hbm %s6243_s20, 1 }
  0xc5   : > { %p5210_p6 = scmp.ne.s32.totalorder %s5208_s14, %s5209_s2  ;;  %p5214_p11 = scmp.lt.s32.totalorder %s5208_s14, %s6243_s20 }
  0xc6   : > { %p5215_p12 = scmp.lt.s32.totalorder %s5213_s28, %s5209_s2 }
  0xc7   : > { %p5211_p7 = pnand %p5210_p6, %p142_p10 }
  0xc8   : > { %p5216_p1 = por %p5215_p12, %p5214_p11 }
  0xc9   : > { %p5212_p8 = pneg %p5211_p7 }
  0xcb   : > { %p5217_p2 = pnand %p5216_p1, %p5212_p8 }
  0xcd   : > { %5220 = shalt.err (!%p5217_p2)
}
  0xce   : > { %4781 = dma.hbm_to_vmem [thread:$0]  (%p142_p10), %s6456_s9, 16, %s1249_s26, [#allocation33]  }
  0xcf   : > { %s6118_s10 = smov [#allocation10]   ;;  %s1090_s1 = sshll.u32 %s6173_s25, 4  ;;  %s6476_s1 = int_to_ptr.hbm [resolvable:$true] %s1090_s1 }
  0xd0   : > { %s1066_s13 = sshll.u32 %s6118_s10, 4  ;;  %s5235_s14 = sshra.s32 %s6465_s23, 4  ;;  %s1067_s13 = int_to_ptr.vmem [resolvable:$true] %s1066_s13  ;;  %s5236_s14 = int_to_ptr.hbm [resolvable:$true] %s5235_s14 }
  0xd1   : > { %s5237_s7 = scalar_lea.hbm %s5236_s14, 1  ;;  %s5241_s2 = scalar_lea.hbm %s7034_s17, 1 }
  0xd2   : > { %p5238_p3 = scmp.ne.s32.totalorder %s5236_s14, %s5237_s7  ;;  %p5242_p6 = scmp.lt.s32.totalorder %s5236_s14, %s7034_s17 }
  0xd3   : > { %p5243_p7 = scmp.lt.s32.totalorder %s5241_s2, %s5237_s7 }
  0xd4   : > { %p5239_p4 = pnand %p5238_p3, %p142_p10 }
  0xd5   : > { %p5244_p8 = por %p5243_p7, %p5242_p6 }
  0xd6   : > { %p5240_p5 = pneg %p5239_p4 }
  0xd8   : > { %p5245_p11 = pnand %p5244_p8, %p5240_p5 }
  0xda   : > { %5248 = shalt.err (!%p5245_p11)
}
  0xdb   : > { %4753 = dma.hbm_to_vmem [thread:$0]  (%p142_p10), %s6465_s23, 16, %s1067_s13, [#allocation9]  }
  0xdc   : > { %s1116_s9 = sshll.u32 %s7038_s3, 4  ;;  %s6119_s26 = smov [#allocation13]   ;;  %s6487_s9 = int_to_ptr.hbm [resolvable:$true] %s1116_s9 }
  0xdd   : > { %s1092_s28 = sshll.u32 %s6119_s26, 4  ;;  %s5263_s10 = sshra.s32 %s6476_s1, 4  ;;  %s1093_s28 = int_to_ptr.vmem [resolvable:$true] %s1092_s28  ;;  %s5264_s10 = int_to_ptr.hbm [resolvable:$true] %s5263_s10 }
  0xde   : > { %s5265_s14 = scalar_lea.hbm %s5264_s10, 1  ;;  %s5269_s7 = scalar_lea.hbm %s6173_s25, 1 }
  0xdf   : > { %p5266_p12 = scmp.ne.s32.totalorder %s5264_s10, %s5265_s14  ;;  %p5270_p3 = scmp.lt.s32.totalorder %s5264_s10, %s6173_s25 }
  0xe0   : > { %p5271_p4 = scmp.lt.s32.totalorder %s5269_s7, %s5265_s14 }
  0xe1   : > { %p5267_p1 = pnand %p5266_p12, %p142_p10 }
  0xe2   : > { %p5272_p5 = por %p5271_p4, %p5270_p3 }
  0xe3   : > { %p5268_p2 = pneg %p5267_p1 }
  0xe5   : > { %p5273_p6 = pnand %p5272_p5, %p5268_p2 }
  0xe7   : > { %5276 = shalt.err (!%p5273_p6)
}
  0xe8   : > { %4757 = dma.hbm_to_vmem [thread:$0]  (%p142_p10), %s6476_s1, 16, %s1093_s28, [#allocation12]  }
  0xe9   : > { %s6120_s23 = smov [#allocation16]   ;;  %s1142_s2 = sshll.u32 %s6198_s19, 4  ;;  %s6498_s2 = int_to_ptr.hbm [resolvable:$true] %s1142_s2 }
  0xea   : > { %s1118_s13 = sshll.u32 %s6120_s23, 4  ;;  %s5291_s26 = sshra.s32 %s6487_s9, 4  ;;  %s1119_s13 = int_to_ptr.vmem [resolvable:$true] %s1118_s13  ;;  %s5292_s26 = int_to_ptr.hbm [resolvable:$true] %s5291_s26 }
  0xeb   : > { %s5293_s10 = scalar_lea.hbm %s5292_s26, 2  ;;  %s5297_s14 = scalar_lea.hbm %s7038_s3, 2 }
  0xec   : > { %p5294_p7 = scmp.ne.s32.totalorder %s5292_s26, %s5293_s10  ;;  %p5298_p12 = scmp.lt.s32.totalorder %s5292_s26, %s7038_s3 }
  0xed   : > { %p5299_p1 = scmp.lt.s32.totalorder %s5297_s14, %s5293_s10 }
  0xee   : > { %p5295_p8 = pnand %p5294_p7, %p142_p10 }
  0xef   : > { %p5300_p2 = por %p5299_p1, %p5298_p12 }
  0xf0   : > { %p5296_p11 = pneg %p5295_p8 }
  0xf2   : > { %p5301_p3 = pnand %p5300_p2, %p5296_p11 }
  0xf4   : > { %5304 = shalt.err (!%p5301_p3)
}
  0xf5   : > { %4761 = dma.hbm_to_vmem [thread:$0]  (%p142_p10), %s6487_s9, 32, %s1119_s13, [#allocation15]  }
  0xf6   : > { %s1153_s1 = sshll.u32 %s6203_s24, 4  ;;  %s6121_s28 = smov [#allocation19]   ;;  %s6509_s1 = int_to_ptr.hbm [resolvable:$true] %s1153_s1 }
  0xf7   : > { %s1144_s7 = sshll.u32 %s6121_s28, 4  ;;  %s5319_s23 = sshra.s32 %s6498_s2, 4  ;;  %s1145_s7 = int_to_ptr.vmem [resolvable:$true] %s1144_s7  ;;  %s5320_s23 = int_to_ptr.hbm [resolvable:$true] %s5319_s23 }
  0xf8   : > { %s5321_s26 = scalar_lea.hbm %s5320_s23, 1  ;;  %s5325_s10 = scalar_lea.hbm %s6198_s19, 1 }
  0xf9   : > { %p5322_p4 = scmp.ne.s32.totalorder %s5320_s23, %s5321_s26  ;;  %p5326_p7 = scmp.lt.s32.totalorder %s5320_s23, %s6198_s19 }
  0xfa   : > { %p5327_p8 = scmp.lt.s32.totalorder %s5325_s10, %s5321_s26 }
  0xfb   : > { %p5323_p5 = pnand %p5322_p4, %p142_p10 }
  0xfc   : > { %p5328_p11 = por %p5327_p8, %p5326_p7 }
  0xfd   : > { %p5324_p6 = pneg %p5323_p5 }
  0xff   : > { %p5329_p12 = pnand %p5328_p11, %p5324_p6 }
 0x101   : > { %5332 = shalt.err (!%p5329_p12)
}
 0x102   : > { %4765 = dma.hbm_to_vmem [thread:$0]  (%p142_p10), %s6498_s2, 16, %s1145_s7, [#allocation18]  }
 0x103   : > { %s6122_s9 = smov [#allocation20]   ;;  %s1179_s14 = sshll.u32 %s7036_s6, 4  ;;  %s6520_s14 = int_to_ptr.hbm [resolvable:$true] %s1179_s14 }
 0x104   : > { %s1155_s13 = sshll.u32 %s6122_s9, 4  ;;  %s5347_s28 = sshra.s32 %s6509_s1, 4  ;;  %s1156_s13 = int_to_ptr.vmem [resolvable:$true] %s1155_s13  ;;  %s5348_s28 = int_to_ptr.hbm [resolvable:$true] %s5347_s28 }
 0x105   : > { %s5349_s23 = scalar_lea.hbm %s5348_s28, 64  ;;  %s5353_s26 = scalar_lea.hbm %s6203_s24, 64 }
 0x106   : > { %p5350_p1 = scmp.ne.s32.totalorder %s5348_s28, %s5349_s23  ;;  %p5354_p4 = scmp.lt.s32.totalorder %s5348_s28, %s6203_s24 }
 0x107   : > { %p5355_p5 = scmp.lt.s32.totalorder %s5353_s26, %s5349_s23 }
 0x108   : > { %p5351_p2 = pnand %p5350_p1, %p142_p10 }
 0x109   : > { %p5356_p6 = por %p5355_p5, %p5354_p4 }
 0x10a   : > { %p5352_p3 = pneg %p5351_p2 }
 0x10c   : > { %p5357_p7 = pnand %p5356_p6, %p5352_p3 }
 0x10e   : > { %5360 = shalt.err (!%p5357_p7)
}
 0x10f   : > { %4767 = dma.hbm_to_vmem [thread:$0]  (%p142_p10), %s6509_s1, 1024, %s1156_s13, [#allocation21], %s7047_s0, %s7047_s0, %s7046_s11  }
 0x110   : > { %s1231_s2 = sshll.u32 %s7035_s8, 4  ;;  %s6123_s7 = smov [#allocation23]   ;;  %s6534_s2 = int_to_ptr.hbm [resolvable:$true] %s1231_s2 }
 0x111   : > { %s1181_s10 = sshll.u32 %s6123_s7, 4  ;;  %s5375_s9 = sshra.s32 %s6520_s14, 4  ;;  %s1182_s10 = int_to_ptr.vmem [resolvable:$true] %s1181_s10  ;;  %s5376_s9 = int_to_ptr.hbm [resolvable:$true] %s5375_s9 }
 0x112   : > { %s5377_s28 = scalar_lea.hbm %s5376_s9, 128  ;;  %s5381_s23 = scalar_lea.hbm %s7036_s6, 128 }
 0x113   : > { %p5378_p8 = scmp.ne.s32.totalorder %s5376_s9, %s5377_s28  ;;  %p5382_p1 = scmp.lt.s32.totalorder %s5376_s9, %s7036_s6 }
 0x114   : > { %p5383_p2 = scmp.lt.s32.totalorder %s5381_s23, %s5377_s28 }
 0x115   : > { %p5379_p11 = pnand %p5378_p8, %p142_p10 }
 0x116   : > { %p5384_p3 = por %p5383_p2, %p5382_p1 }
 0x117   : > { %p5380_p12 = pneg %p5379_p11 }
 0x119   : > { %p5385_p4 = pnand %p5384_p3, %p5380_p12 }
 0x11b   : > { %5388 = shalt.err (!%p5385_p4)
}
 0x11c   : > { %s7048_s1 = smov 8   ;;  %s7049_s13 = smov 128  }
 0x11d   : > { %s7050_s26 = sld [smem:[#allocation85_spill]]  ;;  %s6124_s7 = smov [#allocation31]  }
 0x11e   : > { %4771 = dma.hbm_to_vmem [thread:$0]  (%p142_p10), %s6520_s14, 2048, %s1182_s10, [#allocation24], %s7049_s13, %s7049_s13, %s7048_s1  }
 0x11f   : > { %s1233_s3 = sshll.u32 %s6124_s7, 4  ;;  %s5403_s9 = sshra.s32 %s6534_s2, 4  ;;  %s1234_s3 = int_to_ptr.vmem [resolvable:$true] %s1233_s3  ;;  %s5404_s9 = int_to_ptr.hbm [resolvable:$true] %s5403_s9 }
 0x120   : > { %s5405_s28 = scalar_lea.hbm %s5404_s9, 64  ;;  %s5409_s23 = scalar_lea.hbm %s7035_s8, 64 }
 0x121   : > { %p5406_p5 = scmp.ne.s32.totalorder %s5404_s9, %s5405_s28  ;;  %p5410_p8 = scmp.lt.s32.totalorder %s5404_s9, %s7035_s8 }
 0x122   : > { %p5411_p11 = scmp.lt.s32.totalorder %s5409_s23, %s5405_s28 }
 0x123   : > { %s1257_s4 = sshll.u32 %s7050_s26, 4  ;;  %p5407_p6 = pnand %p5406_p5, %p142_p10  ;;  %s6548_s4 = int_to_ptr.hbm [resolvable:$true] %s1257_s4 }
 0x124   : > { %p5412_p12 = por %p5411_p11, %p5410_p8 }
 0x125   : > { %p5408_p7 = pneg %p5407_p6 }
 0x127   : > { %p5413_p1 = pnand %p5412_p12, %p5408_p7 }
 0x129   : > { %5416 = shalt.err (!%p5413_p1)
}
 0x12a   : > { %s7051_s14 = sld [smem:[#allocation86_spill]]  ;;  %s6125_s7 = smov [#allocation34]  }
 0x12b   : > { %4779 = dma.hbm_to_vmem [thread:$0]  (%p142_p10), %s6534_s2, 1024, %s1234_s3, [#allocation30], %s7047_s0, %s7047_s0, %s7046_s11  }
 0x12c   : > { %s1259_s6 = sshll.u32 %s6125_s7, 4  ;;  %s5431_s9 = sshra.s32 %s6548_s4, 4  ;;  %s1260_s6 = int_to_ptr.vmem [resolvable:$true] %s1259_s6  ;;  %s5432_s9 = int_to_ptr.hbm [resolvable:$true] %s5431_s9 }
 0x12d   : > { %s5433_s28 = scalar_lea.hbm %s5432_s9, 128  ;;  %s5437_s23 = scalar_lea.hbm %s7050_s26, 128 }
 0x12e   : > { %p5434_p2 = scmp.ne.s32.totalorder %s5432_s9, %s5433_s28  ;;  %p5438_p5 = scmp.lt.s32.totalorder %s5432_s9, %s7050_s26 }
 0x12f   : > { %p5439_p6 = scmp.lt.s32.totalorder %s5437_s23, %s5433_s28 }
 0x130   : > { %s1272_s10 = sshll.u32 %s7051_s14, 4  ;;  %p5435_p3 = pnand %p5434_p2, %p142_p10  ;;  %s6562_s10 = int_to_ptr.hbm [resolvable:$true] %s1272_s10 }
 0x131   : > { %p5440_p7 = por %p5439_p6, %p5438_p5 }
 0x132   : > { %p5436_p4 = pneg %p5435_p3 }
 0x134   : > { %p5441_p8 = pnand %p5440_p7, %p5436_p4 }
 0x136   : > { %5444 = shalt.err (!%p5441_p8)
}
 0x137   : > { %s7052_s3 = sld [smem:[#allocation101_spill]]  ;;  %s6126_s2 = smov [#allocation35]  }
 0x138   : > { %4783 = dma.hbm_to_vmem [thread:$0]  (%p142_p10), %s6548_s4, 2048, %s1260_s6, [#allocation33], %s7049_s13, %s7049_s13, %s7048_s1  }
 0x139   : > { %s1274_s7 = sshll.u32 %s6126_s2, 4  ;;  %s5459_s9 = sshra.s32 %s6562_s10, 4  ;;  %s1275_s7 = int_to_ptr.vmem [resolvable:$true] %s1274_s7  ;;  %s5460_s9 = int_to_ptr.hbm [resolvable:$true] %s5459_s9 }
 0x13a   : > { %s5461_s28 = scalar_lea.hbm %s5460_s9, 2  ;;  %s5465_s23 = scalar_lea.hbm %s7051_s14, 2 }
 0x13b   : > { %p5462_p11 = scmp.ne.s32.totalorder %s5460_s9, %s5461_s28  ;;  %p5466_p2 = scmp.lt.s32.totalorder %s5460_s9, %s7051_s14 }
 0x13c   : > { %p5467_p3 = scmp.lt.s32.totalorder %s5465_s23, %s5461_s28 }
 0x13d   : > { %s1392_s8 = sshll.u32 %s7052_s3, 4  ;;  %p5463_p12 = pnand %p5462_p11, %p142_p10  ;;  %s6576_s8 = int_to_ptr.hbm [resolvable:$true] %s1392_s8 }
 0x13e   : > { %p5468_p4 = por %p5467_p3, %p5466_p2 }
 0x13f   : > { %p5464_p1 = pneg %p5463_p12 }
 0x141   : > { %p5469_p5 = pnand %p5468_p4, %p5464_p1 }
 0x143   : > { %5472 = shalt.err (!%p5469_p5)
}
 0x144   : > { %s7053_s6 = sld [smem:[#allocation78_spill]]  ;;  %s6127_s2 = smov [#allocation46]  }
 0x145   : > { %4785 = dma.hbm_to_vmem [thread:$0]  (%p142_p10), %s6562_s10, 32, %s1275_s7, [#allocation36]  }
 0x146   : > { %s1394_s17 = sshll.u32 %s6127_s2, 4  ;;  %s5487_s9 = sshra.s32 %s6576_s8, 4  ;;  %s1395_s17 = int_to_ptr.vmem [resolvable:$true] %s1394_s17  ;;  %s5488_s9 = int_to_ptr.hbm [resolvable:$true] %s5487_s9 }
 0x147   : > { %s5489_s28 = scalar_lea.hbm %s5488_s9, 128  ;;  %s5493_s23 = scalar_lea.hbm %s7052_s3, 128 }
 0x148   : > { %p5490_p6 = scmp.ne.s32.totalorder %s5488_s9, %s5489_s28  ;;  %p5494_p11 = scmp.lt.s32.totalorder %s5488_s9, %s7052_s3 }
 0x149   : > { %p5495_p12 = scmp.lt.s32.totalorder %s5493_s23, %s5489_s28 }
 0x14a   : > { %s1168_s4 = sshll.u32 %s7053_s6, 4  ;;  %p5491_p7 = pnand %p5490_p6, %p142_p10  ;;  %s6587_s4 = int_to_ptr.hbm [resolvable:$true] %s1168_s4 }
 0x14b   : > { %p5496_p1 = por %p5495_p12, %p5494_p11 }
 0x14c   : > { %p5492_p8 = pneg %p5491_p7 }
 0x14e   : > { %p5497_p2 = pnand %p5496_p1, %p5492_p8 }
 0x150   : > { %5500 = shalt.err (!%p5497_p2)
}
 0x151   : > { %s7054_s10 = sld [smem:[#allocation80_spill]]  ;;  %s6128_s7 = smov [#allocation22]  }
 0x152   : > { %4801 = dma.hbm_to_vmem [thread:$0]  (%p142_p10), %s6576_s8, 2048, %s1395_s17, [#allocation47], %s7047_s0, %s7047_s0, %s7046_s11  }
 0x153   : > { %s1170_s2 = sshll.u32 %s6128_s7, 4  ;;  %s5515_s9 = sshra.s32 %s6587_s4, 4  ;;  %s1171_s2 = int_to_ptr.vmem [resolvable:$true] %s1170_s2  ;;  %s5516_s9 = int_to_ptr.hbm [resolvable:$true] %s5515_s9 }
 0x154   : > { %s5517_s28 = scalar_lea.hbm %s5516_s9, 1  ;;  %s5521_s23 = scalar_lea.hbm %s7053_s6, 1 }
 0x155   : > { %p5518_p3 = scmp.ne.s32.totalorder %s5516_s9, %s5517_s28  ;;  %p5522_p6 = scmp.lt.s32.totalorder %s5516_s9, %s7053_s6 }
 0x156   : > { %p5523_p7 = scmp.lt.s32.totalorder %s5521_s23, %s5517_s28 }
 0x157   : > { %s1194_s14 = sshll.u32 %s7054_s10, 4  ;;  %p5519_p4 = pnand %p5518_p3, %p142_p10  ;;  %s6601_s14 = int_to_ptr.hbm [resolvable:$true] %s1194_s14 }
 0x158   : > { %p5524_p8 = por %p5523_p7, %p5522_p6 }
 0x159   : > { %p5520_p5 = pneg %p5519_p4 }
 0x15b   : > { %p5525_p11 = pnand %p5524_p8, %p5520_p5 }
 0x15d   : > { %5528 = shalt.err (!%p5525_p11)
}
 0x15e   : > { %s7055_s17 = sld [smem:[#allocation82_spill]]  ;;  %s6129_s7 = smov [#allocation25]  }
 0x15f   : > { %4769 = dma.hbm_to_vmem [thread:$0]  (%p142_p10), %s6587_s4, 16, %s1171_s2, [#allocation21]  }
 0x160   : > { %s1196_s3 = sshll.u32 %s6129_s7, 4  ;;  %s5543_s9 = sshra.s32 %s6601_s14, 4  ;;  %s1197_s3 = int_to_ptr.vmem [resolvable:$true] %s1196_s3  ;;  %s5544_s9 = int_to_ptr.hbm [resolvable:$true] %s5543_s9 }
 0x161   : > { %s5545_s28 = scalar_lea.hbm %s5544_s9, 2  ;;  %s5549_s23 = scalar_lea.hbm %s7054_s10, 2 }
 0x162   : > { %p5546_p12 = scmp.ne.s32.totalorder %s5544_s9, %s5545_s28  ;;  %p5550_p3 = scmp.lt.s32.totalorder %s5544_s9, %s7054_s10 }
 0x163   : > { %p5551_p4 = scmp.lt.s32.totalorder %s5549_s23, %s5545_s28 }
 0x164   : > { %s1205_s8 = sshll.u32 %s7055_s17, 4  ;;  %p5547_p1 = pnand %p5546_p12, %p142_p10  ;;  %s6612_s8 = int_to_ptr.hbm [resolvable:$true] %s1205_s8 }
 0x165   : > { %p5552_p5 = por %p5551_p4, %p5550_p3 }
 0x166   : > { %p5548_p2 = pneg %p5547_p1 }
 0x168   : > { %p5553_p6 = pnand %p5552_p5, %p5548_p2 }
 0x16a   : > { %5556 = shalt.err (!%p5553_p6)
}
 0x16b   : > { %s7056_s4 = sld [smem:[#allocation89_spill]]  ;;  %s6130_s2 = smov [#allocation28]  }
 0x16c   : > { %4773 = dma.hbm_to_vmem [thread:$0]  (%p142_p10), %s6601_s14, 32, %s1197_s3, [#allocation24]  }
 0x16d   : > { %s1207_s7 = sshll.u32 %s6130_s2, 4  ;;  %s5571_s9 = sshra.s32 %s6612_s8, 4  ;;  %s1208_s7 = int_to_ptr.vmem [resolvable:$true] %s1207_s7  ;;  %s5572_s9 = int_to_ptr.hbm [resolvable:$true] %s5571_s9 }
 0x16e   : > { %s5573_s28 = scalar_lea.hbm %s5572_s9, 28  ;;  %s5577_s23 = scalar_lea.hbm %s7055_s17, 28 }
 0x16f   : > { %p5574_p7 = scmp.ne.s32.totalorder %s5572_s9, %s5573_s28  ;;  %p5578_p12 = scmp.lt.s32.totalorder %s5572_s9, %s7055_s17 }
 0x170   : > { %p5579_p1 = scmp.lt.s32.totalorder %s5577_s23, %s5573_s28 }
 0x171   : > { %s1287_s6 = sshll.u32 %s7056_s4, 4  ;;  %p5575_p8 = pnand %p5574_p7, %p142_p10  ;;  %s6623_s6 = int_to_ptr.hbm [resolvable:$true] %s1287_s6 }
 0x172   : > { %p5580_p2 = por %p5579_p1, %p5578_p12 }
 0x173   : > { %p5576_p11 = pneg %p5575_p8 }
 0x175   : > { %p5581_p3 = pnand %p5580_p2, %p5576_p11 }
 0x177   : > { %5584 = shalt.err (!%p5581_p3)
}
 0x178   : > { %s7057_s14 = sld [smem:[#allocation90_spill]]  ;;  %s6131_s2 = smov [#allocation38]  }
 0x179   : > { %4775 = dma.hbm_to_vmem [thread:$0]  (%p142_p10), %s6612_s8, 448, %s1208_s7, [#allocation27], %s7047_s0, %s7047_s0, %s7046_s11  }
 0x17a   : > { %s1289_s10 = sshll.u32 %s6131_s2, 4  ;;  %s5599_s9 = sshra.s32 %s6623_s6, 4  ;;  %s1290_s10 = int_to_ptr.vmem [resolvable:$true] %s1289_s10  ;;  %s5600_s9 = int_to_ptr.hbm [resolvable:$true] %s5599_s9 }
 0x17b   : > { %s5601_s28 = scalar_lea.hbm %s5600_s9, 1  ;;  %s5605_s23 = scalar_lea.hbm %s7056_s4, 1 }
 0x17c   : > { %p5602_p4 = scmp.ne.s32.totalorder %s5600_s9, %s5601_s28  ;;  %p5606_p7 = scmp.lt.s32.totalorder %s5600_s9, %s7056_s4 }
 0x17d   : > { %p5607_p8 = scmp.lt.s32.totalorder %s5605_s23, %s5601_s28 }
 0x17e   : > { %s1298_s3 = sshll.u32 %s7057_s14, 4  ;;  %p5603_p5 = pnand %p5602_p4, %p142_p10  ;;  %s6637_s3 = int_to_ptr.hbm [resolvable:$true] %s1298_s3 }
 0x17f   : > { %p5608_p11 = por %p5607_p8, %p5606_p7 }
 0x180   : > { %p5604_p6 = pneg %p5603_p5 }
 0x182   : > { %p5609_p12 = pnand %p5608_p11, %p5604_p6 }
 0x184   : > { %5612 = shalt.err (!%p5609_p12)
}
 0x185   : > { %s7058_s8 = sld [smem:[#allocation91_spill]]  ;;  %s6132_s7 = smov [#allocation39]  }
 0x186   : > { %4787 = dma.hbm_to_vmem [thread:$0]  (%p142_p10), %s6623_s6, 16, %s1290_s10, [#allocation9]  }
 0x187   : > { %s1300_s2 = sshll.u32 %s6132_s7, 4  ;;  %s5627_s9 = sshra.s32 %s6637_s3, 4  ;;  %s1301_s2 = int_to_ptr.vmem [resolvable:$true] %s1300_s2  ;;  %s5628_s9 = int_to_ptr.hbm [resolvable:$true] %s5627_s9 }
 0x188   : > { %s5629_s28 = scalar_lea.hbm %s5628_s9, 64  ;;  %s5633_s23 = scalar_lea.hbm %s7057_s14, 64 }
 0x189   : > { %p5630_p1 = scmp.ne.s32.totalorder %s5628_s9, %s5629_s28  ;;  %p5634_p4 = scmp.lt.s32.totalorder %s5628_s9, %s7057_s14 }
 0x18a   : > { %p5635_p5 = scmp.lt.s32.totalorder %s5633_s23, %s5629_s28 }
 0x18b   : > { %s1313_s17 = sshll.u32 %s7058_s8, 4  ;;  %p5631_p2 = pnand %p5630_p1, %p142_p10  ;;  %s6648_s17 = int_to_ptr.hbm [resolvable:$true] %s1313_s17 }
 0x18c   : > { %p5636_p6 = por %p5635_p5, %p5634_p4 }
 0x18d   : > { %p5632_p3 = pneg %p5631_p2 }
 0x18f   : > { %p5637_p7 = pnand %p5636_p6, %p5632_p3 }
 0x191   : > { %5640 = shalt.err (!%p5637_p7)
}
 0x192   : > { %s7059_s6 = sld [smem:[#allocation92_spill]]  ;;  %s6133_s7 = smov [#allocation40]  }
 0x193   : > { %4789 = dma.hbm_to_vmem [thread:$0]  (%p142_p10), %s6637_s3, 1024, %s1301_s2, [#allocation12], %s7047_s0, %s7047_s0, %s7046_s11  }
 0x194   : > { %s1315_s4 = sshll.u32 %s6133_s7, 4  ;;  %s5655_s9 = sshra.s32 %s6648_s17, 4  ;;  %s1316_s4 = int_to_ptr.vmem [resolvable:$true] %s1315_s4  ;;  %s5656_s9 = int_to_ptr.hbm [resolvable:$true] %s5655_s9 }
 0x195   : > { %s5657_s28 = scalar_lea.hbm %s5656_s9, 1  ;;  %s5661_s23 = scalar_lea.hbm %s7058_s8, 1 }
 0x196   : > { %p5658_p8 = scmp.ne.s32.totalorder %s5656_s9, %s5657_s28  ;;  %p5662_p1 = scmp.lt.s32.totalorder %s5656_s9, %s7058_s8 }
 0x197   : > { %p5663_p2 = scmp.lt.s32.totalorder %s5661_s23, %s5657_s28 }
 0x198   : > { %s1324_s10 = sshll.u32 %s7059_s6, 4  ;;  %p5659_p11 = pnand %p5658_p8, %p142_p10  ;;  %s6662_s10 = int_to_ptr.hbm [resolvable:$true] %s1324_s10 }
 0x199   : > { %p5664_p3 = por %p5663_p2, %p5662_p1 }
 0x19a   : > { %p5660_p12 = pneg %p5659_p11 }
 0x19c   : > { %p5665_p4 = pnand %p5664_p3, %p5660_p12 }
 0x19e   : > { %5668 = shalt.err (!%p5665_p4)
}
 0x19f   : > { %s7060_s3 = sld [smem:[#allocation95_spill]]  ;;  %s6134_s2 = smov [#allocation41]  }
 0x1a0   : > { %4791 = dma.hbm_to_vmem [thread:$0]  (%p142_p10), %s6648_s17, 16, %s1316_s4, [#allocation15]  }
 0x1a1   : > { %s1326_s7 = sshll.u32 %s6134_s2, 4  ;;  %s5683_s9 = sshra.s32 %s6662_s10, 4  ;;  %s1327_s7 = int_to_ptr.vmem [resolvable:$true] %s1326_s7  ;;  %s5684_s9 = int_to_ptr.hbm [resolvable:$true] %s5683_s9 }
 0x1a2   : > { %s5685_s28 = scalar_lea.hbm %s5684_s9, 128  ;;  %s5689_s23 = scalar_lea.hbm %s7059_s6, 128 }
 0x1a3   : > { %p5686_p5 = scmp.ne.s32.totalorder %s5684_s9, %s5685_s28  ;;  %p5690_p8 = scmp.lt.s32.totalorder %s5684_s9, %s7059_s6 }
 0x1a4   : > { %p5691_p11 = scmp.lt.s32.totalorder %s5689_s23, %s5685_s28 }
 0x1a5   : > { %s1341_s14 = sshll.u32 %s7060_s3, 4  ;;  %p5687_p6 = pnand %p5686_p5, %p142_p10  ;;  %s6673_s14 = int_to_ptr.hbm [resolvable:$true] %s1341_s14 }
 0x1a6   : > { %p5692_p12 = por %p5691_p11, %p5690_p8 }
 0x1a7   : > { %p5688_p7 = pneg %p5687_p6 }
 0x1a9   : > { %p5693_p1 = pnand %p5692_p12, %p5688_p7 }
 0x1ab   : > { %5696 = shalt.err (!%p5693_p1)
}
 0x1ac   : > { %s7061_s17 = sld [smem:[#allocation97_spill]]  ;;  %s6135_s2 = smov [#allocation43]  }
 0x1ad   : > { %4793 = dma.hbm_to_vmem [thread:$0]  (%p142_p10), %s6662_s10, 2048, %s1327_s7, [#allocation18], %s7049_s13, %s7049_s13, %s7048_s1  }
 0x1ae   : > { %s1343_s8 = sshll.u32 %s6135_s2, 4  ;;  %s5711_s9 = sshra.s32 %s6673_s14, 4  ;;  %s1344_s8 = int_to_ptr.vmem [resolvable:$true] %s1343_s8  ;;  %s5712_s9 = int_to_ptr.hbm [resolvable:$true] %s5711_s9 }
 0x1af   : > { %s5713_s28 = scalar_lea.hbm %s5712_s9, 32  ;;  %s5717_s23 = scalar_lea.hbm %s7060_s3, 32 }
 0x1b0   : > { %p5714_p2 = scmp.ne.s32.totalorder %s5712_s9, %s5713_s28  ;;  %p5718_p5 = scmp.lt.s32.totalorder %s5712_s9, %s7060_s3 }
 0x1b1   : > { %p5719_p6 = scmp.lt.s32.totalorder %s5717_s23, %s5713_s28 }
 0x1b2   : > { %s1358_s4 = sshll.u32 %s7061_s17, 4  ;;  %p5715_p3 = pnand %p5714_p2, %p142_p10  ;;  %s6687_s4 = int_to_ptr.hbm [resolvable:$true] %s1358_s4 }
 0x1b3   : > { %p5720_p7 = por %p5719_p6, %p5718_p5 }
 0x1b4   : > { %p5716_p4 = pneg %p5715_p3 }
 0x1b6   : > { %p5721_p8 = pnand %p5720_p7, %p5716_p4 }
 0x1b8   : > { %5724 = shalt.err (!%p5721_p8)
}
 0x1b9   : > { %s7062_s10 = sld [smem:[#allocation99_spill]]  ;;  %s6136_s7 = smov [#allocation44]  }
 0x1ba   : > { %4795 = dma.hbm_to_vmem [thread:$0]  (%p142_p10), %s6673_s14, 512, %s1344_s8, [#allocation30], %s7047_s0, %s7047_s0, %s7046_s11  }
 0x1bb   : > { %s1360_s2 = sshll.u32 %s6136_s7, 4  ;;  %s5739_s9 = sshra.s32 %s6687_s4, 4  ;;  %s1361_s2 = int_to_ptr.vmem [resolvable:$true] %s1360_s2  ;;  %s5740_s9 = int_to_ptr.hbm [resolvable:$true] %s5739_s9 }
 0x1bc   : > { %s5741_s28 = scalar_lea.hbm %s5740_s9, 64  ;;  %s5745_s23 = scalar_lea.hbm %s7061_s17, 64 }
 0x1bd   : > { %p5742_p11 = scmp.ne.s32.totalorder %s5740_s9, %s5741_s28  ;;  %p5746_p2 = scmp.lt.s32.totalorder %s5740_s9, %s7061_s17 }
 0x1be   : > { %p5747_p3 = scmp.lt.s32.totalorder %s5745_s23, %s5741_s28 }
 0x1bf   : > { %s1375_s6 = sshll.u32 %s7062_s10, 4  ;;  %p5743_p12 = pnand %p5742_p11, %p142_p10  ;;  %s6701_s6 = int_to_ptr.hbm [resolvable:$true] %s1375_s6 }
 0x1c0   : > { %p5748_p4 = por %p5747_p3, %p5746_p2 }
 0x1c1   : > { %p5744_p1 = pneg %p5743_p12 }
 0x1c3   : > { %p5749_p5 = pnand %p5748_p4, %p5744_p1 }
 0x1c5   : > { %5752 = shalt.err (!%p5749_p5)
}
 0x1c6   : > { %4797 = dma.hbm_to_vmem [thread:$0]  (%p142_p10), %s6687_s4, 1024, %s1361_s2, [#allocation33], %s7047_s0, %s7047_s0, %s7046_s11  }
 0x1c7   : > { %s1409_s14 = sshll.u32 %s6338_s30, 4  ;;  %s6137_s8 = smov [#allocation45]   ;;  %s6715_s14 = int_to_ptr.hbm [resolvable:$true] %s1409_s14 }
 0x1c8   : > { %s1377_s7 = sshll.u32 %s6137_s8, 4  ;;  %s5767_s9 = sshra.s32 %s6701_s6, 4  ;;  %s1378_s7 = int_to_ptr.vmem [resolvable:$true] %s1377_s7  ;;  %s5768_s9 = int_to_ptr.hbm [resolvable:$true] %s5767_s9 }
 0x1c9   : > { %s5769_s28 = scalar_lea.hbm %s5768_s9, 128  ;;  %s5773_s23 = scalar_lea.hbm %s7062_s10, 128 }
 0x1ca   : > { %p5770_p6 = scmp.ne.s32.totalorder %s5768_s9, %s5769_s28  ;;  %p5774_p11 = scmp.lt.s32.totalorder %s5768_s9, %s7062_s10 }
 0x1cb   : > { %p5775_p12 = scmp.lt.s32.totalorder %s5773_s23, %s5769_s28 }
 0x1cc   : > { %p5771_p7 = pnand %p5770_p6, %p142_p10 }
 0x1cd   : > { %p5776_p1 = por %p5775_p12, %p5774_p11 }
 0x1ce   : > { %p5772_p8 = pneg %p5771_p7 }
 0x1d0   : > { %p5777_p2 = pnand %p5776_p1, %p5772_p8 }
 0x1d2   : > { %5780 = shalt.err (!%p5777_p2)
}
 0x1d3   : > { %4799 = dma.hbm_to_vmem [thread:$0]  (%p142_p10), %s6701_s6, 2048, %s1378_s7, [#allocation36], %s7049_s13, %s7049_s13, %s7048_s1  }
 0x1d4   : > { %s6138_s4 = smov [#allocation48]   ;;  %s5795_s8 = sshra.s32 %s6715_s14, 4  ;;  %s5796_s8 = int_to_ptr.hbm [resolvable:$true] %s5795_s8 }
 0x1d5   : > { %s1411_s2 = sshll.u32 %s6138_s4, 4  ;;  %s5797_s9 = scalar_lea.hbm %s5796_s8, 64  ;;  %s1412_s2 = int_to_ptr.vmem [resolvable:$true] %s1411_s2 }
 0x1d6   : > { %p5798_p3 = scmp.ne.s32.totalorder %s5796_s8, %s5797_s9  ;;  %s5801_s28 = scalar_lea.hbm %s6338_s30, 64 }
 0x1d7   : > { %p5802_p6 = scmp.lt.s32.totalorder %s5796_s8, %s6338_s30  ;;  %p5803_p7 = scmp.lt.s32.totalorder %s5801_s28, %s5797_s9 }
 0x1d8   : > { %p5799_p4 = pnand %p5798_p3, %p142_p10 }
 0x1d9   : > { %p5804_p8 = por %p5803_p7, %p5802_p6 }
 0x1da   : > { %p5800_p5 = pneg %p5799_p4 }
 0x1dc   : > { %p5805_p11 = pnand %p5804_p8, %p5800_p5 }
 0x1de   : > { %5808 = shalt.err (!%p5805_p11)
}
 0x1df   : > { %4803 = dma.hbm_to_vmem [thread:$0]  (%p142_p10), %s6715_s14, 1024, %s1412_s2, [#allocation47], %s7047_s0, %s7047_s0, %s7046_s11  }
 0x1e0 PF: > { %s7063_s1 = sld [smem:[#allocation72_spill]]  ;;  %p4906_p12 = scmp.lt.s32.totalorder %s6063_s27, 2 }
 0x1e1   : > { %s7064_s13 = sld [smem:[#allocation81_spill]]  ;;  %s6997_s6 = sand.u32 1, %s6063_s27  }
 0x1e2   : > { %s1436_s7 = sand.u32 1, %s6059_s12   ;;  %s6745_s4 = sshll.u32 %s6063_s27, 2 }
 0x1e3   : > { %s6742_s23 = sshll.u32 %s1436_s7, 2  ;;  %p6752_p1 = pnand %p4906_p12, %p6395_p9 }
 0x1e4   : > { %s1438_s0 = scalar_lea.vmem [#allocation6], %s6742_s23  ;;  %s6760_s28 = scalar_lea.sflag [#allocation7], %s6997_s6 }
 0x1e5   : > { %s1446_s14 = sshll.u32 %s1438_s0, 4  ;;  %p5827_p3 = pneg %p6752_p1  ;;  %s1447_s14 = int_to_ptr.vmem [resolvable:$true] %s1446_s14 }
 0x1e6   : > { %s1442_s11 = scalar_lea.hbm %s7063_s1, %s6745_s4  ;;  %s5830_s16 = scalar_lea.hbm %s7063_s1, 8 }
 0x1e7   : > { %s1444_s2 = sshll.u32 %s1442_s11, 4  ;;  %s1468_s9 = scalar_lea.hbm %s7064_s13, %s6745_s4  ;;  %s1445_s2 = int_to_ptr.hbm [resolvable:$true] %s1444_s2 }
 0x1e8   : > { %s5823_s7 = sshra.s32 %s1445_s2, 4  ;;  %s5824_s7 = int_to_ptr.hbm [resolvable:$true] %s5823_s7 }
 0x1e9   : > { %s5825_s3 = scalar_lea.hbm %s5824_s7, 4  ;;  %p5831_p9 = scmp.lt.s32.totalorder %s5824_s7, %s7063_s1 }
 0x1ea   : > { %p5826_p2 = scmp.ne.s32.totalorder %s5824_s7, %s5825_s3  ;;  %p5832_p6 = scmp.lt.s32.totalorder %s5830_s16, %s5825_s3 }
 0x1ec   : > { %p5828_p4 = pnand %p5827_p3, %p5826_p2  ;;  %p5833_p7 = por %p5832_p6, %p5831_p9 }
 0x1ee   : > { %p5829_p5 = pneg %p5828_p4 }
 0x1f0   : > { %p5834_p8 = pnand %p5833_p7, %p5829_p5 }
 0x1f2   : > { %5837 = shalt.err (!%p5834_p8)
}
 0x1f3   : > { %4869 = dma.hbm_to_vmem [thread:$0]  (!%p6752_p1), %s1445_s2, 64, %s1447_s14, %s6760_s28  }
 0x1f4   : > { %s1470_s11 = sshll.u32 %s1468_s9, 4  ;;  %s1464_s0 = scalar_lea.vmem [#allocation26], %s6742_s23  ;;  %s1471_s11 = int_to_ptr.hbm [resolvable:$true] %s1470_s11 }
 0x1f5   : > { %s1472_s6 = sshll.u32 %s1464_s0, 4  ;;  %s7066_s10 = sand.u32 1, %s6063_s27   ;;  %s1473_s6 = int_to_ptr.vmem [resolvable:$true] %s1472_s6 }
 0x1f6   : > { %s6775_s7 = scalar_lea.sflag [#allocation27], %s7066_s10  ;;  %s5853_s3 = sshra.s32 %s1471_s11, 4  ;;  %s5854_s3 = int_to_ptr.hbm [resolvable:$true] %s5853_s3 }
 0x1f7   : > { %s5855_s16 = scalar_lea.hbm %s5854_s3, 4  ;;  %s5860_s1 = scalar_lea.hbm %s7064_s13, 8 }
 0x1f8   : > { %p5856_p11 = scmp.ne.s32.totalorder %s5854_s3, %s5855_s16  ;;  %p5861_p4 = scmp.lt.s32.totalorder %s5854_s3, %s7064_s13 }
 0x1f9   : > { %p5862_p5 = scmp.lt.s32.totalorder %s5860_s1, %s5855_s16 }
 0x1fa   : > { %p5858_p12 = pnand %p5856_p11, %p5827_p3 }
 0x1fb   : > { %p5863_p9 = por %p5862_p5, %p5861_p4 }
 0x1fc   : > { %p5859_p2 = pneg %p5858_p12 }
 0x1fe   : > { %p5864_p6 = pnand %p5863_p9, %p5859_p2 }
 0x200   : > { %5867 = shalt.err (!%p5864_p6)
}
 0x201   : > { %s7067_s27 = sld [smem:[#allocation87_spill]]  ;;  %s1483_s9 = scalar_lea.vmem [#allocation37], %s6742_s23 }
 0x202   : > { %4872 = dma.hbm_to_vmem [thread:$0]  (!%p6752_p1), %s1471_s11, 64, %s1473_s6, %s6775_s7  }
 0x203   : > { %s1491_s0 = sshll.u32 %s1483_s9, 4  ;;  %s1492_s0 = int_to_ptr.vmem [resolvable:$true] %s1491_s0 }
 0x207   : > { %s7068_s10 = smov %s7067_s27  ;;  %s1487_s14 = scalar_lea.hbm %s7067_s27, %s6745_s4 }
 0x208   : > { %s1489_s2 = sshll.u32 %s1487_s14, 4  ;;  %s5890_s16 = scalar_lea.hbm %s7068_s10, 8  ;;  %s1490_s2 = int_to_ptr.hbm [resolvable:$true] %s1489_s2 }
 0x209   : > { %s5883_s1 = sshra.s32 %s1490_s2, 4  ;;  %s5884_s1 = int_to_ptr.hbm [resolvable:$true] %s5883_s1 }
 0x20a   : > { %s5885_s3 = scalar_lea.hbm %s5884_s1, 4  ;;  %p5891_p12 = scmp.lt.s32.totalorder %s5884_s1, %s7068_s10 }
 0x20b   : > { %p5886_p7 = scmp.ne.s32.totalorder %s5884_s1, %s5885_s3  ;;  %p5892_p2 = scmp.lt.s32.totalorder %s5890_s16, %s5885_s3 }
 0x20d   : > { %p5888_p8 = pnand %p5886_p7, %p5827_p3  ;;  %p5893_p4 = por %p5892_p2, %p5891_p12 }
 0x20f   : > { %p5889_p11 = pneg %p5888_p8 }
 0x211   : > { %p5894_p5 = pnand %p5893_p4, %p5889_p11 }
 0x213   : > { %5897 = shalt.err (!%p5894_p5)
}
 0x214   : > { %s7069_s6 = sld [smem:[#allocation94_spill]]  ;;  %s1502_s14 = scalar_lea.vmem [#allocation42], %s6742_s23 }
 0x215   : > { %4875 = dma.hbm_to_vmem [thread:$0]  (!%p6752_p1), %s1490_s2, 64, %s1492_s0, %s6760_s28  }
 0x216   : > { %s1510_s9 = sshll.u32 %s1502_s14, 4  ;;  %s1511_s9 = int_to_ptr.vmem [resolvable:$true] %s1510_s9 }
 0x21a   : > { %s1506_s11 = scalar_lea.hbm %s7069_s6, %s6745_s4  ;;  %s5920_s16 = scalar_lea.hbm %s7069_s6, 8 }
 0x21b   : > { %s1508_s27 = sshll.u32 %s1506_s11, 4  ;;  %s1509_s27 = int_to_ptr.hbm [resolvable:$true] %s1508_s27 }
 0x21c   : > { %s5913_s1 = sshra.s32 %s1509_s27, 4  ;;  %s5914_s1 = int_to_ptr.hbm [resolvable:$true] %s5913_s1 }
 0x21d   : > { %s5915_s3 = scalar_lea.hbm %s5914_s1, 4  ;;  %p5921_p8 = scmp.lt.s32.totalorder %s5914_s1, %s7069_s6 }
 0x21e   : > { %p5916_p9 = scmp.ne.s32.totalorder %s5914_s1, %s5915_s3  ;;  %p5922_p11 = scmp.lt.s32.totalorder %s5920_s16, %s5915_s3 }
 0x220   : > { %p5918_p6 = pnand %p5916_p9, %p5827_p3  ;;  %p5923_p12 = por %p5922_p11, %p5921_p8 }
 0x222   : > { %p5919_p7 = pneg %p5918_p6 }
 0x224   : > { %p5924_p2 = pnand %p5923_p12, %p5919_p7 }
 0x226   : > { %5927 = shalt.err (!%p5924_p2)
}
 0x227   : > { %4878 = dma.hbm_to_vmem [thread:$0]  (!%p6752_p1), %s1509_s27, 64, %s1511_s9, %s6775_s7  }
 0x228   : > { %1519 = sbr.rel (%p6408_p0) target bundleno = 3184 (0xc70), region = 184  ;;  %s1521_s23 = sand.u32 (!%p6408_p0), 1, %s6380_s22  }
 0x229   : > { %s1523_s4 = sand.u32 (!%p6408_p0), 1, %s6055_s5   ;;  %s6813_s2 = scalar_lea.sflag (!%p6408_p0), [#allocation7], %s1521_s23 }
 0x22a   : > { %s6811_s28 = sshll.u32 (!%p6408_p0), %s1523_s4, 2 }
 0x22b   : > { %s1525_s0 = scalar_lea.vmem (!%p6408_p0), [#allocation6], %s6811_s28 }
 0x22d   : > { %5962 = dma.done.wait (%p6404_p13), %s6813_s2, 64  }
 0x22e   : > { %5964 = vsyncadd (%p6404_p13), %s6813_s2, 4294967232 }
 0x22f   : > { %5966 = dma.done.wait (%p142_p10), [#allocation9], 336  }
 0x230   : > { %5968 = vsyncadd (%p142_p10), [#allocation9], 4294966960 }
 0x231   : > { %5970 = dma.done.wait (%p142_p10), [#allocation12], 1040  }
 0x232   : > { %5972 = vsyncadd (%p142_p10), [#allocation12], 4294966256 }
 0x233   : > { %5974 = dma.done.wait (%p142_p10), [#allocation15], 2080  }
 0x234   : > { %5976 = vsyncadd (%p142_p10), [#allocation15], 4294965216 }
 0x235   : > { %5978 = dma.done.wait (%p142_p10), [#allocation18], 400  }
 0x236   : > { %5980 = vsyncadd (%p142_p10), [#allocation18], 4294966896 }
 0x237   : > { %5982 = dma.done.wait (%p142_p10), [#allocation21], 1040  }
 0x238   : > { %5984 = vsyncadd (%p142_p10), [#allocation21], 4294966256 }
 0x239   : > { %5986 = dma.done.wait (%p142_p10), [#allocation24], 2080  }
 0x23a   : > { %5988 = vsyncadd (%p142_p10), [#allocation24], 4294965216  ;;  %s1592_s18 = scalar_lea.sflag [#allocation27], %s1521_s23  ;;  %s1595_s8 = scalar_lea.vmem [#allocation26], %s6811_s28 }
 0x23b   : > { %5990 = dma.done.wait (%p6404_p13), %s1592_s18, 64  }
 0x23c   : > { %5992 = vsyncadd (%p6404_p13), %s1592_s18, 4294967232 }
 0x23d   : > { %5994 = dma.done.wait (%p142_p10), [#allocation27], 448  }
 0x23e   : > { %5996 = vsyncadd (%p142_p10), [#allocation27], 4294966848 }
 0x23f   : > { %5998 = dma.done.wait (%p142_p10), [#allocation30], 1040  }
 0x240   : > { %6000 = vsyncadd (%p142_p10), [#allocation30], 4294966256 }
 0x241   : > { %6002 = dma.done.wait (%p142_p10), [#allocation33], 2064  }
 0x242   : > { %6004 = vsyncadd (%p142_p10), [#allocation33], 4294965232 }
 0x243   : > { %6006 = dma.done.wait (%p142_p10), [#allocation36], 32  }
 0x244   : > { %6008 = vsyncadd (%p142_p10), [#allocation36], 4294967264  ;;  %s1635_s7 = scalar_lea.vmem [#allocation37], %s6811_s28 }
 0x245   : > { %6010 = dma.done.wait (%p6404_p13), %s6813_s2, 64  }
 0x246   : > { %6012 = vsyncadd (%p6404_p13), %s6813_s2, 4294967232 }
 0x247   : > { %6014 = dma.done.wait (%p142_p10), [#allocation9], 16  }
 0x248   : > { %6016 = vsyncadd (%p142_p10), [#allocation9], 4294967280 }
 0x249   : > { %6018 = dma.done.wait (%p142_p10), [#allocation12], 1024  }
 0x24a   : > { %6020 = vsyncadd (%p142_p10), [#allocation12], 4294966272 }
 0x24b   : > { %6022 = dma.done.wait (%p142_p10), [#allocation15], 16  }
 0x24c   : > { %6024 = vsyncadd (%p142_p10), [#allocation15], 4294967280 }
 0x24d   : > { %6026 = dma.done.wait (%p142_p10), [#allocation18], 2048  }
 0x24e   : > { %6028 = vsyncadd (%p142_p10), [#allocation18], 4294965248  ;;  %s1665_s11 = scalar_lea.vmem [#allocation42], %s6811_s28 }
 0x24f   : > { %6030 = dma.done.wait (%p6404_p13), %s1592_s18, 64  }
 0x250   : > { %6032 = vsyncadd (%p6404_p13), %s1592_s18, 4294967232 }
 0x251   : > { %6034 = dma.done.wait (%p142_p10), [#allocation30], 512  }
 0x252   : > { %6036 = vsyncadd (%p142_p10), [#allocation30], 4294966784 }
 0x253   : > { %6038 = dma.done.wait (%p142_p10), [#allocation33], 1024  }
 0x254   : > { %6040 = vsyncadd (%p142_p10), [#allocation33], 4294966272 }
 0x255   : > { %6042 = dma.done.wait (%p142_p10), [#allocation36], 2048  }
 0x256   : > { %6044 = vsyncadd (%p142_p10), [#allocation36], 4294965248 }
 0x257   : > { %6046 = dma.done.wait (%p142_p10), [#allocation47], 3072  }
 0x258   : > { %6048 = vsyncadd (%p142_p10), [#allocation47], 4294964224  ;;  %s7070_s15 = sld [smem:[#allocation76_spill]]  ;;  %p1808_p13 = scmp.lt.s32.totalorder %s6380_s22, 1  ;;  %v6139_v1 = vmov 0.0  }
 0x259   : > { %s7071_s27 = sld [smem:[#allocation105_spill]]  ;;  %1817 = vst [vmem:[#allocation2] sm:$0xff] %v6139_v1 }
 0x25a   : > { %s1819_s14 = sld [smem:[#allocation4]]  ;;  %s7086_s22 = smov (!%p1808_p13, %s6380_s22), 1  ;;  %1818 = vst [vmem:[#allocation2 + $0x8] sm:$0xff] %v6139_v1 }
 0x25b   : > { %s3942_s9 = sshll.u32 %s7086_s22, 2  ;;  %s3943_s1 = sshll.u32 %s7086_s22, 3 }
 0x25e   : > { %s6914_s3 = scalar_lea.vmem %s7070_s15, %s3942_s9 }
 0x25f   : > { %s6917_s16 = scalar_lea.vmem %s7071_s27, %s3943_s1 }
 0x260   : > { %p3944_p0 = scmp.eq.s32.totalorder %s1819_s14, 0 }
 0x262   : > { %1823 = sbr.rel (%p3944_p0) target bundleno = 1036 (0x40c), region = 312 }
 0x267   : > { %v1829_v2 = vld [vmem:[#allocation8 + $0x10] sm:$0xf]  ;;  %vm1853_vm0 = vcmask 1043456   ;;  %v4600_v6 = vld [vmem:[#allocation11 + $0x30] sm:$0xff]  ;;  %v4599_v9 = vld [vmem:[#allocation11 + $0x28] sm:$0xff]  ;;  %vm1849_vm1 = vcmask 326656  }
 0x268   : > { %v1843_v3 = vunpack.c.l.b16 %v1829_v2  ;;  %v4601_v4 = vld [vmem:[#allocation11 + $0x38] sm:$0xff]  ;;  %v4592_v10 = vld [vmem:[#allocation8] sm:$0xff]  ;;  %v4598_v11 = vld [vmem:[#allocation11 + $0x20] sm:$0xff] }
 0x269   : > { %1940 = vmatpush.bf16.msra.mxu1 %v4601_v4  ;;  %v4593_v8 = vld [vmem:[#allocation8 + $0x8] sm:$0xff]  ;;  %v1824_v12 = vld [vmem:[%s1525_s0] sm:$0xf]  ;;  %v4617_v18 = vld [vmem:[#allocation14 + $0x74] sm:$0xf0] }
 0x26a   : > { %v1846_v5 = vpack.c.b16 %v1843_v3, %v1843_v3  ;;  %v4597_v13 = vld [vmem:[#allocation11 + $0x18] sm:$0xff]  ;;  %v4596_v14 = vld [vmem:[#allocation11 + $0x10] sm:$0xff]  ;;  %v4595_v15 = vld [vmem:[#allocation11 + $0x8] sm:$0xff] }
 0x26b   : > { %v4594_v16 = vld [vmem:[#allocation11] sm:$0xff]  ;;  %v4044_v17 = vld [vmem:[#allocation14 + $0x70] sm:$0xf]  ;;  %v4616_v19 = vld [vmem:[#allocation14 + $0x74] sm:$0xf] }
 0x26c   : > { %v1855_v7 = vsel %vm1853_vm0, %v1846_v5, 0  ;;  %v4045_v20 = vor.u32 %v4617_v18, %v4044_v17  ;;  %v4046_v21 = vld [vmem:[#allocation14 + $0x78] sm:$0xf0]  ;;  %v4036_v22 = vld [vmem:[#allocation14 + $0x60] sm:$0xf] }
 0x26d   : > { %1862 = vmatpush.bf16.msra.mxu0 %v1855_v7  ;;  %1941 = vmatpush.bf16.msra.mxu1 %v4600_v6  ;;  %v4615_v23 = vld [vmem:[#allocation14 + $0x64] sm:$0xf0]  ;;  %v4049_v24 = vor.u32 %v4616_v19, %v4046_v21  ;;  %v4614_v25 = vld [vmem:[#allocation14 + $0x64] sm:$0xf]  ;;  %v4038_v26 = vld [vmem:[#allocation14 + $0x68] sm:$0xf0] }
 0x26e   : > { %2059 = vmatpush.bf16.msra.mxu2 %v4045_v20  ;;  %v4037_v27 = vor.u32 %v4615_v23, %v4036_v22  ;;  %v4041_v28 = vor.u32 %v4614_v25, %v4038_v26  ;;  %v4028_v29 = vld [vmem:[#allocation14 + $0x50] sm:$0xf]  ;;  %v4613_v30 = vld [vmem:[#allocation14 + $0x54] sm:$0xf0]  ;;  %v4612_v31 = vld [vmem:[#allocation14 + $0x54] sm:$0xf] }
 0x26f   : > { %2072 = vmatpush.bf16.msra.mxu3 %v4049_v24  ;;  %v4030_v32 = vld [vmem:[#allocation14 + $0x58] sm:$0xf0]  ;;  %v4029_v33 = vor.u32 %v4613_v30, %v4028_v29  ;;  %v4020_v35 = vld [vmem:[#allocation14 + $0x40] sm:$0xf]  ;;  %v4611_v36 = vld [vmem:[#allocation14 + $0x44] sm:$0xf0] }
 0x270   : > { %v4033_v34 = vor.u32 %v4612_v31, %v4030_v32  ;;  %v4610_v37 = vld [vmem:[#allocation14 + $0x44] sm:$0xf]  ;;  %v4022_v38 = vld [vmem:[#allocation14 + $0x48] sm:$0xf0]  ;;  %v4021_v39 = vor.u32 %v4611_v36, %v4020_v35  ;;  %v4012_v41 = vld [vmem:[#allocation14 + $0x30] sm:$0xf] }
 0x271   : > { %1863 = vmatpush.bf16.msra.mxu0 %v4593_v8  ;;  %1942 = vmatpush.bf16.msra.mxu1 %v4599_v9  ;;  %v4025_v40 = vor.u32 %v4610_v37, %v4022_v38  ;;  %v4609_v42 = vld [vmem:[#allocation14 + $0x34] sm:$0xf0]  ;;  %v4608_v43 = vld [vmem:[#allocation14 + $0x34] sm:$0xf]  ;;  %v4014_v44 = vld [vmem:[#allocation14 + $0x38] sm:$0xf0] }
 0x272   : > { %2060 = vmatpush.bf16.msra.mxu2 %v4037_v27  ;;  %v4013_v45 = vor.u32 %v4609_v42, %v4012_v41  ;;  %v4017_v46 = vor.u32 %v4608_v43, %v4014_v44  ;;  %v4004_v47 = vld [vmem:[#allocation14 + $0x20] sm:$0xf]  ;;  %v4607_v48 = vld [vmem:[#allocation14 + $0x24] sm:$0xf0]  ;;  %v4606_v49 = vld [vmem:[#allocation14 + $0x24] sm:$0xf] }
 0x273   : > { %2073 = vmatpush.bf16.msra.mxu3 %v4041_v28  ;;  %v4006_v50 = vld [vmem:[#allocation14 + $0x28] sm:$0xf0]  ;;  %v4005_v51 = vor.u32 %v4607_v48, %v4004_v47  ;;  %v5041_v53 = vld [vmem:[#allocation10] ss:$0 sm:$0xff]  ;;  %v3996_v59 = vld [vmem:[#allocation14 + $0x10] sm:$0xf] }
 0x274   : > { %v4009_v52 = vor.u32 %v4606_v49, %v4006_v50  ;;  %v4605_v60 = vld [vmem:[#allocation14 + $0x14] sm:$0xf0]  ;;  %v4604_v61 = vld [vmem:[#allocation14 + $0x14] sm:$0xf]  ;;  %v3998_v63 = vld [vmem:[#allocation14 + $0x18] sm:$0xf0] }
 0x275   : > { %1864 = vmatpush.bf16.msra.mxu0 %v4592_v10  ;;  %1943 = vmatpush.bf16.msra.mxu1 %v4598_v11  ;;  %v3997_v62 = vor.u32 %v4605_v60, %v3996_v59  ;;  %v4001_v0 = vor.u32 %v4604_v61, %v3998_v63  ;;  %v3988_v1 = vld [vmem:[#allocation14] sm:$0xf]  ;;  %v4603_v2 = vld [vmem:[#allocation14 + $0x4] sm:$0xf0]  ;;  %v4602_v3 = vld [vmem:[#allocation14 + $0x4] sm:$0xf] }
 0x276   : > { %2061 = vmatpush.bf16.msra.mxu2 %v4029_v33  ;;  %v3989_v4 = vor.u32 %v4603_v2, %v3988_v1  ;;  %v3990_v5 = vld [vmem:[#allocation14 + $0x8] sm:$0xf0]  ;;  %v5042_v7 = vld [vmem:[#allocation13] ss:$0 sm:$0xff] }
 0x277   : > { %2074 = vmatpush.bf16.msra.mxu3 %v4033_v34  ;;  %v3993_v6 = vor.u32 %v4602_v3, %v3990_v5  ;;  %v1955_v18 = vld [vmem:[#allocation2 + $0x8] sm:$0xff] }
 0x278   : > { %3953 = vmatmul.msk.bf16.vlgmr.msra.gmra.mxu0 %vm1849_vm1, %v1824_v12 }
 0x279   : > { %1944 = vmatpush.bf16.msra.mxu1 %v4597_v13  ;;  %v1973_v13 = vld [vmem:[#allocation16] sm:$0x3] }
 0x27a   : > { %2062 = vmatpush.bf16.msra.mxu2 %v4021_v39 }
 0x27b   : > { %2075 = vmatpush.bf16.msra.mxu3 %v4025_v40 }
 0x27d   : > { %1945 = vmatpush.bf16.msra.mxu1 %v4596_v14  ;;  %v1975_v14 = vperm.slane %v1973_v13, 0 }
 0x27e   : > { %2063 = vmatpush.bf16.msra.mxu2 %v4013_v45 }
 0x27f   : > { %2076 = vmatpush.bf16.msra.mxu3 %v4017_v46 }
 0x281   : > { %1946 = vmatpush.bf16.msra.mxu1 %v4595_v15  ;;  %v1976_v15 = vperm.slane %v1973_v13, 1 }
 0x282   : > { %2064 = vmatpush.bf16.msra.mxu2 %v4005_v51 }
 0x283   : > { %2077 = vmatpush.bf16.msra.mxu3 %v4009_v52 }
 0x285   : > { %1947 = vmatpush.bf16.msra.mxu1 %v4594_v16  ;;  %v1954_v16 = vld [vmem:[#allocation2] sm:$0xff] }
 0x286   : > { %2065 = vmatpush.bf16.msra.mxu2 %v3997_v62 }
 0x287   : > { %2078 = vmatpush.bf16.msra.mxu3 %v4001_v0 }
 0x28a   : > { %2066 = vmatpush.bf16.msra.mxu2 %v3989_v4 }
 0x28b   : > { %2079 = vmatpush.bf16.msra.mxu3 %v3993_v6 }
 0x2f5   : > { %v1866_v54 = vpop.f32.mrf.mxu0 }
 0x2f6   : > { %v1867_v55 = vadd.f32 %v5041_v53, %v1866_v54 }
 0x2f8   : > { %v1870_v56 = vmax.f32 %v1867_v55, 0.0 }
 0x2fa   : > { %v1871_v57 = vpack.c.bf16 %v1870_v56, %v1870_v56 }
 0x2fc   : > { %1948 = vmatmul.bf16.vlgmr.msra.gmra.mxu1 %v1871_v57 }
 0x2fd   : > { %v1868_v58 = vpop.f32.mrf.mxu0 }
 0x379   : > { %v1949_v8 = vpop.f32.mrf.mxu1 }
 0x37a   : > { %v1950_v9 = vadd.f32 %v5042_v7, %v1949_v8 }
 0x37c   : > { %v1953_v10 = vmax.f32 %v1950_v9, 0.0 }
 0x37e   : > { %v1956_v11 = vpack.c.bf16 %v1953_v10, %v1953_v10 }
 0x380   : > { %2067 = vmatmul.bf16.vlgmr.msra.gmra.mxu2 %v1956_v11  ;;  %2080 = vmatmul.bf16.vlgmr.msra.gmra.mxu3 %v1956_v11 }
 0x381   : > { %v1951_v12 = vpop.f32.mrf.mxu1 }
 0x403   : > { %v2068_v17 = vpop.f32.mrf.mxu2  ;;  %v2081_v19 = vpop.f32.mrf.mxu3 }
 0x404   : > { %v2069_v20 = vadd.f32 %v2068_v17, %v1975_v14  ;;  %v2082_v21 = vadd.f32 %v2081_v19, %v1976_v15 }
 0x406   : > { %v2085_v22 = vadd.f32 %v2069_v20, %v1954_v16  ;;  %v2086_v23 = vadd.f32 %v2082_v21, %v1955_v18 }
 0x408   : > { %2087 = vst [vmem:[#allocation2] sm:$0xff] %v2085_v22 }
 0x409   : > { %2088 = vst [vmem:[#allocation2 + $0x8] sm:$0xff] %v2086_v23 }
 0x40b   : > { %v2070_v24 = vpop.f32.mrf.mxu2  ;;  %v2083_v25 = vpop.f32.mrf.mxu3 }
 0x40c PF: > { %s4050_s22 = sld [smem:[#allocation4 + $0x1]] }
 0x412   : > { %p4051_p10 = scmp.eq.s32.totalorder %s4050_s22, 0 }
 0x414   : > { %2093 = sbr.rel (%p4051_p10) target bundleno = 1465 (0x5b9), region = 316 }
 0x419   : > { %v4620_v26 = vld [vmem:[#allocation17 + $0x10] sm:$0xff]  ;;  %v4619_v28 = vld [vmem:[#allocation17 + $0x8] sm:$0xff]  ;;  %v4618_v30 = vld [vmem:[#allocation17] sm:$0xff]  ;;  %vm2123_vm2 = vcmask 392192  }
 0x41a   : > { %v4628_v27 = vld [vmem:[#allocation20 + $0x38] sm:$0xff]  ;;  %2132 = vmatpush.bf16.msra.mxu0 %v4620_v26  ;;  %v4627_v29 = vld [vmem:[#allocation20 + $0x30] sm:$0xff]  ;;  %v4626_v31 = vld [vmem:[#allocation20 + $0x28] sm:$0xff] }
 0x41b   : > { %2210 = vmatpush.bf16.msra.mxu1 %v4628_v27  ;;  %v2094_v32 = vld [vmem:[%s6914_s3] sm:$0xf]  ;;  %v4625_v33 = vld [vmem:[#allocation20 + $0x20] sm:$0xff]  ;;  %v4624_v34 = vld [vmem:[#allocation20 + $0x18] sm:$0xff] }
 0x41c   : > { %v4623_v35 = vld [vmem:[#allocation20 + $0x10] sm:$0xff]  ;;  %v4622_v36 = vld [vmem:[#allocation20 + $0x8] sm:$0xff]  ;;  %v4621_v37 = vld [vmem:[#allocation20] sm:$0xff] }
 0x41d   : > { %v4155_v38 = vld [vmem:[#allocation23 + $0x70] sm:$0xf]  ;;  %v4644_v39 = vld [vmem:[#allocation23 + $0x74] sm:$0xf0]  ;;  %v4643_v40 = vld [vmem:[#allocation23 + $0x74] sm:$0xf] }
 0x41e   : > { %2133 = vmatpush.bf16.msra.mxu0 %v4619_v28  ;;  %v4156_v41 = vor.u32 %v4644_v39, %v4155_v38  ;;  %v4157_v42 = vld [vmem:[#allocation23 + $0x78] sm:$0xf0]  ;;  %v4147_v43 = vld [vmem:[#allocation23 + $0x60] sm:$0xf]  ;;  %v4642_v44 = vld [vmem:[#allocation23 + $0x64] sm:$0xf0] }
 0x41f   : > { %2211 = vmatpush.bf16.msra.mxu1 %v4627_v29  ;;  %v4160_v45 = vor.u32 %v4643_v40, %v4157_v42  ;;  %v4641_v46 = vld [vmem:[#allocation23 + $0x64] sm:$0xf]  ;;  %v4149_v47 = vld [vmem:[#allocation23 + $0x68] sm:$0xf0]  ;;  %v4148_v48 = vor.u32 %v4642_v44, %v4147_v43  ;;  %v4139_v50 = vld [vmem:[#allocation23 + $0x50] sm:$0xf] }
 0x420   : > { %2329 = vmatpush.bf16.msra.mxu2 %v4156_v41  ;;  %v4152_v49 = vor.u32 %v4641_v46, %v4149_v47  ;;  %v4640_v51 = vld [vmem:[#allocation23 + $0x54] sm:$0xf0]  ;;  %v4639_v52 = vld [vmem:[#allocation23 + $0x54] sm:$0xf]  ;;  %v4141_v53 = vld [vmem:[#allocation23 + $0x58] sm:$0xf0] }
 0x421   : > { %2342 = vmatpush.bf16.msra.mxu3 %v4160_v45  ;;  %v4140_v54 = vor.u32 %v4640_v51, %v4139_v50  ;;  %v4144_v55 = vor.u32 %v4639_v52, %v4141_v53  ;;  %v4131_v56 = vld [vmem:[#allocation23 + $0x40] sm:$0xf]  ;;  %v4638_v57 = vld [vmem:[#allocation23 + $0x44] sm:$0xf0]  ;;  %v4637_v58 = vld [vmem:[#allocation23 + $0x44] sm:$0xf] }
 0x422   : > { %2134 = vmatpush.bf16.msra.mxu0 %v4618_v30  ;;  %v4133_v59 = vld [vmem:[#allocation23 + $0x48] sm:$0xf0]  ;;  %v4132_v60 = vor.u32 %v4638_v57, %v4131_v56  ;;  %v4123_v62 = vld [vmem:[#allocation23 + $0x30] sm:$0xf]  ;;  %v4636_v63 = vld [vmem:[#allocation23 + $0x34] sm:$0xf0] }
 0x423   : > { %2212 = vmatpush.bf16.msra.mxu1 %v4626_v31  ;;  %v4136_v61 = vor.u32 %v4637_v58, %v4133_v59  ;;  %v4635_v0 = vld [vmem:[#allocation23 + $0x34] sm:$0xf]  ;;  %v4125_v1 = vld [vmem:[#allocation23 + $0x38] sm:$0xf0]  ;;  %v4124_v2 = vor.u32 %v4636_v63, %v4123_v62  ;;  %v4115_v4 = vld [vmem:[#allocation23 + $0x20] sm:$0xf] }
 0x424   : > { %2330 = vmatpush.bf16.msra.mxu2 %v4148_v48  ;;  %v4128_v3 = vor.u32 %v4635_v0, %v4125_v1  ;;  %v4634_v5 = vld [vmem:[#allocation23 + $0x24] sm:$0xf0]  ;;  %v4633_v6 = vld [vmem:[#allocation23 + $0x24] sm:$0xf]  ;;  %v4117_v7 = vld [vmem:[#allocation23 + $0x28] sm:$0xf0] }
 0x425   : > { %4064 = vmatmul.msk.bf16.vlgmr.msra.gmra.mxu0 %vm2123_vm2, %v2094_v32  ;;  %2343 = vmatpush.bf16.msra.mxu3 %v4152_v49  ;;  %v4116_v8 = vor.u32 %v4634_v5, %v4115_v4  ;;  %v4120_v9 = vor.u32 %v4633_v6, %v4117_v7  ;;  %v5043_v10 = vld [vmem:[#allocation19] ss:$0 sm:$0xff]  ;;  %v4107_v16 = vld [vmem:[#allocation23 + $0x10] sm:$0xf]  ;;  %v4632_v17 = vld [vmem:[#allocation23 + $0x14] sm:$0xf0] }
 0x426   : > { %v4631_v18 = vld [vmem:[#allocation23 + $0x14] sm:$0xf]  ;;  %v4108_v19 = vor.u32 %v4632_v17, %v4107_v16  ;;  %v4109_v20 = vld [vmem:[#allocation23 + $0x18] sm:$0xf0]  ;;  %v4099_v22 = vld [vmem:[#allocation23] sm:$0xf] }
 0x427   : > { %2213 = vmatpush.bf16.msra.mxu1 %v4625_v33  ;;  %v4112_v21 = vor.u32 %v4631_v18, %v4109_v20  ;;  %v4630_v23 = vld [vmem:[#allocation23 + $0x4] sm:$0xf0]  ;;  %v4629_v24 = vld [vmem:[#allocation23 + $0x4] sm:$0xf]  ;;  %v4101_v26 = vld [vmem:[#allocation23 + $0x8] sm:$0xf0] }
 0x428   : > { %2331 = vmatpush.bf16.msra.mxu2 %v4140_v54  ;;  %v4100_v25 = vor.u32 %v4630_v23, %v4099_v22  ;;  %v4104_v27 = vor.u32 %v4629_v24, %v4101_v26  ;;  %v5044_v28 = vld [vmem:[#allocation22] ss:$0 sm:$0xff] }
 0x429   : > { %2344 = vmatpush.bf16.msra.mxu3 %v4144_v55  ;;  %v2225_v39 = vld [vmem:[#allocation2 + $0x8] sm:$0xff] }
 0x42b   : > { %2214 = vmatpush.bf16.msra.mxu1 %v4624_v34  ;;  %v2243_v34 = vld [vmem:[#allocation25] sm:$0x3] }
 0x42c   : > { %2332 = vmatpush.bf16.msra.mxu2 %v4132_v60 }
 0x42d   : > { %2345 = vmatpush.bf16.msra.mxu3 %v4136_v61 }
 0x42f   : > { %2215 = vmatpush.bf16.msra.mxu1 %v4623_v35  ;;  %v2245_v35 = vperm.slane %v2243_v34, 0 }
 0x430   : > { %2333 = vmatpush.bf16.msra.mxu2 %v4124_v2 }
 0x431   : > { %2346 = vmatpush.bf16.msra.mxu3 %v4128_v3 }
 0x433   : > { %2216 = vmatpush.bf16.msra.mxu1 %v4622_v36  ;;  %v2246_v36 = vperm.slane %v2243_v34, 1 }
 0x434   : > { %2334 = vmatpush.bf16.msra.mxu2 %v4116_v8 }
 0x435   : > { %2347 = vmatpush.bf16.msra.mxu3 %v4120_v9 }
 0x437   : > { %2217 = vmatpush.bf16.msra.mxu1 %v4621_v37  ;;  %v2224_v37 = vld [vmem:[#allocation2] sm:$0xff] }
 0x438   : > { %2335 = vmatpush.bf16.msra.mxu2 %v4108_v19 }
 0x439   : > { %2348 = vmatpush.bf16.msra.mxu3 %v4112_v21 }
 0x43c   : > { %2336 = vmatpush.bf16.msra.mxu2 %v4100_v25 }
 0x43d   : > { %2349 = vmatpush.bf16.msra.mxu3 %v4104_v27 }
 0x4a2   : > { %v2136_v11 = vpop.f32.mrf.mxu0 }
 0x4a3   : > { %v2137_v12 = vadd.f32 %v5043_v10, %v2136_v11 }
 0x4a5   : > { %v2140_v13 = vmax.f32 %v2137_v12, 0.0 }
 0x4a7   : > { %v2141_v14 = vpack.c.bf16 %v2140_v13, %v2140_v13 }
 0x4a9   : > { %2218 = vmatmul.bf16.vlgmr.msra.gmra.mxu1 %v2141_v14 }
 0x4aa   : > { %v2138_v15 = vpop.f32.mrf.mxu0 }
 0x526   : > { %v2219_v29 = vpop.f32.mrf.mxu1 }
 0x527   : > { %v2220_v30 = vadd.f32 %v5044_v28, %v2219_v29 }
 0x529   : > { %v2223_v31 = vmax.f32 %v2220_v30, 0.0 }
 0x52b   : > { %v2226_v32 = vpack.c.bf16 %v2223_v31, %v2223_v31 }
 0x52d   : > { %2337 = vmatmul.bf16.vlgmr.msra.gmra.mxu2 %v2226_v32  ;;  %2350 = vmatmul.bf16.vlgmr.msra.gmra.mxu3 %v2226_v32 }
 0x52e   : > { %v2221_v33 = vpop.f32.mrf.mxu1 }
 0x5b0   : > { %v2338_v38 = vpop.f32.mrf.mxu2  ;;  %v2351_v40 = vpop.f32.mrf.mxu3 }
 0x5b1   : > { %v2339_v41 = vadd.f32 %v2338_v38, %v2245_v35  ;;  %v2352_v42 = vadd.f32 %v2351_v40, %v2246_v36 }
 0x5b3   : > { %v2355_v43 = vadd.f32 %v2339_v41, %v2224_v37  ;;  %v2356_v44 = vadd.f32 %v2352_v42, %v2225_v39 }
 0x5b5   : > { %2357 = vst [vmem:[#allocation2] sm:$0xff] %v2355_v43 }
 0x5b6   : > { %2358 = vst [vmem:[#allocation2 + $0x8] sm:$0xff] %v2356_v44 }
 0x5b8   : > { %v2340_v45 = vpop.f32.mrf.mxu2  ;;  %v2353_v46 = vpop.f32.mrf.mxu3 }
 0x5b9 PF: > { %s4161_s23 = sld [smem:[#allocation4 + $0x2]] }
 0x5bf   : > { %p4162_p1 = scmp.eq.s32.totalorder %s4161_s23, 0 }
 0x5c1   : > { %2363 = sbr.rel (%p4162_p1) target bundleno = 1903 (0x76f), region = 320 }
 0x5c6   : > { %v2371_v47 = vld [vmem:[#allocation28 + $0x18] sm:$0xf]  ;;  %vm2401_vm3 = vcmask 1043456   ;;  %v4654_v51 = vld [vmem:[#allocation31 + $0x30] sm:$0xff]  ;;  %v4653_v54 = vld [vmem:[#allocation31 + $0x28] sm:$0xff]  ;;  %vm2397_vm4 = vcmask 457728  }
 0x5c7   : > { %v2389_v48 = vunpack.c.l.b16 %v2371_v47  ;;  %v4655_v49 = vld [vmem:[#allocation31 + $0x38] sm:$0xff]  ;;  %v4646_v55 = vld [vmem:[#allocation28 + $0x8] sm:$0xff]  ;;  %v4652_v56 = vld [vmem:[#allocation31 + $0x20] sm:$0xff] }
 0x5c8   : > { %2488 = vmatpush.bf16.msra.mxu1 %v4655_v49  ;;  %v4647_v53 = vld [vmem:[#allocation28 + $0x10] sm:$0xff]  ;;  %v4645_v57 = vld [vmem:[#allocation28] sm:$0xff]  ;;  %v2364_v59 = vld [vmem:[%s1595_s8] sm:$0xf] }
 0x5c9   : > { %v2393_v50 = vpack.c.b16 %v2389_v48, %v2389_v48  ;;  %v4651_v58 = vld [vmem:[#allocation31 + $0x18] sm:$0xff]  ;;  %v4650_v60 = vld [vmem:[#allocation31 + $0x10] sm:$0xff]  ;;  %v4649_v61 = vld [vmem:[#allocation31 + $0x8] sm:$0xff] }
 0x5ca   : > { %v4648_v62 = vld [vmem:[#allocation31] sm:$0xff]  ;;  %v4266_v63 = vld [vmem:[#allocation34 + $0x70] sm:$0xf]  ;;  %v4671_v0 = vld [vmem:[#allocation34 + $0x74] sm:$0xf0] }
 0x5cb   : > { %v2403_v52 = vsel %vm2401_vm3, %v2393_v50, 0  ;;  %v4670_v1 = vld [vmem:[#allocation34 + $0x74] sm:$0xf]  ;;  %v4267_v2 = vor.u32 %v4671_v0, %v4266_v63  ;;  %v4268_v3 = vld [vmem:[#allocation34 + $0x78] sm:$0xf0] }
 0x5cc   : > { %2409 = vmatpush.bf16.msra.mxu0 %v2403_v52  ;;  %2489 = vmatpush.bf16.msra.mxu1 %v4654_v51  ;;  %v4258_v4 = vld [vmem:[#allocation34 + $0x60] sm:$0xf]  ;;  %v4669_v5 = vld [vmem:[#allocation34 + $0x64] sm:$0xf0]  ;;  %v4271_v6 = vor.u32 %v4670_v1, %v4268_v3  ;;  %v4668_v7 = vld [vmem:[#allocation34 + $0x64] sm:$0xf] }
 0x5cd   : > { %v4260_v8 = vld [vmem:[#allocation34 + $0x68] sm:$0xf0]  ;;  %2607 = vmatpush.bf16.msra.mxu2 %v4267_v2  ;;  %v4259_v9 = vor.u32 %v4669_v5, %v4258_v4  ;;  %v4250_v11 = vld [vmem:[#allocation34 + $0x50] sm:$0xf]  ;;  %v4667_v12 = vld [vmem:[#allocation34 + $0x54] sm:$0xf0] }
 0x5ce   : > { %2620 = vmatpush.bf16.msra.mxu3 %v4271_v6  ;;  %v4263_v10 = vor.u32 %v4668_v7, %v4260_v8  ;;  %v4666_v13 = vld [vmem:[#allocation34 + $0x54] sm:$0xf]  ;;  %v4252_v14 = vld [vmem:[#allocation34 + $0x58] sm:$0xf0]  ;;  %v4251_v15 = vor.u32 %v4667_v12, %v4250_v11  ;;  %v4242_v17 = vld [vmem:[#allocation34 + $0x40] sm:$0xf] }
 0x5cf   : > { %v4255_v16 = vor.u32 %v4666_v13, %v4252_v14  ;;  %v4665_v18 = vld [vmem:[#allocation34 + $0x44] sm:$0xf0]  ;;  %v4664_v19 = vld [vmem:[#allocation34 + $0x44] sm:$0xf]  ;;  %v4244_v20 = vld [vmem:[#allocation34 + $0x48] sm:$0xf0] }
 0x5d0   : > { %2410 = vmatpush.bf16.msra.mxu0 %v4647_v53  ;;  %2490 = vmatpush.bf16.msra.mxu1 %v4653_v54  ;;  %v4243_v21 = vor.u32 %v4665_v18, %v4242_v17  ;;  %v4247_v22 = vor.u32 %v4664_v19, %v4244_v20  ;;  %v4234_v23 = vld [vmem:[#allocation34 + $0x30] sm:$0xf]  ;;  %v4663_v24 = vld [vmem:[#allocation34 + $0x34] sm:$0xf0]  ;;  %v4662_v25 = vld [vmem:[#allocation34 + $0x34] sm:$0xf] }
 0x5d1   : > { %2608 = vmatpush.bf16.msra.mxu2 %v4259_v9  ;;  %v4236_v26 = vld [vmem:[#allocation34 + $0x38] sm:$0xf0]  ;;  %v4235_v27 = vor.u32 %v4663_v24, %v4234_v23  ;;  %v4226_v29 = vld [vmem:[#allocation34 + $0x20] sm:$0xf]  ;;  %v4661_v30 = vld [vmem:[#allocation34 + $0x24] sm:$0xf0] }
 0x5d2   : > { %2621 = vmatpush.bf16.msra.mxu3 %v4263_v10  ;;  %v4239_v28 = vor.u32 %v4662_v25, %v4236_v26  ;;  %v4660_v31 = vld [vmem:[#allocation34 + $0x24] sm:$0xf]  ;;  %v4228_v32 = vld [vmem:[#allocation34 + $0x28] sm:$0xf0]  ;;  %v4227_v33 = vor.u32 %v4661_v30, %v4226_v29  ;;  %v5045_v35 = vld [vmem:[#allocation29] ss:$0 sm:$0xff] }
 0x5d3   : > { %v4231_v34 = vor.u32 %v4660_v31, %v4228_v32  ;;  %v4218_v41 = vld [vmem:[#allocation34 + $0x10] sm:$0xf]  ;;  %v4659_v42 = vld [vmem:[#allocation34 + $0x14] sm:$0xf0]  ;;  %v4658_v43 = vld [vmem:[#allocation34 + $0x14] sm:$0xf] }
 0x5d4   : > { %2411 = vmatpush.bf16.msra.mxu0 %v4646_v55  ;;  %2491 = vmatpush.bf16.msra.mxu1 %v4652_v56  ;;  %v4219_v44 = vor.u32 %v4659_v42, %v4218_v41  ;;  %v4220_v45 = vld [vmem:[#allocation34 + $0x18] sm:$0xf0]  ;;  %v4210_v47 = vld [vmem:[#allocation34] sm:$0xf]  ;;  %v4657_v48 = vld [vmem:[#allocation34 + $0x4] sm:$0xf0] }
 0x5d5   : > { %2609 = vmatpush.bf16.msra.mxu2 %v4251_v15  ;;  %v4223_v46 = vor.u32 %v4658_v43, %v4220_v45  ;;  %v4656_v49 = vld [vmem:[#allocation34 + $0x4] sm:$0xf]  ;;  %v4211_v50 = vor.u32 %v4657_v48, %v4210_v47  ;;  %v4212_v51 = vld [vmem:[#allocation34 + $0x8] sm:$0xf0]  ;;  %v5046_v53 = vld [vmem:[#allocation32] ss:$0 sm:$0xff] }
 0x5d6   : > { %2622 = vmatpush.bf16.msra.mxu3 %v4255_v16  ;;  %v4215_v52 = vor.u32 %v4656_v49, %v4212_v51  ;;  %v2503_v0 = vld [vmem:[#allocation2 + $0x8] sm:$0xff] }
 0x5d8   : > { %2412 = vmatpush.bf16.msra.mxu0 %v4645_v57  ;;  %2492 = vmatpush.bf16.msra.mxu1 %v4651_v58 }
 0x5d9   : > { %2610 = vmatpush.bf16.msra.mxu2 %v4243_v21 }
 0x5da   : > { %2623 = vmatpush.bf16.msra.mxu3 %v4247_v22 }
 0x5db   : > { %4175 = vmatmul.msk.bf16.vlgmr.msra.gmra.mxu0 %vm2397_vm4, %v2364_v59  ;;  %v2521_v59 = vld [vmem:[#allocation35] sm:$0x3] }
 0x5dc   : > { %2493 = vmatpush.bf16.msra.mxu1 %v4650_v60  ;;  %v2523_v60 = vperm.slane %v2521_v59, 0 }
 0x5dd   : > { %2611 = vmatpush.bf16.msra.mxu2 %v4235_v27 }
 0x5de   : > { %2624 = vmatpush.bf16.msra.mxu3 %v4239_v28 }
 0x5e0   : > { %2494 = vmatpush.bf16.msra.mxu1 %v4649_v61  ;;  %v2524_v61 = vperm.slane %v2521_v59, 1 }
 0x5e1   : > { %2612 = vmatpush.bf16.msra.mxu2 %v4227_v33 }
 0x5e2   : > { %2625 = vmatpush.bf16.msra.mxu3 %v4231_v34 }
 0x5e4   : > { %2495 = vmatpush.bf16.msra.mxu1 %v4648_v62  ;;  %v2502_v62 = vld [vmem:[#allocation2] sm:$0xff] }
 0x5e5   : > { %2613 = vmatpush.bf16.msra.mxu2 %v4219_v44 }
 0x5e6   : > { %2626 = vmatpush.bf16.msra.mxu3 %v4223_v46 }
 0x5e9   : > { %2614 = vmatpush.bf16.msra.mxu2 %v4211_v50 }
 0x5ea   : > { %2627 = vmatpush.bf16.msra.mxu3 %v4215_v52 }
 0x658   : > { %v2414_v36 = vpop.f32.mrf.mxu0 }
 0x659   : > { %v2415_v37 = vadd.f32 %v5045_v35, %v2414_v36 }
 0x65b   : > { %v2418_v38 = vmax.f32 %v2415_v37, 0.0 }
 0x65d   : > { %v2419_v39 = vpack.c.bf16 %v2418_v38, %v2418_v38 }
 0x65f   : > { %2496 = vmatmul.bf16.vlgmr.msra.gmra.mxu1 %v2419_v39 }
 0x660   : > { %v2416_v40 = vpop.f32.mrf.mxu0 }
 0x6dc   : > { %v2497_v54 = vpop.f32.mrf.mxu1 }
 0x6dd   : > { %v2498_v55 = vadd.f32 %v5046_v53, %v2497_v54 }
 0x6df   : > { %v2501_v56 = vmax.f32 %v2498_v55, 0.0 }
 0x6e1   : > { %v2504_v57 = vpack.c.bf16 %v2501_v56, %v2501_v56 }
 0x6e3   : > { %2615 = vmatmul.bf16.vlgmr.msra.gmra.mxu2 %v2504_v57  ;;  %2628 = vmatmul.bf16.vlgmr.msra.gmra.mxu3 %v2504_v57 }
 0x6e4   : > { %v2499_v58 = vpop.f32.mrf.mxu1 }
 0x766   : > { %v2616_v63 = vpop.f32.mrf.mxu2  ;;  %v2629_v1 = vpop.f32.mrf.mxu3 }
 0x767   : > { %v2617_v2 = vadd.f32 %v2616_v63, %v2523_v60  ;;  %v2630_v3 = vadd.f32 %v2629_v1, %v2524_v61 }
 0x769   : > { %v2633_v4 = vadd.f32 %v2617_v2, %v2502_v62  ;;  %v2634_v5 = vadd.f32 %v2630_v3, %v2503_v0 }
 0x76b   : > { %2635 = vst [vmem:[#allocation2] sm:$0xff] %v2633_v4 }
 0x76c   : > { %2636 = vst [vmem:[#allocation2 + $0x8] sm:$0xff] %v2634_v5 }
 0x76e   : > { %v2618_v6 = vpop.f32.mrf.mxu2  ;;  %v2631_v7 = vpop.f32.mrf.mxu3 }
 0x76f PF: > { %s4272_s4 = sld [smem:[#allocation4 + $0x3]] }
 0x775   : > { %p4273_p3 = scmp.eq.s32.totalorder %s4272_s4, 0 }
 0x776   : > { %s7072_s2 = sld [smem:[#allocation88_spill]] (!%p4273_p3) }
 0x777   : > { %2641 = sbr.rel (%p4273_p3) target bundleno = 2328 (0x918), region = 324  ;;  %s7073_s0 = sld [smem:[#allocation93_spill]] (!%p4273_p3) }
 0x77c   : > { %v4673_v8 = vld [vmem:[%s7072_s2 + $0x8] sm:$0xff]  ;;  %v4681_v9 = vld [vmem:[#allocation39 + $0x38] sm:$0xff]  ;;  %v4680_v11 = vld [vmem:[#allocation39 + $0x30] sm:$0xff]  ;;  %vm2663_vm5 = vcmask 261120  }
 0x77d   : > { %2673 = vmatpush.bf16.msra.mxu0 %v4673_v8  ;;  %v4672_v10 = vld [vmem:[%s7072_s2] sm:$0xff]  ;;  %2750 = vmatpush.bf16.msra.mxu1 %v4681_v9  ;;  %v4679_v13 = vld [vmem:[#allocation39 + $0x28] sm:$0xff]  ;;  %v4676_v16 = vld [vmem:[#allocation39 + $0x10] sm:$0xff] }
 0x77e   : > { %v2642_v12 = vld [vmem:[%s1635_s7] sm:$0xf]  ;;  %v4678_v14 = vld [vmem:[#allocation39 + $0x20] sm:$0xff]  ;;  %v4675_v17 = vld [vmem:[#allocation39 + $0x8] sm:$0xff] }
 0x77f   : > { %v4677_v15 = vld [vmem:[#allocation39 + $0x18] sm:$0xff]  ;;  %v4674_v18 = vld [vmem:[#allocation39] sm:$0xff]  ;;  %v4373_v19 = vld [vmem:[#allocation41 + $0x70] sm:$0xf] }
 0x780   : > { %v4697_v20 = vld [vmem:[#allocation41 + $0x74] sm:$0xf0]  ;;  %v4696_v21 = vld [vmem:[#allocation41 + $0x74] sm:$0xf]  ;;  %v4375_v23 = vld [vmem:[#allocation41 + $0x78] sm:$0xf0] }
 0x781   : > { %2674 = vmatpush.bf16.msra.mxu0 %v4672_v10  ;;  %2751 = vmatpush.bf16.msra.mxu1 %v4680_v11  ;;  %v4374_v22 = vor.u32 %v4697_v20, %v4373_v19  ;;  %v4365_v24 = vld [vmem:[#allocation41 + $0x60] sm:$0xf]  ;;  %v4695_v25 = vld [vmem:[#allocation41 + $0x64] sm:$0xf0]  ;;  %v4378_v26 = vor.u32 %v4696_v21, %v4375_v23  ;;  %v4694_v27 = vld [vmem:[#allocation41 + $0x64] sm:$0xf] }
 0x782   : > { %v4367_v28 = vld [vmem:[#allocation41 + $0x68] sm:$0xf0]  ;;  %v4366_v29 = vor.u32 %v4695_v25, %v4365_v24  ;;  %v4357_v31 = vld [vmem:[#allocation41 + $0x50] sm:$0xf]  ;;  %v4693_v32 = vld [vmem:[#allocation41 + $0x54] sm:$0xf0] }
 0x783   : > { %2869 = vmatpush.bf16.msra.mxu2 %v4374_v22  ;;  %2882 = vmatpush.bf16.msra.mxu3 %v4378_v26  ;;  %v4370_v30 = vor.u32 %v4694_v27, %v4367_v28  ;;  %v4692_v33 = vld [vmem:[#allocation41 + $0x54] sm:$0xf]  ;;  %v4359_v34 = vld [vmem:[#allocation41 + $0x58] sm:$0xf0]  ;;  %v4358_v35 = vor.u32 %v4693_v32, %v4357_v31  ;;  %v4349_v37 = vld [vmem:[#allocation41 + $0x40] sm:$0xf] }
 0x784   : > { %4282 = vmatmul.msk.bf16.vlgmr.msra.gmra.mxu0 %vm2663_vm5, %v2642_v12  ;;  %v4362_v36 = vor.u32 %v4692_v33, %v4359_v34  ;;  %v4691_v38 = vld [vmem:[#allocation41 + $0x44] sm:$0xf0]  ;;  %v4690_v39 = vld [vmem:[#allocation41 + $0x44] sm:$0xf]  ;;  %v4351_v40 = vld [vmem:[#allocation41 + $0x48] sm:$0xf0] }
 0x785   : > { %2752 = vmatpush.bf16.msra.mxu1 %v4679_v13  ;;  %v4350_v41 = vor.u32 %v4691_v38, %v4349_v37  ;;  %v4354_v42 = vor.u32 %v4690_v39, %v4351_v40  ;;  %v4341_v43 = vld [vmem:[#allocation41 + $0x30] sm:$0xf]  ;;  %v4689_v44 = vld [vmem:[#allocation41 + $0x34] sm:$0xf0]  ;;  %v4688_v45 = vld [vmem:[#allocation41 + $0x34] sm:$0xf] }
 0x786   : > { %v4343_v46 = vld [vmem:[#allocation41 + $0x38] sm:$0xf0]  ;;  %v4342_v47 = vor.u32 %v4689_v44, %v4341_v43  ;;  %v4333_v49 = vld [vmem:[#allocation41 + $0x20] sm:$0xf]  ;;  %v4687_v50 = vld [vmem:[#allocation41 + $0x24] sm:$0xf0] }
 0x787   : > { %2870 = vmatpush.bf16.msra.mxu2 %v4366_v29  ;;  %2883 = vmatpush.bf16.msra.mxu3 %v4370_v30  ;;  %v4346_v48 = vor.u32 %v4688_v45, %v4343_v46  ;;  %v4686_v51 = vld [vmem:[#allocation41 + $0x24] sm:$0xf]  ;;  %v4335_v52 = vld [vmem:[#allocation41 + $0x28] sm:$0xf0]  ;;  %v4334_v53 = vor.u32 %v4687_v50, %v4333_v49  ;;  %v5047_v55 = vld [vmem:[#allocation38] ss:$0 sm:$0xff] }
 0x788   : > { %v4338_v54 = vor.u32 %v4686_v51, %v4335_v52  ;;  %v4325_v61 = vld [vmem:[#allocation41 + $0x10] sm:$0xf]  ;;  %v4685_v62 = vld [vmem:[#allocation41 + $0x14] sm:$0xf0]  ;;  %v4684_v63 = vld [vmem:[#allocation41 + $0x14] sm:$0xf] }
 0x789   : > { %2753 = vmatpush.bf16.msra.mxu1 %v4678_v14  ;;  %v4326_v0 = vor.u32 %v4685_v62, %v4325_v61  ;;  %v4327_v1 = vld [vmem:[#allocation41 + $0x18] sm:$0xf0]  ;;  %v4317_v3 = vld [vmem:[#allocation41] sm:$0xf]  ;;  %v4683_v4 = vld [vmem:[#allocation41 + $0x4] sm:$0xf0] }
 0x78a   : > { %v4330_v2 = vor.u32 %v4684_v63, %v4327_v1  ;;  %v4682_v5 = vld [vmem:[#allocation41 + $0x4] sm:$0xf]  ;;  %v4318_v6 = vor.u32 %v4683_v4, %v4317_v3  ;;  %v4319_v7 = vld [vmem:[#allocation41 + $0x8] sm:$0xf0]  ;;  %v5048_v9 = vld [vmem:[#allocation40] ss:$0 sm:$0xff] }
 0x78b   : > { %2871 = vmatpush.bf16.msra.mxu2 %v4358_v35  ;;  %2884 = vmatpush.bf16.msra.mxu3 %v4362_v36  ;;  %v4322_v8 = vor.u32 %v4682_v5, %v4319_v7  ;;  %v2765_v20 = vld [vmem:[#allocation2 + $0x8] sm:$0xff] }
 0x78d   : > { %2754 = vmatpush.bf16.msra.mxu1 %v4677_v15  ;;  %v2783_v15 = vld [vmem:[%s7073_s0] sm:$0x3] }
 0x78f   : > { %2872 = vmatpush.bf16.msra.mxu2 %v4350_v41  ;;  %2885 = vmatpush.bf16.msra.mxu3 %v4354_v42 }
 0x791   : > { %2755 = vmatpush.bf16.msra.mxu1 %v4676_v16  ;;  %v2785_v16 = vperm.slane %v2783_v15, 0 }
 0x793   : > { %2873 = vmatpush.bf16.msra.mxu2 %v4342_v47  ;;  %2886 = vmatpush.bf16.msra.mxu3 %v4346_v48 }
 0x795   : > { %2756 = vmatpush.bf16.msra.mxu1 %v4675_v17  ;;  %v2786_v17 = vperm.slane %v2783_v15, 1 }
 0x797   : > { %2874 = vmatpush.bf16.msra.mxu2 %v4334_v53  ;;  %2887 = vmatpush.bf16.msra.mxu3 %v4338_v54 }
 0x799   : > { %2757 = vmatpush.bf16.msra.mxu1 %v4674_v18  ;;  %v2764_v18 = vld [vmem:[#allocation2] sm:$0xff] }
 0x79b   : > { %2875 = vmatpush.bf16.msra.mxu2 %v4326_v0  ;;  %2888 = vmatpush.bf16.msra.mxu3 %v4330_v2 }
 0x79f   : > { %2876 = vmatpush.bf16.msra.mxu2 %v4318_v6  ;;  %2889 = vmatpush.bf16.msra.mxu3 %v4322_v8 }
 0x801   : > { %v2676_v56 = vpop.f32.mrf.mxu0 }
 0x802   : > { %v2677_v57 = vadd.f32 %v5047_v55, %v2676_v56 }
 0x804   : > { %v2680_v58 = vmax.f32 %v2677_v57, 0.0 }
 0x806   : > { %v2681_v59 = vpack.c.bf16 %v2680_v58, %v2680_v58 }
 0x808   : > { %2758 = vmatmul.bf16.vlgmr.msra.gmra.mxu1 %v2681_v59 }
 0x809   : > { %v2678_v60 = vpop.f32.mrf.mxu0 }
 0x885   : > { %v2759_v10 = vpop.f32.mrf.mxu1 }
 0x886   : > { %v2760_v11 = vadd.f32 %v5048_v9, %v2759_v10 }
 0x888   : > { %v2763_v12 = vmax.f32 %v2760_v11, 0.0 }
 0x88a   : > { %v2766_v13 = vpack.c.bf16 %v2763_v12, %v2763_v12 }
 0x88c   : > { %2877 = vmatmul.bf16.vlgmr.msra.gmra.mxu2 %v2766_v13  ;;  %2890 = vmatmul.bf16.vlgmr.msra.gmra.mxu3 %v2766_v13 }
 0x88d   : > { %v2761_v14 = vpop.f32.mrf.mxu1 }
 0x90f   : > { %v2878_v19 = vpop.f32.mrf.mxu2  ;;  %v2891_v21 = vpop.f32.mrf.mxu3 }
 0x910   : > { %v2879_v22 = vadd.f32 %v2878_v19, %v2785_v16  ;;  %v2892_v23 = vadd.f32 %v2891_v21, %v2786_v17 }
 0x912   : > { %v2895_v24 = vadd.f32 %v2879_v22, %v2764_v18  ;;  %v2896_v25 = vadd.f32 %v2892_v23, %v2765_v20 }
 0x914   : > { %2897 = vst [vmem:[#allocation2] sm:$0xff] %v2895_v24 }
 0x915   : > { %2898 = vst [vmem:[#allocation2 + $0x8] sm:$0xff] %v2896_v25 }
 0x917   : > { %v2880_v26 = vpop.f32.mrf.mxu2  ;;  %v2893_v27 = vpop.f32.mrf.mxu3 }
 0x918 PF: > { %s4379_s18 = sld [smem:[#allocation4 + $0x4]] }
 0x91e   : > { %p4380_p4 = scmp.eq.s32.totalorder %s4379_s18, 0 }
 0x91f   : > { %s7074_s28 = sld [smem:[#allocation96_spill]] (!%p4380_p4) }
 0x920   : > { %2903 = sbr.rel (%p4380_p4) target bundleno = 2761 (0xac9), region = 328  ;;  %s7075_s8 = sld [smem:[#allocation98_spill]] (!%p4380_p4) }
 0x921   : > { %s7076_s7 = sld [smem:[#allocation100_spill]] (!%p4380_p4) }
 0x925   : > { %v4701_v28 = vld [vmem:[#allocation43 + $0x18] sm:$0xff]  ;;  %v4700_v30 = vld [vmem:[#allocation43 + $0x10] sm:$0xff]  ;;  %v4699_v32 = vld [vmem:[#allocation43 + $0x8] sm:$0xff]  ;;  %vm2941_vm6 = vcmask 523264  }
 0x926   : > { %v4709_v29 = vld [vmem:[#allocation44 + $0x38] sm:$0xff]  ;;  %2949 = vmatpush.bf16.msra.mxu0 %v4701_v28  ;;  %v4708_v31 = vld [vmem:[#allocation44 + $0x30] sm:$0xff]  ;;  %v4707_v33 = vld [vmem:[#allocation44 + $0x28] sm:$0xff] }
 0x927   : > { %3028 = vmatpush.bf16.msra.mxu1 %v4709_v29  ;;  %v4698_v34 = vld [vmem:[#allocation43] sm:$0xff]  ;;  %v2904_v36 = vld [vmem:[%s1665_s11] sm:$0xf]  ;;  %v4704_v38 = vld [vmem:[#allocation44 + $0x10] sm:$0xff] }
 0x928   : > { %v4706_v35 = vld [vmem:[#allocation44 + $0x20] sm:$0xff]  ;;  %v4705_v37 = vld [vmem:[#allocation44 + $0x18] sm:$0xff]  ;;  %v4703_v39 = vld [vmem:[#allocation44 + $0x8] sm:$0xff] }
 0x929   : > { %v4702_v40 = vld [vmem:[#allocation44] sm:$0xff]  ;;  %v4488_v41 = vld [vmem:[#allocation45 + $0x70] sm:$0xf]  ;;  %v4725_v42 = vld [vmem:[#allocation45 + $0x74] sm:$0xf0] }
 0x92a   : > { %2950 = vmatpush.bf16.msra.mxu0 %v4700_v30  ;;  %v4724_v43 = vld [vmem:[#allocation45 + $0x74] sm:$0xf]  ;;  %v4489_v44 = vor.u32 %v4725_v42, %v4488_v41  ;;  %v4490_v45 = vld [vmem:[#allocation45 + $0x78] sm:$0xf0]  ;;  %v4480_v46 = vld [vmem:[#allocation45 + $0x60] sm:$0xf] }
 0x92b   : > { %3029 = vmatpush.bf16.msra.mxu1 %v4708_v31  ;;  %v4723_v47 = vld [vmem:[#allocation45 + $0x64] sm:$0xf0]  ;;  %v4493_v48 = vor.u32 %v4724_v43, %v4490_v45  ;;  %v4722_v49 = vld [vmem:[#allocation45 + $0x64] sm:$0xf]  ;;  %v4482_v50 = vld [vmem:[#allocation45 + $0x68] sm:$0xf0] }
 0x92c   : > { %3147 = vmatpush.bf16.msra.mxu2 %v4489_v44  ;;  %v4481_v51 = vor.u32 %v4723_v47, %v4480_v46  ;;  %v4485_v52 = vor.u32 %v4722_v49, %v4482_v50  ;;  %v4472_v53 = vld [vmem:[#allocation45 + $0x50] sm:$0xf]  ;;  %v4721_v54 = vld [vmem:[#allocation45 + $0x54] sm:$0xf0]  ;;  %v4720_v55 = vld [vmem:[#allocation45 + $0x54] sm:$0xf] }
 0x92d   : > { %3160 = vmatpush.bf16.msra.mxu3 %v4493_v48  ;;  %v4474_v56 = vld [vmem:[#allocation45 + $0x58] sm:$0xf0]  ;;  %v4473_v57 = vor.u32 %v4721_v54, %v4472_v53  ;;  %v4464_v59 = vld [vmem:[#allocation45 + $0x40] sm:$0xf]  ;;  %v4719_v60 = vld [vmem:[#allocation45 + $0x44] sm:$0xf0] }
 0x92e   : > { %2951 = vmatpush.bf16.msra.mxu0 %v4699_v32  ;;  %v4477_v58 = vor.u32 %v4720_v55, %v4474_v56  ;;  %v4718_v61 = vld [vmem:[#allocation45 + $0x44] sm:$0xf]  ;;  %v4466_v62 = vld [vmem:[#allocation45 + $0x48] sm:$0xf0]  ;;  %v4465_v63 = vor.u32 %v4719_v60, %v4464_v59  ;;  %v4456_v1 = vld [vmem:[#allocation45 + $0x30] sm:$0xf] }
 0x92f   : > { %3030 = vmatpush.bf16.msra.mxu1 %v4707_v33  ;;  %v4469_v0 = vor.u32 %v4718_v61, %v4466_v62  ;;  %v4717_v2 = vld [vmem:[#allocation45 + $0x34] sm:$0xf0]  ;;  %v4716_v3 = vld [vmem:[#allocation45 + $0x34] sm:$0xf]  ;;  %v4458_v4 = vld [vmem:[#allocation45 + $0x38] sm:$0xf0] }
 0x930   : > { %3148 = vmatpush.bf16.msra.mxu2 %v4481_v51  ;;  %v4457_v5 = vor.u32 %v4717_v2, %v4456_v1  ;;  %v4461_v6 = vor.u32 %v4716_v3, %v4458_v4  ;;  %v4448_v7 = vld [vmem:[#allocation45 + $0x20] sm:$0xf]  ;;  %v4715_v8 = vld [vmem:[#allocation45 + $0x24] sm:$0xf0]  ;;  %v4714_v9 = vld [vmem:[#allocation45 + $0x24] sm:$0xf] }
 0x931   : > { %3161 = vmatpush.bf16.msra.mxu3 %v4485_v52  ;;  %v4450_v10 = vld [vmem:[#allocation45 + $0x28] sm:$0xf0]  ;;  %v4449_v11 = vor.u32 %v4715_v8, %v4448_v7  ;;  %v5049_v13 = vld [vmem:[%s7074_s28] ss:$0 sm:$0xff]  ;;  %v4713_v20 = vld [vmem:[#allocation45 + $0x14] sm:$0xf0] }
 0x932   : > { %2952 = vmatpush.bf16.msra.mxu0 %v4698_v34  ;;  %v4453_v12 = vor.u32 %v4714_v9, %v4450_v10  ;;  %v4440_v19 = vld [vmem:[#allocation45 + $0x10] sm:$0xf]  ;;  %v4712_v21 = vld [vmem:[#allocation45 + $0x14] sm:$0xf]  ;;  %v4442_v23 = vld [vmem:[#allocation45 + $0x18] sm:$0xf0] }
 0x933   : > { %3031 = vmatpush.bf16.msra.mxu1 %v4706_v35  ;;  %v4441_v22 = vor.u32 %v4713_v20, %v4440_v19  ;;  %v4445_v24 = vor.u32 %v4712_v21, %v4442_v23  ;;  %v4432_v25 = vld [vmem:[#allocation45] sm:$0xf]  ;;  %v4711_v26 = vld [vmem:[#allocation45 + $0x4] sm:$0xf0]  ;;  %v4710_v27 = vld [vmem:[#allocation45 + $0x4] sm:$0xf] }
 0x934   : > { %3149 = vmatpush.bf16.msra.mxu2 %v4473_v57  ;;  %v4433_v28 = vor.u32 %v4711_v26, %v4432_v25  ;;  %v4434_v29 = vld [vmem:[#allocation45 + $0x8] sm:$0xf0]  ;;  %v5050_v31 = vld [vmem:[%s7075_s8] ss:$0 sm:$0xff]  ;;  %v3043_v42 = vld [vmem:[#allocation2 + $0x8] sm:$0xff] }
 0x935   : > { %4397 = vmatmul.msk.bf16.vlgmr.msra.gmra.mxu0 %vm2941_vm6, %v2904_v36  ;;  %3162 = vmatpush.bf16.msra.mxu3 %v4477_v58  ;;  %v4437_v30 = vor.u32 %v4710_v27, %v4434_v29 }
 0x937   : > { %3032 = vmatpush.bf16.msra.mxu1 %v4705_v37  ;;  %v3061_v37 = vld [vmem:[%s7076_s7] sm:$0x3] }
 0x938   : > { %3150 = vmatpush.bf16.msra.mxu2 %v4465_v63 }
 0x939   : > { %3163 = vmatpush.bf16.msra.mxu3 %v4469_v0 }
 0x93b   : > { %3033 = vmatpush.bf16.msra.mxu1 %v4704_v38  ;;  %v3063_v38 = vperm.slane %v3061_v37, 0 }
 0x93c   : > { %3151 = vmatpush.bf16.msra.mxu2 %v4457_v5 }
 0x93d   : > { %3164 = vmatpush.bf16.msra.mxu3 %v4461_v6 }
 0x93f   : > { %3034 = vmatpush.bf16.msra.mxu1 %v4703_v39  ;;  %v3064_v39 = vperm.slane %v3061_v37, 1 }
 0x940   : > { %3152 = vmatpush.bf16.msra.mxu2 %v4449_v11 }
 0x941   : > { %3165 = vmatpush.bf16.msra.mxu3 %v4453_v12 }
 0x943   : > { %3035 = vmatpush.bf16.msra.mxu1 %v4702_v40  ;;  %v3042_v40 = vld [vmem:[#allocation2] sm:$0xff] }
 0x944   : > { %3153 = vmatpush.bf16.msra.mxu2 %v4441_v22 }
 0x945   : > { %3166 = vmatpush.bf16.msra.mxu3 %v4445_v24 }
 0x948   : > { %3154 = vmatpush.bf16.msra.mxu2 %v4433_v28 }
 0x949   : > { %3167 = vmatpush.bf16.msra.mxu3 %v4437_v30 }
 0x9b2   : > { %v2954_v14 = vpop.f32.mrf.mxu0 }
 0x9b3   : > { %v2955_v15 = vadd.f32 %v5049_v13, %v2954_v14 }
 0x9b5   : > { %v2958_v16 = vmax.f32 %v2955_v15, 0.0 }
 0x9b7   : > { %v2959_v17 = vpack.c.bf16 %v2958_v16, %v2958_v16 }
 0x9b9   : > { %3036 = vmatmul.bf16.vlgmr.msra.gmra.mxu1 %v2959_v17 }
 0x9ba   : > { %v2956_v18 = vpop.f32.mrf.mxu0 }
 0xa36   : > { %v3037_v32 = vpop.f32.mrf.mxu1 }
 0xa37   : > { %v3038_v33 = vadd.f32 %v5050_v31, %v3037_v32 }
 0xa39   : > { %v3041_v34 = vmax.f32 %v3038_v33, 0.0 }
 0xa3b   : > { %v3044_v35 = vpack.c.bf16 %v3041_v34, %v3041_v34 }
 0xa3d   : > { %3155 = vmatmul.bf16.vlgmr.msra.gmra.mxu2 %v3044_v35  ;;  %3168 = vmatmul.bf16.vlgmr.msra.gmra.mxu3 %v3044_v35 }
 0xa3e   : > { %v3039_v36 = vpop.f32.mrf.mxu1 }
 0xac0   : > { %v3156_v41 = vpop.f32.mrf.mxu2  ;;  %v3169_v43 = vpop.f32.mrf.mxu3 }
 0xac1   : > { %v3157_v44 = vadd.f32 %v3156_v41, %v3063_v38  ;;  %v3170_v45 = vadd.f32 %v3169_v43, %v3064_v39 }
 0xac3   : > { %v3173_v46 = vadd.f32 %v3157_v44, %v3042_v40  ;;  %v3174_v47 = vadd.f32 %v3170_v45, %v3043_v42 }
 0xac5   : > { %3175 = vst [vmem:[#allocation2] sm:$0xff] %v3173_v46 }
 0xac6   : > { %3176 = vst [vmem:[#allocation2 + $0x8] sm:$0xff] %v3174_v47 }
 0xac8   : > { %v3158_v48 = vpop.f32.mrf.mxu2  ;;  %v3171_v49 = vpop.f32.mrf.mxu3 }
 0xac9 PF: > { %v4733_v50 = vld [vmem:[#allocation46 + $0x38] sm:$0xff]  ;;  %v4732_v52 = vld [vmem:[#allocation46 + $0x30] sm:$0xff]  ;;  %v4731_v54 = vld [vmem:[#allocation46 + $0x28] sm:$0xff]  ;;  %s7077_s11 = sld [smem:[#allocation102_spill]]  ;;  %vm3435_vm7 = vcmask 7168  }
 0xaca   : > { %v4741_v51 = vld [vmem:[#allocation46 + $0x78] sm:$0xff]  ;;  %3313 = vmatpush.bf16.msra.mxu0 %v4733_v50  ;;  %v4740_v53 = vld [vmem:[#allocation46 + $0x70] sm:$0xff]  ;;  %v4739_v55 = vld [vmem:[#allocation46 + $0x68] sm:$0xff]  ;;  %s7078_s15 = sld [smem:[#allocation103_spill]] }
 0xacb   : > { %3326 = vmatpush.bf16.msra.mxu1 %v4741_v51  ;;  %v4749_v56 = vld [vmem:[#allocation48 + $0x38] sm:$0xff]  ;;  %v4748_v57 = vld [vmem:[#allocation48 + $0x30] sm:$0xff]  ;;  %v4730_v58 = vld [vmem:[#allocation46 + $0x20] sm:$0xff]  ;;  %s7079_s27 = sld [smem:[#allocation104_spill]] }
 0xacc   : > { %3409 = vmatpush.bf16.msra.mxu2 %v4749_v56  ;;  %v4738_v59 = vld [vmem:[#allocation46 + $0x60] sm:$0xff]  ;;  %v4747_v60 = vld [vmem:[#allocation48 + $0x28] sm:$0xff]  ;;  %v4729_v61 = vld [vmem:[#allocation46 + $0x18] sm:$0xff] }
 0xacd   : > { %v4737_v62 = vld [vmem:[#allocation46 + $0x58] sm:$0xff]  ;;  %v4746_v63 = vld [vmem:[#allocation48 + $0x20] sm:$0xff]  ;;  %v4728_v0 = vld [vmem:[#allocation46 + $0x10] sm:$0xff] }
 0xace   : > { %3314 = vmatpush.bf16.msra.mxu0 %v4732_v52  ;;  %v4736_v1 = vld [vmem:[#allocation46 + $0x50] sm:$0xff]  ;;  %v4745_v2 = vld [vmem:[#allocation48 + $0x18] sm:$0xff]  ;;  %v4727_v3 = vld [vmem:[#allocation46 + $0x8] sm:$0xff] }
 0xacf   : > { %3327 = vmatpush.bf16.msra.mxu1 %v4740_v53  ;;  %v4735_v4 = vld [vmem:[#allocation46 + $0x48] sm:$0xff]  ;;  %v4744_v5 = vld [vmem:[#allocation48 + $0x10] sm:$0xff]  ;;  %v4726_v6 = vld [vmem:[#allocation46] sm:$0xff] }
 0xad0   : > { %3410 = vmatpush.bf16.msra.mxu2 %v4748_v57  ;;  %v4734_v7 = vld [vmem:[#allocation46 + $0x40] sm:$0xff]  ;;  %v3177_v8 = vld [vmem:[#allocation2] sm:$0xff]  ;;  %v4743_v12 = vld [vmem:[#allocation48 + $0x8] sm:$0xff] }
 0xad1   : > { %v3178_v9 = vld [vmem:[#allocation2 + $0x8] sm:$0xff]  ;;  %v3179_v10 = vpack.c.bf16 %v3177_v8, %v3177_v8  ;;  %v5051_v14 = vld [vmem:[%s7077_s11] ss:$0 sm:$0xff]  ;;  %v5054_v30 = vld [vmem:[#allocation5] ss:$0 sm:$0xff] }
 0xad2   : > { %3315 = vmatpush.bf16.msra.mxu0 %v4731_v54  ;;  %v3180_v11 = vpack.c.bf16 %v3178_v9, %v3178_v9  ;;  %v4742_v13 = vld [vmem:[#allocation48] sm:$0xff]  ;;  %v5052_v23 = vld [vmem:[%s7078_s15] ss:$0 sm:$0xff] }
 0xad3   : > { %3328 = vmatpush.bf16.msra.mxu1 %v4739_v55  ;;  %v5053_v26 = vld [vmem:[%s7079_s27] ss:$0 sm:$0xff] }
 0xad4   : > { %3411 = vmatpush.bf16.msra.mxu2 %v4747_v60 }
 0xad6   : > { %3316 = vmatpush.bf16.msra.mxu0 %v4730_v58 }
 0xad7   : > { %3329 = vmatpush.bf16.msra.mxu1 %v4738_v59 }
 0xad8   : > { %3412 = vmatpush.bf16.msra.mxu2 %v4746_v63 }
 0xada   : > { %3317 = vmatpush.bf16.msra.mxu0 %v4729_v61 }
 0xadb   : > { %3330 = vmatpush.bf16.msra.mxu1 %v4737_v62 }
 0xadc   : > { %3413 = vmatpush.bf16.msra.mxu2 %v4745_v2 }
 0xade   : > { %3318 = vmatpush.bf16.msra.mxu0 %v4728_v0 }
 0xadf   : > { %3331 = vmatpush.bf16.msra.mxu1 %v4736_v1 }
 0xae0   : > { %3414 = vmatpush.bf16.msra.mxu2 %v4744_v5 }
 0xae2   : > { %3319 = vmatpush.bf16.msra.mxu0 %v4727_v3 }
 0xae3   : > { %3332 = vmatpush.bf16.msra.mxu1 %v4735_v4 }
 0xae4   : > { %3415 = vmatpush.bf16.msra.mxu2 %v4743_v12 }
 0xae6   : > { %3320 = vmatpush.bf16.msra.mxu0 %v4726_v6 }
 0xae7   : > { %3333 = vmatpush.bf16.msra.mxu1 %v4734_v7 }
 0xae8   : > { %3416 = vmatpush.bf16.msra.mxu2 %v4742_v13 }
 0xae9   : > { %3321 = vmatmul.bf16.vlgmr.msra.gmra.mxu0 %v3179_v10 }
 0xaea   : > { %3334 = vmatmul.bf16.vlgmr.msra.gmra.mxu1 %v3180_v11 }
 0xb66   : > { %v3322_v15 = vpop.f32.mrf.mxu0 }
 0xb67   : > { %v3335_v16 = vpop.f32.mrf.mxu1  ;;  %v3323_v17 = vadd.f32 %v5051_v14, %v3322_v15 }
 0xb69   : > { %v3336_v18 = vadd.f32 %v3335_v16, %v3323_v17 }
 0xb6b   : > { %v3339_v19 = vmax.f32 %v3336_v18, 0.0 }
 0xb6d   : > { %v3340_v20 = vpack.c.bf16 %v3339_v19, %v3339_v19 }
 0xb6e   : > { %v3324_v21 = vpop.f32.mrf.mxu0 }
 0xb6f   : > { %v3337_v22 = vpop.f32.mrf.mxu1  ;;  %3417 = vmatmul.bf16.vlgmr.msra.gmra.mxu2 %v3340_v20 }
 0xbf2   : > { %v3418_v24 = vpop.f32.mrf.mxu2 }
 0xbf3   : > { %v3419_v25 = vadd.f32 %v5052_v23, %v3418_v24 }
 0xbf5   : > { %v3422_v27 = vmax.f32 %v3419_v25, 0.0 }
 0xbf7   : > { %v3427_v28 = vmul.f32 %v5053_v26, %v3422_v27 }
 0xbf9   : > { %3428 = vadd.xlane.f32.xlu0 %v3427_v28 }
 0xbfa   : > { %v3420_v29 = vpop.f32.mrf.mxu2 }
 0xc6c   : > { %v3429_v31 = vpop.xlane.xlu0 %3428 }
 0xc6d   : > { %v3434_v32 = vadd.f32 %v5054_v30, %v3429_v31 }
 0xc6f   : > { %3436 = vst.msk [vmem:[%s6917_s16] sm:$0xff] %vm3435_vm7, %v3434_v32 }
 0xc70 PF: > { %s7080_s27 = sld [smem:[#allocation106_spill]]  ;;  %s7082_s0 = smov %s6055_s5 }
 0xc71   : > { %s7081_s14 = sld [smem:[#allocation107_spill]]  ;;  %s7083_s5 = smov %s6059_s12 }
 0xc76   : > { %p118_p5 = scmp.ge.s32.totalorder %s7080_s27, 4  }
 0xc77   : > { %s7084_s12 = smov %s7081_s14 }
 0xc78   :  { %120 = sbr.rel (!%p118_p5) target bundleno = 110 (0x6e), region = 432 }
 0xc7d   :  { %3456 = vsyncpa [#allocation7], 1 }
 0xc7e   :  { %3458 = vsyncpa [#allocation7 + $0x1], 1 }
 0xc7f   :  { %3459 = vsyncpa [#allocation9], 1 }
 0xc80   :  { %3460 = vsyncpa [#allocation12], 1 }
 0xc81   :  { %3461 = vsyncpa [#allocation15], 1 }
 0xc82   :  { %3462 = vsyncpa [#allocation18], 1 }
 0xc83   :  { %3463 = vsyncpa [#allocation21], 1 }
 0xc84   :  { %3464 = vsyncpa [#allocation24], 1 }
 0xc85   :  { %3465 = vsyncpa [#allocation27], 1 }
 0xc86   :  { %3467 = vsyncpa [#allocation27 + $0x1], 1 }
 0xc87   :  { %3468 = vsyncpa [#allocation30], 1 }
 0xc88   :  { %3469 = vsyncpa [#allocation33], 1 }
 0xc89   :  { %3470 = vsyncpa [#allocation36], 1 }
 0xc8a   :  { %3471 = vsyncpa [#allocation47], 1 }

</bundles_post_ra>
